<compile_context>
chip_gen: v7x
topology: tpu7x:2x2x1
jax: 0.10.0
libtpu: 0.0.40
codegen_flags: <defaults>
</compile_context>

<pallas_src>
import jax
import jax.numpy as jnp
from jax.experimental import pallas as pl
from jax.experimental.pallas import tpu as pltpu


# ----------------------------------------------------------------------------
# Config / parameter init (mirrors the PyTorch module structure, scaled down)
# ----------------------------------------------------------------------------
class Cfg:
    def __init__(self, nb_code=64, code_dim=32, output_emb_width=32, down_t=2,
                 stride_t=2, width=32, depth=2, dilation_growth_rate=3, in_dim=3):
        self.nb_code = nb_code
        self.code_dim = code_dim
        self.output_emb_width = output_emb_width
        self.down_t = down_t
        self.stride_t = stride_t
        self.width = width
        self.depth = depth
        self.dilation_growth_rate = dilation_growth_rate
        self.in_dim = in_dim


def init_params(key, cfg):
    keys = list(jax.random.split(key, 512))
    kit = iter(keys)

    def conv(cout, cin, k):
        s = 1.0 / float(cin * k) ** 0.5
        w = jax.random.uniform(next(kit), (cout, cin, k), jnp.float32, -s, s)
        b = jax.random.uniform(next(kit), (cout,), jnp.float32, -s, s)
        return {"w": w, "b": b}

    def resblocks():
        return [{"c1": conv(cfg.width, cfg.width, 3),
                 "c2": conv(cfg.width, cfg.width, 1)} for _ in range(cfg.depth)]

    enc = {
        "in": conv(cfg.width, cfg.in_dim, 3),
        "down": [{"down": conv(cfg.width, cfg.width, cfg.stride_t * 2),
                  "res": resblocks()} for _ in range(cfg.down_t)],
        "out": conv(cfg.output_emb_width, cfg.width, 3),
    }
    dec = {
        "in": conv(cfg.width, cfg.output_emb_width, 3),
        "up": [{"res": resblocks(),
                "conv": conv(cfg.width, cfg.width, 3)} for _ in range(cfg.down_t)],
        "outa": conv(cfg.width, cfg.width, 3),
        "outb": conv(cfg.in_dim, cfg.width, 3),
    }
    # Synthetic codebook (deterministic) instead of the zero/EMA-trained buffer.
    codebook = 0.1 * jax.random.normal(next(kit), (cfg.nb_code, cfg.code_dim), jnp.float32)
    return {"enc": enc, "dec": dec, "codebook": codebook}


# ----------------------------------------------------------------------------
# One-time parameter preparation: static execution plan + flat array list.
# Conv weights -> (K, Cin, Cout) bf16, biases -> (1, Cout) f32, codebook passed
# both as (Kc, D) and pre-transposed (D, Kc) together with its squared norms.
# ----------------------------------------------------------------------------
def prepare_params(params, cfg, matmul_dtype=jnp.bfloat16):
    # Resnet1D uses reverse_dilation=True in both encoder and decoder.
    dils = list(reversed([cfg.dilation_growth_rate ** i for i in range(cfg.depth)]))
    flat, plan = [], []

    def add_conv(p, stride=1, dilation=1, padding=0, pre_relu=False, post_relu=False):
        cout, _, k = p["w"].shape
        w = jnp.transpose(p["w"], (2, 1, 0)).astype(matmul_dtype)   # (K, Cin, Cout)
        b = p["b"].reshape(1, cout).astype(jnp.float32)
        wi = len(flat); flat.append(w)
        bi = len(flat); flat.append(b)
        plan.append(("conv", wi, bi, k, stride, dilation, padding, pre_relu, post_relu))

    def add_res(res_params):
        # ResConv1DBlock (pre-activation): h = conv2(relu(conv1(relu(x)))); x = x + h
        for rp, d in zip(res_params, dils):
            plan.append(("res_save",))
            add_conv(rp["c1"], 1, d, d, pre_relu=True)
            add_conv(rp["c2"], 1, 1, 0, pre_relu=True)
            plan.append(("res_add",))

    enc, dec = params["enc"], params["dec"]
    add_conv(enc["in"], 1, 1, 1, post_relu=True)
    for blk in enc["down"]:
        add_conv(blk["down"], cfg.stride_t, 1, cfg.stride_t // 2)
        add_res(blk["res"])
    add_conv(enc["out"], 1, 1, 1)

    plan.append(("quantize",))

    add_conv(dec["in"], 1, 1, 1, post_relu=True)
    for blk in dec["up"]:
        add_res(blk["res"])
        plan.append(("upsample",))
        add_conv(blk["conv"], 1, 1, 1)
    add_conv(dec["outa"], 1, 1, 1, post_relu=True)
    add_conv(dec["outb"], 1, 1, 1)

    cb = params["codebook"].astype(jnp.float32)
    cb_i = len(flat); flat.append(cb)                                         # (Kc, D)
    cbT_i = len(flat); flat.append(jnp.transpose(cb, (1, 0)))                 # (D, Kc)
    c2_i = len(flat)
    flat.append(jnp.transpose(jnp.sum(cb * cb, axis=1, keepdims=True), (1, 0)))  # (1, Kc)
    return plan, (cb_i, cbT_i, c2_i), flat


# ----------------------------------------------------------------------------
# Fused kernel
# ----------------------------------------------------------------------------
def _make_kernel(plan, qidx, n_params, N, t_enc, code_dim, nb_code):
    cb_i, cbT_i, c2_i = qidx

    def kernel(*refs):
        x_ref = refs[0]
        w_refs = refs[1:1 + n_params]
        out_ref, loss_ref, perp_ref = refs[1 + n_params:4 + n_params]
        pad_ref = refs[4 + n_params]          # zero-padded activation scratch (VMEM)

        # Conv1d with in-kernel im2col: write padded activation to VMEM scratch,
        # accumulate K shifted static slices through K small MXU GEMMs.
        def conv_apply(x, wi, bi, K, stride, dilation, padding, pre_relu, post_relu):
            t_in, cin = x.shape
            w_ref, b_ref = w_refs[wi], w_refs[bi]
            cout = b_ref.shape[1]
            if pre_relu:
                x = jnp.maximum(x, 0.0)
            if K == 1 and stride == 1 and padding == 0:
                y = jnp.dot(x.astype(w_ref.dtype), w_ref[0],
                            preferred_element_type=jnp.float32) + b_ref[...]
            else:
                t_pad = t_in + 2 * padding
                t_full = t_pad - dilation * (K - 1)          # stride-1 output length
                pad_ref[...] = jnp.zeros_like(pad_ref)
                pad_ref[padding:padding + t_in, 0:cin] = x
                acc = jnp.zeros((t_full, cout), jnp.float32)
                for k in range(K):
                    xk = pad_ref[k * dilation:k * dilation + t_full, 0:cin]
                    acc = acc + jnp.dot(xk.astype(w_ref.dtype), w_ref[k],
                                        preferred_element_type=jnp.float32)
                y = acc + b_ref[...]
                if stride > 1:
                    # strided downsample fused as a 0/1 row-selection matmul
                    t_out = (t_in + 2 * padding - dilation * (K - 1) - 1) // stride + 1
                    r = jax.lax.broadcasted_iota(jnp.int32, (t_out, t_full), 0)
                    c = jax.lax.broadcasted_iota(jnp.int32, (t_out, t_full), 1)
                    sel = (c == stride * r).astype(jnp.float32)
                    y = jnp.dot(sel, y, preferred_element_type=jnp.float32)
            if post_relu:
                y = jnp.maximum(y, 0.0)
            return y

        # nn.Upsample(scale_factor=2, mode='nearest') fused as a 0/1 matmul
        def upsample2(x):
            t_in, _ = x.shape
            r = jax.lax.broadcasted_iota(jnp.int32, (2 * t_in, t_in), 0)
            c = jax.lax.broadcasted_iota(jnp.int32, (2 * t_in, t_in), 1)
            up = jnp.logical_or(r == 2 * c, r == 2 * c + 1).astype(jnp.float32)
            return jnp.dot(up, x, preferred_element_type=jnp.float32)

        cb = w_refs[cb_i][...]        # (Kc, D)
        cbT = w_refs[cbT_i][...]      # (D, Kc) pre-transposed (no in-kernel XLU transpose)
        c2 = w_refs[c2_i][...]        # (1, Kc) codebook squared norms

        se_sum = jnp.zeros((1, 1), jnp.float32)
        counts = jnp.zeros((1, nb_code), jnp.float32)

        for b in range(N):            # tiny static batch: unrolled inside the kernel
            h = x_ref[b].astype(jnp.float32)       # (T, in_dim)
            stack = []
            for op in plan:
                tag = op[0]
                if tag == "conv":
                    _, wi, bi, K, s, d, p, prer, postr = op
                    h = conv_apply(h, wi, bi, K, s, d, p, prer, postr)
                elif tag == "res_save":
                    stack.append(h)
                elif tag == "res_add":
                    h = stack.pop() + h            # fused residual add
                elif tag == "upsample":
                    h = upsample2(h)
                else:  # "quantize": EMA-reset quantizer, eval-mode forward (f32)
                    x_enc = h                                      # (t_enc, D)
                    x2 = jnp.sum(x_enc * x_enc, axis=-1, keepdims=True)
                    dist = x2 - 2.0 * jnp.dot(x_enc, cbT,
                                              preferred_element_type=jnp.float32) + c2
                    dmin = jnp.min(dist, axis=-1, keepdims=True)
                    iota = jax.lax.broadcasted_iota(jnp.int32, dist.shape, 1)
                    idx = jnp.min(jnp.where(dist <= dmin, iota, nb_code),
                                  axis=-1, keepdims=True)          # first min (torch.min)
                    onehot = (iota == idx).astype(jnp.float32)     # (t_enc, Kc)
                    x_d = jnp.dot(onehot, cb, preferred_element_type=jnp.float32)
                    diff = x_enc - x_d
                    se_sum = se_sum + jnp.sum(jnp.sum(diff * diff, axis=1, keepdims=True),
                                              axis=0, keepdims=True)
                    counts = counts + jnp.sum(onehot, axis=0, keepdims=True)
                    h = x_d                        # straight-through: forward value = x_d
            out_ref[b] = h.astype(out_ref.dtype)

        # commitment loss = mean((x - x_d)^2) over all N*t_enc*D elements
        loss_ref[...] = se_sum / float(N * t_enc * code_dim)
        # perplexity = exp(-sum p log(p + 1e-7)), p = code histogram
        prob = counts / float(N * t_enc)
        ent = jnp.sum(prob * jnp.log(prob + 1e-7), axis=1, keepdims=True)
        perp_ref[...] = jnp.exp(-ent)

    return kernel


# ----------------------------------------------------------------------------
# Driver: single pallas_call for the whole forward
# ----------------------------------------------------------------------------
def vqvae_forward_fused(plan, qidx, flat, x, cfg):
    """x: (N, T, 3) f32 -> (x_out (N, T, 3), commit_loss, perplexity)."""
    N, T, in_dim = x.shape

    # Static walk of the plan: encoder length, final length, scratch sizing.
    t_cur, t_enc, max_tpad, max_cin = T, None, 8, max(in_dim, 8)
    for op in plan:
        if op[0] == "conv":
            _, wi, _, K, s, d, p, _, _ = op
            max_cin = max(max_cin, int(flat[wi].shape[1]))
            if not (K == 1 and p == 0 and s == 1):
                max_tpad = max(max_tpad, t_cur + 2 * p)
            t_cur = (t_cur + 2 * p - d * (K - 1) - 1) // s + 1
        elif op[0] == "upsample":
            t_cur *= 2
        elif op[0] == "quantize":
            t_enc = t_cur
    t_out = t_cur
    pad_rows = ((max_tpad + 7) // 8) * 8           # sublane-align the scratch

    kernel = _make_kernel(plan, qidx, len(flat), N, t_enc, cfg.code_dim, cfg.nb_code)

    def _spec(shape):
        z = (0,) * len(shape)
        return pl.BlockSpec(shape, lambda i, _z=z: _z)

    out, loss, perp = pl.pallas_call(
        kernel,
        out_shape=(
            jax.ShapeDtypeStruct((N, t_out, cfg.in_dim), jnp.float32),
            jax.ShapeDtypeStruct((1, 1), jnp.float32),
            jax.ShapeDtypeStruct((1, 1), jnp.float32),
        ),
        grid=(1,),
        in_specs=[_spec(tuple(x.shape))] + [_spec(tuple(a.shape)) for a in flat],
        out_specs=(
            _spec((N, t_out, cfg.in_dim)),
            _spec((1, 1)),
            _spec((1, 1)),
        ),
        scratch_shapes=[pltpu.VMEM((pad_rows, max_cin), jnp.float32)],
        compiler_params=pltpu.CompilerParams(dimension_semantics=("arbitrary",)),
    )(x, *flat)
    return out, loss[0, 0], perp[0, 0]


# ----------------------------------------------------------------------------
if __name__ == "__main__":
    cfg = Cfg(nb_code=64, code_dim=32, output_emb_width=32, down_t=2,
              stride_t=2, width=32, depth=2, dilation_growth_rate=3, in_dim=3)

    key = jax.random.PRNGKey(0)
    pkey, xkey = jax.random.split(key)
    params = init_params(pkey, cfg)

    N, T = 2, 16
    x = jax.random.normal(xkey, (N, T, cfg.in_dim), jnp.float32)

    # One-time parameter preparation (weight transpose/cast, codebook transpose).
    plan, qidx, flat = prepare_params(params, cfg)

    x_out, loss, perplexity = vqvae_forward_fused(plan, qidx, flat, x, cfg)
    jax.block_until_ready((x_out, loss, perplexity))

    assert x_out.shape == (N, T, cfg.in_dim)
    assert loss.shape == () and perplexity.shape == ()
    print("KERNEL_OK")
</pallas_src>

<mosaic_0001>
module attributes {stable_mosaic.version = 11 : i64} {
  func.func @kernel(%arg0: i32, %arg1: memref<2x16x3xf32, #tpu.memory_space<vmem>>, %arg2: memref<3x3x32xbf16, #tpu.memory_space<vmem>>, %arg3: memref<1x32xf32, #tpu.memory_space<vmem>>, %arg4: memref<4x32x32xbf16, #tpu.memory_space<vmem>>, %arg5: memref<1x32xf32, #tpu.memory_space<vmem>>, %arg6: memref<3x32x32xbf16, #tpu.memory_space<vmem>>, %arg7: memref<1x32xf32, #tpu.memory_space<vmem>>, %arg8: memref<1x32x32xbf16, #tpu.memory_space<vmem>>, %arg9: memref<1x32xf32, #tpu.memory_space<vmem>>, %arg10: memref<3x32x32xbf16, #tpu.memory_space<vmem>>, %arg11: memref<1x32xf32, #tpu.memory_space<vmem>>, %arg12: memref<1x32x32xbf16, #tpu.memory_space<vmem>>, %arg13: memref<1x32xf32, #tpu.memory_space<vmem>>, %arg14: memref<4x32x32xbf16, #tpu.memory_space<vmem>>, %arg15: memref<1x32xf32, #tpu.memory_space<vmem>>, %arg16: memref<3x32x32xbf16, #tpu.memory_space<vmem>>, %arg17: memref<1x32xf32, #tpu.memory_space<vmem>>, %arg18: memref<1x32x32xbf16, #tpu.memory_space<vmem>>, %arg19: memref<1x32xf32, #tpu.memory_space<vmem>>, %arg20: memref<3x32x32xbf16, #tpu.memory_space<vmem>>, %arg21: memref<1x32xf32, #tpu.memory_space<vmem>>, %arg22: memref<1x32x32xbf16, #tpu.memory_space<vmem>>, %arg23: memref<1x32xf32, #tpu.memory_space<vmem>>, %arg24: memref<3x32x32xbf16, #tpu.memory_space<vmem>>, %arg25: memref<1x32xf32, #tpu.memory_space<vmem>>, %arg26: memref<3x32x32xbf16, #tpu.memory_space<vmem>>, %arg27: memref<1x32xf32, #tpu.memory_space<vmem>>, %arg28: memref<3x32x32xbf16, #tpu.memory_space<vmem>>, %arg29: memref<1x32xf32, #tpu.memory_space<vmem>>, %arg30: memref<1x32x32xbf16, #tpu.memory_space<vmem>>, %arg31: memref<1x32xf32, #tpu.memory_space<vmem>>, %arg32: memref<3x32x32xbf16, #tpu.memory_space<vmem>>, %arg33: memref<1x32xf32, #tpu.memory_space<vmem>>, %arg34: memref<1x32x32xbf16, #tpu.memory_space<vmem>>, %arg35: memref<1x32xf32, #tpu.memory_space<vmem>>, %arg36: memref<3x32x32xbf16, #tpu.memory_space<vmem>>, %arg37: memref<1x32xf32, #tpu.memory_space<vmem>>, %arg38: memref<3x32x32xbf16, #tpu.memory_space<vmem>>, %arg39: memref<1x32xf32, #tpu.memory_space<vmem>>, %arg40: memref<1x32x32xbf16, #tpu.memory_space<vmem>>, %arg41: memref<1x32xf32, #tpu.memory_space<vmem>>, %arg42: memref<3x32x32xbf16, #tpu.memory_space<vmem>>, %arg43: memref<1x32xf32, #tpu.memory_space<vmem>>, %arg44: memref<1x32x32xbf16, #tpu.memory_space<vmem>>, %arg45: memref<1x32xf32, #tpu.memory_space<vmem>>, %arg46: memref<3x32x32xbf16, #tpu.memory_space<vmem>>, %arg47: memref<1x32xf32, #tpu.memory_space<vmem>>, %arg48: memref<3x32x32xbf16, #tpu.memory_space<vmem>>, %arg49: memref<1x32xf32, #tpu.memory_space<vmem>>, %arg50: memref<3x32x3xbf16, #tpu.memory_space<vmem>>, %arg51: memref<1x3xf32, #tpu.memory_space<vmem>>, %arg52: memref<64x32xf32, #tpu.memory_space<vmem>>, %arg53: memref<32x64xf32, #tpu.memory_space<vmem>>, %arg54: memref<1x64xf32, #tpu.memory_space<vmem>>, %arg55: memref<2x16x3xf32, #tpu.memory_space<vmem>>, %arg56: memref<1x1xf32, #tpu.memory_space<vmem>>, %arg57: memref<1x1xf32, #tpu.memory_space<vmem>>, %arg58: memref<24x32xf32, #tpu.memory_space<vmem>>) attributes {dimension_semantics = [#tpu.dimension_semantics<arbitrary>], iteration_bounds = array<i64: 1>, scalar_prefetch = 0 : i64, scratch_operands = 1 : i64, tpu.core_type = #tpu.core_type<tc>, window_params = [{pipeline_mode = #tpu.pipeline_mode<synchronous>, transform_indices = @transform_0, window_bounds = array<i64: 2, 16, 3>}, {pipeline_mode = #tpu.pipeline_mode<synchronous>, transform_indices = @transform_1, window_bounds = array<i64: 3, 3, 32>}, {pipeline_mode = #tpu.pipeline_mode<synchronous>, transform_indices = @transform_2, window_bounds = array<i64: 1, 32>}, {pipeline_mode = #tpu.pipeline_mode<synchronous>, transform_indices = @transform_3, window_bounds = array<i64: 4, 32, 32>}, {pipeline_mode = #tpu.pipeline_mode<synchronous>, transform_indices = @transform_4, window_bounds = array<i64: 1, 32>}, {pipeline_mode = #tpu.pipeline_mode<synchronous>, transform_indices = @transform_5, window_bounds = array<i64: 3, 32, 32>}, {pipeline_mode = #tpu.pipeline_mode<synchronous>, transform_indices = @transform_6, window_bounds = array<i64: 1, 32>}, {pipeline_mode = #tpu.pipeline_mode<synchronous>, transform_indices = @transform_7, window_bounds = array<i64: 1, 32, 32>}, {pipeline_mode = #tpu.pipeline_mode<synchronous>, transform_indices = @transform_8, window_bounds = array<i64: 1, 32>}, {pipeline_mode = #tpu.pipeline_mode<synchronous>, transform_indices = @transform_9, window_bounds = array<i64: 3, 32, 32>}, {pipeline_mode = #tpu.pipeline_mode<synchronous>, transform_indices = @transform_10, window_bounds = array<i64: 1, 32>}, {pipeline_mode = #tpu.pipeline_mode<synchronous>, transform_indices = @transform_11, window_bounds = array<i64: 1, 32, 32>}, {pipeline_mode = #tpu.pipeline_mode<synchronous>, transform_indices = @transform_12, window_bounds = array<i64: 1, 32>}, {pipeline_mode = #tpu.pipeline_mode<synchronous>, transform_indices = @transform_13, window_bounds = array<i64: 4, 32, 32>}, {pipeline_mode = #tpu.pipeline_mode<synchronous>, transform_indices = @transform_14, window_bounds = array<i64: 1, 32>}, {pipeline_mode = #tpu.pipeline_mode<synchronous>, transform_indices = @transform_15, window_bounds = array<i64: 3, 32, 32>}, {pipeline_mode = #tpu.pipeline_mode<synchronous>, transform_indices = @transform_16, window_bounds = array<i64: 1, 32>}, {pipeline_mode = #tpu.pipeline_mode<synchronous>, transform_indices = @transform_17, window_bounds = array<i64: 1, 32, 32>}, {pipeline_mode = #tpu.pipeline_mode<synchronous>, transform_indices = @transform_18, window_bounds = array<i64: 1, 32>}, {pipeline_mode = #tpu.pipeline_mode<synchronous>, transform_indices = @transform_19, window_bounds = array<i64: 3, 32, 32>}, {pipeline_mode = #tpu.pipeline_mode<synchronous>, transform_indices = @transform_20, window_bounds = array<i64: 1, 32>}, {pipeline_mode = #tpu.pipeline_mode<synchronous>, transform_indices = @transform_21, window_bounds = array<i64: 1, 32, 32>}, {pipeline_mode = #tpu.pipeline_mode<synchronous>, transform_indices = @transform_22, window_bounds = array<i64: 1, 32>}, {pipeline_mode = #tpu.pipeline_mode<synchronous>, transform_indices = @transform_23, window_bounds = array<i64: 3, 32, 32>}, {pipeline_mode = #tpu.pipeline_mode<synchronous>, transform_indices = @transform_24, window_bounds = array<i64: 1, 32>}, {pipeline_mode = #tpu.pipeline_mode<synchronous>, transform_indices = @transform_25, window_bounds = array<i64: 3, 32, 32>}, {pipeline_mode = #tpu.pipeline_mode<synchronous>, transform_indices = @transform_26, window_bounds = array<i64: 1, 32>}, {pipeline_mode = #tpu.pipeline_mode<synchronous>, transform_indices = @transform_27, window_bounds = array<i64: 3, 32, 32>}, {pipeline_mode = #tpu.pipeline_mode<synchronous>, transform_indices = @transform_28, window_bounds = array<i64: 1, 32>}, {pipeline_mode = #tpu.pipeline_mode<synchronous>, transform_indices = @transform_29, window_bounds = array<i64: 1, 32, 32>}, {pipeline_mode = #tpu.pipeline_mode<synchronous>, transform_indices = @transform_30, window_bounds = array<i64: 1, 32>}, {pipeline_mode = #tpu.pipeline_mode<synchronous>, transform_indices = @transform_31, window_bounds = array<i64: 3, 32, 32>}, {pipeline_mode = #tpu.pipeline_mode<synchronous>, transform_indices = @transform_32, window_bounds = array<i64: 1, 32>}, {pipeline_mode = #tpu.pipeline_mode<synchronous>, transform_indices = @transform_33, window_bounds = array<i64: 1, 32, 32>}, {pipeline_mode = #tpu.pipeline_mode<synchronous>, transform_indices = @transform_34, window_bounds = array<i64: 1, 32>}, {pipeline_mode = #tpu.pipeline_mode<synchronous>, transform_indices = @transform_35, window_bounds = array<i64: 3, 32, 32>}, {pipeline_mode = #tpu.pipeline_mode<synchronous>, transform_indices = @transform_36, window_bounds = array<i64: 1, 32>}, {pipeline_mode = #tpu.pipeline_mode<synchronous>, transform_indices = @transform_37, window_bounds = array<i64: 3, 32, 32>}, {pipeline_mode = #tpu.pipeline_mode<synchronous>, transform_indices = @transform_38, window_bounds = array<i64: 1, 32>}, {pipeline_mode = #tpu.pipeline_mode<synchronous>, transform_indices = @transform_39, window_bounds = array<i64: 1, 32, 32>}, {pipeline_mode = #tpu.pipeline_mode<synchronous>, transform_indices = @transform_40, window_bounds = array<i64: 1, 32>}, {pipeline_mode = #tpu.pipeline_mode<synchronous>, transform_indices = @transform_41, window_bounds = array<i64: 3, 32, 32>}, {pipeline_mode = #tpu.pipeline_mode<synchronous>, transform_indices = @transform_42, window_bounds = array<i64: 1, 32>}, {pipeline_mode = #tpu.pipeline_mode<synchronous>, transform_indices = @transform_43, window_bounds = array<i64: 1, 32, 32>}, {pipeline_mode = #tpu.pipeline_mode<synchronous>, transform_indices = @transform_44, window_bounds = array<i64: 1, 32>}, {pipeline_mode = #tpu.pipeline_mode<synchronous>, transform_indices = @transform_45, window_bounds = array<i64: 3, 32, 32>}, {pipeline_mode = #tpu.pipeline_mode<synchronous>, transform_indices = @transform_46, window_bounds = array<i64: 1, 32>}, {pipeline_mode = #tpu.pipeline_mode<synchronous>, transform_indices = @transform_47, window_bounds = array<i64: 3, 32, 32>}, {pipeline_mode = #tpu.pipeline_mode<synchronous>, transform_indices = @transform_48, window_bounds = array<i64: 1, 32>}, {pipeline_mode = #tpu.pipeline_mode<synchronous>, transform_indices = @transform_49, window_bounds = array<i64: 3, 32, 3>}, {pipeline_mode = #tpu.pipeline_mode<synchronous>, transform_indices = @transform_50, window_bounds = array<i64: 1, 3>}, {pipeline_mode = #tpu.pipeline_mode<synchronous>, transform_indices = @transform_51, window_bounds = array<i64: 64, 32>}, {pipeline_mode = #tpu.pipeline_mode<synchronous>, transform_indices = @transform_52, window_bounds = array<i64: 32, 64>}, {pipeline_mode = #tpu.pipeline_mode<synchronous>, transform_indices = @transform_53, window_bounds = array<i64: 1, 64>}, {pipeline_mode = #tpu.pipeline_mode<synchronous>, transform_indices = @transform_54, window_bounds = array<i64: 2, 16, 3>}, {pipeline_mode = #tpu.pipeline_mode<synchronous>, transform_indices = @transform_55, window_bounds = array<i64: 1, 1>}, {pipeline_mode = #tpu.pipeline_mode<synchronous>, transform_indices = @transform_56, window_bounds = array<i64: 1, 1>}]} {
    %c0 = arith.constant 0 : index
    %c0_0 = arith.constant 0 : index
    %0 = vector.load %arg52[%c0, %c0_0] : memref<64x32xf32, #tpu.memory_space<vmem>>, vector<64x32xf32>
    %c0_1 = arith.constant 0 : index
    %c0_2 = arith.constant 0 : index
    %1 = vector.load %arg53[%c0_1, %c0_2] : memref<32x64xf32, #tpu.memory_space<vmem>>, vector<32x64xf32>
    %c0_3 = arith.constant 0 : index
    %c0_4 = arith.constant 0 : index
    %2 = vector.load %arg54[%c0_3, %c0_4] : memref<1x64xf32, #tpu.memory_space<vmem>>, vector<1x64xf32>
    %cst = arith.constant 0.000000e+00 : f32
    %3 = vector.broadcast %cst : f32 to vector<1x1xf32>
    %cst_5 = arith.constant 0.000000e+00 : f32
    %4 = vector.broadcast %cst_5 : f32 to vector<1x64xf32>
    %c0_6 = arith.constant 0 : index
    %c0_7 = arith.constant 0 : index
    %c0_8 = arith.constant 0 : index
    %5 = vector.load %arg1[%c0_6, %c0_7, %c0_8] : memref<2x16x3xf32, #tpu.memory_space<vmem>>, vector<1x16x3xf32>
    %6 = vector.shape_cast %5 : vector<1x16x3xf32> to vector<16x3xf32>
    %cst_9 = arith.constant 0.000000e+00 : f32
    %7 = vector.broadcast %cst_9 : f32 to vector<24x32xf32>
    %c0_10 = arith.constant 0 : index
    %c0_11 = arith.constant 0 : index
    %8 = vector.load %arg58[%c0_10, %c0_11] : memref<24x32xf32, #tpu.memory_space<vmem>>, vector<24x32xf32>
    tpu.vector_store %arg58[%c0_10, %c0_11], %7 {strides = array<i32>} : memref<24x32xf32, #tpu.memory_space<vmem>>, vector<24x32xf32>,
    %c1 = arith.constant 1 : index
    %c0_12 = arith.constant 0 : index
    %9 = vector.load %arg58[%c1, %c0_12] : memref<24x32xf32, #tpu.memory_space<vmem>>, vector<16x3xf32>
    tpu.vector_store %arg58[%c1, %c0_12], %6 {strides = array<i32>} : memref<24x32xf32, #tpu.memory_space<vmem>>, vector<16x3xf32>,
    %cst_13 = arith.constant 0.000000e+00 : f32
    %10 = vector.broadcast %cst_13 : f32 to vector<16x32xf32>
    %c0_14 = arith.constant 0 : index
    %c0_15 = arith.constant 0 : index
    %11 = vector.load %arg58[%c0_14, %c0_15] : memref<24x32xf32, #tpu.memory_space<vmem>>, vector<16x3xf32>
    %12 = arith.truncf %11 : vector<16x3xf32> to vector<16x3xbf16>
    %c0_16 = arith.constant 0 : index
    %c0_17 = arith.constant 0 : index
    %c0_18 = arith.constant 0 : index
    %13 = vector.load %arg2[%c0_16, %c0_17, %c0_18] : memref<3x3x32xbf16, #tpu.memory_space<vmem>>, vector<1x3x32xbf16>
    %14 = vector.shape_cast %13 : vector<1x3x32xbf16> to vector<3x32xbf16>
    %cst_19 = arith.constant dense<0.000000e+00> : vector<16x32xf32>
    %15 = tpu.matmul %12, %14, %cst_19 {dimension_numbers = #tpu.dot_dimension_numbers<[1], [0], [0], [1], [0, 0, 1, 1], [], []>} : vector<16x3xbf16>, vector<3x32xbf16>, vector<16x32xf32> -> vector<16x32xf32>
    %16 = arith.addf %10, %15 : vector<16x32xf32>
    %c1_20 = arith.constant 1 : index
    %c0_21 = arith.constant 0 : index
    %17 = vector.load %arg58[%c1_20, %c0_21] : memref<24x32xf32, #tpu.memory_space<vmem>>, vector<16x3xf32>
    %18 = arith.truncf %17 : vector<16x3xf32> to vector<16x3xbf16>
    %c1_22 = arith.constant 1 : index
    %c0_23 = arith.constant 0 : index
    %c0_24 = arith.constant 0 : index
    %19 = vector.load %arg2[%c1_22, %c0_23, %c0_24] : memref<3x3x32xbf16, #tpu.memory_space<vmem>>, vector<1x3x32xbf16>
    %20 = vector.shape_cast %19 : vector<1x3x32xbf16> to vector<3x32xbf16>
    %cst_25 = arith.constant dense<0.000000e+00> : vector<16x32xf32>
    %21 = tpu.matmul %18, %20, %cst_25 {dimension_numbers = #tpu.dot_dimension_numbers<[1], [0], [0], [1], [0, 0, 1, 1], [], []>} : vector<16x3xbf16>, vector<3x32xbf16>, vector<16x32xf32> -> vector<16x32xf32>
    %22 = arith.addf %16, %21 : vector<16x32xf32>
    %c2 = arith.constant 2 : index
    %c0_26 = arith.constant 0 : index
    %23 = vector.load %arg58[%c2, %c0_26] : memref<24x32xf32, #tpu.memory_space<vmem>>, vector<16x3xf32>
    %24 = arith.truncf %23 : vector<16x3xf32> to vector<16x3xbf16>
    %c2_27 = arith.constant 2 : index
    %c0_28 = arith.constant 0 : index
    %c0_29 = arith.constant 0 : index
    %25 = vector.load %arg2[%c2_27, %c0_28, %c0_29] : memref<3x3x32xbf16, #tpu.memory_space<vmem>>, vector<1x3x32xbf16>
    %26 = vector.shape_cast %25 : vector<1x3x32xbf16> to vector<3x32xbf16>
    %cst_30 = arith.constant dense<0.000000e+00> : vector<16x32xf32>
    %27 = tpu.matmul %24, %26, %cst_30 {dimension_numbers = #tpu.dot_dimension_numbers<[1], [0], [0], [1], [0, 0, 1, 1], [], []>} : vector<16x3xbf16>, vector<3x32xbf16>, vector<16x32xf32> -> vector<16x32xf32>
    %28 = arith.addf %22, %27 : vector<16x32xf32>
    %c0_31 = arith.constant 0 : index
    %c0_32 = arith.constant 0 : index
    %29 = vector.load %arg3[%c0_31, %c0_32] : memref<1x32xf32, #tpu.memory_space<vmem>>, vector<1x32xf32>
    %30 = vector.broadcast %29 : vector<1x32xf32> to vector<16x32xf32>
    %31 = arith.addf %28, %30 : vector<16x32xf32>
    %cst_33 = arith.constant 0.000000e+00 : f32
    %32 = vector.broadcast %cst_33 : f32 to vector<16x32xf32>
    %33 = arith.maximumf %31, %32 : vector<16x32xf32>
    %cst_34 = arith.constant 0.000000e+00 : f32
    %34 = vector.broadcast %cst_34 : f32 to vector<24x32xf32>
    %c0_35 = arith.constant 0 : index
    %c0_36 = arith.constant 0 : index
    %35 = vector.load %arg58[%c0_35, %c0_36] : memref<24x32xf32, #tpu.memory_space<vmem>>, vector<24x32xf32>
    tpu.vector_store %arg58[%c0_35, %c0_36], %34 {strides = array<i32>} : memref<24x32xf32, #tpu.memory_space<vmem>>, vector<24x32xf32>,
    %c1_37 = arith.constant 1 : index
    %c0_38 = arith.constant 0 : index
    %36 = vector.load %arg58[%c1_37, %c0_38] : memref<24x32xf32, #tpu.memory_space<vmem>>, vector<16x32xf32>
    tpu.vector_store %arg58[%c1_37, %c0_38], %33 {strides = array<i32>} : memref<24x32xf32, #tpu.memory_space<vmem>>, vector<16x32xf32>,
    %cst_39 = arith.constant 0.000000e+00 : f32
    %37 = vector.broadcast %cst_39 : f32 to vector<15x32xf32>
    %c0_40 = arith.constant 0 : index
    %c0_41 = arith.constant 0 : index
    %38 = vector.load %arg58[%c0_40, %c0_41] : memref<24x32xf32, #tpu.memory_space<vmem>>, vector<15x32xf32>
    %39 = arith.truncf %38 : vector<15x32xf32> to vector<15x32xbf16>
    %c0_42 = arith.constant 0 : index
    %c0_43 = arith.constant 0 : index
    %c0_44 = arith.constant 0 : index
    %40 = vector.load %arg4[%c0_42, %c0_43, %c0_44] : memref<4x32x32xbf16, #tpu.memory_space<vmem>>, vector<1x32x32xbf16>
    %41 = vector.shape_cast %40 : vector<1x32x32xbf16> to vector<32x32xbf16>
    %cst_45 = arith.constant dense<0.000000e+00> : vector<15x32xf32>
    %42 = tpu.matmul %39, %41, %cst_45 {dimension_numbers = #tpu.dot_dimension_numbers<[1], [0], [0], [1], [0, 0, 1, 1], [], []>} : vector<15x32xbf16>, vector<32x32xbf16>, vector<15x32xf32> -> vector<15x32xf32>
    %43 = arith.addf %37, %42 : vector<15x32xf32>
    %c1_46 = arith.constant 1 : index
    %c0_47 = arith.constant 0 : index
    %44 = vector.load %arg58[%c1_46, %c0_47] : memref<24x32xf32, #tpu.memory_space<vmem>>, vector<15x32xf32>
    %45 = arith.truncf %44 : vector<15x32xf32> to vector<15x32xbf16>
    %c1_48 = arith.constant 1 : index
    %c0_49 = arith.constant 0 : index
    %c0_50 = arith.constant 0 : index
    %46 = vector.load %arg4[%c1_48, %c0_49, %c0_50] : memref<4x32x32xbf16, #tpu.memory_space<vmem>>, vector<1x32x32xbf16>
    %47 = vector.shape_cast %46 : vector<1x32x32xbf16> to vector<32x32xbf16>
    %cst_51 = arith.constant dense<0.000000e+00> : vector<15x32xf32>
    %48 = tpu.matmul %45, %47, %cst_51 {dimension_numbers = #tpu.dot_dimension_numbers<[1], [0], [0], [1], [0, 0, 1, 1], [], []>} : vector<15x32xbf16>, vector<32x32xbf16>, vector<15x32xf32> -> vector<15x32xf32>
    %49 = arith.addf %43, %48 : vector<15x32xf32>
    %c2_52 = arith.constant 2 : index
    %c0_53 = arith.constant 0 : index
    %50 = vector.load %arg58[%c2_52, %c0_53] : memref<24x32xf32, #tpu.memory_space<vmem>>, vector<15x32xf32>
    %51 = arith.truncf %50 : vector<15x32xf32> to vector<15x32xbf16>
    %c2_54 = arith.constant 2 : index
    %c0_55 = arith.constant 0 : index
    %c0_56 = arith.constant 0 : index
    %52 = vector.load %arg4[%c2_54, %c0_55, %c0_56] : memref<4x32x32xbf16, #tpu.memory_space<vmem>>, vector<1x32x32xbf16>
    %53 = vector.shape_cast %52 : vector<1x32x32xbf16> to vector<32x32xbf16>
    %cst_57 = arith.constant dense<0.000000e+00> : vector<15x32xf32>
    %54 = tpu.matmul %51, %53, %cst_57 {dimension_numbers = #tpu.dot_dimension_numbers<[1], [0], [0], [1], [0, 0, 1, 1], [], []>} : vector<15x32xbf16>, vector<32x32xbf16>, vector<15x32xf32> -> vector<15x32xf32>
    %55 = arith.addf %49, %54 : vector<15x32xf32>
    %c3 = arith.constant 3 : index
    %c0_58 = arith.constant 0 : index
    %56 = vector.load %arg58[%c3, %c0_58] : memref<24x32xf32, #tpu.memory_space<vmem>>, vector<15x32xf32>
    %57 = arith.truncf %56 : vector<15x32xf32> to vector<15x32xbf16>
    %c3_59 = arith.constant 3 : index
    %c0_60 = arith.constant 0 : index
    %c0_61 = arith.constant 0 : index
    %58 = vector.load %arg4[%c3_59, %c0_60, %c0_61] : memref<4x32x32xbf16, #tpu.memory_space<vmem>>, vector<1x32x32xbf16>
    %59 = vector.shape_cast %58 : vector<1x32x32xbf16> to vector<32x32xbf16>
    %cst_62 = arith.constant dense<0.000000e+00> : vector<15x32xf32>
    %60 = tpu.matmul %57, %59, %cst_62 {dimension_numbers = #tpu.dot_dimension_numbers<[1], [0], [0], [1], [0, 0, 1, 1], [], []>} : vector<15x32xbf16>, vector<32x32xbf16>, vector<15x32xf32> -> vector<15x32xf32>
    %61 = arith.addf %55, %60 : vector<15x32xf32>
    %c0_63 = arith.constant 0 : index
    %c0_64 = arith.constant 0 : index
    %62 = vector.load %arg5[%c0_63, %c0_64] : memref<1x32xf32, #tpu.memory_space<vmem>>, vector<1x32xf32>
    %63 = vector.broadcast %62 : vector<1x32xf32> to vector<15x32xf32>
    %64 = arith.addf %61, %63 : vector<15x32xf32>
    %65 = tpu.iota {dimensions = array<i32: 0>} : vector<8x15xi32>
    %66 = tpu.iota {dimensions = array<i32: 1>} : vector<8x15xi32>
    %c2_i32 = arith.constant 2 : i32
    %67 = vector.broadcast %c2_i32 : i32 to vector<8x15xi32>
    %68 = arith.muli %67, %65 : vector<8x15xi32>
    %69 = arith.cmpi eq, %66, %68 : vector<8x15xi32>
    %70 = arith.extui %69 : vector<8x15xi1> to vector<8x15xi32>
    %71 = arith.sitofp %70 : vector<8x15xi32> to vector<8x15xf32>
    %cst_65 = arith.constant dense<0.000000e+00> : vector<8x32xf32>
    %72 = tpu.matmul %71, %64, %cst_65 {dimension_numbers = #tpu.dot_dimension_numbers<[1], [0], [0], [1], [0, 0, 1, 1], [], []>} : vector<8x15xf32>, vector<15x32xf32>, vector<8x32xf32> -> vector<8x32xf32>
    %cst_66 = arith.constant 0.000000e+00 : f32
    %73 = vector.broadcast %cst_66 : f32 to vector<8x32xf32>
    %74 = arith.maximumf %72, %73 : vector<8x32xf32>
    %cst_67 = arith.constant 0.000000e+00 : f32
    %75 = vector.broadcast %cst_67 : f32 to vector<24x32xf32>
    %c0_68 = arith.constant 0 : index
    %c0_69 = arith.constant 0 : index
    %76 = vector.load %arg58[%c0_68, %c0_69] : memref<24x32xf32, #tpu.memory_space<vmem>>, vector<24x32xf32>
    tpu.vector_store %arg58[%c0_68, %c0_69], %75 {strides = array<i32>} : memref<24x32xf32, #tpu.memory_space<vmem>>, vector<24x32xf32>,
    %c3_70 = arith.constant 3 : index
    %c0_71 = arith.constant 0 : index
    %77 = vector.load %arg58[%c3_70, %c0_71] : memref<24x32xf32, #tpu.memory_space<vmem>>, vector<8x32xf32>
    tpu.vector_store %arg58[%c3_70, %c0_71], %74 {strides = array<i32>} : memref<24x32xf32, #tpu.memory_space<vmem>>, vector<8x32xf32>,
    %cst_72 = arith.constant 0.000000e+00 : f32
    %78 = vector.broadcast %cst_72 : f32 to vector<8x32xf32>
    %c0_73 = arith.constant 0 : index
    %c0_74 = arith.constant 0 : index
    %79 = vector.load %arg58[%c0_73, %c0_74] : memref<24x32xf32, #tpu.memory_space<vmem>>, vector<8x32xf32>
    %80 = arith.truncf %79 : vector<8x32xf32> to vector<8x32xbf16>
    %c0_75 = arith.constant 0 : index
    %c0_76 = arith.constant 0 : index
    %c0_77 = arith.constant 0 : index
    %81 = vector.load %arg6[%c0_75, %c0_76, %c0_77] : memref<3x32x32xbf16, #tpu.memory_space<vmem>>, vector<1x32x32xbf16>
    %82 = vector.shape_cast %81 : vector<1x32x32xbf16> to vector<32x32xbf16>
    %cst_78 = arith.constant dense<0.000000e+00> : vector<8x32xf32>
    %83 = tpu.matmul %80, %82, %cst_78 {dimension_numbers = #tpu.dot_dimension_numbers<[1], [0], [0], [1], [0, 0, 1, 1], [], []>} : vector<8x32xbf16>, vector<32x32xbf16>, vector<8x32xf32> -> vector<8x32xf32>
    %84 = arith.addf %78, %83 : vector<8x32xf32>
    %c3_79 = arith.constant 3 : index
    %c0_80 = arith.constant 0 : index
    %85 = vector.load %arg58[%c3_79, %c0_80] : memref<24x32xf32, #tpu.memory_space<vmem>>, vector<8x32xf32>
    %86 = arith.truncf %85 : vector<8x32xf32> to vector<8x32xbf16>
    %c1_81 = arith.constant 1 : index
    %c0_82 = arith.constant 0 : index
    %c0_83 = arith.constant 0 : index
    %87 = vector.load %arg6[%c1_81, %c0_82, %c0_83] : memref<3x32x32xbf16, #tpu.memory_space<vmem>>, vector<1x32x32xbf16>
    %88 = vector.shape_cast %87 : vector<1x32x32xbf16> to vector<32x32xbf16>
    %cst_84 = arith.constant dense<0.000000e+00> : vector<8x32xf32>
    %89 = tpu.matmul %86, %88, %cst_84 {dimension_numbers = #tpu.dot_dimension_numbers<[1], [0], [0], [1], [0, 0, 1, 1], [], []>} : vector<8x32xbf16>, vector<32x32xbf16>, vector<8x32xf32> -> vector<8x32xf32>
    %90 = arith.addf %84, %89 : vector<8x32xf32>
    %c6 = arith.constant 6 : index
    %c0_85 = arith.constant 0 : index
    %91 = vector.load %arg58[%c6, %c0_85] : memref<24x32xf32, #tpu.memory_space<vmem>>, vector<8x32xf32>
    %92 = arith.truncf %91 : vector<8x32xf32> to vector<8x32xbf16>
    %c2_86 = arith.constant 2 : index
    %c0_87 = arith.constant 0 : index
    %c0_88 = arith.constant 0 : index
    %93 = vector.load %arg6[%c2_86, %c0_87, %c0_88] : memref<3x32x32xbf16, #tpu.memory_space<vmem>>, vector<1x32x32xbf16>
    %94 = vector.shape_cast %93 : vector<1x32x32xbf16> to vector<32x32xbf16>
    %cst_89 = arith.constant dense<0.000000e+00> : vector<8x32xf32>
    %95 = tpu.matmul %92, %94, %cst_89 {dimension_numbers = #tpu.dot_dimension_numbers<[1], [0], [0], [1], [0, 0, 1, 1], [], []>} : vector<8x32xbf16>, vector<32x32xbf16>, vector<8x32xf32> -> vector<8x32xf32>
    %96 = arith.addf %90, %95 : vector<8x32xf32>
    %c0_90 = arith.constant 0 : index
    %c0_91 = arith.constant 0 : index
    %97 = vector.load %arg7[%c0_90, %c0_91] : memref<1x32xf32, #tpu.memory_space<vmem>>, vector<1x32xf32>
    %98 = vector.broadcast %97 : vector<1x32xf32> to vector<8x32xf32>
    %99 = arith.addf %96, %98 : vector<8x32xf32>
    %cst_92 = arith.constant 0.000000e+00 : f32
    %100 = vector.broadcast %cst_92 : f32 to vector<8x32xf32>
    %101 = arith.maximumf %99, %100 : vector<8x32xf32>
    %102 = arith.truncf %101 : vector<8x32xf32> to vector<8x32xbf16>
    %c0_93 = arith.constant 0 : index
    %c0_94 = arith.constant 0 : index
    %c0_95 = arith.constant 0 : index
    %103 = vector.load %arg8[%c0_93, %c0_94, %c0_95] : memref<1x32x32xbf16, #tpu.memory_space<vmem>>, vector<1x32x32xbf16>
    %104 = vector.shape_cast %103 : vector<1x32x32xbf16> to vector<32x32xbf16>
    %cst_96 = arith.constant dense<0.000000e+00> : vector<8x32xf32>
    %105 = tpu.matmul %102, %104, %cst_96 {dimension_numbers = #tpu.dot_dimension_numbers<[1], [0], [0], [1], [0, 0, 1, 1], [], []>} : vector<8x32xbf16>, vector<32x32xbf16>, vector<8x32xf32> -> vector<8x32xf32>
    %c0_97 = arith.constant 0 : index
    %c0_98 = arith.constant 0 : index
    %106 = vector.load %arg9[%c0_97, %c0_98] : memref<1x32xf32, #tpu.memory_space<vmem>>, vector<1x32xf32>
    %107 = vector.broadcast %106 : vector<1x32xf32> to vector<8x32xf32>
    %108 = arith.addf %105, %107 : vector<8x32xf32>
    %109 = arith.addf %72, %108 : vector<8x32xf32>
    %cst_99 = arith.constant 0.000000e+00 : f32
    %110 = vector.broadcast %cst_99 : f32 to vector<8x32xf32>
    %111 = arith.maximumf %109, %110 : vector<8x32xf32>
    %cst_100 = arith.constant 0.000000e+00 : f32
    %112 = vector.broadcast %cst_100 : f32 to vector<24x32xf32>
    %c0_101 = arith.constant 0 : index
    %c0_102 = arith.constant 0 : index
    %113 = vector.load %arg58[%c0_101, %c0_102] : memref<24x32xf32, #tpu.memory_space<vmem>>, vector<24x32xf32>
    tpu.vector_store %arg58[%c0_101, %c0_102], %112 {strides = array<i32>} : memref<24x32xf32, #tpu.memory_space<vmem>>, vector<24x32xf32>,
    %c1_103 = arith.constant 1 : index
    %c0_104 = arith.constant 0 : index
    %114 = vector.load %arg58[%c1_103, %c0_104] : memref<24x32xf32, #tpu.memory_space<vmem>>, vector<8x32xf32>
    tpu.vector_store %arg58[%c1_103, %c0_104], %111 {strides = array<i32>} : memref<24x32xf32, #tpu.memory_space<vmem>>, vector<8x32xf32>,
    %cst_105 = arith.constant 0.000000e+00 : f32
    %115 = vector.broadcast %cst_105 : f32 to vector<8x32xf32>
    %c0_106 = arith.constant 0 : index
    %c0_107 = arith.constant 0 : index
    %116 = vector.load %arg58[%c0_106, %c0_107] : memref<24x32xf32, #tpu.memory_space<vmem>>, vector<8x32xf32>
    %117 = arith.truncf %116 : vector<8x32xf32> to vector<8x32xbf16>
    %c0_108 = arith.constant 0 : index
    %c0_109 = arith.constant 0 : index
    %c0_110 = arith.constant 0 : index
    %118 = vector.load %arg10[%c0_108, %c0_109, %c0_110] : memref<3x32x32xbf16, #tpu.memory_space<vmem>>, vector<1x32x32xbf16>
    %119 = vector.shape_cast %118 : vector<1x32x32xbf16> to vector<32x32xbf16>
    %cst_111 = arith.constant dense<0.000000e+00> : vector<8x32xf32>
    %120 = tpu.matmul %117, %119, %cst_111 {dimension_numbers = #tpu.dot_dimension_numbers<[1], [0], [0], [1], [0, 0, 1, 1], [], []>} : vector<8x32xbf16>, vector<32x32xbf16>, vector<8x32xf32> -> vector<8x32xf32>
    %121 = arith.addf %115, %120 : vector<8x32xf32>
    %c1_112 = arith.constant 1 : index
    %c0_113 = arith.constant 0 : index
    %122 = vector.load %arg58[%c1_112, %c0_113] : memref<24x32xf32, #tpu.memory_space<vmem>>, vector<8x32xf32>
    %123 = arith.truncf %122 : vector<8x32xf32> to vector<8x32xbf16>
    %c1_114 = arith.constant 1 : index
    %c0_115 = arith.constant 0 : index
    %c0_116 = arith.constant 0 : index
    %124 = vector.load %arg10[%c1_114, %c0_115, %c0_116] : memref<3x32x32xbf16, #tpu.memory_space<vmem>>, vector<1x32x32xbf16>
    %125 = vector.shape_cast %124 : vector<1x32x32xbf16> to vector<32x32xbf16>
    %cst_117 = arith.constant dense<0.000000e+00> : vector<8x32xf32>
    %126 = tpu.matmul %123, %125, %cst_117 {dimension_numbers = #tpu.dot_dimension_numbers<[1], [0], [0], [1], [0, 0, 1, 1], [], []>} : vector<8x32xbf16>, vector<32x32xbf16>, vector<8x32xf32> -> vector<8x32xf32>
    %127 = arith.addf %121, %126 : vector<8x32xf32>
    %c2_118 = arith.constant 2 : index
    %c0_119 = arith.constant 0 : index
    %128 = vector.load %arg58[%c2_118, %c0_119] : memref<24x32xf32, #tpu.memory_space<vmem>>, vector<8x32xf32>
    %129 = arith.truncf %128 : vector<8x32xf32> to vector<8x32xbf16>
    %c2_120 = arith.constant 2 : index
    %c0_121 = arith.constant 0 : index
    %c0_122 = arith.constant 0 : index
    %130 = vector.load %arg10[%c2_120, %c0_121, %c0_122] : memref<3x32x32xbf16, #tpu.memory_space<vmem>>, vector<1x32x32xbf16>
    %131 = vector.shape_cast %130 : vector<1x32x32xbf16> to vector<32x32xbf16>
    %cst_123 = arith.constant dense<0.000000e+00> : vector<8x32xf32>
    %132 = tpu.matmul %129, %131, %cst_123 {dimension_numbers = #tpu.dot_dimension_numbers<[1], [0], [0], [1], [0, 0, 1, 1], [], []>} : vector<8x32xbf16>, vector<32x32xbf16>, vector<8x32xf32> -> vector<8x32xf32>
    %133 = arith.addf %127, %132 : vector<8x32xf32>
    %c0_124 = arith.constant 0 : index
    %c0_125 = arith.constant 0 : index
    %134 = vector.load %arg11[%c0_124, %c0_125] : memref<1x32xf32, #tpu.memory_space<vmem>>, vector<1x32xf32>
    %135 = vector.broadcast %134 : vector<1x32xf32> to vector<8x32xf32>
    %136 = arith.addf %133, %135 : vector<8x32xf32>
    %cst_126 = arith.constant 0.000000e+00 : f32
    %137 = vector.broadcast %cst_126 : f32 to vector<8x32xf32>
    %138 = arith.maximumf %136, %137 : vector<8x32xf32>
    %139 = arith.truncf %138 : vector<8x32xf32> to vector<8x32xbf16>
    %c0_127 = arith.constant 0 : index
    %c0_128 = arith.constant 0 : index
    %c0_129 = arith.constant 0 : index
    %140 = vector.load %arg12[%c0_127, %c0_128, %c0_129] : memref<1x32x32xbf16, #tpu.memory_space<vmem>>, vector<1x32x32xbf16>
    %141 = vector.shape_cast %140 : vector<1x32x32xbf16> to vector<32x32xbf16>
    %cst_130 = arith.constant dense<0.000000e+00> : vector<8x32xf32>
    %142 = tpu.matmul %139, %141, %cst_130 {dimension_numbers = #tpu.dot_dimension_numbers<[1], [0], [0], [1], [0, 0, 1, 1], [], []>} : vector<8x32xbf16>, vector<32x32xbf16>, vector<8x32xf32> -> vector<8x32xf32>
    %c0_131 = arith.constant 0 : index
    %c0_132 = arith.constant 0 : index
    %143 = vector.load %arg13[%c0_131, %c0_132] : memref<1x32xf32, #tpu.memory_space<vmem>>, vector<1x32xf32>
    %144 = vector.broadcast %143 : vector<1x32xf32> to vector<8x32xf32>
    %145 = arith.addf %142, %144 : vector<8x32xf32>
    %146 = arith.addf %109, %145 : vector<8x32xf32>
    %cst_133 = arith.constant 0.000000e+00 : f32
    %147 = vector.broadcast %cst_133 : f32 to vector<24x32xf32>
    %c0_134 = arith.constant 0 : index
    %c0_135 = arith.constant 0 : index
    %148 = vector.load %arg58[%c0_134, %c0_135] : memref<24x32xf32, #tpu.memory_space<vmem>>, vector<24x32xf32>
    tpu.vector_store %arg58[%c0_134, %c0_135], %147 {strides = array<i32>} : memref<24x32xf32, #tpu.memory_space<vmem>>, vector<24x32xf32>,
    %c1_136 = arith.constant 1 : index
    %c0_137 = arith.constant 0 : index
    %149 = vector.load %arg58[%c1_136, %c0_137] : memref<24x32xf32, #tpu.memory_space<vmem>>, vector<8x32xf32>
    tpu.vector_store %arg58[%c1_136, %c0_137], %146 {strides = array<i32>} : memref<24x32xf32, #tpu.memory_space<vmem>>, vector<8x32xf32>,
    %cst_138 = arith.constant 0.000000e+00 : f32
    %150 = vector.broadcast %cst_138 : f32 to vector<7x32xf32>
    %c0_139 = arith.constant 0 : index
    %c0_140 = arith.constant 0 : index
    %151 = vector.load %arg58[%c0_139, %c0_140] : memref<24x32xf32, #tpu.memory_space<vmem>>, vector<7x32xf32>
    %152 = arith.truncf %151 : vector<7x32xf32> to vector<7x32xbf16>
    %c0_141 = arith.constant 0 : index
    %c0_142 = arith.constant 0 : index
    %c0_143 = arith.constant 0 : index
    %153 = vector.load %arg14[%c0_141, %c0_142, %c0_143] : memref<4x32x32xbf16, #tpu.memory_space<vmem>>, vector<1x32x32xbf16>
    %154 = vector.shape_cast %153 : vector<1x32x32xbf16> to vector<32x32xbf16>
    %cst_144 = arith.constant dense<0.000000e+00> : vector<7x32xf32>
    %155 = tpu.matmul %152, %154, %cst_144 {dimension_numbers = #tpu.dot_dimension_numbers<[1], [0], [0], [1], [0, 0, 1, 1], [], []>} : vector<7x32xbf16>, vector<32x32xbf16>, vector<7x32xf32> -> vector<7x32xf32>
    %156 = arith.addf %150, %155 : vector<7x32xf32>
    %c1_145 = arith.constant 1 : index
    %c0_146 = arith.constant 0 : index
    %157 = vector.load %arg58[%c1_145, %c0_146] : memref<24x32xf32, #tpu.memory_space<vmem>>, vector<7x32xf32>
    %158 = arith.truncf %157 : vector<7x32xf32> to vector<7x32xbf16>
    %c1_147 = arith.constant 1 : index
    %c0_148 = arith.constant 0 : index
    %c0_149 = arith.constant 0 : index
    %159 = vector.load %arg14[%c1_147, %c0_148, %c0_149] : memref<4x32x32xbf16, #tpu.memory_space<vmem>>, vector<1x32x32xbf16>
    %160 = vector.shape_cast %159 : vector<1x32x32xbf16> to vector<32x32xbf16>
    %cst_150 = arith.constant dense<0.000000e+00> : vector<7x32xf32>
    %161 = tpu.matmul %158, %160, %cst_150 {dimension_numbers = #tpu.dot_dimension_numbers<[1], [0], [0], [1], [0, 0, 1, 1], [], []>} : vector<7x32xbf16>, vector<32x32xbf16>, vector<7x32xf32> -> vector<7x32xf32>
    %162 = arith.addf %156, %161 : vector<7x32xf32>
    %c2_151 = arith.constant 2 : index
    %c0_152 = arith.constant 0 : index
    %163 = vector.load %arg58[%c2_151, %c0_152] : memref<24x32xf32, #tpu.memory_space<vmem>>, vector<7x32xf32>
    %164 = arith.truncf %163 : vector<7x32xf32> to vector<7x32xbf16>
    %c2_153 = arith.constant 2 : index
    %c0_154 = arith.constant 0 : index
    %c0_155 = arith.constant 0 : index
    %165 = vector.load %arg14[%c2_153, %c0_154, %c0_155] : memref<4x32x32xbf16, #tpu.memory_space<vmem>>, vector<1x32x32xbf16>
    %166 = vector.shape_cast %165 : vector<1x32x32xbf16> to vector<32x32xbf16>
    %cst_156 = arith.constant dense<0.000000e+00> : vector<7x32xf32>
    %167 = tpu.matmul %164, %166, %cst_156 {dimension_numbers = #tpu.dot_dimension_numbers<[1], [0], [0], [1], [0, 0, 1, 1], [], []>} : vector<7x32xbf16>, vector<32x32xbf16>, vector<7x32xf32> -> vector<7x32xf32>
    %168 = arith.addf %162, %167 : vector<7x32xf32>
    %c3_157 = arith.constant 3 : index
    %c0_158 = arith.constant 0 : index
    %169 = vector.load %arg58[%c3_157, %c0_158] : memref<24x32xf32, #tpu.memory_space<vmem>>, vector<7x32xf32>
    %170 = arith.truncf %169 : vector<7x32xf32> to vector<7x32xbf16>
    %c3_159 = arith.constant 3 : index
    %c0_160 = arith.constant 0 : index
    %c0_161 = arith.constant 0 : index
    %171 = vector.load %arg14[%c3_159, %c0_160, %c0_161] : memref<4x32x32xbf16, #tpu.memory_space<vmem>>, vector<1x32x32xbf16>
    %172 = vector.shape_cast %171 : vector<1x32x32xbf16> to vector<32x32xbf16>
    %cst_162 = arith.constant dense<0.000000e+00> : vector<7x32xf32>
    %173 = tpu.matmul %170, %172, %cst_162 {dimension_numbers = #tpu.dot_dimension_numbers<[1], [0], [0], [1], [0, 0, 1, 1], [], []>} : vector<7x32xbf16>, vector<32x32xbf16>, vector<7x32xf32> -> vector<7x32xf32>
    %174 = arith.addf %168, %173 : vector<7x32xf32>
    %c0_163 = arith.constant 0 : index
    %c0_164 = arith.constant 0 : index
    %175 = vector.load %arg15[%c0_163, %c0_164] : memref<1x32xf32, #tpu.memory_space<vmem>>, vector<1x32xf32>
    %176 = vector.broadcast %175 : vector<1x32xf32> to vector<7x32xf32>
    %177 = arith.addf %174, %176 : vector<7x32xf32>
    %178 = tpu.iota {dimensions = array<i32: 0>} : vector<4x7xi32>
    %179 = tpu.iota {dimensions = array<i32: 1>} : vector<4x7xi32>
    %c2_i32_165 = arith.constant 2 : i32
    %180 = vector.broadcast %c2_i32_165 : i32 to vector<4x7xi32>
    %181 = arith.muli %180, %178 : vector<4x7xi32>
    %182 = arith.cmpi eq, %179, %181 : vector<4x7xi32>
    %183 = arith.extui %182 : vector<4x7xi1> to vector<4x7xi32>
    %184 = arith.sitofp %183 : vector<4x7xi32> to vector<4x7xf32>
    %cst_166 = arith.constant dense<0.000000e+00> : vector<4x32xf32>
    %185 = tpu.matmul %184, %177, %cst_166 {dimension_numbers = #tpu.dot_dimension_numbers<[1], [0], [0], [1], [0, 0, 1, 1], [], []>} : vector<4x7xf32>, vector<7x32xf32>, vector<4x32xf32> -> vector<4x32xf32>
    %cst_167 = arith.constant 0.000000e+00 : f32
    %186 = vector.broadcast %cst_167 : f32 to vector<4x32xf32>
    %187 = arith.maximumf %185, %186 : vector<4x32xf32>
    %cst_168 = arith.constant 0.000000e+00 : f32
    %188 = vector.broadcast %cst_168 : f32 to vector<24x32xf32>
    %c0_169 = arith.constant 0 : index
    %c0_170 = arith.constant 0 : index
    %189 = vector.load %arg58[%c0_169, %c0_170] : memref<24x32xf32, #tpu.memory_space<vmem>>, vector<24x32xf32>
    tpu.vector_store %arg58[%c0_169, %c0_170], %188 {strides = array<i32>} : memref<24x32xf32, #tpu.memory_space<vmem>>, vector<24x32xf32>,
    %c3_171 = arith.constant 3 : index
    %c0_172 = arith.constant 0 : index
    %190 = vector.load %arg58[%c3_171, %c0_172] : memref<24x32xf32, #tpu.memory_space<vmem>>, vector<4x32xf32>
    tpu.vector_store %arg58[%c3_171, %c0_172], %187 {strides = array<i32>} : memref<24x32xf32, #tpu.memory_space<vmem>>, vector<4x32xf32>,
    %cst_173 = arith.constant 0.000000e+00 : f32
    %191 = vector.broadcast %cst_173 : f32 to vector<4x32xf32>
    %c0_174 = arith.constant 0 : index
    %c0_175 = arith.constant 0 : index
    %192 = vector.load %arg58[%c0_174, %c0_175] : memref<24x32xf32, #tpu.memory_space<vmem>>, vector<4x32xf32>
    %193 = arith.truncf %192 : vector<4x32xf32> to vector<4x32xbf16>
    %c0_176 = arith.constant 0 : index
    %c0_177 = arith.constant 0 : index
    %c0_178 = arith.constant 0 : index
    %194 = vector.load %arg16[%c0_176, %c0_177, %c0_178] : memref<3x32x32xbf16, #tpu.memory_space<vmem>>, vector<1x32x32xbf16>
    %195 = vector.shape_cast %194 : vector<1x32x32xbf16> to vector<32x32xbf16>
    %cst_179 = arith.constant dense<0.000000e+00> : vector<4x32xf32>
    %196 = tpu.matmul %193, %195, %cst_179 {dimension_numbers = #tpu.dot_dimension_numbers<[1], [0], [0], [1], [0, 0, 1, 1], [], []>} : vector<4x32xbf16>, vector<32x32xbf16>, vector<4x32xf32> -> vector<4x32xf32>
    %197 = arith.addf %191, %196 : vector<4x32xf32>
    %c3_180 = arith.constant 3 : index
    %c0_181 = arith.constant 0 : index
    %198 = vector.load %arg58[%c3_180, %c0_181] : memref<24x32xf32, #tpu.memory_space<vmem>>, vector<4x32xf32>
    %199 = arith.truncf %198 : vector<4x32xf32> to vector<4x32xbf16>
    %c1_182 = arith.constant 1 : index
    %c0_183 = arith.constant 0 : index
    %c0_184 = arith.constant 0 : index
    %200 = vector.load %arg16[%c1_182, %c0_183, %c0_184] : memref<3x32x32xbf16, #tpu.memory_space<vmem>>, vector<1x32x32xbf16>
    %201 = vector.shape_cast %200 : vector<1x32x32xbf16> to vector<32x32xbf16>
    %cst_185 = arith.constant dense<0.000000e+00> : vector<4x32xf32>
    %202 = tpu.matmul %199, %201, %cst_185 {dimension_numbers = #tpu.dot_dimension_numbers<[1], [0], [0], [1], [0, 0, 1, 1], [], []>} : vector<4x32xbf16>, vector<32x32xbf16>, vector<4x32xf32> -> vector<4x32xf32>
    %203 = arith.addf %197, %202 : vector<4x32xf32>
    %c6_186 = arith.constant 6 : index
    %c0_187 = arith.constant 0 : index
    %204 = vector.load %arg58[%c6_186, %c0_187] : memref<24x32xf32, #tpu.memory_space<vmem>>, vector<4x32xf32>
    %205 = arith.truncf %204 : vector<4x32xf32> to vector<4x32xbf16>
    %c2_188 = arith.constant 2 : index
    %c0_189 = arith.constant 0 : index
    %c0_190 = arith.constant 0 : index
    %206 = vector.load %arg16[%c2_188, %c0_189, %c0_190] : memref<3x32x32xbf16, #tpu.memory_space<vmem>>, vector<1x32x32xbf16>
    %207 = vector.shape_cast %206 : vector<1x32x32xbf16> to vector<32x32xbf16>
    %cst_191 = arith.constant dense<0.000000e+00> : vector<4x32xf32>
    %208 = tpu.matmul %205, %207, %cst_191 {dimension_numbers = #tpu.dot_dimension_numbers<[1], [0], [0], [1], [0, 0, 1, 1], [], []>} : vector<4x32xbf16>, vector<32x32xbf16>, vector<4x32xf32> -> vector<4x32xf32>
    %209 = arith.addf %203, %208 : vector<4x32xf32>
    %c0_192 = arith.constant 0 : index
    %c0_193 = arith.constant 0 : index
    %210 = vector.load %arg17[%c0_192, %c0_193] : memref<1x32xf32, #tpu.memory_space<vmem>>, vector<1x32xf32>
    %211 = vector.broadcast %210 : vector<1x32xf32> to vector<4x32xf32>
    %212 = arith.addf %209, %211 : vector<4x32xf32>
    %cst_194 = arith.constant 0.000000e+00 : f32
    %213 = vector.broadcast %cst_194 : f32 to vector<4x32xf32>
    %214 = arith.maximumf %212, %213 : vector<4x32xf32>
    %215 = arith.truncf %214 : vector<4x32xf32> to vector<4x32xbf16>
    %c0_195 = arith.constant 0 : index
    %c0_196 = arith.constant 0 : index
    %c0_197 = arith.constant 0 : index
    %216 = vector.load %arg18[%c0_195, %c0_196, %c0_197] : memref<1x32x32xbf16, #tpu.memory_space<vmem>>, vector<1x32x32xbf16>
    %217 = vector.shape_cast %216 : vector<1x32x32xbf16> to vector<32x32xbf16>
    %cst_198 = arith.constant dense<0.000000e+00> : vector<4x32xf32>
    %218 = tpu.matmul %215, %217, %cst_198 {dimension_numbers = #tpu.dot_dimension_numbers<[1], [0], [0], [1], [0, 0, 1, 1], [], []>} : vector<4x32xbf16>, vector<32x32xbf16>, vector<4x32xf32> -> vector<4x32xf32>
    %c0_199 = arith.constant 0 : index
    %c0_200 = arith.constant 0 : index
    %219 = vector.load %arg19[%c0_199, %c0_200] : memref<1x32xf32, #tpu.memory_space<vmem>>, vector<1x32xf32>
    %220 = vector.broadcast %219 : vector<1x32xf32> to vector<4x32xf32>
    %221 = arith.addf %218, %220 : vector<4x32xf32>
    %222 = arith.addf %185, %221 : vector<4x32xf32>
    %cst_201 = arith.constant 0.000000e+00 : f32
    %223 = vector.broadcast %cst_201 : f32 to vector<4x32xf32>
    %224 = arith.maximumf %222, %223 : vector<4x32xf32>
    %cst_202 = arith.constant 0.000000e+00 : f32
    %225 = vector.broadcast %cst_202 : f32 to vector<24x32xf32>
    %c0_203 = arith.constant 0 : index
    %c0_204 = arith.constant 0 : index
    %226 = vector.load %arg58[%c0_203, %c0_204] : memref<24x32xf32, #tpu.memory_space<vmem>>, vector<24x32xf32>
    tpu.vector_store %arg58[%c0_203, %c0_204], %225 {strides = array<i32>} : memref<24x32xf32, #tpu.memory_space<vmem>>, vector<24x32xf32>,
    %c1_205 = arith.constant 1 : index
    %c0_206 = arith.constant 0 : index
    %227 = vector.load %arg58[%c1_205, %c0_206] : memref<24x32xf32, #tpu.memory_space<vmem>>, vector<4x32xf32>
    tpu.vector_store %arg58[%c1_205, %c0_206], %224 {strides = array<i32>} : memref<24x32xf32, #tpu.memory_space<vmem>>, vector<4x32xf32>,
    %cst_207 = arith.constant 0.000000e+00 : f32
    %228 = vector.broadcast %cst_207 : f32 to vector<4x32xf32>
    %c0_208 = arith.constant 0 : index
    %c0_209 = arith.constant 0 : index
    %229 = vector.load %arg58[%c0_208, %c0_209] : memref<24x32xf32, #tpu.memory_space<vmem>>, vector<4x32xf32>
    %230 = arith.truncf %229 : vector<4x32xf32> to vector<4x32xbf16>
    %c0_210 = arith.constant 0 : index
    %c0_211 = arith.constant 0 : index
    %c0_212 = arith.constant 0 : index
    %231 = vector.load %arg20[%c0_210, %c0_211, %c0_212] : memref<3x32x32xbf16, #tpu.memory_space<vmem>>, vector<1x32x32xbf16>
    %232 = vector.shape_cast %231 : vector<1x32x32xbf16> to vector<32x32xbf16>
    %cst_213 = arith.constant dense<0.000000e+00> : vector<4x32xf32>
    %233 = tpu.matmul %230, %232, %cst_213 {dimension_numbers = #tpu.dot_dimension_numbers<[1], [0], [0], [1], [0, 0, 1, 1], [], []>} : vector<4x32xbf16>, vector<32x32xbf16>, vector<4x32xf32> -> vector<4x32xf32>
    %234 = arith.addf %228, %233 : vector<4x32xf32>
    %c1_214 = arith.constant 1 : index
    %c0_215 = arith.constant 0 : index
    %235 = vector.load %arg58[%c1_214, %c0_215] : memref<24x32xf32, #tpu.memory_space<vmem>>, vector<4x32xf32>
    %236 = arith.truncf %235 : vector<4x32xf32> to vector<4x32xbf16>
    %c1_216 = arith.constant 1 : index
    %c0_217 = arith.constant 0 : index
    %c0_218 = arith.constant 0 : index
    %237 = vector.load %arg20[%c1_216, %c0_217, %c0_218] : memref<3x32x32xbf16, #tpu.memory_space<vmem>>, vector<1x32x32xbf16>
    %238 = vector.shape_cast %237 : vector<1x32x32xbf16> to vector<32x32xbf16>
    %cst_219 = arith.constant dense<0.000000e+00> : vector<4x32xf32>
    %239 = tpu.matmul %236, %238, %cst_219 {dimension_numbers = #tpu.dot_dimension_numbers<[1], [0], [0], [1], [0, 0, 1, 1], [], []>} : vector<4x32xbf16>, vector<32x32xbf16>, vector<4x32xf32> -> vector<4x32xf32>
    %240 = arith.addf %234, %239 : vector<4x32xf32>
    %c2_220 = arith.constant 2 : index
    %c0_221 = arith.constant 0 : index
    %241 = vector.load %arg58[%c2_220, %c0_221] : memref<24x32xf32, #tpu.memory_space<vmem>>, vector<4x32xf32>
    %242 = arith.truncf %241 : vector<4x32xf32> to vector<4x32xbf16>
    %c2_222 = arith.constant 2 : index
    %c0_223 = arith.constant 0 : index
    %c0_224 = arith.constant 0 : index
    %243 = vector.load %arg20[%c2_222, %c0_223, %c0_224] : memref<3x32x32xbf16, #tpu.memory_space<vmem>>, vector<1x32x32xbf16>
    %244 = vector.shape_cast %243 : vector<1x32x32xbf16> to vector<32x32xbf16>
    %cst_225 = arith.constant dense<0.000000e+00> : vector<4x32xf32>
    %245 = tpu.matmul %242, %244, %cst_225 {dimension_numbers = #tpu.dot_dimension_numbers<[1], [0], [0], [1], [0, 0, 1, 1], [], []>} : vector<4x32xbf16>, vector<32x32xbf16>, vector<4x32xf32> -> vector<4x32xf32>
    %246 = arith.addf %240, %245 : vector<4x32xf32>
    %c0_226 = arith.constant 0 : index
    %c0_227 = arith.constant 0 : index
    %247 = vector.load %arg21[%c0_226, %c0_227] : memref<1x32xf32, #tpu.memory_space<vmem>>, vector<1x32xf32>
    %248 = vector.broadcast %247 : vector<1x32xf32> to vector<4x32xf32>
    %249 = arith.addf %246, %248 : vector<4x32xf32>
    %cst_228 = arith.constant 0.000000e+00 : f32
    %250 = vector.broadcast %cst_228 : f32 to vector<4x32xf32>
    %251 = arith.maximumf %249, %250 : vector<4x32xf32>
    %252 = arith.truncf %251 : vector<4x32xf32> to vector<4x32xbf16>
    %c0_229 = arith.constant 0 : index
    %c0_230 = arith.constant 0 : index
    %c0_231 = arith.constant 0 : index
    %253 = vector.load %arg22[%c0_229, %c0_230, %c0_231] : memref<1x32x32xbf16, #tpu.memory_space<vmem>>, vector<1x32x32xbf16>
    %254 = vector.shape_cast %253 : vector<1x32x32xbf16> to vector<32x32xbf16>
    %cst_232 = arith.constant dense<0.000000e+00> : vector<4x32xf32>
    %255 = tpu.matmul %252, %254, %cst_232 {dimension_numbers = #tpu.dot_dimension_numbers<[1], [0], [0], [1], [0, 0, 1, 1], [], []>} : vector<4x32xbf16>, vector<32x32xbf16>, vector<4x32xf32> -> vector<4x32xf32>
    %c0_233 = arith.constant 0 : index
    %c0_234 = arith.constant 0 : index
    %256 = vector.load %arg23[%c0_233, %c0_234] : memref<1x32xf32, #tpu.memory_space<vmem>>, vector<1x32xf32>
    %257 = vector.broadcast %256 : vector<1x32xf32> to vector<4x32xf32>
    %258 = arith.addf %255, %257 : vector<4x32xf32>
    %259 = arith.addf %222, %258 : vector<4x32xf32>
    %cst_235 = arith.constant 0.000000e+00 : f32
    %260 = vector.broadcast %cst_235 : f32 to vector<24x32xf32>
    %c0_236 = arith.constant 0 : index
    %c0_237 = arith.constant 0 : index
    %261 = vector.load %arg58[%c0_236, %c0_237] : memref<24x32xf32, #tpu.memory_space<vmem>>, vector<24x32xf32>
    tpu.vector_store %arg58[%c0_236, %c0_237], %260 {strides = array<i32>} : memref<24x32xf32, #tpu.memory_space<vmem>>, vector<24x32xf32>,
    %c1_238 = arith.constant 1 : index
    %c0_239 = arith.constant 0 : index
    %262 = vector.load %arg58[%c1_238, %c0_239] : memref<24x32xf32, #tpu.memory_space<vmem>>, vector<4x32xf32>
    tpu.vector_store %arg58[%c1_238, %c0_239], %259 {strides = array<i32>} : memref<24x32xf32, #tpu.memory_space<vmem>>, vector<4x32xf32>,
    %cst_240 = arith.constant 0.000000e+00 : f32
    %263 = vector.broadcast %cst_240 : f32 to vector<4x32xf32>
    %c0_241 = arith.constant 0 : index
    %c0_242 = arith.constant 0 : index
    %264 = vector.load %arg58[%c0_241, %c0_242] : memref<24x32xf32, #tpu.memory_space<vmem>>, vector<4x32xf32>
    %265 = arith.truncf %264 : vector<4x32xf32> to vector<4x32xbf16>
    %c0_243 = arith.constant 0 : index
    %c0_244 = arith.constant 0 : index
    %c0_245 = arith.constant 0 : index
    %266 = vector.load %arg24[%c0_243, %c0_244, %c0_245] : memref<3x32x32xbf16, #tpu.memory_space<vmem>>, vector<1x32x32xbf16>
    %267 = vector.shape_cast %266 : vector<1x32x32xbf16> to vector<32x32xbf16>
    %cst_246 = arith.constant dense<0.000000e+00> : vector<4x32xf32>
    %268 = tpu.matmul %265, %267, %cst_246 {dimension_numbers = #tpu.dot_dimension_numbers<[1], [0], [0], [1], [0, 0, 1, 1], [], []>} : vector<4x32xbf16>, vector<32x32xbf16>, vector<4x32xf32> -> vector<4x32xf32>
    %269 = arith.addf %263, %268 : vector<4x32xf32>
    %c1_247 = arith.constant 1 : index
    %c0_248 = arith.constant 0 : index
    %270 = vector.load %arg58[%c1_247, %c0_248] : memref<24x32xf32, #tpu.memory_space<vmem>>, vector<4x32xf32>
    %271 = arith.truncf %270 : vector<4x32xf32> to vector<4x32xbf16>
    %c1_249 = arith.constant 1 : index
    %c0_250 = arith.constant 0 : index
    %c0_251 = arith.constant 0 : index
    %272 = vector.load %arg24[%c1_249, %c0_250, %c0_251] : memref<3x32x32xbf16, #tpu.memory_space<vmem>>, vector<1x32x32xbf16>
    %273 = vector.shape_cast %272 : vector<1x32x32xbf16> to vector<32x32xbf16>
    %cst_252 = arith.constant dense<0.000000e+00> : vector<4x32xf32>
    %274 = tpu.matmul %271, %273, %cst_252 {dimension_numbers = #tpu.dot_dimension_numbers<[1], [0], [0], [1], [0, 0, 1, 1], [], []>} : vector<4x32xbf16>, vector<32x32xbf16>, vector<4x32xf32> -> vector<4x32xf32>
    %275 = arith.addf %269, %274 : vector<4x32xf32>
    %c2_253 = arith.constant 2 : index
    %c0_254 = arith.constant 0 : index
    %276 = vector.load %arg58[%c2_253, %c0_254] : memref<24x32xf32, #tpu.memory_space<vmem>>, vector<4x32xf32>
    %277 = arith.truncf %276 : vector<4x32xf32> to vector<4x32xbf16>
    %c2_255 = arith.constant 2 : index
    %c0_256 = arith.constant 0 : index
    %c0_257 = arith.constant 0 : index
    %278 = vector.load %arg24[%c2_255, %c0_256, %c0_257] : memref<3x32x32xbf16, #tpu.memory_space<vmem>>, vector<1x32x32xbf16>
    %279 = vector.shape_cast %278 : vector<1x32x32xbf16> to vector<32x32xbf16>
    %cst_258 = arith.constant dense<0.000000e+00> : vector<4x32xf32>
    %280 = tpu.matmul %277, %279, %cst_258 {dimension_numbers = #tpu.dot_dimension_numbers<[1], [0], [0], [1], [0, 0, 1, 1], [], []>} : vector<4x32xbf16>, vector<32x32xbf16>, vector<4x32xf32> -> vector<4x32xf32>
    %281 = arith.addf %275, %280 : vector<4x32xf32>
    %c0_259 = arith.constant 0 : index
    %c0_260 = arith.constant 0 : index
    %282 = vector.load %arg25[%c0_259, %c0_260] : memref<1x32xf32, #tpu.memory_space<vmem>>, vector<1x32xf32>
    %283 = vector.broadcast %282 : vector<1x32xf32> to vector<4x32xf32>
    %284 = arith.addf %281, %283 : vector<4x32xf32>
    %285 = arith.mulf %284, %284 : vector<4x32xf32>
    %cst_261 = arith.constant dense<0.000000e+00> : vector<4xf32>
    %286 = vector.multi_reduction <add>, %285, %cst_261 [1] : vector<4x32xf32> to vector<4xf32>
    %287 = vector.shape_cast %286 : vector<4xf32> to vector<4x1xf32>
    %cst_262 = arith.constant dense<0.000000e+00> : vector<4x64xf32>
    %288 = tpu.matmul %284, %1, %cst_262 {dimension_numbers = #tpu.dot_dimension_numbers<[1], [0], [0], [1], [0, 0, 1, 1], [], []>} : vector<4x32xf32>, vector<32x64xf32>, vector<4x64xf32> -> vector<4x64xf32>
    %cst_263 = arith.constant 2.000000e+00 : f32
    %289 = vector.broadcast %cst_263 : f32 to vector<4x64xf32>
    %290 = arith.mulf %289, %288 : vector<4x64xf32>
    %291 = vector.broadcast %287 : vector<4x1xf32> to vector<4x64xf32>
    %292 = arith.subf %291, %290 : vector<4x64xf32>
    %293 = vector.broadcast %2 : vector<1x64xf32> to vector<4x64xf32>
    %294 = arith.addf %292, %293 : vector<4x64xf32>
    %cst_264 = arith.constant dense<0x7F800000> : vector<4xf32>
    %295 = vector.multi_reduction <minimumf>, %294, %cst_264 [1] : vector<4x64xf32> to vector<4xf32>
    %296 = vector.shape_cast %295 : vector<4xf32> to vector<4x1xf32>
    %297 = tpu.iota {dimensions = array<i32: 1>} : vector<4x64xi32>
    %298 = vector.broadcast %296 : vector<4x1xf32> to vector<4x64xf32>
    %299 = arith.cmpf ole, %294, %298 : vector<4x64xf32>
    %c64_i32 = arith.constant 64 : i32
    %300 = vector.broadcast %c64_i32 : i32 to vector<4x64xi32>
    %301 = arith.select %299, %297, %300 : vector<4x64xi1>, vector<4x64xi32>
    %cst_265 = arith.constant dense<2147483647> : vector<4xi32>
    %302 = vector.multi_reduction <minsi>, %301, %cst_265 [1] : vector<4x64xi32> to vector<4xi32>
    %303 = vector.shape_cast %302 : vector<4xi32> to vector<4x1xi32>
    %304 = vector.broadcast %303 : vector<4x1xi32> to vector<4x64xi32>
    %305 = arith.cmpi eq, %297, %304 : vector<4x64xi32>
    %306 = arith.extui %305 : vector<4x64xi1> to vector<4x64xi32>
    %307 = arith.sitofp %306 : vector<4x64xi32> to vector<4x64xf32>
    %cst_266 = arith.constant dense<0.000000e+00> : vector<4x32xf32>
    %308 = tpu.matmul %307, %0, %cst_266 {dimension_numbers = #tpu.dot_dimension_numbers<[1], [0], [0], [1], [0, 0, 1, 1], [], []>} : vector<4x64xf32>, vector<64x32xf32>, vector<4x32xf32> -> vector<4x32xf32>
    %309 = arith.subf %284, %308 : vector<4x32xf32>
    %310 = arith.mulf %309, %309 : vector<4x32xf32>
    %cst_267 = arith.constant dense<0.000000e+00> : vector<4xf32>
    %311 = vector.multi_reduction <add>, %310, %cst_267 [1] : vector<4x32xf32> to vector<4xf32>
    %312 = vector.shape_cast %311 : vector<4xf32> to vector<4x1xf32>
    %cst_268 = arith.constant dense<0.000000e+00> : vector<1xf32>
    %313 = vector.multi_reduction <add>, %312, %cst_268 [0] : vector<4x1xf32> to vector<1xf32>
    %314 = vector.shape_cast %313 : vector<1xf32> to vector<1x1xf32>
    %315 = arith.addf %3, %314 : vector<1x1xf32>
    %cst_269 = arith.constant dense<0.000000e+00> : vector<64xf32>
    %316 = vector.multi_reduction <add>, %307, %cst_269 [0] : vector<4x64xf32> to vector<64xf32>
    %317 = vector.shape_cast %316 : vector<64xf32> to vector<1x64xf32>
    %318 = arith.addf %4, %317 : vector<1x64xf32>
    %cst_270 = arith.constant 0.000000e+00 : f32
    %319 = vector.broadcast %cst_270 : f32 to vector<24x32xf32>
    %c0_271 = arith.constant 0 : index
    %c0_272 = arith.constant 0 : index
    %320 = vector.load %arg58[%c0_271, %c0_272] : memref<24x32xf32, #tpu.memory_space<vmem>>, vector<24x32xf32>
    tpu.vector_store %arg58[%c0_271, %c0_272], %319 {strides = array<i32>} : memref<24x32xf32, #tpu.memory_space<vmem>>, vector<24x32xf32>,
    %c1_273 = arith.constant 1 : index
    %c0_274 = arith.constant 0 : index
    %321 = vector.load %arg58[%c1_273, %c0_274] : memref<24x32xf32, #tpu.memory_space<vmem>>, vector<4x32xf32>
    tpu.vector_store %arg58[%c1_273, %c0_274], %308 {strides = array<i32>} : memref<24x32xf32, #tpu.memory_space<vmem>>, vector<4x32xf32>,
    %cst_275 = arith.constant 0.000000e+00 : f32
    %322 = vector.broadcast %cst_275 : f32 to vector<4x32xf32>
    %c0_276 = arith.constant 0 : index
    %c0_277 = arith.constant 0 : index
    %323 = vector.load %arg58[%c0_276, %c0_277] : memref<24x32xf32, #tpu.memory_space<vmem>>, vector<4x32xf32>
    %324 = arith.truncf %323 : vector<4x32xf32> to vector<4x32xbf16>
    %c0_278 = arith.constant 0 : index
    %c0_279 = arith.constant 0 : index
    %c0_280 = arith.constant 0 : index
    %325 = vector.load %arg26[%c0_278, %c0_279, %c0_280] : memref<3x32x32xbf16, #tpu.memory_space<vmem>>, vector<1x32x32xbf16>
    %326 = vector.shape_cast %325 : vector<1x32x32xbf16> to vector<32x32xbf16>
    %cst_281 = arith.constant dense<0.000000e+00> : vector<4x32xf32>
    %327 = tpu.matmul %324, %326, %cst_281 {dimension_numbers = #tpu.dot_dimension_numbers<[1], [0], [0], [1], [0, 0, 1, 1], [], []>} : vector<4x32xbf16>, vector<32x32xbf16>, vector<4x32xf32> -> vector<4x32xf32>
    %328 = arith.addf %322, %327 : vector<4x32xf32>
    %c1_282 = arith.constant 1 : index
    %c0_283 = arith.constant 0 : index
    %329 = vector.load %arg58[%c1_282, %c0_283] : memref<24x32xf32, #tpu.memory_space<vmem>>, vector<4x32xf32>
    %330 = arith.truncf %329 : vector<4x32xf32> to vector<4x32xbf16>
    %c1_284 = arith.constant 1 : index
    %c0_285 = arith.constant 0 : index
    %c0_286 = arith.constant 0 : index
    %331 = vector.load %arg26[%c1_284, %c0_285, %c0_286] : memref<3x32x32xbf16, #tpu.memory_space<vmem>>, vector<1x32x32xbf16>
    %332 = vector.shape_cast %331 : vector<1x32x32xbf16> to vector<32x32xbf16>
    %cst_287 = arith.constant dense<0.000000e+00> : vector<4x32xf32>
    %333 = tpu.matmul %330, %332, %cst_287 {dimension_numbers = #tpu.dot_dimension_numbers<[1], [0], [0], [1], [0, 0, 1, 1], [], []>} : vector<4x32xbf16>, vector<32x32xbf16>, vector<4x32xf32> -> vector<4x32xf32>
    %334 = arith.addf %328, %333 : vector<4x32xf32>
    %c2_288 = arith.constant 2 : index
    %c0_289 = arith.constant 0 : index
    %335 = vector.load %arg58[%c2_288, %c0_289] : memref<24x32xf32, #tpu.memory_space<vmem>>, vector<4x32xf32>
    %336 = arith.truncf %335 : vector<4x32xf32> to vector<4x32xbf16>
    %c2_290 = arith.constant 2 : index
    %c0_291 = arith.constant 0 : index
    %c0_292 = arith.constant 0 : index
    %337 = vector.load %arg26[%c2_290, %c0_291, %c0_292] : memref<3x32x32xbf16, #tpu.memory_space<vmem>>, vector<1x32x32xbf16>
    %338 = vector.shape_cast %337 : vector<1x32x32xbf16> to vector<32x32xbf16>
    %cst_293 = arith.constant dense<0.000000e+00> : vector<4x32xf32>
    %339 = tpu.matmul %336, %338, %cst_293 {dimension_numbers = #tpu.dot_dimension_numbers<[1], [0], [0], [1], [0, 0, 1, 1], [], []>} : vector<4x32xbf16>, vector<32x32xbf16>, vector<4x32xf32> -> vector<4x32xf32>
    %340 = arith.addf %334, %339 : vector<4x32xf32>
    %c0_294 = arith.constant 0 : index
    %c0_295 = arith.constant 0 : index
    %341 = vector.load %arg27[%c0_294, %c0_295] : memref<1x32xf32, #tpu.memory_space<vmem>>, vector<1x32xf32>
    %342 = vector.broadcast %341 : vector<1x32xf32> to vector<4x32xf32>
    %343 = arith.addf %340, %342 : vector<4x32xf32>
    %cst_296 = arith.constant 0.000000e+00 : f32
    %344 = vector.broadcast %cst_296 : f32 to vector<4x32xf32>
    %345 = arith.maximumf %343, %344 : vector<4x32xf32>
    %cst_297 = arith.constant 0.000000e+00 : f32
    %346 = vector.broadcast %cst_297 : f32 to vector<4x32xf32>
    %347 = arith.maximumf %345, %346 : vector<4x32xf32>
    %cst_298 = arith.constant 0.000000e+00 : f32
    %348 = vector.broadcast %cst_298 : f32 to vector<24x32xf32>
    %c0_299 = arith.constant 0 : index
    %c0_300 = arith.constant 0 : index
    %349 = vector.load %arg58[%c0_299, %c0_300] : memref<24x32xf32, #tpu.memory_space<vmem>>, vector<24x32xf32>
    tpu.vector_store %arg58[%c0_299, %c0_300], %348 {strides = array<i32>} : memref<24x32xf32, #tpu.memory_space<vmem>>, vector<24x32xf32>,
    %c3_301 = arith.constant 3 : index
    %c0_302 = arith.constant 0 : index
    %350 = vector.load %arg58[%c3_301, %c0_302] : memref<24x32xf32, #tpu.memory_space<vmem>>, vector<4x32xf32>
    tpu.vector_store %arg58[%c3_301, %c0_302], %347 {strides = array<i32>} : memref<24x32xf32, #tpu.memory_space<vmem>>, vector<4x32xf32>,
    %cst_303 = arith.constant 0.000000e+00 : f32
    %351 = vector.broadcast %cst_303 : f32 to vector<4x32xf32>
    %c0_304 = arith.constant 0 : index
    %c0_305 = arith.constant 0 : index
    %352 = vector.load %arg58[%c0_304, %c0_305] : memref<24x32xf32, #tpu.memory_space<vmem>>, vector<4x32xf32>
    %353 = arith.truncf %352 : vector<4x32xf32> to vector<4x32xbf16>
    %c0_306 = arith.constant 0 : index
    %c0_307 = arith.constant 0 : index
    %c0_308 = arith.constant 0 : index
    %354 = vector.load %arg28[%c0_306, %c0_307, %c0_308] : memref<3x32x32xbf16, #tpu.memory_space<vmem>>, vector<1x32x32xbf16>
    %355 = vector.shape_cast %354 : vector<1x32x32xbf16> to vector<32x32xbf16>
    %cst_309 = arith.constant dense<0.000000e+00> : vector<4x32xf32>
    %356 = tpu.matmul %353, %355, %cst_309 {dimension_numbers = #tpu.dot_dimension_numbers<[1], [0], [0], [1], [0, 0, 1, 1], [], []>} : vector<4x32xbf16>, vector<32x32xbf16>, vector<4x32xf32> -> vector<4x32xf32>
    %357 = arith.addf %351, %356 : vector<4x32xf32>
    %c3_310 = arith.constant 3 : index
    %c0_311 = arith.constant 0 : index
    %358 = vector.load %arg58[%c3_310, %c0_311] : memref<24x32xf32, #tpu.memory_space<vmem>>, vector<4x32xf32>
    %359 = arith.truncf %358 : vector<4x32xf32> to vector<4x32xbf16>
    %c1_312 = arith.constant 1 : index
    %c0_313 = arith.constant 0 : index
    %c0_314 = arith.constant 0 : index
    %360 = vector.load %arg28[%c1_312, %c0_313, %c0_314] : memref<3x32x32xbf16, #tpu.memory_space<vmem>>, vector<1x32x32xbf16>
    %361 = vector.shape_cast %360 : vector<1x32x32xbf16> to vector<32x32xbf16>
    %cst_315 = arith.constant dense<0.000000e+00> : vector<4x32xf32>
    %362 = tpu.matmul %359, %361, %cst_315 {dimension_numbers = #tpu.dot_dimension_numbers<[1], [0], [0], [1], [0, 0, 1, 1], [], []>} : vector<4x32xbf16>, vector<32x32xbf16>, vector<4x32xf32> -> vector<4x32xf32>
    %363 = arith.addf %357, %362 : vector<4x32xf32>
    %c6_316 = arith.constant 6 : index
    %c0_317 = arith.constant 0 : index
    %364 = vector.load %arg58[%c6_316, %c0_317] : memref<24x32xf32, #tpu.memory_space<vmem>>, vector<4x32xf32>
    %365 = arith.truncf %364 : vector<4x32xf32> to vector<4x32xbf16>
    %c2_318 = arith.constant 2 : index
    %c0_319 = arith.constant 0 : index
    %c0_320 = arith.constant 0 : index
    %366 = vector.load %arg28[%c2_318, %c0_319, %c0_320] : memref<3x32x32xbf16, #tpu.memory_space<vmem>>, vector<1x32x32xbf16>
    %367 = vector.shape_cast %366 : vector<1x32x32xbf16> to vector<32x32xbf16>
    %cst_321 = arith.constant dense<0.000000e+00> : vector<4x32xf32>
    %368 = tpu.matmul %365, %367, %cst_321 {dimension_numbers = #tpu.dot_dimension_numbers<[1], [0], [0], [1], [0, 0, 1, 1], [], []>} : vector<4x32xbf16>, vector<32x32xbf16>, vector<4x32xf32> -> vector<4x32xf32>
    %369 = arith.addf %363, %368 : vector<4x32xf32>
    %c0_322 = arith.constant 0 : index
    %c0_323 = arith.constant 0 : index
    %370 = vector.load %arg29[%c0_322, %c0_323] : memref<1x32xf32, #tpu.memory_space<vmem>>, vector<1x32xf32>
    %371 = vector.broadcast %370 : vector<1x32xf32> to vector<4x32xf32>
    %372 = arith.addf %369, %371 : vector<4x32xf32>
    %cst_324 = arith.constant 0.000000e+00 : f32
    %373 = vector.broadcast %cst_324 : f32 to vector<4x32xf32>
    %374 = arith.maximumf %372, %373 : vector<4x32xf32>
    %375 = arith.truncf %374 : vector<4x32xf32> to vector<4x32xbf16>
    %c0_325 = arith.constant 0 : index
    %c0_326 = arith.constant 0 : index
    %c0_327 = arith.constant 0 : index
    %376 = vector.load %arg30[%c0_325, %c0_326, %c0_327] : memref<1x32x32xbf16, #tpu.memory_space<vmem>>, vector<1x32x32xbf16>
    %377 = vector.shape_cast %376 : vector<1x32x32xbf16> to vector<32x32xbf16>
    %cst_328 = arith.constant dense<0.000000e+00> : vector<4x32xf32>
    %378 = tpu.matmul %375, %377, %cst_328 {dimension_numbers = #tpu.dot_dimension_numbers<[1], [0], [0], [1], [0, 0, 1, 1], [], []>} : vector<4x32xbf16>, vector<32x32xbf16>, vector<4x32xf32> -> vector<4x32xf32>
    %c0_329 = arith.constant 0 : index
    %c0_330 = arith.constant 0 : index
    %379 = vector.load %arg31[%c0_329, %c0_330] : memref<1x32xf32, #tpu.memory_space<vmem>>, vector<1x32xf32>
    %380 = vector.broadcast %379 : vector<1x32xf32> to vector<4x32xf32>
    %381 = arith.addf %378, %380 : vector<4x32xf32>
    %382 = arith.addf %345, %381 : vector<4x32xf32>
    %cst_331 = arith.constant 0.000000e+00 : f32
    %383 = vector.broadcast %cst_331 : f32 to vector<4x32xf32>
    %384 = arith.maximumf %382, %383 : vector<4x32xf32>
    %cst_332 = arith.constant 0.000000e+00 : f32
    %385 = vector.broadcast %cst_332 : f32 to vector<24x32xf32>
    %c0_333 = arith.constant 0 : index
    %c0_334 = arith.constant 0 : index
    %386 = vector.load %arg58[%c0_333, %c0_334] : memref<24x32xf32, #tpu.memory_space<vmem>>, vector<24x32xf32>
    tpu.vector_store %arg58[%c0_333, %c0_334], %385 {strides = array<i32>} : memref<24x32xf32, #tpu.memory_space<vmem>>, vector<24x32xf32>,
    %c1_335 = arith.constant 1 : index
    %c0_336 = arith.constant 0 : index
    %387 = vector.load %arg58[%c1_335, %c0_336] : memref<24x32xf32, #tpu.memory_space<vmem>>, vector<4x32xf32>
    tpu.vector_store %arg58[%c1_335, %c0_336], %384 {strides = array<i32>} : memref<24x32xf32, #tpu.memory_space<vmem>>, vector<4x32xf32>,
    %cst_337 = arith.constant 0.000000e+00 : f32
    %388 = vector.broadcast %cst_337 : f32 to vector<4x32xf32>
    %c0_338 = arith.constant 0 : index
    %c0_339 = arith.constant 0 : index
    %389 = vector.load %arg58[%c0_338, %c0_339] : memref<24x32xf32, #tpu.memory_space<vmem>>, vector<4x32xf32>
    %390 = arith.truncf %389 : vector<4x32xf32> to vector<4x32xbf16>
    %c0_340 = arith.constant 0 : index
    %c0_341 = arith.constant 0 : index
    %c0_342 = arith.constant 0 : index
    %391 = vector.load %arg32[%c0_340, %c0_341, %c0_342] : memref<3x32x32xbf16, #tpu.memory_space<vmem>>, vector<1x32x32xbf16>
    %392 = vector.shape_cast %391 : vector<1x32x32xbf16> to vector<32x32xbf16>
    %cst_343 = arith.constant dense<0.000000e+00> : vector<4x32xf32>
    %393 = tpu.matmul %390, %392, %cst_343 {dimension_numbers = #tpu.dot_dimension_numbers<[1], [0], [0], [1], [0, 0, 1, 1], [], []>} : vector<4x32xbf16>, vector<32x32xbf16>, vector<4x32xf32> -> vector<4x32xf32>
    %394 = arith.addf %388, %393 : vector<4x32xf32>
    %c1_344 = arith.constant 1 : index
    %c0_345 = arith.constant 0 : index
    %395 = vector.load %arg58[%c1_344, %c0_345] : memref<24x32xf32, #tpu.memory_space<vmem>>, vector<4x32xf32>
    %396 = arith.truncf %395 : vector<4x32xf32> to vector<4x32xbf16>
    %c1_346 = arith.constant 1 : index
    %c0_347 = arith.constant 0 : index
    %c0_348 = arith.constant 0 : index
    %397 = vector.load %arg32[%c1_346, %c0_347, %c0_348] : memref<3x32x32xbf16, #tpu.memory_space<vmem>>, vector<1x32x32xbf16>
    %398 = vector.shape_cast %397 : vector<1x32x32xbf16> to vector<32x32xbf16>
    %cst_349 = arith.constant dense<0.000000e+00> : vector<4x32xf32>
    %399 = tpu.matmul %396, %398, %cst_349 {dimension_numbers = #tpu.dot_dimension_numbers<[1], [0], [0], [1], [0, 0, 1, 1], [], []>} : vector<4x32xbf16>, vector<32x32xbf16>, vector<4x32xf32> -> vector<4x32xf32>
    %400 = arith.addf %394, %399 : vector<4x32xf32>
    %c2_350 = arith.constant 2 : index
    %c0_351 = arith.constant 0 : index
    %401 = vector.load %arg58[%c2_350, %c0_351] : memref<24x32xf32, #tpu.memory_space<vmem>>, vector<4x32xf32>
    %402 = arith.truncf %401 : vector<4x32xf32> to vector<4x32xbf16>
    %c2_352 = arith.constant 2 : index
    %c0_353 = arith.constant 0 : index
    %c0_354 = arith.constant 0 : index
    %403 = vector.load %arg32[%c2_352, %c0_353, %c0_354] : memref<3x32x32xbf16, #tpu.memory_space<vmem>>, vector<1x32x32xbf16>
    %404 = vector.shape_cast %403 : vector<1x32x32xbf16> to vector<32x32xbf16>
    %cst_355 = arith.constant dense<0.000000e+00> : vector<4x32xf32>
    %405 = tpu.matmul %402, %404, %cst_355 {dimension_numbers = #tpu.dot_dimension_numbers<[1], [0], [0], [1], [0, 0, 1, 1], [], []>} : vector<4x32xbf16>, vector<32x32xbf16>, vector<4x32xf32> -> vector<4x32xf32>
    %406 = arith.addf %400, %405 : vector<4x32xf32>
    %c0_356 = arith.constant 0 : index
    %c0_357 = arith.constant 0 : index
    %407 = vector.load %arg33[%c0_356, %c0_357] : memref<1x32xf32, #tpu.memory_space<vmem>>, vector<1x32xf32>
    %408 = vector.broadcast %407 : vector<1x32xf32> to vector<4x32xf32>
    %409 = arith.addf %406, %408 : vector<4x32xf32>
    %cst_358 = arith.constant 0.000000e+00 : f32
    %410 = vector.broadcast %cst_358 : f32 to vector<4x32xf32>
    %411 = arith.maximumf %409, %410 : vector<4x32xf32>
    %412 = arith.truncf %411 : vector<4x32xf32> to vector<4x32xbf16>
    %c0_359 = arith.constant 0 : index
    %c0_360 = arith.constant 0 : index
    %c0_361 = arith.constant 0 : index
    %413 = vector.load %arg34[%c0_359, %c0_360, %c0_361] : memref<1x32x32xbf16, #tpu.memory_space<vmem>>, vector<1x32x32xbf16>
    %414 = vector.shape_cast %413 : vector<1x32x32xbf16> to vector<32x32xbf16>
    %cst_362 = arith.constant dense<0.000000e+00> : vector<4x32xf32>
    %415 = tpu.matmul %412, %414, %cst_362 {dimension_numbers = #tpu.dot_dimension_numbers<[1], [0], [0], [1], [0, 0, 1, 1], [], []>} : vector<4x32xbf16>, vector<32x32xbf16>, vector<4x32xf32> -> vector<4x32xf32>
    %c0_363 = arith.constant 0 : index
    %c0_364 = arith.constant 0 : index
    %416 = vector.load %arg35[%c0_363, %c0_364] : memref<1x32xf32, #tpu.memory_space<vmem>>, vector<1x32xf32>
    %417 = vector.broadcast %416 : vector<1x32xf32> to vector<4x32xf32>
    %418 = arith.addf %415, %417 : vector<4x32xf32>
    %419 = arith.addf %382, %418 : vector<4x32xf32>
    %420 = tpu.iota {dimensions = array<i32: 0>} : vector<8x4xi32>
    %421 = tpu.iota {dimensions = array<i32: 1>} : vector<8x4xi32>
    %c2_i32_365 = arith.constant 2 : i32
    %422 = vector.broadcast %c2_i32_365 : i32 to vector<8x4xi32>
    %423 = arith.muli %422, %421 : vector<8x4xi32>
    %424 = arith.cmpi eq, %420, %423 : vector<8x4xi32>
    %c2_i32_366 = arith.constant 2 : i32
    %425 = vector.broadcast %c2_i32_366 : i32 to vector<8x4xi32>
    %426 = arith.muli %425, %421 : vector<8x4xi32>
    %c1_i32 = arith.constant 1 : i32
    %427 = vector.broadcast %c1_i32 : i32 to vector<8x4xi32>
    %428 = arith.addi %426, %427 : vector<8x4xi32>
    %429 = arith.cmpi eq, %420, %428 : vector<8x4xi32>
    %430 = arith.ori %424, %429 : vector<8x4xi1>
    %431 = arith.extui %430 : vector<8x4xi1> to vector<8x4xi32>
    %432 = arith.sitofp %431 : vector<8x4xi32> to vector<8x4xf32>
    %cst_367 = arith.constant dense<0.000000e+00> : vector<8x32xf32>
    %433 = tpu.matmul %432, %419, %cst_367 {dimension_numbers = #tpu.dot_dimension_numbers<[1], [0], [0], [1], [0, 0, 1, 1], [], []>} : vector<8x4xf32>, vector<4x32xf32>, vector<8x32xf32> -> vector<8x32xf32>
    %cst_368 = arith.constant 0.000000e+00 : f32
    %434 = vector.broadcast %cst_368 : f32 to vector<24x32xf32>
    %c0_369 = arith.constant 0 : index
    %c0_370 = arith.constant 0 : index
    %435 = vector.load %arg58[%c0_369, %c0_370] : memref<24x32xf32, #tpu.memory_space<vmem>>, vector<24x32xf32>
    tpu.vector_store %arg58[%c0_369, %c0_370], %434 {strides = array<i32>} : memref<24x32xf32, #tpu.memory_space<vmem>>, vector<24x32xf32>,
    %c1_371 = arith.constant 1 : index
    %c0_372 = arith.constant 0 : index
    %436 = vector.load %arg58[%c1_371, %c0_372] : memref<24x32xf32, #tpu.memory_space<vmem>>, vector<8x32xf32>
    tpu.vector_store %arg58[%c1_371, %c0_372], %433 {strides = array<i32>} : memref<24x32xf32, #tpu.memory_space<vmem>>, vector<8x32xf32>,
    %cst_373 = arith.constant 0.000000e+00 : f32
    %437 = vector.broadcast %cst_373 : f32 to vector<8x32xf32>
    %c0_374 = arith.constant 0 : index
    %c0_375 = arith.constant 0 : index
    %438 = vector.load %arg58[%c0_374, %c0_375] : memref<24x32xf32, #tpu.memory_space<vmem>>, vector<8x32xf32>
    %439 = arith.truncf %438 : vector<8x32xf32> to vector<8x32xbf16>
    %c0_376 = arith.constant 0 : index
    %c0_377 = arith.constant 0 : index
    %c0_378 = arith.constant 0 : index
    %440 = vector.load %arg36[%c0_376, %c0_377, %c0_378] : memref<3x32x32xbf16, #tpu.memory_space<vmem>>, vector<1x32x32xbf16>
    %441 = vector.shape_cast %440 : vector<1x32x32xbf16> to vector<32x32xbf16>
    %cst_379 = arith.constant dense<0.000000e+00> : vector<8x32xf32>
    %442 = tpu.matmul %439, %441, %cst_379 {dimension_numbers = #tpu.dot_dimension_numbers<[1], [0], [0], [1], [0, 0, 1, 1], [], []>} : vector<8x32xbf16>, vector<32x32xbf16>, vector<8x32xf32> -> vector<8x32xf32>
    %443 = arith.addf %437, %442 : vector<8x32xf32>
    %c1_380 = arith.constant 1 : index
    %c0_381 = arith.constant 0 : index
    %444 = vector.load %arg58[%c1_380, %c0_381] : memref<24x32xf32, #tpu.memory_space<vmem>>, vector<8x32xf32>
    %445 = arith.truncf %444 : vector<8x32xf32> to vector<8x32xbf16>
    %c1_382 = arith.constant 1 : index
    %c0_383 = arith.constant 0 : index
    %c0_384 = arith.constant 0 : index
    %446 = vector.load %arg36[%c1_382, %c0_383, %c0_384] : memref<3x32x32xbf16, #tpu.memory_space<vmem>>, vector<1x32x32xbf16>
    %447 = vector.shape_cast %446 : vector<1x32x32xbf16> to vector<32x32xbf16>
    %cst_385 = arith.constant dense<0.000000e+00> : vector<8x32xf32>
    %448 = tpu.matmul %445, %447, %cst_385 {dimension_numbers = #tpu.dot_dimension_numbers<[1], [0], [0], [1], [0, 0, 1, 1], [], []>} : vector<8x32xbf16>, vector<32x32xbf16>, vector<8x32xf32> -> vector<8x32xf32>
    %449 = arith.addf %443, %448 : vector<8x32xf32>
    %c2_386 = arith.constant 2 : index
    %c0_387 = arith.constant 0 : index
    %450 = vector.load %arg58[%c2_386, %c0_387] : memref<24x32xf32, #tpu.memory_space<vmem>>, vector<8x32xf32>
    %451 = arith.truncf %450 : vector<8x32xf32> to vector<8x32xbf16>
    %c2_388 = arith.constant 2 : index
    %c0_389 = arith.constant 0 : index
    %c0_390 = arith.constant 0 : index
    %452 = vector.load %arg36[%c2_388, %c0_389, %c0_390] : memref<3x32x32xbf16, #tpu.memory_space<vmem>>, vector<1x32x32xbf16>
    %453 = vector.shape_cast %452 : vector<1x32x32xbf16> to vector<32x32xbf16>
    %cst_391 = arith.constant dense<0.000000e+00> : vector<8x32xf32>
    %454 = tpu.matmul %451, %453, %cst_391 {dimension_numbers = #tpu.dot_dimension_numbers<[1], [0], [0], [1], [0, 0, 1, 1], [], []>} : vector<8x32xbf16>, vector<32x32xbf16>, vector<8x32xf32> -> vector<8x32xf32>
    %455 = arith.addf %449, %454 : vector<8x32xf32>
    %c0_392 = arith.constant 0 : index
    %c0_393 = arith.constant 0 : index
    %456 = vector.load %arg37[%c0_392, %c0_393] : memref<1x32xf32, #tpu.memory_space<vmem>>, vector<1x32xf32>
    %457 = vector.broadcast %456 : vector<1x32xf32> to vector<8x32xf32>
    %458 = arith.addf %455, %457 : vector<8x32xf32>
    %cst_394 = arith.constant 0.000000e+00 : f32
    %459 = vector.broadcast %cst_394 : f32 to vector<8x32xf32>
    %460 = arith.maximumf %458, %459 : vector<8x32xf32>
    %cst_395 = arith.constant 0.000000e+00 : f32
    %461 = vector.broadcast %cst_395 : f32 to vector<24x32xf32>
    %c0_396 = arith.constant 0 : index
    %c0_397 = arith.constant 0 : index
    %462 = vector.load %arg58[%c0_396, %c0_397] : memref<24x32xf32, #tpu.memory_space<vmem>>, vector<24x32xf32>
    tpu.vector_store %arg58[%c0_396, %c0_397], %461 {strides = array<i32>} : memref<24x32xf32, #tpu.memory_space<vmem>>, vector<24x32xf32>,
    %c3_398 = arith.constant 3 : index
    %c0_399 = arith.constant 0 : index
    %463 = vector.load %arg58[%c3_398, %c0_399] : memref<24x32xf32, #tpu.memory_space<vmem>>, vector<8x32xf32>
    tpu.vector_store %arg58[%c3_398, %c0_399], %460 {strides = array<i32>} : memref<24x32xf32, #tpu.memory_space<vmem>>, vector<8x32xf32>,
    %cst_400 = arith.constant 0.000000e+00 : f32
    %464 = vector.broadcast %cst_400 : f32 to vector<8x32xf32>
    %c0_401 = arith.constant 0 : index
    %c0_402 = arith.constant 0 : index
    %465 = vector.load %arg58[%c0_401, %c0_402] : memref<24x32xf32, #tpu.memory_space<vmem>>, vector<8x32xf32>
    %466 = arith.truncf %465 : vector<8x32xf32> to vector<8x32xbf16>
    %c0_403 = arith.constant 0 : index
    %c0_404 = arith.constant 0 : index
    %c0_405 = arith.constant 0 : index
    %467 = vector.load %arg38[%c0_403, %c0_404, %c0_405] : memref<3x32x32xbf16, #tpu.memory_space<vmem>>, vector<1x32x32xbf16>
    %468 = vector.shape_cast %467 : vector<1x32x32xbf16> to vector<32x32xbf16>
    %cst_406 = arith.constant dense<0.000000e+00> : vector<8x32xf32>
    %469 = tpu.matmul %466, %468, %cst_406 {dimension_numbers = #tpu.dot_dimension_numbers<[1], [0], [0], [1], [0, 0, 1, 1], [], []>} : vector<8x32xbf16>, vector<32x32xbf16>, vector<8x32xf32> -> vector<8x32xf32>
    %470 = arith.addf %464, %469 : vector<8x32xf32>
    %c3_407 = arith.constant 3 : index
    %c0_408 = arith.constant 0 : index
    %471 = vector.load %arg58[%c3_407, %c0_408] : memref<24x32xf32, #tpu.memory_space<vmem>>, vector<8x32xf32>
    %472 = arith.truncf %471 : vector<8x32xf32> to vector<8x32xbf16>
    %c1_409 = arith.constant 1 : index
    %c0_410 = arith.constant 0 : index
    %c0_411 = arith.constant 0 : index
    %473 = vector.load %arg38[%c1_409, %c0_410, %c0_411] : memref<3x32x32xbf16, #tpu.memory_space<vmem>>, vector<1x32x32xbf16>
    %474 = vector.shape_cast %473 : vector<1x32x32xbf16> to vector<32x32xbf16>
    %cst_412 = arith.constant dense<0.000000e+00> : vector<8x32xf32>
    %475 = tpu.matmul %472, %474, %cst_412 {dimension_numbers = #tpu.dot_dimension_numbers<[1], [0], [0], [1], [0, 0, 1, 1], [], []>} : vector<8x32xbf16>, vector<32x32xbf16>, vector<8x32xf32> -> vector<8x32xf32>
    %476 = arith.addf %470, %475 : vector<8x32xf32>
    %c6_413 = arith.constant 6 : index
    %c0_414 = arith.constant 0 : index
    %477 = vector.load %arg58[%c6_413, %c0_414] : memref<24x32xf32, #tpu.memory_space<vmem>>, vector<8x32xf32>
    %478 = arith.truncf %477 : vector<8x32xf32> to vector<8x32xbf16>
    %c2_415 = arith.constant 2 : index
    %c0_416 = arith.constant 0 : index
    %c0_417 = arith.constant 0 : index
    %479 = vector.load %arg38[%c2_415, %c0_416, %c0_417] : memref<3x32x32xbf16, #tpu.memory_space<vmem>>, vector<1x32x32xbf16>
    %480 = vector.shape_cast %479 : vector<1x32x32xbf16> to vector<32x32xbf16>
    %cst_418 = arith.constant dense<0.000000e+00> : vector<8x32xf32>
    %481 = tpu.matmul %478, %480, %cst_418 {dimension_numbers = #tpu.dot_dimension_numbers<[1], [0], [0], [1], [0, 0, 1, 1], [], []>} : vector<8x32xbf16>, vector<32x32xbf16>, vector<8x32xf32> -> vector<8x32xf32>
    %482 = arith.addf %476, %481 : vector<8x32xf32>
    %c0_419 = arith.constant 0 : index
    %c0_420 = arith.constant 0 : index
    %483 = vector.load %arg39[%c0_419, %c0_420] : memref<1x32xf32, #tpu.memory_space<vmem>>, vector<1x32xf32>
    %484 = vector.broadcast %483 : vector<1x32xf32> to vector<8x32xf32>
    %485 = arith.addf %482, %484 : vector<8x32xf32>
    %cst_421 = arith.constant 0.000000e+00 : f32
    %486 = vector.broadcast %cst_421 : f32 to vector<8x32xf32>
    %487 = arith.maximumf %485, %486 : vector<8x32xf32>
    %488 = arith.truncf %487 : vector<8x32xf32> to vector<8x32xbf16>
    %c0_422 = arith.constant 0 : index
    %c0_423 = arith.constant 0 : index
    %c0_424 = arith.constant 0 : index
    %489 = vector.load %arg40[%c0_422, %c0_423, %c0_424] : memref<1x32x32xbf16, #tpu.memory_space<vmem>>, vector<1x32x32xbf16>
    %490 = vector.shape_cast %489 : vector<1x32x32xbf16> to vector<32x32xbf16>
    %cst_425 = arith.constant dense<0.000000e+00> : vector<8x32xf32>
    %491 = tpu.matmul %488, %490, %cst_425 {dimension_numbers = #tpu.dot_dimension_numbers<[1], [0], [0], [1], [0, 0, 1, 1], [], []>} : vector<8x32xbf16>, vector<32x32xbf16>, vector<8x32xf32> -> vector<8x32xf32>
    %c0_426 = arith.constant 0 : index
    %c0_427 = arith.constant 0 : index
    %492 = vector.load %arg41[%c0_426, %c0_427] : memref<1x32xf32, #tpu.memory_space<vmem>>, vector<1x32xf32>
    %493 = vector.broadcast %492 : vector<1x32xf32> to vector<8x32xf32>
    %494 = arith.addf %491, %493 : vector<8x32xf32>
    %495 = arith.addf %458, %494 : vector<8x32xf32>
    %cst_428 = arith.constant 0.000000e+00 : f32
    %496 = vector.broadcast %cst_428 : f32 to vector<8x32xf32>
    %497 = arith.maximumf %495, %496 : vector<8x32xf32>
    %cst_429 = arith.constant 0.000000e+00 : f32
    %498 = vector.broadcast %cst_429 : f32 to vector<24x32xf32>
    %c0_430 = arith.constant 0 : index
    %c0_431 = arith.constant 0 : index
    %499 = vector.load %arg58[%c0_430, %c0_431] : memref<24x32xf32, #tpu.memory_space<vmem>>, vector<24x32xf32>
    tpu.vector_store %arg58[%c0_430, %c0_431], %498 {strides = array<i32>} : memref<24x32xf32, #tpu.memory_space<vmem>>, vector<24x32xf32>,
    %c1_432 = arith.constant 1 : index
    %c0_433 = arith.constant 0 : index
    %500 = vector.load %arg58[%c1_432, %c0_433] : memref<24x32xf32, #tpu.memory_space<vmem>>, vector<8x32xf32>
    tpu.vector_store %arg58[%c1_432, %c0_433], %497 {strides = array<i32>} : memref<24x32xf32, #tpu.memory_space<vmem>>, vector<8x32xf32>,
    %cst_434 = arith.constant 0.000000e+00 : f32
    %501 = vector.broadcast %cst_434 : f32 to vector<8x32xf32>
    %c0_435 = arith.constant 0 : index
    %c0_436 = arith.constant 0 : index
    %502 = vector.load %arg58[%c0_435, %c0_436] : memref<24x32xf32, #tpu.memory_space<vmem>>, vector<8x32xf32>
    %503 = arith.truncf %502 : vector<8x32xf32> to vector<8x32xbf16>
    %c0_437 = arith.constant 0 : index
    %c0_438 = arith.constant 0 : index
    %c0_439 = arith.constant 0 : index
    %504 = vector.load %arg42[%c0_437, %c0_438, %c0_439] : memref<3x32x32xbf16, #tpu.memory_space<vmem>>, vector<1x32x32xbf16>
    %505 = vector.shape_cast %504 : vector<1x32x32xbf16> to vector<32x32xbf16>
    %cst_440 = arith.constant dense<0.000000e+00> : vector<8x32xf32>
    %506 = tpu.matmul %503, %505, %cst_440 {dimension_numbers = #tpu.dot_dimension_numbers<[1], [0], [0], [1], [0, 0, 1, 1], [], []>} : vector<8x32xbf16>, vector<32x32xbf16>, vector<8x32xf32> -> vector<8x32xf32>
    %507 = arith.addf %501, %506 : vector<8x32xf32>
    %c1_441 = arith.constant 1 : index
    %c0_442 = arith.constant 0 : index
    %508 = vector.load %arg58[%c1_441, %c0_442] : memref<24x32xf32, #tpu.memory_space<vmem>>, vector<8x32xf32>
    %509 = arith.truncf %508 : vector<8x32xf32> to vector<8x32xbf16>
    %c1_443 = arith.constant 1 : index
    %c0_444 = arith.constant 0 : index
    %c0_445 = arith.constant 0 : index
    %510 = vector.load %arg42[%c1_443, %c0_444, %c0_445] : memref<3x32x32xbf16, #tpu.memory_space<vmem>>, vector<1x32x32xbf16>
    %511 = vector.shape_cast %510 : vector<1x32x32xbf16> to vector<32x32xbf16>
    %cst_446 = arith.constant dense<0.000000e+00> : vector<8x32xf32>
    %512 = tpu.matmul %509, %511, %cst_446 {dimension_numbers = #tpu.dot_dimension_numbers<[1], [0], [0], [1], [0, 0, 1, 1], [], []>} : vector<8x32xbf16>, vector<32x32xbf16>, vector<8x32xf32> -> vector<8x32xf32>
    %513 = arith.addf %507, %512 : vector<8x32xf32>
    %c2_447 = arith.constant 2 : index
    %c0_448 = arith.constant 0 : index
    %514 = vector.load %arg58[%c2_447, %c0_448] : memref<24x32xf32, #tpu.memory_space<vmem>>, vector<8x32xf32>
    %515 = arith.truncf %514 : vector<8x32xf32> to vector<8x32xbf16>
    %c2_449 = arith.constant 2 : index
    %c0_450 = arith.constant 0 : index
    %c0_451 = arith.constant 0 : index
    %516 = vector.load %arg42[%c2_449, %c0_450, %c0_451] : memref<3x32x32xbf16, #tpu.memory_space<vmem>>, vector<1x32x32xbf16>
    %517 = vector.shape_cast %516 : vector<1x32x32xbf16> to vector<32x32xbf16>
    %cst_452 = arith.constant dense<0.000000e+00> : vector<8x32xf32>
    %518 = tpu.matmul %515, %517, %cst_452 {dimension_numbers = #tpu.dot_dimension_numbers<[1], [0], [0], [1], [0, 0, 1, 1], [], []>} : vector<8x32xbf16>, vector<32x32xbf16>, vector<8x32xf32> -> vector<8x32xf32>
    %519 = arith.addf %513, %518 : vector<8x32xf32>
    %c0_453 = arith.constant 0 : index
    %c0_454 = arith.constant 0 : index
    %520 = vector.load %arg43[%c0_453, %c0_454] : memref<1x32xf32, #tpu.memory_space<vmem>>, vector<1x32xf32>
    %521 = vector.broadcast %520 : vector<1x32xf32> to vector<8x32xf32>
    %522 = arith.addf %519, %521 : vector<8x32xf32>
    %cst_455 = arith.constant 0.000000e+00 : f32
    %523 = vector.broadcast %cst_455 : f32 to vector<8x32xf32>
    %524 = arith.maximumf %522, %523 : vector<8x32xf32>
    %525 = arith.truncf %524 : vector<8x32xf32> to vector<8x32xbf16>
    %c0_456 = arith.constant 0 : index
    %c0_457 = arith.constant 0 : index
    %c0_458 = arith.constant 0 : index
    %526 = vector.load %arg44[%c0_456, %c0_457, %c0_458] : memref<1x32x32xbf16, #tpu.memory_space<vmem>>, vector<1x32x32xbf16>
    %527 = vector.shape_cast %526 : vector<1x32x32xbf16> to vector<32x32xbf16>
    %cst_459 = arith.constant dense<0.000000e+00> : vector<8x32xf32>
    %528 = tpu.matmul %525, %527, %cst_459 {dimension_numbers = #tpu.dot_dimension_numbers<[1], [0], [0], [1], [0, 0, 1, 1], [], []>} : vector<8x32xbf16>, vector<32x32xbf16>, vector<8x32xf32> -> vector<8x32xf32>
    %c0_460 = arith.constant 0 : index
    %c0_461 = arith.constant 0 : index
    %529 = vector.load %arg45[%c0_460, %c0_461] : memref<1x32xf32, #tpu.memory_space<vmem>>, vector<1x32xf32>
    %530 = vector.broadcast %529 : vector<1x32xf32> to vector<8x32xf32>
    %531 = arith.addf %528, %530 : vector<8x32xf32>
    %532 = arith.addf %495, %531 : vector<8x32xf32>
    %533 = tpu.iota {dimensions = array<i32: 0>} : vector<16x8xi32>
    %534 = tpu.iota {dimensions = array<i32: 1>} : vector<16x8xi32>
    %c2_i32_462 = arith.constant 2 : i32
    %535 = vector.broadcast %c2_i32_462 : i32 to vector<16x8xi32>
    %536 = arith.muli %535, %534 : vector<16x8xi32>
    %537 = arith.cmpi eq, %533, %536 : vector<16x8xi32>
    %c2_i32_463 = arith.constant 2 : i32
    %538 = vector.broadcast %c2_i32_463 : i32 to vector<16x8xi32>
    %539 = arith.muli %538, %534 : vector<16x8xi32>
    %c1_i32_464 = arith.constant 1 : i32
    %540 = vector.broadcast %c1_i32_464 : i32 to vector<16x8xi32>
    %541 = arith.addi %539, %540 : vector<16x8xi32>
    %542 = arith.cmpi eq, %533, %541 : vector<16x8xi32>
    %543 = arith.ori %537, %542 : vector<16x8xi1>
    %544 = arith.extui %543 : vector<16x8xi1> to vector<16x8xi32>
    %545 = arith.sitofp %544 : vector<16x8xi32> to vector<16x8xf32>
    %cst_465 = arith.constant dense<0.000000e+00> : vector<16x32xf32>
    %546 = tpu.matmul %545, %532, %cst_465 {dimension_numbers = #tpu.dot_dimension_numbers<[1], [0], [0], [1], [0, 0, 1, 1], [], []>} : vector<16x8xf32>, vector<8x32xf32>, vector<16x32xf32> -> vector<16x32xf32>
    %cst_466 = arith.constant 0.000000e+00 : f32
    %547 = vector.broadcast %cst_466 : f32 to vector<24x32xf32>
    %c0_467 = arith.constant 0 : index
    %c0_468 = arith.constant 0 : index
    %548 = vector.load %arg58[%c0_467, %c0_468] : memref<24x32xf32, #tpu.memory_space<vmem>>, vector<24x32xf32>
    tpu.vector_store %arg58[%c0_467, %c0_468], %547 {strides = array<i32>} : memref<24x32xf32, #tpu.memory_space<vmem>>, vector<24x32xf32>,
    %c1_469 = arith.constant 1 : index
    %c0_470 = arith.constant 0 : index
    %549 = vector.load %arg58[%c1_469, %c0_470] : memref<24x32xf32, #tpu.memory_space<vmem>>, vector<16x32xf32>
    tpu.vector_store %arg58[%c1_469, %c0_470], %546 {strides = array<i32>} : memref<24x32xf32, #tpu.memory_space<vmem>>, vector<16x32xf32>,
    %cst_471 = arith.constant 0.000000e+00 : f32
    %550 = vector.broadcast %cst_471 : f32 to vector<16x32xf32>
    %c0_472 = arith.constant 0 : index
    %c0_473 = arith.constant 0 : index
    %551 = vector.load %arg58[%c0_472, %c0_473] : memref<24x32xf32, #tpu.memory_space<vmem>>, vector<16x32xf32>
    %552 = arith.truncf %551 : vector<16x32xf32> to vector<16x32xbf16>
    %c0_474 = arith.constant 0 : index
    %c0_475 = arith.constant 0 : index
    %c0_476 = arith.constant 0 : index
    %553 = vector.load %arg46[%c0_474, %c0_475, %c0_476] : memref<3x32x32xbf16, #tpu.memory_space<vmem>>, vector<1x32x32xbf16>
    %554 = vector.shape_cast %553 : vector<1x32x32xbf16> to vector<32x32xbf16>
    %cst_477 = arith.constant dense<0.000000e+00> : vector<16x32xf32>
    %555 = tpu.matmul %552, %554, %cst_477 {dimension_numbers = #tpu.dot_dimension_numbers<[1], [0], [0], [1], [0, 0, 1, 1], [], []>} : vector<16x32xbf16>, vector<32x32xbf16>, vector<16x32xf32> -> vector<16x32xf32>
    %556 = arith.addf %550, %555 : vector<16x32xf32>
    %c1_478 = arith.constant 1 : index
    %c0_479 = arith.constant 0 : index
    %557 = vector.load %arg58[%c1_478, %c0_479] : memref<24x32xf32, #tpu.memory_space<vmem>>, vector<16x32xf32>
    %558 = arith.truncf %557 : vector<16x32xf32> to vector<16x32xbf16>
    %c1_480 = arith.constant 1 : index
    %c0_481 = arith.constant 0 : index
    %c0_482 = arith.constant 0 : index
    %559 = vector.load %arg46[%c1_480, %c0_481, %c0_482] : memref<3x32x32xbf16, #tpu.memory_space<vmem>>, vector<1x32x32xbf16>
    %560 = vector.shape_cast %559 : vector<1x32x32xbf16> to vector<32x32xbf16>
    %cst_483 = arith.constant dense<0.000000e+00> : vector<16x32xf32>
    %561 = tpu.matmul %558, %560, %cst_483 {dimension_numbers = #tpu.dot_dimension_numbers<[1], [0], [0], [1], [0, 0, 1, 1], [], []>} : vector<16x32xbf16>, vector<32x32xbf16>, vector<16x32xf32> -> vector<16x32xf32>
    %562 = arith.addf %556, %561 : vector<16x32xf32>
    %c2_484 = arith.constant 2 : index
    %c0_485 = arith.constant 0 : index
    %563 = vector.load %arg58[%c2_484, %c0_485] : memref<24x32xf32, #tpu.memory_space<vmem>>, vector<16x32xf32>
    %564 = arith.truncf %563 : vector<16x32xf32> to vector<16x32xbf16>
    %c2_486 = arith.constant 2 : index
    %c0_487 = arith.constant 0 : index
    %c0_488 = arith.constant 0 : index
    %565 = vector.load %arg46[%c2_486, %c0_487, %c0_488] : memref<3x32x32xbf16, #tpu.memory_space<vmem>>, vector<1x32x32xbf16>
    %566 = vector.shape_cast %565 : vector<1x32x32xbf16> to vector<32x32xbf16>
    %cst_489 = arith.constant dense<0.000000e+00> : vector<16x32xf32>
    %567 = tpu.matmul %564, %566, %cst_489 {dimension_numbers = #tpu.dot_dimension_numbers<[1], [0], [0], [1], [0, 0, 1, 1], [], []>} : vector<16x32xbf16>, vector<32x32xbf16>, vector<16x32xf32> -> vector<16x32xf32>
    %568 = arith.addf %562, %567 : vector<16x32xf32>
    %c0_490 = arith.constant 0 : index
    %c0_491 = arith.constant 0 : index
    %569 = vector.load %arg47[%c0_490, %c0_491] : memref<1x32xf32, #tpu.memory_space<vmem>>, vector<1x32xf32>
    %570 = vector.broadcast %569 : vector<1x32xf32> to vector<16x32xf32>
    %571 = arith.addf %568, %570 : vector<16x32xf32>
    %cst_492 = arith.constant 0.000000e+00 : f32
    %572 = vector.broadcast %cst_492 : f32 to vector<24x32xf32>
    %c0_493 = arith.constant 0 : index
    %c0_494 = arith.constant 0 : index
    %573 = vector.load %arg58[%c0_493, %c0_494] : memref<24x32xf32, #tpu.memory_space<vmem>>, vector<24x32xf32>
    tpu.vector_store %arg58[%c0_493, %c0_494], %572 {strides = array<i32>} : memref<24x32xf32, #tpu.memory_space<vmem>>, vector<24x32xf32>,
    %c1_495 = arith.constant 1 : index
    %c0_496 = arith.constant 0 : index
    %574 = vector.load %arg58[%c1_495, %c0_496] : memref<24x32xf32, #tpu.memory_space<vmem>>, vector<16x32xf32>
    tpu.vector_store %arg58[%c1_495, %c0_496], %571 {strides = array<i32>} : memref<24x32xf32, #tpu.memory_space<vmem>>, vector<16x32xf32>,
    %cst_497 = arith.constant 0.000000e+00 : f32
    %575 = vector.broadcast %cst_497 : f32 to vector<16x32xf32>
    %c0_498 = arith.constant 0 : index
    %c0_499 = arith.constant 0 : index
    %576 = vector.load %arg58[%c0_498, %c0_499] : memref<24x32xf32, #tpu.memory_space<vmem>>, vector<16x32xf32>
    %577 = arith.truncf %576 : vector<16x32xf32> to vector<16x32xbf16>
    %c0_500 = arith.constant 0 : index
    %c0_501 = arith.constant 0 : index
    %c0_502 = arith.constant 0 : index
    %578 = vector.load %arg48[%c0_500, %c0_501, %c0_502] : memref<3x32x32xbf16, #tpu.memory_space<vmem>>, vector<1x32x32xbf16>
    %579 = vector.shape_cast %578 : vector<1x32x32xbf16> to vector<32x32xbf16>
    %cst_503 = arith.constant dense<0.000000e+00> : vector<16x32xf32>
    %580 = tpu.matmul %577, %579, %cst_503 {dimension_numbers = #tpu.dot_dimension_numbers<[1], [0], [0], [1], [0, 0, 1, 1], [], []>} : vector<16x32xbf16>, vector<32x32xbf16>, vector<16x32xf32> -> vector<16x32xf32>
    %581 = arith.addf %575, %580 : vector<16x32xf32>
    %c1_504 = arith.constant 1 : index
    %c0_505 = arith.constant 0 : index
    %582 = vector.load %arg58[%c1_504, %c0_505] : memref<24x32xf32, #tpu.memory_space<vmem>>, vector<16x32xf32>
    %583 = arith.truncf %582 : vector<16x32xf32> to vector<16x32xbf16>
    %c1_506 = arith.constant 1 : index
    %c0_507 = arith.constant 0 : index
    %c0_508 = arith.constant 0 : index
    %584 = vector.load %arg48[%c1_506, %c0_507, %c0_508] : memref<3x32x32xbf16, #tpu.memory_space<vmem>>, vector<1x32x32xbf16>
    %585 = vector.shape_cast %584 : vector<1x32x32xbf16> to vector<32x32xbf16>
    %cst_509 = arith.constant dense<0.000000e+00> : vector<16x32xf32>
    %586 = tpu.matmul %583, %585, %cst_509 {dimension_numbers = #tpu.dot_dimension_numbers<[1], [0], [0], [1], [0, 0, 1, 1], [], []>} : vector<16x32xbf16>, vector<32x32xbf16>, vector<16x32xf32> -> vector<16x32xf32>
    %587 = arith.addf %581, %586 : vector<16x32xf32>
    %c2_510 = arith.constant 2 : index
    %c0_511 = arith.constant 0 : index
    %588 = vector.load %arg58[%c2_510, %c0_511] : memref<24x32xf32, #tpu.memory_space<vmem>>, vector<16x32xf32>
    %589 = arith.truncf %588 : vector<16x32xf32> to vector<16x32xbf16>
    %c2_512 = arith.constant 2 : index
    %c0_513 = arith.constant 0 : index
    %c0_514 = arith.constant 0 : index
    %590 = vector.load %arg48[%c2_512, %c0_513, %c0_514] : memref<3x32x32xbf16, #tpu.memory_space<vmem>>, vector<1x32x32xbf16>
    %591 = vector.shape_cast %590 : vector<1x32x32xbf16> to vector<32x32xbf16>
    %cst_515 = arith.constant dense<0.000000e+00> : vector<16x32xf32>
    %592 = tpu.matmul %589, %591, %cst_515 {dimension_numbers = #tpu.dot_dimension_numbers<[1], [0], [0], [1], [0, 0, 1, 1], [], []>} : vector<16x32xbf16>, vector<32x32xbf16>, vector<16x32xf32> -> vector<16x32xf32>
    %593 = arith.addf %587, %592 : vector<16x32xf32>
    %c0_516 = arith.constant 0 : index
    %c0_517 = arith.constant 0 : index
    %594 = vector.load %arg49[%c0_516, %c0_517] : memref<1x32xf32, #tpu.memory_space<vmem>>, vector<1x32xf32>
    %595 = vector.broadcast %594 : vector<1x32xf32> to vector<16x32xf32>
    %596 = arith.addf %593, %595 : vector<16x32xf32>
    %cst_518 = arith.constant 0.000000e+00 : f32
    %597 = vector.broadcast %cst_518 : f32 to vector<16x32xf32>
    %598 = arith.maximumf %596, %597 : vector<16x32xf32>
    %cst_519 = arith.constant 0.000000e+00 : f32
    %599 = vector.broadcast %cst_519 : f32 to vector<24x32xf32>
    %c0_520 = arith.constant 0 : index
    %c0_521 = arith.constant 0 : index
    %600 = vector.load %arg58[%c0_520, %c0_521] : memref<24x32xf32, #tpu.memory_space<vmem>>, vector<24x32xf32>
    tpu.vector_store %arg58[%c0_520, %c0_521], %599 {strides = array<i32>} : memref<24x32xf32, #tpu.memory_space<vmem>>, vector<24x32xf32>,
    %c1_522 = arith.constant 1 : index
    %c0_523 = arith.constant 0 : index
    %601 = vector.load %arg58[%c1_522, %c0_523] : memref<24x32xf32, #tpu.memory_space<vmem>>, vector<16x32xf32>
    tpu.vector_store %arg58[%c1_522, %c0_523], %598 {strides = array<i32>} : memref<24x32xf32, #tpu.memory_space<vmem>>, vector<16x32xf32>,
    %cst_524 = arith.constant 0.000000e+00 : f32
    %602 = vector.broadcast %cst_524 : f32 to vector<16x3xf32>
    %c0_525 = arith.constant 0 : index
    %c0_526 = arith.constant 0 : index
    %603 = vector.load %arg58[%c0_525, %c0_526] : memref<24x32xf32, #tpu.memory_space<vmem>>, vector<16x32xf32>
    %604 = arith.truncf %603 : vector<16x32xf32> to vector<16x32xbf16>
    %c0_527 = arith.constant 0 : index
    %c0_528 = arith.constant 0 : index
    %c0_529 = arith.constant 0 : index
    %605 = vector.load %arg50[%c0_527, %c0_528, %c0_529] : memref<3x32x3xbf16, #tpu.memory_space<vmem>>, vector<1x32x3xbf16>
    %606 = vector.shape_cast %605 : vector<1x32x3xbf16> to vector<32x3xbf16>
    %cst_530 = arith.constant dense<0.000000e+00> : vector<16x3xf32>
    %607 = tpu.matmul %604, %606, %cst_530 {dimension_numbers = #tpu.dot_dimension_numbers<[1], [0], [0], [1], [0, 0, 1, 1], [], []>} : vector<16x32xbf16>, vector<32x3xbf16>, vector<16x3xf32> -> vector<16x3xf32>
    %608 = arith.addf %602, %607 : vector<16x3xf32>
    %c1_531 = arith.constant 1 : index
    %c0_532 = arith.constant 0 : index
    %609 = vector.load %arg58[%c1_531, %c0_532] : memref<24x32xf32, #tpu.memory_space<vmem>>, vector<16x32xf32>
    %610 = arith.truncf %609 : vector<16x32xf32> to vector<16x32xbf16>
    %c1_533 = arith.constant 1 : index
    %c0_534 = arith.constant 0 : index
    %c0_535 = arith.constant 0 : index
    %611 = vector.load %arg50[%c1_533, %c0_534, %c0_535] : memref<3x32x3xbf16, #tpu.memory_space<vmem>>, vector<1x32x3xbf16>
    %612 = vector.shape_cast %611 : vector<1x32x3xbf16> to vector<32x3xbf16>
    %cst_536 = arith.constant dense<0.000000e+00> : vector<16x3xf32>
    %613 = tpu.matmul %610, %612, %cst_536 {dimension_numbers = #tpu.dot_dimension_numbers<[1], [0], [0], [1], [0, 0, 1, 1], [], []>} : vector<16x32xbf16>, vector<32x3xbf16>, vector<16x3xf32> -> vector<16x3xf32>
    %614 = arith.addf %608, %613 : vector<16x3xf32>
    %c2_537 = arith.constant 2 : index
    %c0_538 = arith.constant 0 : index
    %615 = vector.load %arg58[%c2_537, %c0_538] : memref<24x32xf32, #tpu.memory_space<vmem>>, vector<16x32xf32>
    %616 = arith.truncf %615 : vector<16x32xf32> to vector<16x32xbf16>
    %c2_539 = arith.constant 2 : index
    %c0_540 = arith.constant 0 : index
    %c0_541 = arith.constant 0 : index
    %617 = vector.load %arg50[%c2_539, %c0_540, %c0_541] : memref<3x32x3xbf16, #tpu.memory_space<vmem>>, vector<1x32x3xbf16>
    %618 = vector.shape_cast %617 : vector<1x32x3xbf16> to vector<32x3xbf16>
    %cst_542 = arith.constant dense<0.000000e+00> : vector<16x3xf32>
    %619 = tpu.matmul %616, %618, %cst_542 {dimension_numbers = #tpu.dot_dimension_numbers<[1], [0], [0], [1], [0, 0, 1, 1], [], []>} : vector<16x32xbf16>, vector<32x3xbf16>, vector<16x3xf32> -> vector<16x3xf32>
    %620 = arith.addf %614, %619 : vector<16x3xf32>
    %c0_543 = arith.constant 0 : index
    %c0_544 = arith.constant 0 : index
    %621 = vector.load %arg51[%c0_543, %c0_544] : memref<1x3xf32, #tpu.memory_space<vmem>>, vector<1x3xf32>
    %622 = vector.broadcast %621 : vector<1x3xf32> to vector<16x3xf32>
    %623 = arith.addf %620, %622 : vector<16x3xf32>
    %c0_545 = arith.constant 0 : index
    %c0_546 = arith.constant 0 : index
    %c0_547 = arith.constant 0 : index
    %624 = vector.load %arg55[%c0_545, %c0_546, %c0_547] : memref<2x16x3xf32, #tpu.memory_space<vmem>>, vector<1x16x3xf32>
    %625 = vector.shape_cast %624 : vector<1x16x3xf32> to vector<16x3xf32>
    %626 = vector.shape_cast %623 : vector<16x3xf32> to vector<1x16x3xf32>
    tpu.vector_store %arg55[%c0_545, %c0_546, %c0_547], %626 {strides = array<i32>} : memref<2x16x3xf32, #tpu.memory_space<vmem>>, vector<1x16x3xf32>,
    %c1_548 = arith.constant 1 : index
    %c0_549 = arith.constant 0 : index
    %c0_550 = arith.constant 0 : index
    %627 = vector.load %arg1[%c1_548, %c0_549, %c0_550] : memref<2x16x3xf32, #tpu.memory_space<vmem>>, vector<1x16x3xf32>
    %628 = vector.shape_cast %627 : vector<1x16x3xf32> to vector<16x3xf32>
    %cst_551 = arith.constant 0.000000e+00 : f32
    %629 = vector.broadcast %cst_551 : f32 to vector<24x32xf32>
    %c0_552 = arith.constant 0 : index
    %c0_553 = arith.constant 0 : index
    %630 = vector.load %arg58[%c0_552, %c0_553] : memref<24x32xf32, #tpu.memory_space<vmem>>, vector<24x32xf32>
    tpu.vector_store %arg58[%c0_552, %c0_553], %629 {strides = array<i32>} : memref<24x32xf32, #tpu.memory_space<vmem>>, vector<24x32xf32>,
    %c1_554 = arith.constant 1 : index
    %c0_555 = arith.constant 0 : index
    %631 = vector.load %arg58[%c1_554, %c0_555] : memref<24x32xf32, #tpu.memory_space<vmem>>, vector<16x3xf32>
    tpu.vector_store %arg58[%c1_554, %c0_555], %628 {strides = array<i32>} : memref<24x32xf32, #tpu.memory_space<vmem>>, vector<16x3xf32>,
    %cst_556 = arith.constant 0.000000e+00 : f32
    %632 = vector.broadcast %cst_556 : f32 to vector<16x32xf32>
    %c0_557 = arith.constant 0 : index
    %c0_558 = arith.constant 0 : index
    %633 = vector.load %arg58[%c0_557, %c0_558] : memref<24x32xf32, #tpu.memory_space<vmem>>, vector<16x3xf32>
    %634 = arith.truncf %633 : vector<16x3xf32> to vector<16x3xbf16>
    %c0_559 = arith.constant 0 : index
    %c0_560 = arith.constant 0 : index
    %c0_561 = arith.constant 0 : index
    %635 = vector.load %arg2[%c0_559, %c0_560, %c0_561] : memref<3x3x32xbf16, #tpu.memory_space<vmem>>, vector<1x3x32xbf16>
    %636 = vector.shape_cast %635 : vector<1x3x32xbf16> to vector<3x32xbf16>
    %cst_562 = arith.constant dense<0.000000e+00> : vector<16x32xf32>
    %637 = tpu.matmul %634, %636, %cst_562 {dimension_numbers = #tpu.dot_dimension_numbers<[1], [0], [0], [1], [0, 0, 1, 1], [], []>} : vector<16x3xbf16>, vector<3x32xbf16>, vector<16x32xf32> -> vector<16x32xf32>
    %638 = arith.addf %632, %637 : vector<16x32xf32>
    %c1_563 = arith.constant 1 : index
    %c0_564 = arith.constant 0 : index
    %639 = vector.load %arg58[%c1_563, %c0_564] : memref<24x32xf32, #tpu.memory_space<vmem>>, vector<16x3xf32>
    %640 = arith.truncf %639 : vector<16x3xf32> to vector<16x3xbf16>
    %c1_565 = arith.constant 1 : index
    %c0_566 = arith.constant 0 : index
    %c0_567 = arith.constant 0 : index
    %641 = vector.load %arg2[%c1_565, %c0_566, %c0_567] : memref<3x3x32xbf16, #tpu.memory_space<vmem>>, vector<1x3x32xbf16>
    %642 = vector.shape_cast %641 : vector<1x3x32xbf16> to vector<3x32xbf16>
    %cst_568 = arith.constant dense<0.000000e+00> : vector<16x32xf32>
    %643 = tpu.matmul %640, %642, %cst_568 {dimension_numbers = #tpu.dot_dimension_numbers<[1], [0], [0], [1], [0, 0, 1, 1], [], []>} : vector<16x3xbf16>, vector<3x32xbf16>, vector<16x32xf32> -> vector<16x32xf32>
    %644 = arith.addf %638, %643 : vector<16x32xf32>
    %c2_569 = arith.constant 2 : index
    %c0_570 = arith.constant 0 : index
    %645 = vector.load %arg58[%c2_569, %c0_570] : memref<24x32xf32, #tpu.memory_space<vmem>>, vector<16x3xf32>
    %646 = arith.truncf %645 : vector<16x3xf32> to vector<16x3xbf16>
    %c2_571 = arith.constant 2 : index
    %c0_572 = arith.constant 0 : index
    %c0_573 = arith.constant 0 : index
    %647 = vector.load %arg2[%c2_571, %c0_572, %c0_573] : memref<3x3x32xbf16, #tpu.memory_space<vmem>>, vector<1x3x32xbf16>
    %648 = vector.shape_cast %647 : vector<1x3x32xbf16> to vector<3x32xbf16>
    %cst_574 = arith.constant dense<0.000000e+00> : vector<16x32xf32>
    %649 = tpu.matmul %646, %648, %cst_574 {dimension_numbers = #tpu.dot_dimension_numbers<[1], [0], [0], [1], [0, 0, 1, 1], [], []>} : vector<16x3xbf16>, vector<3x32xbf16>, vector<16x32xf32> -> vector<16x32xf32>
    %650 = arith.addf %644, %649 : vector<16x32xf32>
    %c0_575 = arith.constant 0 : index
    %c0_576 = arith.constant 0 : index
    %651 = vector.load %arg3[%c0_575, %c0_576] : memref<1x32xf32, #tpu.memory_space<vmem>>, vector<1x32xf32>
    %652 = vector.broadcast %651 : vector<1x32xf32> to vector<16x32xf32>
    %653 = arith.addf %650, %652 : vector<16x32xf32>
    %cst_577 = arith.constant 0.000000e+00 : f32
    %654 = vector.broadcast %cst_577 : f32 to vector<16x32xf32>
    %655 = arith.maximumf %653, %654 : vector<16x32xf32>
    %cst_578 = arith.constant 0.000000e+00 : f32
    %656 = vector.broadcast %cst_578 : f32 to vector<24x32xf32>
    %c0_579 = arith.constant 0 : index
    %c0_580 = arith.constant 0 : index
    %657 = vector.load %arg58[%c0_579, %c0_580] : memref<24x32xf32, #tpu.memory_space<vmem>>, vector<24x32xf32>
    tpu.vector_store %arg58[%c0_579, %c0_580], %656 {strides = array<i32>} : memref<24x32xf32, #tpu.memory_space<vmem>>, vector<24x32xf32>,
    %c1_581 = arith.constant 1 : index
    %c0_582 = arith.constant 0 : index
    %658 = vector.load %arg58[%c1_581, %c0_582] : memref<24x32xf32, #tpu.memory_space<vmem>>, vector<16x32xf32>
    tpu.vector_store %arg58[%c1_581, %c0_582], %655 {strides = array<i32>} : memref<24x32xf32, #tpu.memory_space<vmem>>, vector<16x32xf32>,
    %cst_583 = arith.constant 0.000000e+00 : f32
    %659 = vector.broadcast %cst_583 : f32 to vector<15x32xf32>
    %c0_584 = arith.constant 0 : index
    %c0_585 = arith.constant 0 : index
    %660 = vector.load %arg58[%c0_584, %c0_585] : memref<24x32xf32, #tpu.memory_space<vmem>>, vector<15x32xf32>
    %661 = arith.truncf %660 : vector<15x32xf32> to vector<15x32xbf16>
    %c0_586 = arith.constant 0 : index
    %c0_587 = arith.constant 0 : index
    %c0_588 = arith.constant 0 : index
    %662 = vector.load %arg4[%c0_586, %c0_587, %c0_588] : memref<4x32x32xbf16, #tpu.memory_space<vmem>>, vector<1x32x32xbf16>
    %663 = vector.shape_cast %662 : vector<1x32x32xbf16> to vector<32x32xbf16>
    %cst_589 = arith.constant dense<0.000000e+00> : vector<15x32xf32>
    %664 = tpu.matmul %661, %663, %cst_589 {dimension_numbers = #tpu.dot_dimension_numbers<[1], [0], [0], [1], [0, 0, 1, 1], [], []>} : vector<15x32xbf16>, vector<32x32xbf16>, vector<15x32xf32> -> vector<15x32xf32>
    %665 = arith.addf %659, %664 : vector<15x32xf32>
    %c1_590 = arith.constant 1 : index
    %c0_591 = arith.constant 0 : index
    %666 = vector.load %arg58[%c1_590, %c0_591] : memref<24x32xf32, #tpu.memory_space<vmem>>, vector<15x32xf32>
    %667 = arith.truncf %666 : vector<15x32xf32> to vector<15x32xbf16>
    %c1_592 = arith.constant 1 : index
    %c0_593 = arith.constant 0 : index
    %c0_594 = arith.constant 0 : index
    %668 = vector.load %arg4[%c1_592, %c0_593, %c0_594] : memref<4x32x32xbf16, #tpu.memory_space<vmem>>, vector<1x32x32xbf16>
    %669 = vector.shape_cast %668 : vector<1x32x32xbf16> to vector<32x32xbf16>
    %cst_595 = arith.constant dense<0.000000e+00> : vector<15x32xf32>
    %670 = tpu.matmul %667, %669, %cst_595 {dimension_numbers = #tpu.dot_dimension_numbers<[1], [0], [0], [1], [0, 0, 1, 1], [], []>} : vector<15x32xbf16>, vector<32x32xbf16>, vector<15x32xf32> -> vector<15x32xf32>
    %671 = arith.addf %665, %670 : vector<15x32xf32>
    %c2_596 = arith.constant 2 : index
    %c0_597 = arith.constant 0 : index
    %672 = vector.load %arg58[%c2_596, %c0_597] : memref<24x32xf32, #tpu.memory_space<vmem>>, vector<15x32xf32>
    %673 = arith.truncf %672 : vector<15x32xf32> to vector<15x32xbf16>
    %c2_598 = arith.constant 2 : index
    %c0_599 = arith.constant 0 : index
    %c0_600 = arith.constant 0 : index
    %674 = vector.load %arg4[%c2_598, %c0_599, %c0_600] : memref<4x32x32xbf16, #tpu.memory_space<vmem>>, vector<1x32x32xbf16>
    %675 = vector.shape_cast %674 : vector<1x32x32xbf16> to vector<32x32xbf16>
    %cst_601 = arith.constant dense<0.000000e+00> : vector<15x32xf32>
    %676 = tpu.matmul %673, %675, %cst_601 {dimension_numbers = #tpu.dot_dimension_numbers<[1], [0], [0], [1], [0, 0, 1, 1], [], []>} : vector<15x32xbf16>, vector<32x32xbf16>, vector<15x32xf32> -> vector<15x32xf32>
    %677 = arith.addf %671, %676 : vector<15x32xf32>
    %c3_602 = arith.constant 3 : index
    %c0_603 = arith.constant 0 : index
    %678 = vector.load %arg58[%c3_602, %c0_603] : memref<24x32xf32, #tpu.memory_space<vmem>>, vector<15x32xf32>
    %679 = arith.truncf %678 : vector<15x32xf32> to vector<15x32xbf16>
    %c3_604 = arith.constant 3 : index
    %c0_605 = arith.constant 0 : index
    %c0_606 = arith.constant 0 : index
    %680 = vector.load %arg4[%c3_604, %c0_605, %c0_606] : memref<4x32x32xbf16, #tpu.memory_space<vmem>>, vector<1x32x32xbf16>
    %681 = vector.shape_cast %680 : vector<1x32x32xbf16> to vector<32x32xbf16>
    %cst_607 = arith.constant dense<0.000000e+00> : vector<15x32xf32>
    %682 = tpu.matmul %679, %681, %cst_607 {dimension_numbers = #tpu.dot_dimension_numbers<[1], [0], [0], [1], [0, 0, 1, 1], [], []>} : vector<15x32xbf16>, vector<32x32xbf16>, vector<15x32xf32> -> vector<15x32xf32>
    %683 = arith.addf %677, %682 : vector<15x32xf32>
    %c0_608 = arith.constant 0 : index
    %c0_609 = arith.constant 0 : index
    %684 = vector.load %arg5[%c0_608, %c0_609] : memref<1x32xf32, #tpu.memory_space<vmem>>, vector<1x32xf32>
    %685 = vector.broadcast %684 : vector<1x32xf32> to vector<15x32xf32>
    %686 = arith.addf %683, %685 : vector<15x32xf32>
    %687 = tpu.iota {dimensions = array<i32: 0>} : vector<8x15xi32>
    %688 = tpu.iota {dimensions = array<i32: 1>} : vector<8x15xi32>
    %c2_i32_610 = arith.constant 2 : i32
    %689 = vector.broadcast %c2_i32_610 : i32 to vector<8x15xi32>
    %690 = arith.muli %689, %687 : vector<8x15xi32>
    %691 = arith.cmpi eq, %688, %690 : vector<8x15xi32>
    %692 = arith.extui %691 : vector<8x15xi1> to vector<8x15xi32>
    %693 = arith.sitofp %692 : vector<8x15xi32> to vector<8x15xf32>
    %cst_611 = arith.constant dense<0.000000e+00> : vector<8x32xf32>
    %694 = tpu.matmul %693, %686, %cst_611 {dimension_numbers = #tpu.dot_dimension_numbers<[1], [0], [0], [1], [0, 0, 1, 1], [], []>} : vector<8x15xf32>, vector<15x32xf32>, vector<8x32xf32> -> vector<8x32xf32>
    %cst_612 = arith.constant 0.000000e+00 : f32
    %695 = vector.broadcast %cst_612 : f32 to vector<8x32xf32>
    %696 = arith.maximumf %694, %695 : vector<8x32xf32>
    %cst_613 = arith.constant 0.000000e+00 : f32
    %697 = vector.broadcast %cst_613 : f32 to vector<24x32xf32>
    %c0_614 = arith.constant 0 : index
    %c0_615 = arith.constant 0 : index
    %698 = vector.load %arg58[%c0_614, %c0_615] : memref<24x32xf32, #tpu.memory_space<vmem>>, vector<24x32xf32>
    tpu.vector_store %arg58[%c0_614, %c0_615], %697 {strides = array<i32>} : memref<24x32xf32, #tpu.memory_space<vmem>>, vector<24x32xf32>,
    %c3_616 = arith.constant 3 : index
    %c0_617 = arith.constant 0 : index
    %699 = vector.load %arg58[%c3_616, %c0_617] : memref<24x32xf32, #tpu.memory_space<vmem>>, vector<8x32xf32>
    tpu.vector_store %arg58[%c3_616, %c0_617], %696 {strides = array<i32>} : memref<24x32xf32, #tpu.memory_space<vmem>>, vector<8x32xf32>,
    %cst_618 = arith.constant 0.000000e+00 : f32
    %700 = vector.broadcast %cst_618 : f32 to vector<8x32xf32>
    %c0_619 = arith.constant 0 : index
    %c0_620 = arith.constant 0 : index
    %701 = vector.load %arg58[%c0_619, %c0_620] : memref<24x32xf32, #tpu.memory_space<vmem>>, vector<8x32xf32>
    %702 = arith.truncf %701 : vector<8x32xf32> to vector<8x32xbf16>
    %c0_621 = arith.constant 0 : index
    %c0_622 = arith.constant 0 : index
    %c0_623 = arith.constant 0 : index
    %703 = vector.load %arg6[%c0_621, %c0_622, %c0_623] : memref<3x32x32xbf16, #tpu.memory_space<vmem>>, vector<1x32x32xbf16>
    %704 = vector.shape_cast %703 : vector<1x32x32xbf16> to vector<32x32xbf16>
    %cst_624 = arith.constant dense<0.000000e+00> : vector<8x32xf32>
    %705 = tpu.matmul %702, %704, %cst_624 {dimension_numbers = #tpu.dot_dimension_numbers<[1], [0], [0], [1], [0, 0, 1, 1], [], []>} : vector<8x32xbf16>, vector<32x32xbf16>, vector<8x32xf32> -> vector<8x32xf32>
    %706 = arith.addf %700, %705 : vector<8x32xf32>
    %c3_625 = arith.constant 3 : index
    %c0_626 = arith.constant 0 : index
    %707 = vector.load %arg58[%c3_625, %c0_626] : memref<24x32xf32, #tpu.memory_space<vmem>>, vector<8x32xf32>
    %708 = arith.truncf %707 : vector<8x32xf32> to vector<8x32xbf16>
    %c1_627 = arith.constant 1 : index
    %c0_628 = arith.constant 0 : index
    %c0_629 = arith.constant 0 : index
    %709 = vector.load %arg6[%c1_627, %c0_628, %c0_629] : memref<3x32x32xbf16, #tpu.memory_space<vmem>>, vector<1x32x32xbf16>
    %710 = vector.shape_cast %709 : vector<1x32x32xbf16> to vector<32x32xbf16>
    %cst_630 = arith.constant dense<0.000000e+00> : vector<8x32xf32>
    %711 = tpu.matmul %708, %710, %cst_630 {dimension_numbers = #tpu.dot_dimension_numbers<[1], [0], [0], [1], [0, 0, 1, 1], [], []>} : vector<8x32xbf16>, vector<32x32xbf16>, vector<8x32xf32> -> vector<8x32xf32>
    %712 = arith.addf %706, %711 : vector<8x32xf32>
    %c6_631 = arith.constant 6 : index
    %c0_632 = arith.constant 0 : index
    %713 = vector.load %arg58[%c6_631, %c0_632] : memref<24x32xf32, #tpu.memory_space<vmem>>, vector<8x32xf32>
    %714 = arith.truncf %713 : vector<8x32xf32> to vector<8x32xbf16>
    %c2_633 = arith.constant 2 : index
    %c0_634 = arith.constant 0 : index
    %c0_635 = arith.constant 0 : index
    %715 = vector.load %arg6[%c2_633, %c0_634, %c0_635] : memref<3x32x32xbf16, #tpu.memory_space<vmem>>, vector<1x32x32xbf16>
    %716 = vector.shape_cast %715 : vector<1x32x32xbf16> to vector<32x32xbf16>
    %cst_636 = arith.constant dense<0.000000e+00> : vector<8x32xf32>
    %717 = tpu.matmul %714, %716, %cst_636 {dimension_numbers = #tpu.dot_dimension_numbers<[1], [0], [0], [1], [0, 0, 1, 1], [], []>} : vector<8x32xbf16>, vector<32x32xbf16>, vector<8x32xf32> -> vector<8x32xf32>
    %718 = arith.addf %712, %717 : vector<8x32xf32>
    %c0_637 = arith.constant 0 : index
    %c0_638 = arith.constant 0 : index
    %719 = vector.load %arg7[%c0_637, %c0_638] : memref<1x32xf32, #tpu.memory_space<vmem>>, vector<1x32xf32>
    %720 = vector.broadcast %719 : vector<1x32xf32> to vector<8x32xf32>
    %721 = arith.addf %718, %720 : vector<8x32xf32>
    %cst_639 = arith.constant 0.000000e+00 : f32
    %722 = vector.broadcast %cst_639 : f32 to vector<8x32xf32>
    %723 = arith.maximumf %721, %722 : vector<8x32xf32>
    %724 = arith.truncf %723 : vector<8x32xf32> to vector<8x32xbf16>
    %c0_640 = arith.constant 0 : index
    %c0_641 = arith.constant 0 : index
    %c0_642 = arith.constant 0 : index
    %725 = vector.load %arg8[%c0_640, %c0_641, %c0_642] : memref<1x32x32xbf16, #tpu.memory_space<vmem>>, vector<1x32x32xbf16>
    %726 = vector.shape_cast %725 : vector<1x32x32xbf16> to vector<32x32xbf16>
    %cst_643 = arith.constant dense<0.000000e+00> : vector<8x32xf32>
    %727 = tpu.matmul %724, %726, %cst_643 {dimension_numbers = #tpu.dot_dimension_numbers<[1], [0], [0], [1], [0, 0, 1, 1], [], []>} : vector<8x32xbf16>, vector<32x32xbf16>, vector<8x32xf32> -> vector<8x32xf32>
    %c0_644 = arith.constant 0 : index
    %c0_645 = arith.constant 0 : index
    %728 = vector.load %arg9[%c0_644, %c0_645] : memref<1x32xf32, #tpu.memory_space<vmem>>, vector<1x32xf32>
    %729 = vector.broadcast %728 : vector<1x32xf32> to vector<8x32xf32>
    %730 = arith.addf %727, %729 : vector<8x32xf32>
    %731 = arith.addf %694, %730 : vector<8x32xf32>
    %cst_646 = arith.constant 0.000000e+00 : f32
    %732 = vector.broadcast %cst_646 : f32 to vector<8x32xf32>
    %733 = arith.maximumf %731, %732 : vector<8x32xf32>
    %cst_647 = arith.constant 0.000000e+00 : f32
    %734 = vector.broadcast %cst_647 : f32 to vector<24x32xf32>
    %c0_648 = arith.constant 0 : index
    %c0_649 = arith.constant 0 : index
    %735 = vector.load %arg58[%c0_648, %c0_649] : memref<24x32xf32, #tpu.memory_space<vmem>>, vector<24x32xf32>
    tpu.vector_store %arg58[%c0_648, %c0_649], %734 {strides = array<i32>} : memref<24x32xf32, #tpu.memory_space<vmem>>, vector<24x32xf32>,
    %c1_650 = arith.constant 1 : index
    %c0_651 = arith.constant 0 : index
    %736 = vector.load %arg58[%c1_650, %c0_651] : memref<24x32xf32, #tpu.memory_space<vmem>>, vector<8x32xf32>
    tpu.vector_store %arg58[%c1_650, %c0_651], %733 {strides = array<i32>} : memref<24x32xf32, #tpu.memory_space<vmem>>, vector<8x32xf32>,
    %cst_652 = arith.constant 0.000000e+00 : f32
    %737 = vector.broadcast %cst_652 : f32 to vector<8x32xf32>
    %c0_653 = arith.constant 0 : index
    %c0_654 = arith.constant 0 : index
    %738 = vector.load %arg58[%c0_653, %c0_654] : memref<24x32xf32, #tpu.memory_space<vmem>>, vector<8x32xf32>
    %739 = arith.truncf %738 : vector<8x32xf32> to vector<8x32xbf16>
    %c0_655 = arith.constant 0 : index
    %c0_656 = arith.constant 0 : index
    %c0_657 = arith.constant 0 : index
    %740 = vector.load %arg10[%c0_655, %c0_656, %c0_657] : memref<3x32x32xbf16, #tpu.memory_space<vmem>>, vector<1x32x32xbf16>
    %741 = vector.shape_cast %740 : vector<1x32x32xbf16> to vector<32x32xbf16>
    %cst_658 = arith.constant dense<0.000000e+00> : vector<8x32xf32>
    %742 = tpu.matmul %739, %741, %cst_658 {dimension_numbers = #tpu.dot_dimension_numbers<[1], [0], [0], [1], [0, 0, 1, 1], [], []>} : vector<8x32xbf16>, vector<32x32xbf16>, vector<8x32xf32> -> vector<8x32xf32>
    %743 = arith.addf %737, %742 : vector<8x32xf32>
    %c1_659 = arith.constant 1 : index
    %c0_660 = arith.constant 0 : index
    %744 = vector.load %arg58[%c1_659, %c0_660] : memref<24x32xf32, #tpu.memory_space<vmem>>, vector<8x32xf32>
    %745 = arith.truncf %744 : vector<8x32xf32> to vector<8x32xbf16>
    %c1_661 = arith.constant 1 : index
    %c0_662 = arith.constant 0 : index
    %c0_663 = arith.constant 0 : index
    %746 = vector.load %arg10[%c1_661, %c0_662, %c0_663] : memref<3x32x32xbf16, #tpu.memory_space<vmem>>, vector<1x32x32xbf16>
    %747 = vector.shape_cast %746 : vector<1x32x32xbf16> to vector<32x32xbf16>
    %cst_664 = arith.constant dense<0.000000e+00> : vector<8x32xf32>
    %748 = tpu.matmul %745, %747, %cst_664 {dimension_numbers = #tpu.dot_dimension_numbers<[1], [0], [0], [1], [0, 0, 1, 1], [], []>} : vector<8x32xbf16>, vector<32x32xbf16>, vector<8x32xf32> -> vector<8x32xf32>
    %749 = arith.addf %743, %748 : vector<8x32xf32>
    %c2_665 = arith.constant 2 : index
    %c0_666 = arith.constant 0 : index
    %750 = vector.load %arg58[%c2_665, %c0_666] : memref<24x32xf32, #tpu.memory_space<vmem>>, vector<8x32xf32>
    %751 = arith.truncf %750 : vector<8x32xf32> to vector<8x32xbf16>
    %c2_667 = arith.constant 2 : index
    %c0_668 = arith.constant 0 : index
    %c0_669 = arith.constant 0 : index
    %752 = vector.load %arg10[%c2_667, %c0_668, %c0_669] : memref<3x32x32xbf16, #tpu.memory_space<vmem>>, vector<1x32x32xbf16>
    %753 = vector.shape_cast %752 : vector<1x32x32xbf16> to vector<32x32xbf16>
    %cst_670 = arith.constant dense<0.000000e+00> : vector<8x32xf32>
    %754 = tpu.matmul %751, %753, %cst_670 {dimension_numbers = #tpu.dot_dimension_numbers<[1], [0], [0], [1], [0, 0, 1, 1], [], []>} : vector<8x32xbf16>, vector<32x32xbf16>, vector<8x32xf32> -> vector<8x32xf32>
    %755 = arith.addf %749, %754 : vector<8x32xf32>
    %c0_671 = arith.constant 0 : index
    %c0_672 = arith.constant 0 : index
    %756 = vector.load %arg11[%c0_671, %c0_672] : memref<1x32xf32, #tpu.memory_space<vmem>>, vector<1x32xf32>
    %757 = vector.broadcast %756 : vector<1x32xf32> to vector<8x32xf32>
    %758 = arith.addf %755, %757 : vector<8x32xf32>
    %cst_673 = arith.constant 0.000000e+00 : f32
    %759 = vector.broadcast %cst_673 : f32 to vector<8x32xf32>
    %760 = arith.maximumf %758, %759 : vector<8x32xf32>
    %761 = arith.truncf %760 : vector<8x32xf32> to vector<8x32xbf16>
    %c0_674 = arith.constant 0 : index
    %c0_675 = arith.constant 0 : index
    %c0_676 = arith.constant 0 : index
    %762 = vector.load %arg12[%c0_674, %c0_675, %c0_676] : memref<1x32x32xbf16, #tpu.memory_space<vmem>>, vector<1x32x32xbf16>
    %763 = vector.shape_cast %762 : vector<1x32x32xbf16> to vector<32x32xbf16>
    %cst_677 = arith.constant dense<0.000000e+00> : vector<8x32xf32>
    %764 = tpu.matmul %761, %763, %cst_677 {dimension_numbers = #tpu.dot_dimension_numbers<[1], [0], [0], [1], [0, 0, 1, 1], [], []>} : vector<8x32xbf16>, vector<32x32xbf16>, vector<8x32xf32> -> vector<8x32xf32>
    %c0_678 = arith.constant 0 : index
    %c0_679 = arith.constant 0 : index
    %765 = vector.load %arg13[%c0_678, %c0_679] : memref<1x32xf32, #tpu.memory_space<vmem>>, vector<1x32xf32>
    %766 = vector.broadcast %765 : vector<1x32xf32> to vector<8x32xf32>
    %767 = arith.addf %764, %766 : vector<8x32xf32>
    %768 = arith.addf %731, %767 : vector<8x32xf32>
    %cst_680 = arith.constant 0.000000e+00 : f32
    %769 = vector.broadcast %cst_680 : f32 to vector<24x32xf32>
    %c0_681 = arith.constant 0 : index
    %c0_682 = arith.constant 0 : index
    %770 = vector.load %arg58[%c0_681, %c0_682] : memref<24x32xf32, #tpu.memory_space<vmem>>, vector<24x32xf32>
    tpu.vector_store %arg58[%c0_681, %c0_682], %769 {strides = array<i32>} : memref<24x32xf32, #tpu.memory_space<vmem>>, vector<24x32xf32>,
    %c1_683 = arith.constant 1 : index
    %c0_684 = arith.constant 0 : index
    %771 = vector.load %arg58[%c1_683, %c0_684] : memref<24x32xf32, #tpu.memory_space<vmem>>, vector<8x32xf32>
    tpu.vector_store %arg58[%c1_683, %c0_684], %768 {strides = array<i32>} : memref<24x32xf32, #tpu.memory_space<vmem>>, vector<8x32xf32>,
    %cst_685 = arith.constant 0.000000e+00 : f32
    %772 = vector.broadcast %cst_685 : f32 to vector<7x32xf32>
    %c0_686 = arith.constant 0 : index
    %c0_687 = arith.constant 0 : index
    %773 = vector.load %arg58[%c0_686, %c0_687] : memref<24x32xf32, #tpu.memory_space<vmem>>, vector<7x32xf32>
    %774 = arith.truncf %773 : vector<7x32xf32> to vector<7x32xbf16>
    %c0_688 = arith.constant 0 : index
    %c0_689 = arith.constant 0 : index
    %c0_690 = arith.constant 0 : index
    %775 = vector.load %arg14[%c0_688, %c0_689, %c0_690] : memref<4x32x32xbf16, #tpu.memory_space<vmem>>, vector<1x32x32xbf16>
    %776 = vector.shape_cast %775 : vector<1x32x32xbf16> to vector<32x32xbf16>
    %cst_691 = arith.constant dense<0.000000e+00> : vector<7x32xf32>
    %777 = tpu.matmul %774, %776, %cst_691 {dimension_numbers = #tpu.dot_dimension_numbers<[1], [0], [0], [1], [0, 0, 1, 1], [], []>} : vector<7x32xbf16>, vector<32x32xbf16>, vector<7x32xf32> -> vector<7x32xf32>
    %778 = arith.addf %772, %777 : vector<7x32xf32>
    %c1_692 = arith.constant 1 : index
    %c0_693 = arith.constant 0 : index
    %779 = vector.load %arg58[%c1_692, %c0_693] : memref<24x32xf32, #tpu.memory_space<vmem>>, vector<7x32xf32>
    %780 = arith.truncf %779 : vector<7x32xf32> to vector<7x32xbf16>
    %c1_694 = arith.constant 1 : index
    %c0_695 = arith.constant 0 : index
    %c0_696 = arith.constant 0 : index
    %781 = vector.load %arg14[%c1_694, %c0_695, %c0_696] : memref<4x32x32xbf16, #tpu.memory_space<vmem>>, vector<1x32x32xbf16>
    %782 = vector.shape_cast %781 : vector<1x32x32xbf16> to vector<32x32xbf16>
    %cst_697 = arith.constant dense<0.000000e+00> : vector<7x32xf32>
    %783 = tpu.matmul %780, %782, %cst_697 {dimension_numbers = #tpu.dot_dimension_numbers<[1], [0], [0], [1], [0, 0, 1, 1], [], []>} : vector<7x32xbf16>, vector<32x32xbf16>, vector<7x32xf32> -> vector<7x32xf32>
    %784 = arith.addf %778, %783 : vector<7x32xf32>
    %c2_698 = arith.constant 2 : index
    %c0_699 = arith.constant 0 : index
    %785 = vector.load %arg58[%c2_698, %c0_699] : memref<24x32xf32, #tpu.memory_space<vmem>>, vector<7x32xf32>
    %786 = arith.truncf %785 : vector<7x32xf32> to vector<7x32xbf16>
    %c2_700 = arith.constant 2 : index
    %c0_701 = arith.constant 0 : index
    %c0_702 = arith.constant 0 : index
    %787 = vector.load %arg14[%c2_700, %c0_701, %c0_702] : memref<4x32x32xbf16, #tpu.memory_space<vmem>>, vector<1x32x32xbf16>
    %788 = vector.shape_cast %787 : vector<1x32x32xbf16> to vector<32x32xbf16>
    %cst_703 = arith.constant dense<0.000000e+00> : vector<7x32xf32>
    %789 = tpu.matmul %786, %788, %cst_703 {dimension_numbers = #tpu.dot_dimension_numbers<[1], [0], [0], [1], [0, 0, 1, 1], [], []>} : vector<7x32xbf16>, vector<32x32xbf16>, vector<7x32xf32> -> vector<7x32xf32>
    %790 = arith.addf %784, %789 : vector<7x32xf32>
    %c3_704 = arith.constant 3 : index
    %c0_705 = arith.constant 0 : index
    %791 = vector.load %arg58[%c3_704, %c0_705] : memref<24x32xf32, #tpu.memory_space<vmem>>, vector<7x32xf32>
    %792 = arith.truncf %791 : vector<7x32xf32> to vector<7x32xbf16>
    %c3_706 = arith.constant 3 : index
    %c0_707 = arith.constant 0 : index
    %c0_708 = arith.constant 0 : index
    %793 = vector.load %arg14[%c3_706, %c0_707, %c0_708] : memref<4x32x32xbf16, #tpu.memory_space<vmem>>, vector<1x32x32xbf16>
    %794 = vector.shape_cast %793 : vector<1x32x32xbf16> to vector<32x32xbf16>
    %cst_709 = arith.constant dense<0.000000e+00> : vector<7x32xf32>
    %795 = tpu.matmul %792, %794, %cst_709 {dimension_numbers = #tpu.dot_dimension_numbers<[1], [0], [0], [1], [0, 0, 1, 1], [], []>} : vector<7x32xbf16>, vector<32x32xbf16>, vector<7x32xf32> -> vector<7x32xf32>
    %796 = arith.addf %790, %795 : vector<7x32xf32>
    %c0_710 = arith.constant 0 : index
    %c0_711 = arith.constant 0 : index
    %797 = vector.load %arg15[%c0_710, %c0_711] : memref<1x32xf32, #tpu.memory_space<vmem>>, vector<1x32xf32>
    %798 = vector.broadcast %797 : vector<1x32xf32> to vector<7x32xf32>
    %799 = arith.addf %796, %798 : vector<7x32xf32>
    %800 = tpu.iota {dimensions = array<i32: 0>} : vector<4x7xi32>
    %801 = tpu.iota {dimensions = array<i32: 1>} : vector<4x7xi32>
    %c2_i32_712 = arith.constant 2 : i32
    %802 = vector.broadcast %c2_i32_712 : i32 to vector<4x7xi32>
    %803 = arith.muli %802, %800 : vector<4x7xi32>
    %804 = arith.cmpi eq, %801, %803 : vector<4x7xi32>
    %805 = arith.extui %804 : vector<4x7xi1> to vector<4x7xi32>
    %806 = arith.sitofp %805 : vector<4x7xi32> to vector<4x7xf32>
    %cst_713 = arith.constant dense<0.000000e+00> : vector<4x32xf32>
    %807 = tpu.matmul %806, %799, %cst_713 {dimension_numbers = #tpu.dot_dimension_numbers<[1], [0], [0], [1], [0, 0, 1, 1], [], []>} : vector<4x7xf32>, vector<7x32xf32>, vector<4x32xf32> -> vector<4x32xf32>
    %cst_714 = arith.constant 0.000000e+00 : f32
    %808 = vector.broadcast %cst_714 : f32 to vector<4x32xf32>
    %809 = arith.maximumf %807, %808 : vector<4x32xf32>
    %cst_715 = arith.constant 0.000000e+00 : f32
    %810 = vector.broadcast %cst_715 : f32 to vector<24x32xf32>
    %c0_716 = arith.constant 0 : index
    %c0_717 = arith.constant 0 : index
    %811 = vector.load %arg58[%c0_716, %c0_717] : memref<24x32xf32, #tpu.memory_space<vmem>>, vector<24x32xf32>
    tpu.vector_store %arg58[%c0_716, %c0_717], %810 {strides = array<i32>} : memref<24x32xf32, #tpu.memory_space<vmem>>, vector<24x32xf32>,
    %c3_718 = arith.constant 3 : index
    %c0_719 = arith.constant 0 : index
    %812 = vector.load %arg58[%c3_718, %c0_719] : memref<24x32xf32, #tpu.memory_space<vmem>>, vector<4x32xf32>
    tpu.vector_store %arg58[%c3_718, %c0_719], %809 {strides = array<i32>} : memref<24x32xf32, #tpu.memory_space<vmem>>, vector<4x32xf32>,
    %cst_720 = arith.constant 0.000000e+00 : f32
    %813 = vector.broadcast %cst_720 : f32 to vector<4x32xf32>
    %c0_721 = arith.constant 0 : index
    %c0_722 = arith.constant 0 : index
    %814 = vector.load %arg58[%c0_721, %c0_722] : memref<24x32xf32, #tpu.memory_space<vmem>>, vector<4x32xf32>
    %815 = arith.truncf %814 : vector<4x32xf32> to vector<4x32xbf16>
    %c0_723 = arith.constant 0 : index
    %c0_724 = arith.constant 0 : index
    %c0_725 = arith.constant 0 : index
    %816 = vector.load %arg16[%c0_723, %c0_724, %c0_725] : memref<3x32x32xbf16, #tpu.memory_space<vmem>>, vector<1x32x32xbf16>
    %817 = vector.shape_cast %816 : vector<1x32x32xbf16> to vector<32x32xbf16>
    %cst_726 = arith.constant dense<0.000000e+00> : vector<4x32xf32>
    %818 = tpu.matmul %815, %817, %cst_726 {dimension_numbers = #tpu.dot_dimension_numbers<[1], [0], [0], [1], [0, 0, 1, 1], [], []>} : vector<4x32xbf16>, vector<32x32xbf16>, vector<4x32xf32> -> vector<4x32xf32>
    %819 = arith.addf %813, %818 : vector<4x32xf32>
    %c3_727 = arith.constant 3 : index
    %c0_728 = arith.constant 0 : index
    %820 = vector.load %arg58[%c3_727, %c0_728] : memref<24x32xf32, #tpu.memory_space<vmem>>, vector<4x32xf32>
    %821 = arith.truncf %820 : vector<4x32xf32> to vector<4x32xbf16>
    %c1_729 = arith.constant 1 : index
    %c0_730 = arith.constant 0 : index
    %c0_731 = arith.constant 0 : index
    %822 = vector.load %arg16[%c1_729, %c0_730, %c0_731] : memref<3x32x32xbf16, #tpu.memory_space<vmem>>, vector<1x32x32xbf16>
    %823 = vector.shape_cast %822 : vector<1x32x32xbf16> to vector<32x32xbf16>
    %cst_732 = arith.constant dense<0.000000e+00> : vector<4x32xf32>
    %824 = tpu.matmul %821, %823, %cst_732 {dimension_numbers = #tpu.dot_dimension_numbers<[1], [0], [0], [1], [0, 0, 1, 1], [], []>} : vector<4x32xbf16>, vector<32x32xbf16>, vector<4x32xf32> -> vector<4x32xf32>
    %825 = arith.addf %819, %824 : vector<4x32xf32>
    %c6_733 = arith.constant 6 : index
    %c0_734 = arith.constant 0 : index
    %826 = vector.load %arg58[%c6_733, %c0_734] : memref<24x32xf32, #tpu.memory_space<vmem>>, vector<4x32xf32>
    %827 = arith.truncf %826 : vector<4x32xf32> to vector<4x32xbf16>
    %c2_735 = arith.constant 2 : index
    %c0_736 = arith.constant 0 : index
    %c0_737 = arith.constant 0 : index
    %828 = vector.load %arg16[%c2_735, %c0_736, %c0_737] : memref<3x32x32xbf16, #tpu.memory_space<vmem>>, vector<1x32x32xbf16>
    %829 = vector.shape_cast %828 : vector<1x32x32xbf16> to vector<32x32xbf16>
    %cst_738 = arith.constant dense<0.000000e+00> : vector<4x32xf32>
    %830 = tpu.matmul %827, %829, %cst_738 {dimension_numbers = #tpu.dot_dimension_numbers<[1], [0], [0], [1], [0, 0, 1, 1], [], []>} : vector<4x32xbf16>, vector<32x32xbf16>, vector<4x32xf32> -> vector<4x32xf32>
    %831 = arith.addf %825, %830 : vector<4x32xf32>
    %c0_739 = arith.constant 0 : index
    %c0_740 = arith.constant 0 : index
    %832 = vector.load %arg17[%c0_739, %c0_740] : memref<1x32xf32, #tpu.memory_space<vmem>>, vector<1x32xf32>
    %833 = vector.broadcast %832 : vector<1x32xf32> to vector<4x32xf32>
    %834 = arith.addf %831, %833 : vector<4x32xf32>
    %cst_741 = arith.constant 0.000000e+00 : f32
    %835 = vector.broadcast %cst_741 : f32 to vector<4x32xf32>
    %836 = arith.maximumf %834, %835 : vector<4x32xf32>
    %837 = arith.truncf %836 : vector<4x32xf32> to vector<4x32xbf16>
    %c0_742 = arith.constant 0 : index
    %c0_743 = arith.constant 0 : index
    %c0_744 = arith.constant 0 : index
    %838 = vector.load %arg18[%c0_742, %c0_743, %c0_744] : memref<1x32x32xbf16, #tpu.memory_space<vmem>>, vector<1x32x32xbf16>
    %839 = vector.shape_cast %838 : vector<1x32x32xbf16> to vector<32x32xbf16>
    %cst_745 = arith.constant dense<0.000000e+00> : vector<4x32xf32>
    %840 = tpu.matmul %837, %839, %cst_745 {dimension_numbers = #tpu.dot_dimension_numbers<[1], [0], [0], [1], [0, 0, 1, 1], [], []>} : vector<4x32xbf16>, vector<32x32xbf16>, vector<4x32xf32> -> vector<4x32xf32>
    %c0_746 = arith.constant 0 : index
    %c0_747 = arith.constant 0 : index
    %841 = vector.load %arg19[%c0_746, %c0_747] : memref<1x32xf32, #tpu.memory_space<vmem>>, vector<1x32xf32>
    %842 = vector.broadcast %841 : vector<1x32xf32> to vector<4x32xf32>
    %843 = arith.addf %840, %842 : vector<4x32xf32>
    %844 = arith.addf %807, %843 : vector<4x32xf32>
    %cst_748 = arith.constant 0.000000e+00 : f32
    %845 = vector.broadcast %cst_748 : f32 to vector<4x32xf32>
    %846 = arith.maximumf %844, %845 : vector<4x32xf32>
    %cst_749 = arith.constant 0.000000e+00 : f32
    %847 = vector.broadcast %cst_749 : f32 to vector<24x32xf32>
    %c0_750 = arith.constant 0 : index
    %c0_751 = arith.constant 0 : index
    %848 = vector.load %arg58[%c0_750, %c0_751] : memref<24x32xf32, #tpu.memory_space<vmem>>, vector<24x32xf32>
    tpu.vector_store %arg58[%c0_750, %c0_751], %847 {strides = array<i32>} : memref<24x32xf32, #tpu.memory_space<vmem>>, vector<24x32xf32>,
    %c1_752 = arith.constant 1 : index
    %c0_753 = arith.constant 0 : index
    %849 = vector.load %arg58[%c1_752, %c0_753] : memref<24x32xf32, #tpu.memory_space<vmem>>, vector<4x32xf32>
    tpu.vector_store %arg58[%c1_752, %c0_753], %846 {strides = array<i32>} : memref<24x32xf32, #tpu.memory_space<vmem>>, vector<4x32xf32>,
    %cst_754 = arith.constant 0.000000e+00 : f32
    %850 = vector.broadcast %cst_754 : f32 to vector<4x32xf32>
    %c0_755 = arith.constant 0 : index
    %c0_756 = arith.constant 0 : index
    %851 = vector.load %arg58[%c0_755, %c0_756] : memref<24x32xf32, #tpu.memory_space<vmem>>, vector<4x32xf32>
    %852 = arith.truncf %851 : vector<4x32xf32> to vector<4x32xbf16>
    %c0_757 = arith.constant 0 : index
    %c0_758 = arith.constant 0 : index
    %c0_759 = arith.constant 0 : index
    %853 = vector.load %arg20[%c0_757, %c0_758, %c0_759] : memref<3x32x32xbf16, #tpu.memory_space<vmem>>, vector<1x32x32xbf16>
    %854 = vector.shape_cast %853 : vector<1x32x32xbf16> to vector<32x32xbf16>
    %cst_760 = arith.constant dense<0.000000e+00> : vector<4x32xf32>
    %855 = tpu.matmul %852, %854, %cst_760 {dimension_numbers = #tpu.dot_dimension_numbers<[1], [0], [0], [1], [0, 0, 1, 1], [], []>} : vector<4x32xbf16>, vector<32x32xbf16>, vector<4x32xf32> -> vector<4x32xf32>
    %856 = arith.addf %850, %855 : vector<4x32xf32>
    %c1_761 = arith.constant 1 : index
    %c0_762 = arith.constant 0 : index
    %857 = vector.load %arg58[%c1_761, %c0_762] : memref<24x32xf32, #tpu.memory_space<vmem>>, vector<4x32xf32>
    %858 = arith.truncf %857 : vector<4x32xf32> to vector<4x32xbf16>
    %c1_763 = arith.constant 1 : index
    %c0_764 = arith.constant 0 : index
    %c0_765 = arith.constant 0 : index
    %859 = vector.load %arg20[%c1_763, %c0_764, %c0_765] : memref<3x32x32xbf16, #tpu.memory_space<vmem>>, vector<1x32x32xbf16>
    %860 = vector.shape_cast %859 : vector<1x32x32xbf16> to vector<32x32xbf16>
    %cst_766 = arith.constant dense<0.000000e+00> : vector<4x32xf32>
    %861 = tpu.matmul %858, %860, %cst_766 {dimension_numbers = #tpu.dot_dimension_numbers<[1], [0], [0], [1], [0, 0, 1, 1], [], []>} : vector<4x32xbf16>, vector<32x32xbf16>, vector<4x32xf32> -> vector<4x32xf32>
    %862 = arith.addf %856, %861 : vector<4x32xf32>
    %c2_767 = arith.constant 2 : index
    %c0_768 = arith.constant 0 : index
    %863 = vector.load %arg58[%c2_767, %c0_768] : memref<24x32xf32, #tpu.memory_space<vmem>>, vector<4x32xf32>
    %864 = arith.truncf %863 : vector<4x32xf32> to vector<4x32xbf16>
    %c2_769 = arith.constant 2 : index
    %c0_770 = arith.constant 0 : index
    %c0_771 = arith.constant 0 : index
    %865 = vector.load %arg20[%c2_769, %c0_770, %c0_771] : memref<3x32x32xbf16, #tpu.memory_space<vmem>>, vector<1x32x32xbf16>
    %866 = vector.shape_cast %865 : vector<1x32x32xbf16> to vector<32x32xbf16>
    %cst_772 = arith.constant dense<0.000000e+00> : vector<4x32xf32>
    %867 = tpu.matmul %864, %866, %cst_772 {dimension_numbers = #tpu.dot_dimension_numbers<[1], [0], [0], [1], [0, 0, 1, 1], [], []>} : vector<4x32xbf16>, vector<32x32xbf16>, vector<4x32xf32> -> vector<4x32xf32>
    %868 = arith.addf %862, %867 : vector<4x32xf32>
    %c0_773 = arith.constant 0 : index
    %c0_774 = arith.constant 0 : index
    %869 = vector.load %arg21[%c0_773, %c0_774] : memref<1x32xf32, #tpu.memory_space<vmem>>, vector<1x32xf32>
    %870 = vector.broadcast %869 : vector<1x32xf32> to vector<4x32xf32>
    %871 = arith.addf %868, %870 : vector<4x32xf32>
    %cst_775 = arith.constant 0.000000e+00 : f32
    %872 = vector.broadcast %cst_775 : f32 to vector<4x32xf32>
    %873 = arith.maximumf %871, %872 : vector<4x32xf32>
    %874 = arith.truncf %873 : vector<4x32xf32> to vector<4x32xbf16>
    %c0_776 = arith.constant 0 : index
    %c0_777 = arith.constant 0 : index
    %c0_778 = arith.constant 0 : index
    %875 = vector.load %arg22[%c0_776, %c0_777, %c0_778] : memref<1x32x32xbf16, #tpu.memory_space<vmem>>, vector<1x32x32xbf16>
    %876 = vector.shape_cast %875 : vector<1x32x32xbf16> to vector<32x32xbf16>
    %cst_779 = arith.constant dense<0.000000e+00> : vector<4x32xf32>
    %877 = tpu.matmul %874, %876, %cst_779 {dimension_numbers = #tpu.dot_dimension_numbers<[1], [0], [0], [1], [0, 0, 1, 1], [], []>} : vector<4x32xbf16>, vector<32x32xbf16>, vector<4x32xf32> -> vector<4x32xf32>
    %c0_780 = arith.constant 0 : index
    %c0_781 = arith.constant 0 : index
    %878 = vector.load %arg23[%c0_780, %c0_781] : memref<1x32xf32, #tpu.memory_space<vmem>>, vector<1x32xf32>
    %879 = vector.broadcast %878 : vector<1x32xf32> to vector<4x32xf32>
    %880 = arith.addf %877, %879 : vector<4x32xf32>
    %881 = arith.addf %844, %880 : vector<4x32xf32>
    %cst_782 = arith.constant 0.000000e+00 : f32
    %882 = vector.broadcast %cst_782 : f32 to vector<24x32xf32>
    %c0_783 = arith.constant 0 : index
    %c0_784 = arith.constant 0 : index
    %883 = vector.load %arg58[%c0_783, %c0_784] : memref<24x32xf32, #tpu.memory_space<vmem>>, vector<24x32xf32>
    tpu.vector_store %arg58[%c0_783, %c0_784], %882 {strides = array<i32>} : memref<24x32xf32, #tpu.memory_space<vmem>>, vector<24x32xf32>,
    %c1_785 = arith.constant 1 : index
    %c0_786 = arith.constant 0 : index
    %884 = vector.load %arg58[%c1_785, %c0_786] : memref<24x32xf32, #tpu.memory_space<vmem>>, vector<4x32xf32>
    tpu.vector_store %arg58[%c1_785, %c0_786], %881 {strides = array<i32>} : memref<24x32xf32, #tpu.memory_space<vmem>>, vector<4x32xf32>,
    %cst_787 = arith.constant 0.000000e+00 : f32
    %885 = vector.broadcast %cst_787 : f32 to vector<4x32xf32>
    %c0_788 = arith.constant 0 : index
    %c0_789 = arith.constant 0 : index
    %886 = vector.load %arg58[%c0_788, %c0_789] : memref<24x32xf32, #tpu.memory_space<vmem>>, vector<4x32xf32>
    %887 = arith.truncf %886 : vector<4x32xf32> to vector<4x32xbf16>
    %c0_790 = arith.constant 0 : index
    %c0_791 = arith.constant 0 : index
    %c0_792 = arith.constant 0 : index
    %888 = vector.load %arg24[%c0_790, %c0_791, %c0_792] : memref<3x32x32xbf16, #tpu.memory_space<vmem>>, vector<1x32x32xbf16>
    %889 = vector.shape_cast %888 : vector<1x32x32xbf16> to vector<32x32xbf16>
    %cst_793 = arith.constant dense<0.000000e+00> : vector<4x32xf32>
    %890 = tpu.matmul %887, %889, %cst_793 {dimension_numbers = #tpu.dot_dimension_numbers<[1], [0], [0], [1], [0, 0, 1, 1], [], []>} : vector<4x32xbf16>, vector<32x32xbf16>, vector<4x32xf32> -> vector<4x32xf32>
    %891 = arith.addf %885, %890 : vector<4x32xf32>
    %c1_794 = arith.constant 1 : index
    %c0_795 = arith.constant 0 : index
    %892 = vector.load %arg58[%c1_794, %c0_795] : memref<24x32xf32, #tpu.memory_space<vmem>>, vector<4x32xf32>
    %893 = arith.truncf %892 : vector<4x32xf32> to vector<4x32xbf16>
    %c1_796 = arith.constant 1 : index
    %c0_797 = arith.constant 0 : index
    %c0_798 = arith.constant 0 : index
    %894 = vector.load %arg24[%c1_796, %c0_797, %c0_798] : memref<3x32x32xbf16, #tpu.memory_space<vmem>>, vector<1x32x32xbf16>
    %895 = vector.shape_cast %894 : vector<1x32x32xbf16> to vector<32x32xbf16>
    %cst_799 = arith.constant dense<0.000000e+00> : vector<4x32xf32>
    %896 = tpu.matmul %893, %895, %cst_799 {dimension_numbers = #tpu.dot_dimension_numbers<[1], [0], [0], [1], [0, 0, 1, 1], [], []>} : vector<4x32xbf16>, vector<32x32xbf16>, vector<4x32xf32> -> vector<4x32xf32>
    %897 = arith.addf %891, %896 : vector<4x32xf32>
    %c2_800 = arith.constant 2 : index
    %c0_801 = arith.constant 0 : index
    %898 = vector.load %arg58[%c2_800, %c0_801] : memref<24x32xf32, #tpu.memory_space<vmem>>, vector<4x32xf32>
    %899 = arith.truncf %898 : vector<4x32xf32> to vector<4x32xbf16>
    %c2_802 = arith.constant 2 : index
    %c0_803 = arith.constant 0 : index
    %c0_804 = arith.constant 0 : index
    %900 = vector.load %arg24[%c2_802, %c0_803, %c0_804] : memref<3x32x32xbf16, #tpu.memory_space<vmem>>, vector<1x32x32xbf16>
    %901 = vector.shape_cast %900 : vector<1x32x32xbf16> to vector<32x32xbf16>
    %cst_805 = arith.constant dense<0.000000e+00> : vector<4x32xf32>
    %902 = tpu.matmul %899, %901, %cst_805 {dimension_numbers = #tpu.dot_dimension_numbers<[1], [0], [0], [1], [0, 0, 1, 1], [], []>} : vector<4x32xbf16>, vector<32x32xbf16>, vector<4x32xf32> -> vector<4x32xf32>
    %903 = arith.addf %897, %902 : vector<4x32xf32>
    %c0_806 = arith.constant 0 : index
    %c0_807 = arith.constant 0 : index
    %904 = vector.load %arg25[%c0_806, %c0_807] : memref<1x32xf32, #tpu.memory_space<vmem>>, vector<1x32xf32>
    %905 = vector.broadcast %904 : vector<1x32xf32> to vector<4x32xf32>
    %906 = arith.addf %903, %905 : vector<4x32xf32>
    %907 = arith.mulf %906, %906 : vector<4x32xf32>
    %cst_808 = arith.constant dense<0.000000e+00> : vector<4xf32>
    %908 = vector.multi_reduction <add>, %907, %cst_808 [1] : vector<4x32xf32> to vector<4xf32>
    %909 = vector.shape_cast %908 : vector<4xf32> to vector<4x1xf32>
    %cst_809 = arith.constant dense<0.000000e+00> : vector<4x64xf32>
    %910 = tpu.matmul %906, %1, %cst_809 {dimension_numbers = #tpu.dot_dimension_numbers<[1], [0], [0], [1], [0, 0, 1, 1], [], []>} : vector<4x32xf32>, vector<32x64xf32>, vector<4x64xf32> -> vector<4x64xf32>
    %cst_810 = arith.constant 2.000000e+00 : f32
    %911 = vector.broadcast %cst_810 : f32 to vector<4x64xf32>
    %912 = arith.mulf %911, %910 : vector<4x64xf32>
    %913 = vector.broadcast %909 : vector<4x1xf32> to vector<4x64xf32>
    %914 = arith.subf %913, %912 : vector<4x64xf32>
    %915 = vector.broadcast %2 : vector<1x64xf32> to vector<4x64xf32>
    %916 = arith.addf %914, %915 : vector<4x64xf32>
    %cst_811 = arith.constant dense<0x7F800000> : vector<4xf32>
    %917 = vector.multi_reduction <minimumf>, %916, %cst_811 [1] : vector<4x64xf32> to vector<4xf32>
    %918 = vector.shape_cast %917 : vector<4xf32> to vector<4x1xf32>
    %919 = tpu.iota {dimensions = array<i32: 1>} : vector<4x64xi32>
    %920 = vector.broadcast %918 : vector<4x1xf32> to vector<4x64xf32>
    %921 = arith.cmpf ole, %916, %920 : vector<4x64xf32>
    %c64_i32_812 = arith.constant 64 : i32
    %922 = vector.broadcast %c64_i32_812 : i32 to vector<4x64xi32>
    %923 = arith.select %921, %919, %922 : vector<4x64xi1>, vector<4x64xi32>
    %cst_813 = arith.constant dense<2147483647> : vector<4xi32>
    %924 = vector.multi_reduction <minsi>, %923, %cst_813 [1] : vector<4x64xi32> to vector<4xi32>
    %925 = vector.shape_cast %924 : vector<4xi32> to vector<4x1xi32>
    %926 = vector.broadcast %925 : vector<4x1xi32> to vector<4x64xi32>
    %927 = arith.cmpi eq, %919, %926 : vector<4x64xi32>
    %928 = arith.extui %927 : vector<4x64xi1> to vector<4x64xi32>
    %929 = arith.sitofp %928 : vector<4x64xi32> to vector<4x64xf32>
    %cst_814 = arith.constant dense<0.000000e+00> : vector<4x32xf32>
    %930 = tpu.matmul %929, %0, %cst_814 {dimension_numbers = #tpu.dot_dimension_numbers<[1], [0], [0], [1], [0, 0, 1, 1], [], []>} : vector<4x64xf32>, vector<64x32xf32>, vector<4x32xf32> -> vector<4x32xf32>
    %931 = arith.subf %906, %930 : vector<4x32xf32>
    %932 = arith.mulf %931, %931 : vector<4x32xf32>
    %cst_815 = arith.constant dense<0.000000e+00> : vector<4xf32>
    %933 = vector.multi_reduction <add>, %932, %cst_815 [1] : vector<4x32xf32> to vector<4xf32>
    %934 = vector.shape_cast %933 : vector<4xf32> to vector<4x1xf32>
    %cst_816 = arith.constant dense<0.000000e+00> : vector<1xf32>
    %935 = vector.multi_reduction <add>, %934, %cst_816 [0] : vector<4x1xf32> to vector<1xf32>
    %936 = vector.shape_cast %935 : vector<1xf32> to vector<1x1xf32>
    %937 = arith.addf %315, %936 : vector<1x1xf32>
    %cst_817 = arith.constant dense<0.000000e+00> : vector<64xf32>
    %938 = vector.multi_reduction <add>, %929, %cst_817 [0] : vector<4x64xf32> to vector<64xf32>
    %939 = vector.shape_cast %938 : vector<64xf32> to vector<1x64xf32>
    %940 = arith.addf %318, %939 : vector<1x64xf32>
    %cst_818 = arith.constant 0.000000e+00 : f32
    %941 = vector.broadcast %cst_818 : f32 to vector<24x32xf32>
    %c0_819 = arith.constant 0 : index
    %c0_820 = arith.constant 0 : index
    %942 = vector.load %arg58[%c0_819, %c0_820] : memref<24x32xf32, #tpu.memory_space<vmem>>, vector<24x32xf32>
    tpu.vector_store %arg58[%c0_819, %c0_820], %941 {strides = array<i32>} : memref<24x32xf32, #tpu.memory_space<vmem>>, vector<24x32xf32>,
    %c1_821 = arith.constant 1 : index
    %c0_822 = arith.constant 0 : index
    %943 = vector.load %arg58[%c1_821, %c0_822] : memref<24x32xf32, #tpu.memory_space<vmem>>, vector<4x32xf32>
    tpu.vector_store %arg58[%c1_821, %c0_822], %930 {strides = array<i32>} : memref<24x32xf32, #tpu.memory_space<vmem>>, vector<4x32xf32>,
    %cst_823 = arith.constant 0.000000e+00 : f32
    %944 = vector.broadcast %cst_823 : f32 to vector<4x32xf32>
    %c0_824 = arith.constant 0 : index
    %c0_825 = arith.constant 0 : index
    %945 = vector.load %arg58[%c0_824, %c0_825] : memref<24x32xf32, #tpu.memory_space<vmem>>, vector<4x32xf32>
    %946 = arith.truncf %945 : vector<4x32xf32> to vector<4x32xbf16>
    %c0_826 = arith.constant 0 : index
    %c0_827 = arith.constant 0 : index
    %c0_828 = arith.constant 0 : index
    %947 = vector.load %arg26[%c0_826, %c0_827, %c0_828] : memref<3x32x32xbf16, #tpu.memory_space<vmem>>, vector<1x32x32xbf16>
    %948 = vector.shape_cast %947 : vector<1x32x32xbf16> to vector<32x32xbf16>
    %cst_829 = arith.constant dense<0.000000e+00> : vector<4x32xf32>
    %949 = tpu.matmul %946, %948, %cst_829 {dimension_numbers = #tpu.dot_dimension_numbers<[1], [0], [0], [1], [0, 0, 1, 1], [], []>} : vector<4x32xbf16>, vector<32x32xbf16>, vector<4x32xf32> -> vector<4x32xf32>
    %950 = arith.addf %944, %949 : vector<4x32xf32>
    %c1_830 = arith.constant 1 : index
    %c0_831 = arith.constant 0 : index
    %951 = vector.load %arg58[%c1_830, %c0_831] : memref<24x32xf32, #tpu.memory_space<vmem>>, vector<4x32xf32>
    %952 = arith.truncf %951 : vector<4x32xf32> to vector<4x32xbf16>
    %c1_832 = arith.constant 1 : index
    %c0_833 = arith.constant 0 : index
    %c0_834 = arith.constant 0 : index
    %953 = vector.load %arg26[%c1_832, %c0_833, %c0_834] : memref<3x32x32xbf16, #tpu.memory_space<vmem>>, vector<1x32x32xbf16>
    %954 = vector.shape_cast %953 : vector<1x32x32xbf16> to vector<32x32xbf16>
    %cst_835 = arith.constant dense<0.000000e+00> : vector<4x32xf32>
    %955 = tpu.matmul %952, %954, %cst_835 {dimension_numbers = #tpu.dot_dimension_numbers<[1], [0], [0], [1], [0, 0, 1, 1], [], []>} : vector<4x32xbf16>, vector<32x32xbf16>, vector<4x32xf32> -> vector<4x32xf32>
    %956 = arith.addf %950, %955 : vector<4x32xf32>
    %c2_836 = arith.constant 2 : index
    %c0_837 = arith.constant 0 : index
    %957 = vector.load %arg58[%c2_836, %c0_837] : memref<24x32xf32, #tpu.memory_space<vmem>>, vector<4x32xf32>
    %958 = arith.truncf %957 : vector<4x32xf32> to vector<4x32xbf16>
    %c2_838 = arith.constant 2 : index
    %c0_839 = arith.constant 0 : index
    %c0_840 = arith.constant 0 : index
    %959 = vector.load %arg26[%c2_838, %c0_839, %c0_840] : memref<3x32x32xbf16, #tpu.memory_space<vmem>>, vector<1x32x32xbf16>
    %960 = vector.shape_cast %959 : vector<1x32x32xbf16> to vector<32x32xbf16>
    %cst_841 = arith.constant dense<0.000000e+00> : vector<4x32xf32>
    %961 = tpu.matmul %958, %960, %cst_841 {dimension_numbers = #tpu.dot_dimension_numbers<[1], [0], [0], [1], [0, 0, 1, 1], [], []>} : vector<4x32xbf16>, vector<32x32xbf16>, vector<4x32xf32> -> vector<4x32xf32>
    %962 = arith.addf %956, %961 : vector<4x32xf32>
    %c0_842 = arith.constant 0 : index
    %c0_843 = arith.constant 0 : index
    %963 = vector.load %arg27[%c0_842, %c0_843] : memref<1x32xf32, #tpu.memory_space<vmem>>, vector<1x32xf32>
    %964 = vector.broadcast %963 : vector<1x32xf32> to vector<4x32xf32>
    %965 = arith.addf %962, %964 : vector<4x32xf32>
    %cst_844 = arith.constant 0.000000e+00 : f32
    %966 = vector.broadcast %cst_844 : f32 to vector<4x32xf32>
    %967 = arith.maximumf %965, %966 : vector<4x32xf32>
    %cst_845 = arith.constant 0.000000e+00 : f32
    %968 = vector.broadcast %cst_845 : f32 to vector<4x32xf32>
    %969 = arith.maximumf %967, %968 : vector<4x32xf32>
    %cst_846 = arith.constant 0.000000e+00 : f32
    %970 = vector.broadcast %cst_846 : f32 to vector<24x32xf32>
    %c0_847 = arith.constant 0 : index
    %c0_848 = arith.constant 0 : index
    %971 = vector.load %arg58[%c0_847, %c0_848] : memref<24x32xf32, #tpu.memory_space<vmem>>, vector<24x32xf32>
    tpu.vector_store %arg58[%c0_847, %c0_848], %970 {strides = array<i32>} : memref<24x32xf32, #tpu.memory_space<vmem>>, vector<24x32xf32>,
    %c3_849 = arith.constant 3 : index
    %c0_850 = arith.constant 0 : index
    %972 = vector.load %arg58[%c3_849, %c0_850] : memref<24x32xf32, #tpu.memory_space<vmem>>, vector<4x32xf32>
    tpu.vector_store %arg58[%c3_849, %c0_850], %969 {strides = array<i32>} : memref<24x32xf32, #tpu.memory_space<vmem>>, vector<4x32xf32>,
    %cst_851 = arith.constant 0.000000e+00 : f32
    %973 = vector.broadcast %cst_851 : f32 to vector<4x32xf32>
    %c0_852 = arith.constant 0 : index
    %c0_853 = arith.constant 0 : index
    %974 = vector.load %arg58[%c0_852, %c0_853] : memref<24x32xf32, #tpu.memory_space<vmem>>, vector<4x32xf32>
    %975 = arith.truncf %974 : vector<4x32xf32> to vector<4x32xbf16>
    %c0_854 = arith.constant 0 : index
    %c0_855 = arith.constant 0 : index
    %c0_856 = arith.constant 0 : index
    %976 = vector.load %arg28[%c0_854, %c0_855, %c0_856] : memref<3x32x32xbf16, #tpu.memory_space<vmem>>, vector<1x32x32xbf16>
    %977 = vector.shape_cast %976 : vector<1x32x32xbf16> to vector<32x32xbf16>
    %cst_857 = arith.constant dense<0.000000e+00> : vector<4x32xf32>
    %978 = tpu.matmul %975, %977, %cst_857 {dimension_numbers = #tpu.dot_dimension_numbers<[1], [0], [0], [1], [0, 0, 1, 1], [], []>} : vector<4x32xbf16>, vector<32x32xbf16>, vector<4x32xf32> -> vector<4x32xf32>
    %979 = arith.addf %973, %978 : vector<4x32xf32>
    %c3_858 = arith.constant 3 : index
    %c0_859 = arith.constant 0 : index
    %980 = vector.load %arg58[%c3_858, %c0_859] : memref<24x32xf32, #tpu.memory_space<vmem>>, vector<4x32xf32>
    %981 = arith.truncf %980 : vector<4x32xf32> to vector<4x32xbf16>
    %c1_860 = arith.constant 1 : index
    %c0_861 = arith.constant 0 : index
    %c0_862 = arith.constant 0 : index
    %982 = vector.load %arg28[%c1_860, %c0_861, %c0_862] : memref<3x32x32xbf16, #tpu.memory_space<vmem>>, vector<1x32x32xbf16>
    %983 = vector.shape_cast %982 : vector<1x32x32xbf16> to vector<32x32xbf16>
    %cst_863 = arith.constant dense<0.000000e+00> : vector<4x32xf32>
    %984 = tpu.matmul %981, %983, %cst_863 {dimension_numbers = #tpu.dot_dimension_numbers<[1], [0], [0], [1], [0, 0, 1, 1], [], []>} : vector<4x32xbf16>, vector<32x32xbf16>, vector<4x32xf32> -> vector<4x32xf32>
    %985 = arith.addf %979, %984 : vector<4x32xf32>
    %c6_864 = arith.constant 6 : index
    %c0_865 = arith.constant 0 : index
    %986 = vector.load %arg58[%c6_864, %c0_865] : memref<24x32xf32, #tpu.memory_space<vmem>>, vector<4x32xf32>
    %987 = arith.truncf %986 : vector<4x32xf32> to vector<4x32xbf16>
    %c2_866 = arith.constant 2 : index
    %c0_867 = arith.constant 0 : index
    %c0_868 = arith.constant 0 : index
    %988 = vector.load %arg28[%c2_866, %c0_867, %c0_868] : memref<3x32x32xbf16, #tpu.memory_space<vmem>>, vector<1x32x32xbf16>
    %989 = vector.shape_cast %988 : vector<1x32x32xbf16> to vector<32x32xbf16>
    %cst_869 = arith.constant dense<0.000000e+00> : vector<4x32xf32>
    %990 = tpu.matmul %987, %989, %cst_869 {dimension_numbers = #tpu.dot_dimension_numbers<[1], [0], [0], [1], [0, 0, 1, 1], [], []>} : vector<4x32xbf16>, vector<32x32xbf16>, vector<4x32xf32> -> vector<4x32xf32>
    %991 = arith.addf %985, %990 : vector<4x32xf32>
    %c0_870 = arith.constant 0 : index
    %c0_871 = arith.constant 0 : index
    %992 = vector.load %arg29[%c0_870, %c0_871] : memref<1x32xf32, #tpu.memory_space<vmem>>, vector<1x32xf32>
    %993 = vector.broadcast %992 : vector<1x32xf32> to vector<4x32xf32>
    %994 = arith.addf %991, %993 : vector<4x32xf32>
    %cst_872 = arith.constant 0.000000e+00 : f32
    %995 = vector.broadcast %cst_872 : f32 to vector<4x32xf32>
    %996 = arith.maximumf %994, %995 : vector<4x32xf32>
    %997 = arith.truncf %996 : vector<4x32xf32> to vector<4x32xbf16>
    %c0_873 = arith.constant 0 : index
    %c0_874 = arith.constant 0 : index
    %c0_875 = arith.constant 0 : index
    %998 = vector.load %arg30[%c0_873, %c0_874, %c0_875] : memref<1x32x32xbf16, #tpu.memory_space<vmem>>, vector<1x32x32xbf16>
    %999 = vector.shape_cast %998 : vector<1x32x32xbf16> to vector<32x32xbf16>
    %cst_876 = arith.constant dense<0.000000e+00> : vector<4x32xf32>
    %1000 = tpu.matmul %997, %999, %cst_876 {dimension_numbers = #tpu.dot_dimension_numbers<[1], [0], [0], [1], [0, 0, 1, 1], [], []>} : vector<4x32xbf16>, vector<32x32xbf16>, vector<4x32xf32> -> vector<4x32xf32>
    %c0_877 = arith.constant 0 : index
    %c0_878 = arith.constant 0 : index
    %1001 = vector.load %arg31[%c0_877, %c0_878] : memref<1x32xf32, #tpu.memory_space<vmem>>, vector<1x32xf32>
    %1002 = vector.broadcast %1001 : vector<1x32xf32> to vector<4x32xf32>
    %1003 = arith.addf %1000, %1002 : vector<4x32xf32>
    %1004 = arith.addf %967, %1003 : vector<4x32xf32>
    %cst_879 = arith.constant 0.000000e+00 : f32
    %1005 = vector.broadcast %cst_879 : f32 to vector<4x32xf32>
    %1006 = arith.maximumf %1004, %1005 : vector<4x32xf32>
    %cst_880 = arith.constant 0.000000e+00 : f32
    %1007 = vector.broadcast %cst_880 : f32 to vector<24x32xf32>
    %c0_881 = arith.constant 0 : index
    %c0_882 = arith.constant 0 : index
    %1008 = vector.load %arg58[%c0_881, %c0_882] : memref<24x32xf32, #tpu.memory_space<vmem>>, vector<24x32xf32>
    tpu.vector_store %arg58[%c0_881, %c0_882], %1007 {strides = array<i32>} : memref<24x32xf32, #tpu.memory_space<vmem>>, vector<24x32xf32>,
    %c1_883 = arith.constant 1 : index
    %c0_884 = arith.constant 0 : index
    %1009 = vector.load %arg58[%c1_883, %c0_884] : memref<24x32xf32, #tpu.memory_space<vmem>>, vector<4x32xf32>
    tpu.vector_store %arg58[%c1_883, %c0_884], %1006 {strides = array<i32>} : memref<24x32xf32, #tpu.memory_space<vmem>>, vector<4x32xf32>,
    %cst_885 = arith.constant 0.000000e+00 : f32
    %1010 = vector.broadcast %cst_885 : f32 to vector<4x32xf32>
    %c0_886 = arith.constant 0 : index
    %c0_887 = arith.constant 0 : index
    %1011 = vector.load %arg58[%c0_886, %c0_887] : memref<24x32xf32, #tpu.memory_space<vmem>>, vector<4x32xf32>
    %1012 = arith.truncf %1011 : vector<4x32xf32> to vector<4x32xbf16>
    %c0_888 = arith.constant 0 : index
    %c0_889 = arith.constant 0 : index
    %c0_890 = arith.constant 0 : index
    %1013 = vector.load %arg32[%c0_888, %c0_889, %c0_890] : memref<3x32x32xbf16, #tpu.memory_space<vmem>>, vector<1x32x32xbf16>
    %1014 = vector.shape_cast %1013 : vector<1x32x32xbf16> to vector<32x32xbf16>
    %cst_891 = arith.constant dense<0.000000e+00> : vector<4x32xf32>
    %1015 = tpu.matmul %1012, %1014, %cst_891 {dimension_numbers = #tpu.dot_dimension_numbers<[1], [0], [0], [1], [0, 0, 1, 1], [], []>} : vector<4x32xbf16>, vector<32x32xbf16>, vector<4x32xf32> -> vector<4x32xf32>
    %1016 = arith.addf %1010, %1015 : vector<4x32xf32>
    %c1_892 = arith.constant 1 : index
    %c0_893 = arith.constant 0 : index
    %1017 = vector.load %arg58[%c1_892, %c0_893] : memref<24x32xf32, #tpu.memory_space<vmem>>, vector<4x32xf32>
    %1018 = arith.truncf %1017 : vector<4x32xf32> to vector<4x32xbf16>
    %c1_894 = arith.constant 1 : index
    %c0_895 = arith.constant 0 : index
    %c0_896 = arith.constant 0 : index
    %1019 = vector.load %arg32[%c1_894, %c0_895, %c0_896] : memref<3x32x32xbf16, #tpu.memory_space<vmem>>, vector<1x32x32xbf16>
    %1020 = vector.shape_cast %1019 : vector<1x32x32xbf16> to vector<32x32xbf16>
    %cst_897 = arith.constant dense<0.000000e+00> : vector<4x32xf32>
    %1021 = tpu.matmul %1018, %1020, %cst_897 {dimension_numbers = #tpu.dot_dimension_numbers<[1], [0], [0], [1], [0, 0, 1, 1], [], []>} : vector<4x32xbf16>, vector<32x32xbf16>, vector<4x32xf32> -> vector<4x32xf32>
    %1022 = arith.addf %1016, %1021 : vector<4x32xf32>
    %c2_898 = arith.constant 2 : index
    %c0_899 = arith.constant 0 : index
    %1023 = vector.load %arg58[%c2_898, %c0_899] : memref<24x32xf32, #tpu.memory_space<vmem>>, vector<4x32xf32>
    %1024 = arith.truncf %1023 : vector<4x32xf32> to vector<4x32xbf16>
    %c2_900 = arith.constant 2 : index
    %c0_901 = arith.constant 0 : index
    %c0_902 = arith.constant 0 : index
    %1025 = vector.load %arg32[%c2_900, %c0_901, %c0_902] : memref<3x32x32xbf16, #tpu.memory_space<vmem>>, vector<1x32x32xbf16>
    %1026 = vector.shape_cast %1025 : vector<1x32x32xbf16> to vector<32x32xbf16>
    %cst_903 = arith.constant dense<0.000000e+00> : vector<4x32xf32>
    %1027 = tpu.matmul %1024, %1026, %cst_903 {dimension_numbers = #tpu.dot_dimension_numbers<[1], [0], [0], [1], [0, 0, 1, 1], [], []>} : vector<4x32xbf16>, vector<32x32xbf16>, vector<4x32xf32> -> vector<4x32xf32>
    %1028 = arith.addf %1022, %1027 : vector<4x32xf32>
    %c0_904 = arith.constant 0 : index
    %c0_905 = arith.constant 0 : index
    %1029 = vector.load %arg33[%c0_904, %c0_905] : memref<1x32xf32, #tpu.memory_space<vmem>>, vector<1x32xf32>
    %1030 = vector.broadcast %1029 : vector<1x32xf32> to vector<4x32xf32>
    %1031 = arith.addf %1028, %1030 : vector<4x32xf32>
    %cst_906 = arith.constant 0.000000e+00 : f32
    %1032 = vector.broadcast %cst_906 : f32 to vector<4x32xf32>
    %1033 = arith.maximumf %1031, %1032 : vector<4x32xf32>
    %1034 = arith.truncf %1033 : vector<4x32xf32> to vector<4x32xbf16>
    %c0_907 = arith.constant 0 : index
    %c0_908 = arith.constant 0 : index
    %c0_909 = arith.constant 0 : index
    %1035 = vector.load %arg34[%c0_907, %c0_908, %c0_909] : memref<1x32x32xbf16, #tpu.memory_space<vmem>>, vector<1x32x32xbf16>
    %1036 = vector.shape_cast %1035 : vector<1x32x32xbf16> to vector<32x32xbf16>
    %cst_910 = arith.constant dense<0.000000e+00> : vector<4x32xf32>
    %1037 = tpu.matmul %1034, %1036, %cst_910 {dimension_numbers = #tpu.dot_dimension_numbers<[1], [0], [0], [1], [0, 0, 1, 1], [], []>} : vector<4x32xbf16>, vector<32x32xbf16>, vector<4x32xf32> -> vector<4x32xf32>
    %c0_911 = arith.constant 0 : index
    %c0_912 = arith.constant 0 : index
    %1038 = vector.load %arg35[%c0_911, %c0_912] : memref<1x32xf32, #tpu.memory_space<vmem>>, vector<1x32xf32>
    %1039 = vector.broadcast %1038 : vector<1x32xf32> to vector<4x32xf32>
    %1040 = arith.addf %1037, %1039 : vector<4x32xf32>
    %1041 = arith.addf %1004, %1040 : vector<4x32xf32>
    %1042 = tpu.iota {dimensions = array<i32: 0>} : vector<8x4xi32>
    %1043 = tpu.iota {dimensions = array<i32: 1>} : vector<8x4xi32>
    %c2_i32_913 = arith.constant 2 : i32
    %1044 = vector.broadcast %c2_i32_913 : i32 to vector<8x4xi32>
    %1045 = arith.muli %1044, %1043 : vector<8x4xi32>
    %1046 = arith.cmpi eq, %1042, %1045 : vector<8x4xi32>
    %c2_i32_914 = arith.constant 2 : i32
    %1047 = vector.broadcast %c2_i32_914 : i32 to vector<8x4xi32>
    %1048 = arith.muli %1047, %1043 : vector<8x4xi32>
    %c1_i32_915 = arith.constant 1 : i32
    %1049 = vector.broadcast %c1_i32_915 : i32 to vector<8x4xi32>
    %1050 = arith.addi %1048, %1049 : vector<8x4xi32>
    %1051 = arith.cmpi eq, %1042, %1050 : vector<8x4xi32>
    %1052 = arith.ori %1046, %1051 : vector<8x4xi1>
    %1053 = arith.extui %1052 : vector<8x4xi1> to vector<8x4xi32>
    %1054 = arith.sitofp %1053 : vector<8x4xi32> to vector<8x4xf32>
    %cst_916 = arith.constant dense<0.000000e+00> : vector<8x32xf32>
    %1055 = tpu.matmul %1054, %1041, %cst_916 {dimension_numbers = #tpu.dot_dimension_numbers<[1], [0], [0], [1], [0, 0, 1, 1], [], []>} : vector<8x4xf32>, vector<4x32xf32>, vector<8x32xf32> -> vector<8x32xf32>
    %cst_917 = arith.constant 0.000000e+00 : f32
    %1056 = vector.broadcast %cst_917 : f32 to vector<24x32xf32>
    %c0_918 = arith.constant 0 : index
    %c0_919 = arith.constant 0 : index
    %1057 = vector.load %arg58[%c0_918, %c0_919] : memref<24x32xf32, #tpu.memory_space<vmem>>, vector<24x32xf32>
    tpu.vector_store %arg58[%c0_918, %c0_919], %1056 {strides = array<i32>} : memref<24x32xf32, #tpu.memory_space<vmem>>, vector<24x32xf32>,
    %c1_920 = arith.constant 1 : index
    %c0_921 = arith.constant 0 : index
    %1058 = vector.load %arg58[%c1_920, %c0_921] : memref<24x32xf32, #tpu.memory_space<vmem>>, vector<8x32xf32>
    tpu.vector_store %arg58[%c1_920, %c0_921], %1055 {strides = array<i32>} : memref<24x32xf32, #tpu.memory_space<vmem>>, vector<8x32xf32>,
    %cst_922 = arith.constant 0.000000e+00 : f32
    %1059 = vector.broadcast %cst_922 : f32 to vector<8x32xf32>
    %c0_923 = arith.constant 0 : index
    %c0_924 = arith.constant 0 : index
    %1060 = vector.load %arg58[%c0_923, %c0_924] : memref<24x32xf32, #tpu.memory_space<vmem>>, vector<8x32xf32>
    %1061 = arith.truncf %1060 : vector<8x32xf32> to vector<8x32xbf16>
    %c0_925 = arith.constant 0 : index
    %c0_926 = arith.constant 0 : index
    %c0_927 = arith.constant 0 : index
    %1062 = vector.load %arg36[%c0_925, %c0_926, %c0_927] : memref<3x32x32xbf16, #tpu.memory_space<vmem>>, vector<1x32x32xbf16>
    %1063 = vector.shape_cast %1062 : vector<1x32x32xbf16> to vector<32x32xbf16>
    %cst_928 = arith.constant dense<0.000000e+00> : vector<8x32xf32>
    %1064 = tpu.matmul %1061, %1063, %cst_928 {dimension_numbers = #tpu.dot_dimension_numbers<[1], [0], [0], [1], [0, 0, 1, 1], [], []>} : vector<8x32xbf16>, vector<32x32xbf16>, vector<8x32xf32> -> vector<8x32xf32>
    %1065 = arith.addf %1059, %1064 : vector<8x32xf32>
    %c1_929 = arith.constant 1 : index
    %c0_930 = arith.constant 0 : index
    %1066 = vector.load %arg58[%c1_929, %c0_930] : memref<24x32xf32, #tpu.memory_space<vmem>>, vector<8x32xf32>
    %1067 = arith.truncf %1066 : vector<8x32xf32> to vector<8x32xbf16>
    %c1_931 = arith.constant 1 : index
    %c0_932 = arith.constant 0 : index
    %c0_933 = arith.constant 0 : index
    %1068 = vector.load %arg36[%c1_931, %c0_932, %c0_933] : memref<3x32x32xbf16, #tpu.memory_space<vmem>>, vector<1x32x32xbf16>
    %1069 = vector.shape_cast %1068 : vector<1x32x32xbf16> to vector<32x32xbf16>
    %cst_934 = arith.constant dense<0.000000e+00> : vector<8x32xf32>
    %1070 = tpu.matmul %1067, %1069, %cst_934 {dimension_numbers = #tpu.dot_dimension_numbers<[1], [0], [0], [1], [0, 0, 1, 1], [], []>} : vector<8x32xbf16>, vector<32x32xbf16>, vector<8x32xf32> -> vector<8x32xf32>
    %1071 = arith.addf %1065, %1070 : vector<8x32xf32>
    %c2_935 = arith.constant 2 : index
    %c0_936 = arith.constant 0 : index
    %1072 = vector.load %arg58[%c2_935, %c0_936] : memref<24x32xf32, #tpu.memory_space<vmem>>, vector<8x32xf32>
    %1073 = arith.truncf %1072 : vector<8x32xf32> to vector<8x32xbf16>
    %c2_937 = arith.constant 2 : index
    %c0_938 = arith.constant 0 : index
    %c0_939 = arith.constant 0 : index
    %1074 = vector.load %arg36[%c2_937, %c0_938, %c0_939] : memref<3x32x32xbf16, #tpu.memory_space<vmem>>, vector<1x32x32xbf16>
    %1075 = vector.shape_cast %1074 : vector<1x32x32xbf16> to vector<32x32xbf16>
    %cst_940 = arith.constant dense<0.000000e+00> : vector<8x32xf32>
    %1076 = tpu.matmul %1073, %1075, %cst_940 {dimension_numbers = #tpu.dot_dimension_numbers<[1], [0], [0], [1], [0, 0, 1, 1], [], []>} : vector<8x32xbf16>, vector<32x32xbf16>, vector<8x32xf32> -> vector<8x32xf32>
    %1077 = arith.addf %1071, %1076 : vector<8x32xf32>
    %c0_941 = arith.constant 0 : index
    %c0_942 = arith.constant 0 : index
    %1078 = vector.load %arg37[%c0_941, %c0_942] : memref<1x32xf32, #tpu.memory_space<vmem>>, vector<1x32xf32>
    %1079 = vector.broadcast %1078 : vector<1x32xf32> to vector<8x32xf32>
    %1080 = arith.addf %1077, %1079 : vector<8x32xf32>
    %cst_943 = arith.constant 0.000000e+00 : f32
    %1081 = vector.broadcast %cst_943 : f32 to vector<8x32xf32>
    %1082 = arith.maximumf %1080, %1081 : vector<8x32xf32>
    %cst_944 = arith.constant 0.000000e+00 : f32
    %1083 = vector.broadcast %cst_944 : f32 to vector<24x32xf32>
    %c0_945 = arith.constant 0 : index
    %c0_946 = arith.constant 0 : index
    %1084 = vector.load %arg58[%c0_945, %c0_946] : memref<24x32xf32, #tpu.memory_space<vmem>>, vector<24x32xf32>
    tpu.vector_store %arg58[%c0_945, %c0_946], %1083 {strides = array<i32>} : memref<24x32xf32, #tpu.memory_space<vmem>>, vector<24x32xf32>,
    %c3_947 = arith.constant 3 : index
    %c0_948 = arith.constant 0 : index
    %1085 = vector.load %arg58[%c3_947, %c0_948] : memref<24x32xf32, #tpu.memory_space<vmem>>, vector<8x32xf32>
    tpu.vector_store %arg58[%c3_947, %c0_948], %1082 {strides = array<i32>} : memref<24x32xf32, #tpu.memory_space<vmem>>, vector<8x32xf32>,
    %cst_949 = arith.constant 0.000000e+00 : f32
    %1086 = vector.broadcast %cst_949 : f32 to vector<8x32xf32>
    %c0_950 = arith.constant 0 : index
    %c0_951 = arith.constant 0 : index
    %1087 = vector.load %arg58[%c0_950, %c0_951] : memref<24x32xf32, #tpu.memory_space<vmem>>, vector<8x32xf32>
    %1088 = arith.truncf %1087 : vector<8x32xf32> to vector<8x32xbf16>
    %c0_952 = arith.constant 0 : index
    %c0_953 = arith.constant 0 : index
    %c0_954 = arith.constant 0 : index
    %1089 = vector.load %arg38[%c0_952, %c0_953, %c0_954] : memref<3x32x32xbf16, #tpu.memory_space<vmem>>, vector<1x32x32xbf16>
    %1090 = vector.shape_cast %1089 : vector<1x32x32xbf16> to vector<32x32xbf16>
    %cst_955 = arith.constant dense<0.000000e+00> : vector<8x32xf32>
    %1091 = tpu.matmul %1088, %1090, %cst_955 {dimension_numbers = #tpu.dot_dimension_numbers<[1], [0], [0], [1], [0, 0, 1, 1], [], []>} : vector<8x32xbf16>, vector<32x32xbf16>, vector<8x32xf32> -> vector<8x32xf32>
    %1092 = arith.addf %1086, %1091 : vector<8x32xf32>
    %c3_956 = arith.constant 3 : index
    %c0_957 = arith.constant 0 : index
    %1093 = vector.load %arg58[%c3_956, %c0_957] : memref<24x32xf32, #tpu.memory_space<vmem>>, vector<8x32xf32>
    %1094 = arith.truncf %1093 : vector<8x32xf32> to vector<8x32xbf16>
    %c1_958 = arith.constant 1 : index
    %c0_959 = arith.constant 0 : index
    %c0_960 = arith.constant 0 : index
    %1095 = vector.load %arg38[%c1_958, %c0_959, %c0_960] : memref<3x32x32xbf16, #tpu.memory_space<vmem>>, vector<1x32x32xbf16>
    %1096 = vector.shape_cast %1095 : vector<1x32x32xbf16> to vector<32x32xbf16>
    %cst_961 = arith.constant dense<0.000000e+00> : vector<8x32xf32>
    %1097 = tpu.matmul %1094, %1096, %cst_961 {dimension_numbers = #tpu.dot_dimension_numbers<[1], [0], [0], [1], [0, 0, 1, 1], [], []>} : vector<8x32xbf16>, vector<32x32xbf16>, vector<8x32xf32> -> vector<8x32xf32>
    %1098 = arith.addf %1092, %1097 : vector<8x32xf32>
    %c6_962 = arith.constant 6 : index
    %c0_963 = arith.constant 0 : index
    %1099 = vector.load %arg58[%c6_962, %c0_963] : memref<24x32xf32, #tpu.memory_space<vmem>>, vector<8x32xf32>
    %1100 = arith.truncf %1099 : vector<8x32xf32> to vector<8x32xbf16>
    %c2_964 = arith.constant 2 : index
    %c0_965 = arith.constant 0 : index
    %c0_966 = arith.constant 0 : index
    %1101 = vector.load %arg38[%c2_964, %c0_965, %c0_966] : memref<3x32x32xbf16, #tpu.memory_space<vmem>>, vector<1x32x32xbf16>
    %1102 = vector.shape_cast %1101 : vector<1x32x32xbf16> to vector<32x32xbf16>
    %cst_967 = arith.constant dense<0.000000e+00> : vector<8x32xf32>
    %1103 = tpu.matmul %1100, %1102, %cst_967 {dimension_numbers = #tpu.dot_dimension_numbers<[1], [0], [0], [1], [0, 0, 1, 1], [], []>} : vector<8x32xbf16>, vector<32x32xbf16>, vector<8x32xf32> -> vector<8x32xf32>
    %1104 = arith.addf %1098, %1103 : vector<8x32xf32>
    %c0_968 = arith.constant 0 : index
    %c0_969 = arith.constant 0 : index
    %1105 = vector.load %arg39[%c0_968, %c0_969] : memref<1x32xf32, #tpu.memory_space<vmem>>, vector<1x32xf32>
    %1106 = vector.broadcast %1105 : vector<1x32xf32> to vector<8x32xf32>
    %1107 = arith.addf %1104, %1106 : vector<8x32xf32>
    %cst_970 = arith.constant 0.000000e+00 : f32
    %1108 = vector.broadcast %cst_970 : f32 to vector<8x32xf32>
    %1109 = arith.maximumf %1107, %1108 : vector<8x32xf32>
    %1110 = arith.truncf %1109 : vector<8x32xf32> to vector<8x32xbf16>
    %c0_971 = arith.constant 0 : index
    %c0_972 = arith.constant 0 : index
    %c0_973 = arith.constant 0 : index
    %1111 = vector.load %arg40[%c0_971, %c0_972, %c0_973] : memref<1x32x32xbf16, #tpu.memory_space<vmem>>, vector<1x32x32xbf16>
    %1112 = vector.shape_cast %1111 : vector<1x32x32xbf16> to vector<32x32xbf16>
    %cst_974 = arith.constant dense<0.000000e+00> : vector<8x32xf32>
    %1113 = tpu.matmul %1110, %1112, %cst_974 {dimension_numbers = #tpu.dot_dimension_numbers<[1], [0], [0], [1], [0, 0, 1, 1], [], []>} : vector<8x32xbf16>, vector<32x32xbf16>, vector<8x32xf32> -> vector<8x32xf32>
    %c0_975 = arith.constant 0 : index
    %c0_976 = arith.constant 0 : index
    %1114 = vector.load %arg41[%c0_975, %c0_976] : memref<1x32xf32, #tpu.memory_space<vmem>>, vector<1x32xf32>
    %1115 = vector.broadcast %1114 : vector<1x32xf32> to vector<8x32xf32>
    %1116 = arith.addf %1113, %1115 : vector<8x32xf32>
    %1117 = arith.addf %1080, %1116 : vector<8x32xf32>
    %cst_977 = arith.constant 0.000000e+00 : f32
    %1118 = vector.broadcast %cst_977 : f32 to vector<8x32xf32>
    %1119 = arith.maximumf %1117, %1118 : vector<8x32xf32>
    %cst_978 = arith.constant 0.000000e+00 : f32
    %1120 = vector.broadcast %cst_978 : f32 to vector<24x32xf32>
    %c0_979 = arith.constant 0 : index
    %c0_980 = arith.constant 0 : index
    %1121 = vector.load %arg58[%c0_979, %c0_980] : memref<24x32xf32, #tpu.memory_space<vmem>>, vector<24x32xf32>
    tpu.vector_store %arg58[%c0_979, %c0_980], %1120 {strides = array<i32>} : memref<24x32xf32, #tpu.memory_space<vmem>>, vector<24x32xf32>,
    %c1_981 = arith.constant 1 : index
    %c0_982 = arith.constant 0 : index
    %1122 = vector.load %arg58[%c1_981, %c0_982] : memref<24x32xf32, #tpu.memory_space<vmem>>, vector<8x32xf32>
    tpu.vector_store %arg58[%c1_981, %c0_982], %1119 {strides = array<i32>} : memref<24x32xf32, #tpu.memory_space<vmem>>, vector<8x32xf32>,
    %cst_983 = arith.constant 0.000000e+00 : f32
    %1123 = vector.broadcast %cst_983 : f32 to vector<8x32xf32>
    %c0_984 = arith.constant 0 : index
    %c0_985 = arith.constant 0 : index
    %1124 = vector.load %arg58[%c0_984, %c0_985] : memref<24x32xf32, #tpu.memory_space<vmem>>, vector<8x32xf32>
    %1125 = arith.truncf %1124 : vector<8x32xf32> to vector<8x32xbf16>
    %c0_986 = arith.constant 0 : index
    %c0_987 = arith.constant 0 : index
    %c0_988 = arith.constant 0 : index
    %1126 = vector.load %arg42[%c0_986, %c0_987, %c0_988] : memref<3x32x32xbf16, #tpu.memory_space<vmem>>, vector<1x32x32xbf16>
    %1127 = vector.shape_cast %1126 : vector<1x32x32xbf16> to vector<32x32xbf16>
    %cst_989 = arith.constant dense<0.000000e+00> : vector<8x32xf32>
    %1128 = tpu.matmul %1125, %1127, %cst_989 {dimension_numbers = #tpu.dot_dimension_numbers<[1], [0], [0], [1], [0, 0, 1, 1], [], []>} : vector<8x32xbf16>, vector<32x32xbf16>, vector<8x32xf32> -> vector<8x32xf32>
    %1129 = arith.addf %1123, %1128 : vector<8x32xf32>
    %c1_990 = arith.constant 1 : index
    %c0_991 = arith.constant 0 : index
    %1130 = vector.load %arg58[%c1_990, %c0_991] : memref<24x32xf32, #tpu.memory_space<vmem>>, vector<8x32xf32>
    %1131 = arith.truncf %1130 : vector<8x32xf32> to vector<8x32xbf16>
    %c1_992 = arith.constant 1 : index
    %c0_993 = arith.constant 0 : index
    %c0_994 = arith.constant 0 : index
    %1132 = vector.load %arg42[%c1_992, %c0_993, %c0_994] : memref<3x32x32xbf16, #tpu.memory_space<vmem>>, vector<1x32x32xbf16>
    %1133 = vector.shape_cast %1132 : vector<1x32x32xbf16> to vector<32x32xbf16>
    %cst_995 = arith.constant dense<0.000000e+00> : vector<8x32xf32>
    %1134 = tpu.matmul %1131, %1133, %cst_995 {dimension_numbers = #tpu.dot_dimension_numbers<[1], [0], [0], [1], [0, 0, 1, 1], [], []>} : vector<8x32xbf16>, vector<32x32xbf16>, vector<8x32xf32> -> vector<8x32xf32>
    %1135 = arith.addf %1129, %1134 : vector<8x32xf32>
    %c2_996 = arith.constant 2 : index
    %c0_997 = arith.constant 0 : index
    %1136 = vector.load %arg58[%c2_996, %c0_997] : memref<24x32xf32, #tpu.memory_space<vmem>>, vector<8x32xf32>
    %1137 = arith.truncf %1136 : vector<8x32xf32> to vector<8x32xbf16>
    %c2_998 = arith.constant 2 : index
    %c0_999 = arith.constant 0 : index
    %c0_1000 = arith.constant 0 : index
    %1138 = vector.load %arg42[%c2_998, %c0_999, %c0_1000] : memref<3x32x32xbf16, #tpu.memory_space<vmem>>, vector<1x32x32xbf16>
    %1139 = vector.shape_cast %1138 : vector<1x32x32xbf16> to vector<32x32xbf16>
    %cst_1001 = arith.constant dense<0.000000e+00> : vector<8x32xf32>
    %1140 = tpu.matmul %1137, %1139, %cst_1001 {dimension_numbers = #tpu.dot_dimension_numbers<[1], [0], [0], [1], [0, 0, 1, 1], [], []>} : vector<8x32xbf16>, vector<32x32xbf16>, vector<8x32xf32> -> vector<8x32xf32>
    %1141 = arith.addf %1135, %1140 : vector<8x32xf32>
    %c0_1002 = arith.constant 0 : index
    %c0_1003 = arith.constant 0 : index
    %1142 = vector.load %arg43[%c0_1002, %c0_1003] : memref<1x32xf32, #tpu.memory_space<vmem>>, vector<1x32xf32>
    %1143 = vector.broadcast %1142 : vector<1x32xf32> to vector<8x32xf32>
    %1144 = arith.addf %1141, %1143 : vector<8x32xf32>
    %cst_1004 = arith.constant 0.000000e+00 : f32
    %1145 = vector.broadcast %cst_1004 : f32 to vector<8x32xf32>
    %1146 = arith.maximumf %1144, %1145 : vector<8x32xf32>
    %1147 = arith.truncf %1146 : vector<8x32xf32> to vector<8x32xbf16>
    %c0_1005 = arith.constant 0 : index
    %c0_1006 = arith.constant 0 : index
    %c0_1007 = arith.constant 0 : index
    %1148 = vector.load %arg44[%c0_1005, %c0_1006, %c0_1007] : memref<1x32x32xbf16, #tpu.memory_space<vmem>>, vector<1x32x32xbf16>
    %1149 = vector.shape_cast %1148 : vector<1x32x32xbf16> to vector<32x32xbf16>
    %cst_1008 = arith.constant dense<0.000000e+00> : vector<8x32xf32>
    %1150 = tpu.matmul %1147, %1149, %cst_1008 {dimension_numbers = #tpu.dot_dimension_numbers<[1], [0], [0], [1], [0, 0, 1, 1], [], []>} : vector<8x32xbf16>, vector<32x32xbf16>, vector<8x32xf32> -> vector<8x32xf32>
    %c0_1009 = arith.constant 0 : index
    %c0_1010 = arith.constant 0 : index
    %1151 = vector.load %arg45[%c0_1009, %c0_1010] : memref<1x32xf32, #tpu.memory_space<vmem>>, vector<1x32xf32>
    %1152 = vector.broadcast %1151 : vector<1x32xf32> to vector<8x32xf32>
    %1153 = arith.addf %1150, %1152 : vector<8x32xf32>
    %1154 = arith.addf %1117, %1153 : vector<8x32xf32>
    %1155 = tpu.iota {dimensions = array<i32: 0>} : vector<16x8xi32>
    %1156 = tpu.iota {dimensions = array<i32: 1>} : vector<16x8xi32>
    %c2_i32_1011 = arith.constant 2 : i32
    %1157 = vector.broadcast %c2_i32_1011 : i32 to vector<16x8xi32>
    %1158 = arith.muli %1157, %1156 : vector<16x8xi32>
    %1159 = arith.cmpi eq, %1155, %1158 : vector<16x8xi32>
    %c2_i32_1012 = arith.constant 2 : i32
    %1160 = vector.broadcast %c2_i32_1012 : i32 to vector<16x8xi32>
    %1161 = arith.muli %1160, %1156 : vector<16x8xi32>
    %c1_i32_1013 = arith.constant 1 : i32
    %1162 = vector.broadcast %c1_i32_1013 : i32 to vector<16x8xi32>
    %1163 = arith.addi %1161, %1162 : vector<16x8xi32>
    %1164 = arith.cmpi eq, %1155, %1163 : vector<16x8xi32>
    %1165 = arith.ori %1159, %1164 : vector<16x8xi1>
    %1166 = arith.extui %1165 : vector<16x8xi1> to vector<16x8xi32>
    %1167 = arith.sitofp %1166 : vector<16x8xi32> to vector<16x8xf32>
    %cst_1014 = arith.constant dense<0.000000e+00> : vector<16x32xf32>
    %1168 = tpu.matmul %1167, %1154, %cst_1014 {dimension_numbers = #tpu.dot_dimension_numbers<[1], [0], [0], [1], [0, 0, 1, 1], [], []>} : vector<16x8xf32>, vector<8x32xf32>, vector<16x32xf32> -> vector<16x32xf32>
    %cst_1015 = arith.constant 0.000000e+00 : f32
    %1169 = vector.broadcast %cst_1015 : f32 to vector<24x32xf32>
    %c0_1016 = arith.constant 0 : index
    %c0_1017 = arith.constant 0 : index
    %1170 = vector.load %arg58[%c0_1016, %c0_1017] : memref<24x32xf32, #tpu.memory_space<vmem>>, vector<24x32xf32>
    tpu.vector_store %arg58[%c0_1016, %c0_1017], %1169 {strides = array<i32>} : memref<24x32xf32, #tpu.memory_space<vmem>>, vector<24x32xf32>,
    %c1_1018 = arith.constant 1 : index
    %c0_1019 = arith.constant 0 : index
    %1171 = vector.load %arg58[%c1_1018, %c0_1019] : memref<24x32xf32, #tpu.memory_space<vmem>>, vector<16x32xf32>
    tpu.vector_store %arg58[%c1_1018, %c0_1019], %1168 {strides = array<i32>} : memref<24x32xf32, #tpu.memory_space<vmem>>, vector<16x32xf32>,
    %cst_1020 = arith.constant 0.000000e+00 : f32
    %1172 = vector.broadcast %cst_1020 : f32 to vector<16x32xf32>
    %c0_1021 = arith.constant 0 : index
    %c0_1022 = arith.constant 0 : index
    %1173 = vector.load %arg58[%c0_1021, %c0_1022] : memref<24x32xf32, #tpu.memory_space<vmem>>, vector<16x32xf32>
    %1174 = arith.truncf %1173 : vector<16x32xf32> to vector<16x32xbf16>
    %c0_1023 = arith.constant 0 : index
    %c0_1024 = arith.constant 0 : index
    %c0_1025 = arith.constant 0 : index
    %1175 = vector.load %arg46[%c0_1023, %c0_1024, %c0_1025] : memref<3x32x32xbf16, #tpu.memory_space<vmem>>, vector<1x32x32xbf16>
    %1176 = vector.shape_cast %1175 : vector<1x32x32xbf16> to vector<32x32xbf16>
    %cst_1026 = arith.constant dense<0.000000e+00> : vector<16x32xf32>
    %1177 = tpu.matmul %1174, %1176, %cst_1026 {dimension_numbers = #tpu.dot_dimension_numbers<[1], [0], [0], [1], [0, 0, 1, 1], [], []>} : vector<16x32xbf16>, vector<32x32xbf16>, vector<16x32xf32> -> vector<16x32xf32>
    %1178 = arith.addf %1172, %1177 : vector<16x32xf32>
    %c1_1027 = arith.constant 1 : index
    %c0_1028 = arith.constant 0 : index
    %1179 = vector.load %arg58[%c1_1027, %c0_1028] : memref<24x32xf32, #tpu.memory_space<vmem>>, vector<16x32xf32>
    %1180 = arith.truncf %1179 : vector<16x32xf32> to vector<16x32xbf16>
    %c1_1029 = arith.constant 1 : index
    %c0_1030 = arith.constant 0 : index
    %c0_1031 = arith.constant 0 : index
    %1181 = vector.load %arg46[%c1_1029, %c0_1030, %c0_1031] : memref<3x32x32xbf16, #tpu.memory_space<vmem>>, vector<1x32x32xbf16>
    %1182 = vector.shape_cast %1181 : vector<1x32x32xbf16> to vector<32x32xbf16>
    %cst_1032 = arith.constant dense<0.000000e+00> : vector<16x32xf32>
    %1183 = tpu.matmul %1180, %1182, %cst_1032 {dimension_numbers = #tpu.dot_dimension_numbers<[1], [0], [0], [1], [0, 0, 1, 1], [], []>} : vector<16x32xbf16>, vector<32x32xbf16>, vector<16x32xf32> -> vector<16x32xf32>
    %1184 = arith.addf %1178, %1183 : vector<16x32xf32>
    %c2_1033 = arith.constant 2 : index
    %c0_1034 = arith.constant 0 : index
    %1185 = vector.load %arg58[%c2_1033, %c0_1034] : memref<24x32xf32, #tpu.memory_space<vmem>>, vector<16x32xf32>
    %1186 = arith.truncf %1185 : vector<16x32xf32> to vector<16x32xbf16>
    %c2_1035 = arith.constant 2 : index
    %c0_1036 = arith.constant 0 : index
    %c0_1037 = arith.constant 0 : index
    %1187 = vector.load %arg46[%c2_1035, %c0_1036, %c0_1037] : memref<3x32x32xbf16, #tpu.memory_space<vmem>>, vector<1x32x32xbf16>
    %1188 = vector.shape_cast %1187 : vector<1x32x32xbf16> to vector<32x32xbf16>
    %cst_1038 = arith.constant dense<0.000000e+00> : vector<16x32xf32>
    %1189 = tpu.matmul %1186, %1188, %cst_1038 {dimension_numbers = #tpu.dot_dimension_numbers<[1], [0], [0], [1], [0, 0, 1, 1], [], []>} : vector<16x32xbf16>, vector<32x32xbf16>, vector<16x32xf32> -> vector<16x32xf32>
    %1190 = arith.addf %1184, %1189 : vector<16x32xf32>
    %c0_1039 = arith.constant 0 : index
    %c0_1040 = arith.constant 0 : index
    %1191 = vector.load %arg47[%c0_1039, %c0_1040] : memref<1x32xf32, #tpu.memory_space<vmem>>, vector<1x32xf32>
    %1192 = vector.broadcast %1191 : vector<1x32xf32> to vector<16x32xf32>
    %1193 = arith.addf %1190, %1192 : vector<16x32xf32>
    %cst_1041 = arith.constant 0.000000e+00 : f32
    %1194 = vector.broadcast %cst_1041 : f32 to vector<24x32xf32>
    %c0_1042 = arith.constant 0 : index
    %c0_1043 = arith.constant 0 : index
    %1195 = vector.load %arg58[%c0_1042, %c0_1043] : memref<24x32xf32, #tpu.memory_space<vmem>>, vector<24x32xf32>
    tpu.vector_store %arg58[%c0_1042, %c0_1043], %1194 {strides = array<i32>} : memref<24x32xf32, #tpu.memory_space<vmem>>, vector<24x32xf32>,
    %c1_1044 = arith.constant 1 : index
    %c0_1045 = arith.constant 0 : index
    %1196 = vector.load %arg58[%c1_1044, %c0_1045] : memref<24x32xf32, #tpu.memory_space<vmem>>, vector<16x32xf32>
    tpu.vector_store %arg58[%c1_1044, %c0_1045], %1193 {strides = array<i32>} : memref<24x32xf32, #tpu.memory_space<vmem>>, vector<16x32xf32>,
    %cst_1046 = arith.constant 0.000000e+00 : f32
    %1197 = vector.broadcast %cst_1046 : f32 to vector<16x32xf32>
    %c0_1047 = arith.constant 0 : index
    %c0_1048 = arith.constant 0 : index
    %1198 = vector.load %arg58[%c0_1047, %c0_1048] : memref<24x32xf32, #tpu.memory_space<vmem>>, vector<16x32xf32>
    %1199 = arith.truncf %1198 : vector<16x32xf32> to vector<16x32xbf16>
    %c0_1049 = arith.constant 0 : index
    %c0_1050 = arith.constant 0 : index
    %c0_1051 = arith.constant 0 : index
    %1200 = vector.load %arg48[%c0_1049, %c0_1050, %c0_1051] : memref<3x32x32xbf16, #tpu.memory_space<vmem>>, vector<1x32x32xbf16>
    %1201 = vector.shape_cast %1200 : vector<1x32x32xbf16> to vector<32x32xbf16>
    %cst_1052 = arith.constant dense<0.000000e+00> : vector<16x32xf32>
    %1202 = tpu.matmul %1199, %1201, %cst_1052 {dimension_numbers = #tpu.dot_dimension_numbers<[1], [0], [0], [1], [0, 0, 1, 1], [], []>} : vector<16x32xbf16>, vector<32x32xbf16>, vector<16x32xf32> -> vector<16x32xf32>
    %1203 = arith.addf %1197, %1202 : vector<16x32xf32>
    %c1_1053 = arith.constant 1 : index
    %c0_1054 = arith.constant 0 : index
    %1204 = vector.load %arg58[%c1_1053, %c0_1054] : memref<24x32xf32, #tpu.memory_space<vmem>>, vector<16x32xf32>
    %1205 = arith.truncf %1204 : vector<16x32xf32> to vector<16x32xbf16>
    %c1_1055 = arith.constant 1 : index
    %c0_1056 = arith.constant 0 : index
    %c0_1057 = arith.constant 0 : index
    %1206 = vector.load %arg48[%c1_1055, %c0_1056, %c0_1057] : memref<3x32x32xbf16, #tpu.memory_space<vmem>>, vector<1x32x32xbf16>
    %1207 = vector.shape_cast %1206 : vector<1x32x32xbf16> to vector<32x32xbf16>
    %cst_1058 = arith.constant dense<0.000000e+00> : vector<16x32xf32>
    %1208 = tpu.matmul %1205, %1207, %cst_1058 {dimension_numbers = #tpu.dot_dimension_numbers<[1], [0], [0], [1], [0, 0, 1, 1], [], []>} : vector<16x32xbf16>, vector<32x32xbf16>, vector<16x32xf32> -> vector<16x32xf32>
    %1209 = arith.addf %1203, %1208 : vector<16x32xf32>
    %c2_1059 = arith.constant 2 : index
    %c0_1060 = arith.constant 0 : index
    %1210 = vector.load %arg58[%c2_1059, %c0_1060] : memref<24x32xf32, #tpu.memory_space<vmem>>, vector<16x32xf32>
    %1211 = arith.truncf %1210 : vector<16x32xf32> to vector<16x32xbf16>
    %c2_1061 = arith.constant 2 : index
    %c0_1062 = arith.constant 0 : index
    %c0_1063 = arith.constant 0 : index
    %1212 = vector.load %arg48[%c2_1061, %c0_1062, %c0_1063] : memref<3x32x32xbf16, #tpu.memory_space<vmem>>, vector<1x32x32xbf16>
    %1213 = vector.shape_cast %1212 : vector<1x32x32xbf16> to vector<32x32xbf16>
    %cst_1064 = arith.constant dense<0.000000e+00> : vector<16x32xf32>
    %1214 = tpu.matmul %1211, %1213, %cst_1064 {dimension_numbers = #tpu.dot_dimension_numbers<[1], [0], [0], [1], [0, 0, 1, 1], [], []>} : vector<16x32xbf16>, vector<32x32xbf16>, vector<16x32xf32> -> vector<16x32xf32>
    %1215 = arith.addf %1209, %1214 : vector<16x32xf32>
    %c0_1065 = arith.constant 0 : index
    %c0_1066 = arith.constant 0 : index
    %1216 = vector.load %arg49[%c0_1065, %c0_1066] : memref<1x32xf32, #tpu.memory_space<vmem>>, vector<1x32xf32>
    %1217 = vector.broadcast %1216 : vector<1x32xf32> to vector<16x32xf32>
    %1218 = arith.addf %1215, %1217 : vector<16x32xf32>
    %cst_1067 = arith.constant 0.000000e+00 : f32
    %1219 = vector.broadcast %cst_1067 : f32 to vector<16x32xf32>
    %1220 = arith.maximumf %1218, %1219 : vector<16x32xf32>
    %cst_1068 = arith.constant 0.000000e+00 : f32
    %1221 = vector.broadcast %cst_1068 : f32 to vector<24x32xf32>
    %c0_1069 = arith.constant 0 : index
    %c0_1070 = arith.constant 0 : index
    %1222 = vector.load %arg58[%c0_1069, %c0_1070] : memref<24x32xf32, #tpu.memory_space<vmem>>, vector<24x32xf32>
    tpu.vector_store %arg58[%c0_1069, %c0_1070], %1221 {strides = array<i32>} : memref<24x32xf32, #tpu.memory_space<vmem>>, vector<24x32xf32>,
    %c1_1071 = arith.constant 1 : index
    %c0_1072 = arith.constant 0 : index
    %1223 = vector.load %arg58[%c1_1071, %c0_1072] : memref<24x32xf32, #tpu.memory_space<vmem>>, vector<16x32xf32>
    tpu.vector_store %arg58[%c1_1071, %c0_1072], %1220 {strides = array<i32>} : memref<24x32xf32, #tpu.memory_space<vmem>>, vector<16x32xf32>,
    %cst_1073 = arith.constant 0.000000e+00 : f32
    %1224 = vector.broadcast %cst_1073 : f32 to vector<16x3xf32>
    %c0_1074 = arith.constant 0 : index
    %c0_1075 = arith.constant 0 : index
    %1225 = vector.load %arg58[%c0_1074, %c0_1075] : memref<24x32xf32, #tpu.memory_space<vmem>>, vector<16x32xf32>
    %1226 = arith.truncf %1225 : vector<16x32xf32> to vector<16x32xbf16>
    %c0_1076 = arith.constant 0 : index
    %c0_1077 = arith.constant 0 : index
    %c0_1078 = arith.constant 0 : index
    %1227 = vector.load %arg50[%c0_1076, %c0_1077, %c0_1078] : memref<3x32x3xbf16, #tpu.memory_space<vmem>>, vector<1x32x3xbf16>
    %1228 = vector.shape_cast %1227 : vector<1x32x3xbf16> to vector<32x3xbf16>
    %cst_1079 = arith.constant dense<0.000000e+00> : vector<16x3xf32>
    %1229 = tpu.matmul %1226, %1228, %cst_1079 {dimension_numbers = #tpu.dot_dimension_numbers<[1], [0], [0], [1], [0, 0, 1, 1], [], []>} : vector<16x32xbf16>, vector<32x3xbf16>, vector<16x3xf32> -> vector<16x3xf32>
    %1230 = arith.addf %1224, %1229 : vector<16x3xf32>
    %c1_1080 = arith.constant 1 : index
    %c0_1081 = arith.constant 0 : index
    %1231 = vector.load %arg58[%c1_1080, %c0_1081] : memref<24x32xf32, #tpu.memory_space<vmem>>, vector<16x32xf32>
    %1232 = arith.truncf %1231 : vector<16x32xf32> to vector<16x32xbf16>
    %c1_1082 = arith.constant 1 : index
    %c0_1083 = arith.constant 0 : index
    %c0_1084 = arith.constant 0 : index
    %1233 = vector.load %arg50[%c1_1082, %c0_1083, %c0_1084] : memref<3x32x3xbf16, #tpu.memory_space<vmem>>, vector<1x32x3xbf16>
    %1234 = vector.shape_cast %1233 : vector<1x32x3xbf16> to vector<32x3xbf16>
    %cst_1085 = arith.constant dense<0.000000e+00> : vector<16x3xf32>
    %1235 = tpu.matmul %1232, %1234, %cst_1085 {dimension_numbers = #tpu.dot_dimension_numbers<[1], [0], [0], [1], [0, 0, 1, 1], [], []>} : vector<16x32xbf16>, vector<32x3xbf16>, vector<16x3xf32> -> vector<16x3xf32>
    %1236 = arith.addf %1230, %1235 : vector<16x3xf32>
    %c2_1086 = arith.constant 2 : index
    %c0_1087 = arith.constant 0 : index
    %1237 = vector.load %arg58[%c2_1086, %c0_1087] : memref<24x32xf32, #tpu.memory_space<vmem>>, vector<16x32xf32>
    %1238 = arith.truncf %1237 : vector<16x32xf32> to vector<16x32xbf16>
    %c2_1088 = arith.constant 2 : index
    %c0_1089 = arith.constant 0 : index
    %c0_1090 = arith.constant 0 : index
    %1239 = vector.load %arg50[%c2_1088, %c0_1089, %c0_1090] : memref<3x32x3xbf16, #tpu.memory_space<vmem>>, vector<1x32x3xbf16>
    %1240 = vector.shape_cast %1239 : vector<1x32x3xbf16> to vector<32x3xbf16>
    %cst_1091 = arith.constant dense<0.000000e+00> : vector<16x3xf32>
    %1241 = tpu.matmul %1238, %1240, %cst_1091 {dimension_numbers = #tpu.dot_dimension_numbers<[1], [0], [0], [1], [0, 0, 1, 1], [], []>} : vector<16x32xbf16>, vector<32x3xbf16>, vector<16x3xf32> -> vector<16x3xf32>
    %1242 = arith.addf %1236, %1241 : vector<16x3xf32>
    %c0_1092 = arith.constant 0 : index
    %c0_1093 = arith.constant 0 : index
    %1243 = vector.load %arg51[%c0_1092, %c0_1093] : memref<1x3xf32, #tpu.memory_space<vmem>>, vector<1x3xf32>
    %1244 = vector.broadcast %1243 : vector<1x3xf32> to vector<16x3xf32>
    %1245 = arith.addf %1242, %1244 : vector<16x3xf32>
    %c1_1094 = arith.constant 1 : index
    %c0_1095 = arith.constant 0 : index
    %c0_1096 = arith.constant 0 : index
    %1246 = vector.load %arg55[%c1_1094, %c0_1095, %c0_1096] : memref<2x16x3xf32, #tpu.memory_space<vmem>>, vector<1x16x3xf32>
    %1247 = vector.shape_cast %1246 : vector<1x16x3xf32> to vector<16x3xf32>
    %1248 = vector.shape_cast %1245 : vector<16x3xf32> to vector<1x16x3xf32>
    tpu.vector_store %arg55[%c1_1094, %c0_1095, %c0_1096], %1248 {strides = array<i32>} : memref<2x16x3xf32, #tpu.memory_space<vmem>>, vector<1x16x3xf32>,
    %cst_1097 = arith.constant 2.560000e+02 : f32
    %1249 = vector.broadcast %cst_1097 : f32 to vector<1x1xf32>
    %1250 = arith.divf %937, %1249 : vector<1x1xf32>
    %c0_1098 = arith.constant 0 : index
    %c0_1099 = arith.constant 0 : index
    %1251 = vector.load %arg56[%c0_1098, %c0_1099] : memref<1x1xf32, #tpu.memory_space<vmem>>, vector<1x1xf32>
    tpu.vector_store %arg56[%c0_1098, %c0_1099], %1250 {strides = array<i32>} : memref<1x1xf32, #tpu.memory_space<vmem>>, vector<1x1xf32>,
    %cst_1100 = arith.constant 8.000000e+00 : f32
    %1252 = vector.broadcast %cst_1100 : f32 to vector<1x64xf32>
    %1253 = arith.divf %940, %1252 : vector<1x64xf32>
    %cst_1101 = arith.constant 1.000000e-07 : f32
    %1254 = vector.broadcast %cst_1101 : f32 to vector<1x64xf32>
    %1255 = arith.addf %1253, %1254 : vector<1x64xf32>
    %1256 = math.log %1255 : vector<1x64xf32>
    %1257 = arith.mulf %1253, %1256 : vector<1x64xf32>
    %cst_1102 = arith.constant dense<0.000000e+00> : vector<1xf32>
    %1258 = vector.multi_reduction <add>, %1257, %cst_1102 [1] : vector<1x64xf32> to vector<1xf32>
    %1259 = vector.shape_cast %1258 : vector<1xf32> to vector<1x1xf32>
    %cst_1103 = arith.constant 0.000000e+00 : f32
    %1260 = vector.broadcast %cst_1103 : f32 to vector<1x1xf32>
    %1261 = arith.subf %1260, %1259 : vector<1x1xf32>
    %1262 = math.exp %1261 : vector<1x1xf32>
    %c0_1104 = arith.constant 0 : index
    %c0_1105 = arith.constant 0 : index
    %1263 = vector.load %arg57[%c0_1104, %c0_1105] : memref<1x1xf32, #tpu.memory_space<vmem>>, vector<1x1xf32>
    tpu.vector_store %arg57[%c0_1104, %c0_1105], %1262 {strides = array<i32>} : memref<1x1xf32, #tpu.memory_space<vmem>>, vector<1x1xf32>,
    return
  }
  func.func @transform_0(%arg0: i32) -> (i32, i32, i32) {
    %c0_i32 = arith.constant 0 : i32
    %c0_i32_0 = arith.constant 0 : i32
    %c0_i32_1 = arith.constant 0 : i32
    %c0_i32_2 = arith.constant 0 : i32
    return %c0_i32, %c0_i32_0, %c0_i32_1 : i32, i32, i32
  }
  func.func @transform_1(%arg0: i32) -> (i32, i32, i32) {
    %c0_i32 = arith.constant 0 : i32
    %c0_i32_0 = arith.constant 0 : i32
    %c0_i32_1 = arith.constant 0 : i32
    %c0_i32_2 = arith.constant 0 : i32
    return %c0_i32, %c0_i32_0, %c0_i32_1 : i32, i32, i32
  }
  func.func @transform_2(%arg0: i32) -> (i32, i32) {
    %c0_i32 = arith.constant 0 : i32
    %c0_i32_0 = arith.constant 0 : i32
    %c0_i32_1 = arith.constant 0 : i32
    return %c0_i32, %c0_i32_0 : i32, i32
  }
  func.func @transform_3(%arg0: i32) -> (i32, i32, i32) {
    %c0_i32 = arith.constant 0 : i32
    %c0_i32_0 = arith.constant 0 : i32
    %c0_i32_1 = arith.constant 0 : i32
    %c0_i32_2 = arith.constant 0 : i32
    return %c0_i32, %c0_i32_0, %c0_i32_1 : i32, i32, i32
  }
  func.func @transform_4(%arg0: i32) -> (i32, i32) {
    %c0_i32 = arith.constant 0 : i32
    %c0_i32_0 = arith.constant 0 : i32
    %c0_i32_1 = arith.constant 0 : i32
    return %c0_i32, %c0_i32_0 : i32, i32
  }
  func.func @transform_5(%arg0: i32) -> (i32, i32, i32) {
    %c0_i32 = arith.constant 0 : i32
    %c0_i32_0 = arith.constant 0 : i32
    %c0_i32_1 = arith.constant 0 : i32
    %c0_i32_2 = arith.constant 0 : i32
    return %c0_i32, %c0_i32_0, %c0_i32_1 : i32, i32, i32
  }
  func.func @transform_6(%arg0: i32) -> (i32, i32) {
    %c0_i32 = arith.constant 0 : i32
    %c0_i32_0 = arith.constant 0 : i32
    %c0_i32_1 = arith.constant 0 : i32
    return %c0_i32, %c0_i32_0 : i32, i32
  }
  func.func @transform_7(%arg0: i32) -> (i32, i32, i32) {
    %c0_i32 = arith.constant 0 : i32
    %c0_i32_0 = arith.constant 0 : i32
    %c0_i32_1 = arith.constant 0 : i32
    %c0_i32_2 = arith.constant 0 : i32
    return %c0_i32, %c0_i32_0, %c0_i32_1 : i32, i32, i32
  }
  func.func @transform_8(%arg0: i32) -> (i32, i32) {
    %c0_i32 = arith.constant 0 : i32
    %c0_i32_0 = arith.constant 0 : i32
    %c0_i32_1 = arith.constant 0 : i32
    return %c0_i32, %c0_i32_0 : i32, i32
  }
  func.func @transform_9(%arg0: i32) -> (i32, i32, i32) {
    %c0_i32 = arith.constant 0 : i32
    %c0_i32_0 = arith.constant 0 : i32
    %c0_i32_1 = arith.constant 0 : i32
    %c0_i32_2 = arith.constant 0 : i32
    return %c0_i32, %c0_i32_0, %c0_i32_1 : i32, i32, i32
  }
  func.func @transform_10(%arg0: i32) -> (i32, i32) {
    %c0_i32 = arith.constant 0 : i32
    %c0_i32_0 = arith.constant 0 : i32
    %c0_i32_1 = arith.constant 0 : i32
    return %c0_i32, %c0_i32_0 : i32, i32
  }
  func.func @transform_11(%arg0: i32) -> (i32, i32, i32) {
    %c0_i32 = arith.constant 0 : i32
    %c0_i32_0 = arith.constant 0 : i32
    %c0_i32_1 = arith.constant 0 : i32
    %c0_i32_2 = arith.constant 0 : i32
    return %c0_i32, %c0_i32_0, %c0_i32_1 : i32, i32, i32
  }
  func.func @transform_12(%arg0: i32) -> (i32, i32) {
    %c0_i32 = arith.constant 0 : i32
    %c0_i32_0 = arith.constant 0 : i32
    %c0_i32_1 = arith.constant 0 : i32
    return %c0_i32, %c0_i32_0 : i32, i32
  }
  func.func @transform_13(%arg0: i32) -> (i32, i32, i32) {
    %c0_i32 = arith.constant 0 : i32
    %c0_i32_0 = arith.constant 0 : i32
    %c0_i32_1 = arith.constant 0 : i32
    %c0_i32_2 = arith.constant 0 : i32
    return %c0_i32, %c0_i32_0, %c0_i32_1 : i32, i32, i32
  }
  func.func @transform_14(%arg0: i32) -> (i32, i32) {
    %c0_i32 = arith.constant 0 : i32
    %c0_i32_0 = arith.constant 0 : i32
    %c0_i32_1 = arith.constant 0 : i32
    return %c0_i32, %c0_i32_0 : i32, i32
  }
  func.func @transform_15(%arg0: i32) -> (i32, i32, i32) {
    %c0_i32 = arith.constant 0 : i32
    %c0_i32_0 = arith.constant 0 : i32
    %c0_i32_1 = arith.constant 0 : i32
    %c0_i32_2 = arith.constant 0 : i32
    return %c0_i32, %c0_i32_0, %c0_i32_1 : i32, i32, i32
  }
  func.func @transform_16(%arg0: i32) -> (i32, i32) {
    %c0_i32 = arith.constant 0 : i32
    %c0_i32_0 = arith.constant 0 : i32
    %c0_i32_1 = arith.constant 0 : i32
    return %c0_i32, %c0_i32_0 : i32, i32
  }
  func.func @transform_17(%arg0: i32) -> (i32, i32, i32) {
    %c0_i32 = arith.constant 0 : i32
    %c0_i32_0 = arith.constant 0 : i32
    %c0_i32_1 = arith.constant 0 : i32
    %c0_i32_2 = arith.constant 0 : i32
    return %c0_i32, %c0_i32_0, %c0_i32_1 : i32, i32, i32
  }
  func.func @transform_18(%arg0: i32) -> (i32, i32) {
    %c0_i32 = arith.constant 0 : i32
    %c0_i32_0 = arith.constant 0 : i32
    %c0_i32_1 = arith.constant 0 : i32
    return %c0_i32, %c0_i32_0 : i32, i32
  }
  func.func @transform_19(%arg0: i32) -> (i32, i32, i32) {
    %c0_i32 = arith.constant 0 : i32
    %c0_i32_0 = arith.constant 0 : i32
    %c0_i32_1 = arith.constant 0 : i32
    %c0_i32_2 = arith.constant 0 : i32
    return %c0_i32, %c0_i32_0, %c0_i32_1 : i32, i32, i32
  }
  func.func @transform_20(%arg0: i32) -> (i32, i32) {
    %c0_i32 = arith.constant 0 : i32
    %c0_i32_0 = arith.constant 0 : i32
    %c0_i32_1 = arith.constant 0 : i32
    return %c0_i32, %c0_i32_0 : i32, i32
  }
  func.func @transform_21(%arg0: i32) -> (i32, i32, i32) {
    %c0_i32 = arith.constant 0 : i32
    %c0_i32_0 = arith.constant 0 : i32
    %c0_i32_1 = arith.constant 0 : i32
    %c0_i32_2 = arith.constant 0 : i32
    return %c0_i32, %c0_i32_0, %c0_i32_1 : i32, i32, i32
  }
  func.func @transform_22(%arg0: i32) -> (i32, i32) {
    %c0_i32 = arith.constant 0 : i32
    %c0_i32_0 = arith.constant 0 : i32
    %c0_i32_1 = arith.constant 0 : i32
    return %c0_i32, %c0_i32_0 : i32, i32
  }
  func.func @transform_23(%arg0: i32) -> (i32, i32, i32) {
    %c0_i32 = arith.constant 0 : i32
    %c0_i32_0 = arith.constant 0 : i32
    %c0_i32_1 = arith.constant 0 : i32
    %c0_i32_2 = arith.constant 0 : i32
    return %c0_i32, %c0_i32_0, %c0_i32_1 : i32, i32, i32
  }
  func.func @transform_24(%arg0: i32) -> (i32, i32) {
    %c0_i32 = arith.constant 0 : i32
    %c0_i32_0 = arith.constant 0 : i32
    %c0_i32_1 = arith.constant 0 : i32
    return %c0_i32, %c0_i32_0 : i32, i32
  }
  func.func @transform_25(%arg0: i32) -> (i32, i32, i32) {
    %c0_i32 = arith.constant 0 : i32
    %c0_i32_0 = arith.constant 0 : i32
    %c0_i32_1 = arith.constant 0 : i32
    %c0_i32_2 = arith.constant 0 : i32
    return %c0_i32, %c0_i32_0, %c0_i32_1 : i32, i32, i32
  }
  func.func @transform_26(%arg0: i32) -> (i32, i32) {
    %c0_i32 = arith.constant 0 : i32
    %c0_i32_0 = arith.constant 0 : i32
    %c0_i32_1 = arith.constant 0 : i32
    return %c0_i32, %c0_i32_0 : i32, i32
  }
  func.func @transform_27(%arg0: i32) -> (i32, i32, i32) {
    %c0_i32 = arith.constant 0 : i32
    %c0_i32_0 = arith.constant 0 : i32
    %c0_i32_1 = arith.constant 0 : i32
    %c0_i32_2 = arith.constant 0 : i32
    return %c0_i32, %c0_i32_0, %c0_i32_1 : i32, i32, i32
  }
  func.func @transform_28(%arg0: i32) -> (i32, i32) {
    %c0_i32 = arith.constant 0 : i32
    %c0_i32_0 = arith.constant 0 : i32
    %c0_i32_1 = arith.constant 0 : i32
    return %c0_i32, %c0_i32_0 : i32, i32
  }
  func.func @transform_29(%arg0: i32) -> (i32, i32, i32) {
    %c0_i32 = arith.constant 0 : i32
    %c0_i32_0 = arith.constant 0 : i32
    %c0_i32_1 = arith.constant 0 : i32
    %c0_i32_2 = arith.constant 0 : i32
    return %c0_i32, %c0_i32_0, %c0_i32_1 : i32, i32, i32
  }
  func.func @transform_30(%arg0: i32) -> (i32, i32) {
    %c0_i32 = arith.constant 0 : i32
    %c0_i32_0 = arith.constant 0 : i32
    %c0_i32_1 = arith.constant 0 : i32
    return %c0_i32, %c0_i32_0 : i32, i32
  }
  func.func @transform_31(%arg0: i32) -> (i32, i32, i32) {
    %c0_i32 = arith.constant 0 : i32
    %c0_i32_0 = arith.constant 0 : i32
    %c0_i32_1 = arith.constant 0 : i32
    %c0_i32_2 = arith.constant 0 : i32
    return %c0_i32, %c0_i32_0, %c0_i32_1 : i32, i32, i32
  }
  func.func @transform_32(%arg0: i32) -> (i32, i32) {
    %c0_i32 = arith.constant 0 : i32
    %c0_i32_0 = arith.constant 0 : i32
    %c0_i32_1 = arith.constant 0 : i32
    return %c0_i32, %c0_i32_0 : i32, i32
  }
  func.func @transform_33(%arg0: i32) -> (i32, i32, i32) {
    %c0_i32 = arith.constant 0 : i32
    %c0_i32_0 = arith.constant 0 : i32
    %c0_i32_1 = arith.constant 0 : i32
    %c0_i32_2 = arith.constant 0 : i32
    return %c0_i32, %c0_i32_0, %c0_i32_1 : i32, i32, i32
  }
  func.func @transform_34(%arg0: i32) -> (i32, i32) {
    %c0_i32 = arith.constant 0 : i32
    %c0_i32_0 = arith.constant 0 : i32
    %c0_i32_1 = arith.constant 0 : i32
    return %c0_i32, %c0_i32_0 : i32, i32
  }
  func.func @transform_35(%arg0: i32) -> (i32, i32, i32) {
    %c0_i32 = arith.constant 0 : i32
    %c0_i32_0 = arith.constant 0 : i32
    %c0_i32_1 = arith.constant 0 : i32
    %c0_i32_2 = arith.constant 0 : i32
    return %c0_i32, %c0_i32_0, %c0_i32_1 : i32, i32, i32
  }
  func.func @transform_36(%arg0: i32) -> (i32, i32) {
    %c0_i32 = arith.constant 0 : i32
    %c0_i32_0 = arith.constant 0 : i32
    %c0_i32_1 = arith.constant 0 : i32
    return %c0_i32, %c0_i32_0 : i32, i32
  }
  func.func @transform_37(%arg0: i32) -> (i32, i32, i32) {
    %c0_i32 = arith.constant 0 : i32
    %c0_i32_0 = arith.constant 0 : i32
    %c0_i32_1 = arith.constant 0 : i32
    %c0_i32_2 = arith.constant 0 : i32
    return %c0_i32, %c0_i32_0, %c0_i32_1 : i32, i32, i32
  }
  func.func @transform_38(%arg0: i32) -> (i32, i32) {
    %c0_i32 = arith.constant 0 : i32
    %c0_i32_0 = arith.constant 0 : i32
    %c0_i32_1 = arith.constant 0 : i32
    return %c0_i32, %c0_i32_0 : i32, i32
  }
  func.func @transform_39(%arg0: i32) -> (i32, i32, i32) {
    %c0_i32 = arith.constant 0 : i32
    %c0_i32_0 = arith.constant 0 : i32
    %c0_i32_1 = arith.constant 0 : i32
    %c0_i32_2 = arith.constant 0 : i32
    return %c0_i32, %c0_i32_0, %c0_i32_1 : i32, i32, i32
  }
  func.func @transform_40(%arg0: i32) -> (i32, i32) {
    %c0_i32 = arith.constant 0 : i32
    %c0_i32_0 = arith.constant 0 : i32
    %c0_i32_1 = arith.constant 0 : i32
    return %c0_i32, %c0_i32_0 : i32, i32
  }
  func.func @transform_41(%arg0: i32) -> (i32, i32, i32) {
    %c0_i32 = arith.constant 0 : i32
    %c0_i32_0 = arith.constant 0 : i32
    %c0_i32_1 = arith.constant 0 : i32
    %c0_i32_2 = arith.constant 0 : i32
    return %c0_i32, %c0_i32_0, %c0_i32_1 : i32, i32, i32
  }
  func.func @transform_42(%arg0: i32) -> (i32, i32) {
    %c0_i32 = arith.constant 0 : i32
    %c0_i32_0 = arith.constant 0 : i32
    %c0_i32_1 = arith.constant 0 : i32
    return %c0_i32, %c0_i32_0 : i32, i32
  }
  func.func @transform_43(%arg0: i32) -> (i32, i32, i32) {
    %c0_i32 = arith.constant 0 : i32
    %c0_i32_0 = arith.constant 0 : i32
    %c0_i32_1 = arith.constant 0 : i32
    %c0_i32_2 = arith.constant 0 : i32
    return %c0_i32, %c0_i32_0, %c0_i32_1 : i32, i32, i32
  }
  func.func @transform_44(%arg0: i32) -> (i32, i32) {
    %c0_i32 = arith.constant 0 : i32
    %c0_i32_0 = arith.constant 0 : i32
    %c0_i32_1 = arith.constant 0 : i32
    return %c0_i32, %c0_i32_0 : i32, i32
  }
  func.func @transform_45(%arg0: i32) -> (i32, i32, i32) {
    %c0_i32 = arith.constant 0 : i32
    %c0_i32_0 = arith.constant 0 : i32
    %c0_i32_1 = arith.constant 0 : i32
    %c0_i32_2 = arith.constant 0 : i32
    return %c0_i32, %c0_i32_0, %c0_i32_1 : i32, i32, i32
  }
  func.func @transform_46(%arg0: i32) -> (i32, i32) {
    %c0_i32 = arith.constant 0 : i32
    %c0_i32_0 = arith.constant 0 : i32
    %c0_i32_1 = arith.constant 0 : i32
    return %c0_i32, %c0_i32_0 : i32, i32
  }
  func.func @transform_47(%arg0: i32) -> (i32, i32, i32) {
    %c0_i32 = arith.constant 0 : i32
    %c0_i32_0 = arith.constant 0 : i32
    %c0_i32_1 = arith.constant 0 : i32
    %c0_i32_2 = arith.constant 0 : i32
    return %c0_i32, %c0_i32_0, %c0_i32_1 : i32, i32, i32
  }
  func.func @transform_48(%arg0: i32) -> (i32, i32) {
    %c0_i32 = arith.constant 0 : i32
    %c0_i32_0 = arith.constant 0 : i32
    %c0_i32_1 = arith.constant 0 : i32
    return %c0_i32, %c0_i32_0 : i32, i32
  }
  func.func @transform_49(%arg0: i32) -> (i32, i32, i32) {
    %c0_i32 = arith.constant 0 : i32
    %c0_i32_0 = arith.constant 0 : i32
    %c0_i32_1 = arith.constant 0 : i32
    %c0_i32_2 = arith.constant 0 : i32
    return %c0_i32, %c0_i32_0, %c0_i32_1 : i32, i32, i32
  }
  func.func @transform_50(%arg0: i32) -> (i32, i32) {
    %c0_i32 = arith.constant 0 : i32
    %c0_i32_0 = arith.constant 0 : i32
    %c0_i32_1 = arith.constant 0 : i32
    return %c0_i32, %c0_i32_0 : i32, i32
  }
  func.func @transform_51(%arg0: i32) -> (i32, i32) {
    %c0_i32 = arith.constant 0 : i32
    %c0_i32_0 = arith.constant 0 : i32
    %c0_i32_1 = arith.constant 0 : i32
    return %c0_i32, %c0_i32_0 : i32, i32
  }
  func.func @transform_52(%arg0: i32) -> (i32, i32) {
    %c0_i32 = arith.constant 0 : i32
    %c0_i32_0 = arith.constant 0 : i32
    %c0_i32_1 = arith.constant 0 : i32
    return %c0_i32, %c0_i32_0 : i32, i32
  }
  func.func @transform_53(%arg0: i32) -> (i32, i32) {
    %c0_i32 = arith.constant 0 : i32
    %c0_i32_0 = arith.constant 0 : i32
    %c0_i32_1 = arith.constant 0 : i32
    return %c0_i32, %c0_i32_0 : i32, i32
  }
  func.func @transform_54(%arg0: i32) -> (i32, i32, i32) {
    %c0_i32 = arith.constant 0 : i32
    %c0_i32_0 = arith.constant 0 : i32
    %c0_i32_1 = arith.constant 0 : i32
    %c0_i32_2 = arith.constant 0 : i32
    return %c0_i32, %c0_i32_0, %c0_i32_1 : i32, i32, i32
  }
  func.func @transform_55(%arg0: i32) -> (i32, i32) {
    %c0_i32 = arith.constant 0 : i32
    %c0_i32_0 = arith.constant 0 : i32
    %c0_i32_1 = arith.constant 0 : i32
    return %c0_i32, %c0_i32_0 : i32, i32
  }
  func.func @transform_56(%arg0: i32) -> (i32, i32) {
    %c0_i32 = arith.constant 0 : i32
    %c0_i32_0 = arith.constant 0 : i32
    %c0_i32_1 = arith.constant 0 : i32
    return %c0_i32, %c0_i32_0 : i32, i32
  }
}

</mosaic_0001>

<bundles_post_ra>
// kernel: tpu_custom_call.1
= control target key start
LH: loop header
LB: loop body
LE: loop exit
PB: predicated region body
PF: predicated region fallthrough
CT: control target
= control target key end

     0   :  { %s13555_s6 = smov 1   ;;  %s13556_s10 = smov 2   ;;  %s15438_s0 = inlined_call_operand.smem [shape: u32[57], index: -1, kind: input, shape index: {}] }
   0x1   :  { %s13674_s5 = sld [smem:[%s15438_s0]]   ;;  %s13557_s14 = smov 3  }
   0x2   :  { %s13679_s9 = sld [smem:[%s15438_s0 + %s13555_s6]]   ;;  %s13558_s18 = smov 4  }
   0x3   :  { %s13684_s13 = sld [smem:[%s15438_s0 + %s13556_s10]]   ;;  %s13559_s22 = smov 5  }
   0x4   :  { %s13689_s17 = sld [smem:[%s15438_s0 + %s13557_s14]]   ;;  %s13560_s26 = smov 6  }
   0x5   :  { %s13694_s21 = sld [smem:[%s15438_s0 + %s13558_s18]]   ;;  %s13561_s30 = smov 7  }
   0x6   :  { %s13699_s25 = sld [smem:[%s15438_s0 + %s13559_s22]]   ;;  %s13562_s4 = smov 8  }
   0x7   :  { %15478 = sst [smem:[#allocation99_spill]] %s13674_s5  ;;  %s13563_s10 = smov 9  }
   0x8   :  { %15479 = sst [smem:[#allocation100_spill]] %s13679_s9  ;;  %s13564_s15 = smov 10  }
   0x9   :  { %s13704_s29 = sld [smem:[%s15438_s0 + %s13560_s26]]   ;;  %s13565_s20 = smov 11  }
   0xa   :  { %15480 = sst [smem:[#allocation101_spill]] %s13689_s17  ;;  %s13566_s26 = smov 12  }
   0xb   :  { %15481 = sst [smem:[#allocation102_spill]] %s13694_s21  ;;  %s13567_s1 = smov 13  }
   0xc   :  { %15482 = sst [smem:[#allocation103_spill]] %s13699_s25  ;;  %s13568_s7 = smov 14  }
   0xd   :  { %s13709_s3 = sld [smem:[%s15438_s0 + %s13561_s30]]   ;;  %s13570_s22 = smov 16  }
   0xe   :  { %s13714_s8 = sld [smem:[%s15438_s0 + %s13562_s4]]   ;;  %s13571_s28 = smov 17  }
   0xf   :  { %s13719_s14 = sld [smem:[%s15438_s0 + %s13563_s10]]  }
  0x10   :  { %s13724_s19 = sld [smem:[%s15438_s0 + %s13564_s15]]   ;;  %s13569_s15 = smov 15  }
  0x11   :  { %s13729_s24 = sld [smem:[%s15438_s0 + %s13565_s20]]  }
  0x12   :  { %s13734_s30 = sld [smem:[%s15438_s0 + %s13566_s26]]  }
  0x13   :  { %15483 = sst [smem:[#allocation104_spill]] %s13709_s3 }
  0x14   :  { %s13739_s6 = sld [smem:[%s15438_s0 + %s13567_s1]]  }
  0x15   :  { %15484 = sst [smem:[#allocation105_spill]] %s13719_s14 }
  0x16   :  { %s13744_s12 = sld [smem:[%s15438_s0 + %s13568_s7]]   ;;  %s13572_s7 = smov 18  }
  0x17   :  { %15485 = sst [smem:[#allocation106_spill]] %s13729_s24 }
  0x18   :  { %s13749_s20 = sld [smem:[%s15438_s0 + %s13569_s15]]   ;;  %s13573_s15 = smov 19  }
  0x19   :  { %s13754_s27 = sld [smem:[%s15438_s0 + %s13570_s22]]   ;;  %s13574_s22 = smov 20  }
  0x1a   :  { %15486 = sst [smem:[#allocation107_spill]] %s13739_s6 }
  0x1b   :  { %s13759_s4 = sld [smem:[%s15438_s0 + %s13571_s28]]   ;;  %s13575_s28 = smov 21  }
  0x1c   :  { %15487 = sst [smem:[#allocation108_spill]] %s13744_s12 }
  0x1d   :  { %s13764_s6 = sld [smem:[%s15438_s0 + %s13572_s7]]   ;;  %s13576_s7 = smov 22  }
  0x1e   :  { %15488 = sst [smem:[#allocation109_spill]] %s13749_s20 }
  0x1f   :  { %s13769_s20 = sld [smem:[%s15438_s0 + %s13573_s15]]   ;;  %s13577_s15 = smov 23  }
  0x20   :  { %s13774_s25 = sld [smem:[%s15438_s0 + %s13574_s22]]   ;;  %s13578_s22 = smov 24  }
  0x21   :  { %15489 = sst [smem:[#allocation110_spill]] %s13759_s4 }
  0x22   :  { %s13779_s17 = sld [smem:[%s15438_s0 + %s13575_s28]]   ;;  %s13579_s28 = smov 25  }
  0x23   :  { %s13784_s5 = sld [smem:[%s15438_s0 + %s13576_s7]]   ;;  %s13580_s7 = smov 26  }
  0x24   :  { %s13794_s4 = sld [smem:[%s15438_s0 + %s13578_s22]]   ;;  %s13582_s22 = smov 28  }
  0x25   :  { %15490 = sst [smem:[#allocation111_spill]] %s13769_s20 }
  0x26   :  { %s13789_s20 = sld [smem:[%s15438_s0 + %s13577_s15]]   ;;  %s13581_s15 = smov 27  }
  0x27   :  { %s13804_s12 = sld [smem:[%s15438_s0 + %s13580_s7]]   ;;  %s13584_s7 = smov 30  }
  0x28   :  { %15491 = sst [smem:[#allocation112_spill]] %s13779_s17 }
  0x29   :  { %s13799_s17 = sld [smem:[%s15438_s0 + %s13579_s28]]   ;;  %s13583_s28 = smov 29  }
  0x2a   :  { %15493 = sst [smem:[#allocation114_spill]] %s13794_s4 }
  0x2b   :  { %s13814_s4 = sld [smem:[%s15438_s0 + %s13582_s22]]   ;;  %s13586_s22 = smov 32  }
  0x2c   :  { %15492 = sst [smem:[#allocation113_spill]] %s13789_s20 }
  0x2d   :  { %15494 = sst [smem:[#allocation115_spill]] %s13804_s12 }
  0x2e   :  { %s13809_s20 = sld [smem:[%s15438_s0 + %s13581_s15]]   ;;  %s13585_s15 = smov 31  }
  0x2f   :  { %s13819_s24 = sld [smem:[%s15438_s0 + %s13583_s28]]   ;;  %s13587_s28 = smov 33  }
  0x30   :  { %s13824_s12 = sld [smem:[%s15438_s0 + %s13584_s7]]   ;;  %s13588_s7 = smov 34  }
  0x31   :  { %15495 = sst [smem:[#allocation116_spill]] %s13814_s4 }
  0x32   :  { %s13829_s14 = sld [smem:[%s15438_s0 + %s13585_s15]]   ;;  %s13589_s15 = smov 35  }
  0x33   :  { %s13834_s4 = sld [smem:[%s15438_s0 + %s13586_s22]]   ;;  %s13590_s22 = smov 36  }
  0x34   :  { %s13839_s3 = sld [smem:[%s15438_s0 + %s13587_s28]]   ;;  %s13591_s28 = smov 37  }
  0x35   :  { %s13849_s21 = sld [smem:[%s15438_s0 + %s13589_s15]]   ;;  %s13593_s15 = smov 39  }
  0x36   :  { %15496 = sst [smem:[#allocation117_spill]] %s13824_s12 }
  0x37   :  { %s13844_s12 = sld [smem:[%s15438_s0 + %s13588_s7]]   ;;  %s13592_s7 = smov 38  }
  0x38   :  { %s13859_s9 = sld [smem:[%s15438_s0 + %s13591_s28]]   ;;  %s13595_s28 = smov 41  }
  0x39   :  { %15497 = sst [smem:[#allocation118_spill]] %s13834_s4 }
  0x3a   :  { %s13854_s4 = sld [smem:[%s15438_s0 + %s13590_s22]]   ;;  %s13594_s22 = smov 40  }
  0x3b   :  { %15499 = sst [smem:[#allocation120_spill]] %s13849_s21 }
  0x3c   :  { %s13869_s21 = sld [smem:[%s15438_s0 + %s13593_s15]]   ;;  %s13597_s15 = smov 43  }
  0x3d   :  { %15498 = sst [smem:[#allocation119_spill]] %s13844_s12 }
  0x3e   :  { %15501 = sst [smem:[#allocation122_spill]] %s13859_s9 }
  0x3f   :  { %s13864_s12 = sld [smem:[%s15438_s0 + %s13592_s7]]   ;;  %s13596_s7 = smov 42  }
  0x40   :  { %15500 = sst [smem:[#allocation121_spill]] %s13854_s4 }
  0x41   :  { %s13874_s4 = sld [smem:[%s15438_s0 + %s13594_s22]]   ;;  %s13598_s22 = smov 44  }
  0x42   :  { %15503 = sst [smem:[#allocation124_spill]] %s13869_s21 }
  0x43   :  { %s13879_s9 = sld [smem:[%s15438_s0 + %s13595_s28]]   ;;  %s13599_s28 = smov 45  }
  0x44   :  { %s13889_s21 = sld [smem:[%s15438_s0 + %s13597_s15]]   ;;  %s13601_s15 = smov 47  }
  0x45   :  { %15502 = sst [smem:[#allocation123_spill]] %s13864_s12 }
  0x46   :  { %s13884_s12 = sld [smem:[%s15438_s0 + %s13596_s7]]   ;;  %s13600_s7 = smov 46  }
  0x47   :  { %15504 = sst [smem:[#allocation125_spill]] %s13874_s4 }
  0x48   :  { %s13894_s4 = sld [smem:[%s15438_s0 + %s13598_s22]]   ;;  %s13602_s22 = smov 48  }
  0x49   :  { %15505 = sst [smem:[#allocation126_spill]] %s13879_s9 }
  0x4a   :  { %15507 = sst [smem:[#allocation128_spill]] %s13889_s21 }
  0x4b   :  { %s13899_s9 = sld [smem:[%s15438_s0 + %s13599_s28]]   ;;  %s13603_s28 = smov 49  }
  0x4c   :  { %15506 = sst [smem:[#allocation127_spill]] %s13884_s12 }
  0x4d   :  { %s13904_s12 = sld [smem:[%s15438_s0 + %s13600_s7]]   ;;  %s13604_s7 = smov 50  }
  0x4e   :  { %15508 = sst [smem:[#allocation129_spill]] %s13894_s4 }
  0x4f   :  { %s13909_s21 = sld [smem:[%s15438_s0 + %s13601_s15]]   ;;  %s13605_s15 = smov 51  }
  0x50   :  { %s13914_s4 = sld [smem:[%s15438_s0 + %s13602_s22]]   ;;  %s13606_s22 = smov 52  }
  0x51   :  { %15509 = sst [smem:[#allocation130_spill]] %s13899_s9 }
  0x52   :  { %s13919_s9 = sld [smem:[%s15438_s0 + %s13603_s28]]   ;;  %s13607_s28 = smov 53  }
  0x53   :  { %15510 = sst [smem:[#allocation131_spill]] %s13904_s12 }
  0x54   :  { %s13924_s12 = sld [smem:[%s15438_s0 + %s13604_s7]]   ;;  %s13608_s7 = smov 54  }
  0x55   :  { %15511 = sst [smem:[#allocation132_spill]] %s13909_s21 }
  0x56   :  { %15512 = sst [smem:[#allocation133_spill]] %s13914_s4 }
  0x57   :  { %s13929_s21 = sld [smem:[%s15438_s0 + %s13605_s15]]   ;;  %s13609_s15 = smov 55  }
  0x58   :  { %15513 = sst [smem:[#allocation134_spill]] %s13919_s9 }
  0x59   :  { %s13934_s4 = sld [smem:[%s15438_s0 + %s13606_s22]]   ;;  %s13610_s22 = smov 56  }
  0x5a   :  { %15514 = sst [smem:[#allocation135_spill]] %s13924_s12 }
  0x5b   :  { %s13939_s9 = sld [smem:[%s15438_s0 + %s13607_s28]]  }
  0x5c   :  { %s13944_s12 = sld [smem:[%s15438_s0 + %s13608_s7]]  }
  0x5d   :  { %15515 = sst [smem:[#allocation136_spill]] %s13929_s21 }
  0x5e   :  { %s13949_s21 = sld [smem:[%s15438_s0 + %s13609_s15]]  }
  0x5f   :  { %15516 = sst [smem:[#allocation137_spill]] %s13934_s4 }
  0x60   :  { %s13954_s4 = sld [smem:[%s15438_s0 + %s13610_s22]]  }
  0x61   :  { %119 = vsyncpa [#allocation4], 0 }
  0x62   :  { %120 = vsyncpa [#allocation7], 0 }
  0x63   :  { %121 = vsyncpa [#allocation10], 0 }
  0x64   :  { %122 = vsyncpa [#allocation13], 0 }
  0x65   :  { %123 = vsyncpa [#allocation16], 0 }
  0x66   :  { %124 = vsyncpa [#allocation19], 0 }
  0x67   :  { %125 = vsyncpa [#allocation22], 0 }
  0x68   :  { %126 = vsyncpa [#allocation25], 0 }
  0x69   :  { %127 = vsyncpa [#allocation28], 0 }
  0x6a   :  { %128 = vsyncpa [#allocation31], 0 }
  0x6b   :  { %129 = vsyncpa [#allocation34], 0 }
  0x6c   :  { %130 = vsyncpa [#allocation37], 0 }
  0x6d   :  { %131 = vsyncpa [#allocation40], 0 }
  0x6e   :  { %132 = vsyncpa [#allocation43], 0 }
  0x6f   :  { %133 = vsyncpa [#allocation46], 0 }
  0x70   :  { %134 = vsyncpa [#allocation49], 0 }
  0x71   :  { %135 = vsyncpa [#allocation52], 0 }
  0x72   :  { %136 = vsyncpa [#allocation55], 0 }
  0x73   :  { %137 = vsyncpa [#allocation58], 0 }
  0x74   :  { %138 = vsyncpa [#allocation61], 0 }
  0x75   :  { %139 = vsyncpa [#allocation64], 0 }
  0x76   :  { %140 = vsyncpa [#allocation67], 0 }
  0x77   :  { %141 = vsyncpa [#allocation70], 0 }
  0x78   :  { %142 = vsyncpa [#allocation5], 0 }
  0x79   :  { %143 = vsyncpa [#allocation73], 0  ;;  %s13611_s0 = smov [#allocation6]   ;;  %s13612_s1 = smov [#allocation9]  }
  0x7a   :  { %s164_s28 = sshll.u32 %s13611_s0, 4  ;;  %s188_s2 = sshll.u32 %s13612_s1, 4  ;;  %s165_s28 = int_to_ptr.vmem [resolvable:$true] %s164_s28  ;;  %s189_s2 = int_to_ptr.vmem [resolvable:$true] %s188_s2 }
  0x7b   :  { %s12493_s7 = scalar_lea.hbm %s13684_s13, 16 }
  0x7c   :  { %p12494_p0 = scmp.ne.s32.totalorder %s13684_s13, %s12493_s7  ;;  %p12497_p1 = scmp.lt.u32.totalorder %s12493_s7, %s13684_s13 }
  0x7e   :  { %p12499_p2 = pnand %p12497_p1, %p12494_p0 }
  0x80   :  { %12502 = shalt.err (!%p12499_p2)
}
  0x81   :  { %s12503_s10 = scalar_lea.vmem %s165_s28, 16  ;;  %s12507_s11 = scalar_lea.vmem %s165_s28, 32 }
  0x82   :  { %p12504_p3 = scmp.ne.s32.totalorder %s165_s28, %s12503_s10  ;;  %p12508_p4 = scmp.lt.s32.totalorder %s165_s28, %s165_s28 }
  0x83   :  { %p12509_p5 = scmp.lt.s32.totalorder %s12507_s11, %s12503_s10 }
  0x85   :  { %p12510_p6 = por %p12509_p5, %p12508_p4 }
  0x87   :  { %p12511_p7 = pnand %p12510_p6, %p12504_p3 }
  0x89   :  { %12514 = shalt.err (!%p12511_p7)
}
  0x8a   :  { %167 = dma.hbm_to_vmem [thread:$0]  %s13684_s13, 16, %s165_s28, [#allocation7]  }
  0x8b   :  { %s12515_s15 = scalar_lea.hbm %s13704_s29, 16 }
  0x8c   :  { %p12516_p8 = scmp.ne.s32.totalorder %s13704_s29, %s12515_s15  ;;  %p12519_p9 = scmp.lt.u32.totalorder %s12515_s15, %s13704_s29 }
  0x8e   :  { %p12521_p10 = pnand %p12519_p9, %p12516_p8 }
  0x90   :  { %12524 = shalt.err (!%p12521_p10)
}
  0x91   :  { %s12525_s16 = scalar_lea.vmem %s189_s2, 16  ;;  %s12529_s18 = scalar_lea.vmem %s189_s2, 32 }
  0x92   :  { %p12526_p11 = scmp.ne.s32.totalorder %s189_s2, %s12525_s16  ;;  %p12530_p12 = scmp.lt.s32.totalorder %s189_s2, %s189_s2 }
  0x93   :  { %p12531_p13 = scmp.lt.s32.totalorder %s12529_s18, %s12525_s16 }
  0x95   :  { %p12532_p0 = por %p12531_p13, %p12530_p12 }
  0x97   :  { %p12533_p1 = pnand %p12532_p0, %p12526_p11 }
  0x99   :  { %12536 = shalt.err (!%p12533_p1)
}
  0x9a   :  { %191 = dma.hbm_to_vmem [thread:$0]  %s13704_s29, 16, %s189_s2, [#allocation10]  }
  0x9b   :  { %s13613_s22 = smov [#allocation12]   ;;  %s13614_s23 = smov [#allocation15]  }
  0x9c   :  { %s210_s13 = sshll.u32 %s13613_s22, 4  ;;  %s232_s26 = sshll.u32 %s13614_s23, 4  ;;  %s211_s13 = int_to_ptr.vmem [resolvable:$true] %s210_s13  ;;  %s233_s26 = int_to_ptr.vmem [resolvable:$true] %s232_s26 }
  0x9d   :  { %s12537_s0 = scalar_lea.hbm %s13714_s8, 16 }
  0x9e   :  { %p12538_p2 = scmp.ne.s32.totalorder %s13714_s8, %s12537_s0  ;;  %p12541_p3 = scmp.lt.u32.totalorder %s12537_s0, %s13714_s8 }
  0xa0   :  { %p12543_p4 = pnand %p12541_p3, %p12538_p2 }
  0xa2   :  { %12546 = shalt.err (!%p12543_p4)
}
  0xa3   :  { %s12547_s28 = scalar_lea.vmem %s211_s13, 16  ;;  %s12551_s1 = scalar_lea.vmem %s211_s13, 32 }
  0xa4   :  { %p12548_p5 = scmp.ne.s32.totalorder %s211_s13, %s12547_s28  ;;  %p12552_p6 = scmp.lt.s32.totalorder %s211_s13, %s211_s13 }
  0xa5   :  { %p12553_p7 = scmp.lt.s32.totalorder %s12551_s1, %s12547_s28 }
  0xa7   :  { %p12554_p8 = por %p12553_p7, %p12552_p6 }
  0xa9   :  { %p12555_p9 = pnand %p12554_p8, %p12548_p5 }
  0xab   :  { %12558 = shalt.err (!%p12555_p9)
}
  0xac   :  { %213 = dma.hbm_to_vmem [thread:$0]  %s13714_s8, 16, %s211_s13, [#allocation13]  }
  0xad   :  { %s12559_s29 = scalar_lea.hbm %s13724_s19, 16 }
  0xae   :  { %p12560_p10 = scmp.ne.s32.totalorder %s13724_s19, %s12559_s29  ;;  %p12563_p11 = scmp.lt.u32.totalorder %s12559_s29, %s13724_s19 }
  0xb0   :  { %p12565_p12 = pnand %p12563_p11, %p12560_p10 }
  0xb2   :  { %12568 = shalt.err (!%p12565_p12)
}
  0xb3   :  { %s12569_s2 = scalar_lea.vmem %s233_s26, 16  ;;  %s12573_s7 = scalar_lea.vmem %s233_s26, 32 }
  0xb4   :  { %p12570_p13 = scmp.ne.s32.totalorder %s233_s26, %s12569_s2  ;;  %p12574_p0 = scmp.lt.s32.totalorder %s233_s26, %s233_s26 }
  0xb5   :  { %p12575_p1 = scmp.lt.s32.totalorder %s12573_s7, %s12569_s2 }
  0xb7   :  { %p12576_p2 = por %p12575_p1, %p12574_p0 }
  0xb9   :  { %p12577_p3 = pnand %p12576_p2, %p12570_p13 }
  0xbb   :  { %12580 = shalt.err (!%p12577_p3)
}
  0xbc   :  { %235 = dma.hbm_to_vmem [thread:$0]  %s13724_s19, 16, %s233_s26, [#allocation16]  }
  0xbd   :  { %s13615_s10 = smov [#allocation18]   ;;  %s13616_s11 = smov [#allocation21]  }
  0xbe   :  { %s254_s8 = sshll.u32 %s13615_s10, 4  ;;  %s278_s15 = sshll.u32 %s13616_s11, 4  ;;  %s255_s8 = int_to_ptr.vmem [resolvable:$true] %s254_s8  ;;  %s279_s15 = int_to_ptr.vmem [resolvable:$true] %s278_s15 }
  0xbf   :  { %s12581_s16 = scalar_lea.hbm %s13734_s30, 16 }
  0xc0   :  { %p12582_p4 = scmp.ne.s32.totalorder %s13734_s30, %s12581_s16  ;;  %p12585_p5 = scmp.lt.u32.totalorder %s12581_s16, %s13734_s30 }
  0xc2   :  { %p12587_p6 = pnand %p12585_p5, %p12582_p4 }
  0xc4   :  { %12590 = shalt.err (!%p12587_p6)
}
  0xc5   :  { %s12591_s18 = scalar_lea.vmem %s255_s8, 16  ;;  %s12595_s22 = scalar_lea.vmem %s255_s8, 32 }
  0xc6   :  { %p12592_p7 = scmp.ne.s32.totalorder %s255_s8, %s12591_s18  ;;  %p12596_p8 = scmp.lt.s32.totalorder %s255_s8, %s255_s8 }
  0xc7   :  { %p12597_p9 = scmp.lt.s32.totalorder %s12595_s22, %s12591_s18 }
  0xc9   :  { %p12598_p10 = por %p12597_p9, %p12596_p8 }
  0xcb   :  { %p12599_p11 = pnand %p12598_p10, %p12592_p7 }
  0xcd   :  { %12602 = shalt.err (!%p12599_p11)
}
  0xce   :  { %257 = dma.hbm_to_vmem [thread:$0]  %s13734_s30, 16, %s255_s8, [#allocation19]  }
  0xcf   :  { %s12603_s19 = scalar_lea.hbm %s13754_s27, 16 }
  0xd0   :  { %p12604_p12 = scmp.ne.s32.totalorder %s13754_s27, %s12603_s19  ;;  %p12607_p13 = scmp.lt.u32.totalorder %s12603_s19, %s13754_s27 }
  0xd2   :  { %p12609_p0 = pnand %p12607_p13, %p12604_p12 }
  0xd4   :  { %12612 = shalt.err (!%p12609_p0)
}
  0xd5   :  { %s12613_s13 = scalar_lea.vmem %s279_s15, 16  ;;  %s12617_s23 = scalar_lea.vmem %s279_s15, 32 }
  0xd6   :  { %p12614_p1 = scmp.ne.s32.totalorder %s279_s15, %s12613_s13  ;;  %p12618_p2 = scmp.lt.s32.totalorder %s279_s15, %s279_s15 }
  0xd7   :  { %p12619_p3 = scmp.lt.s32.totalorder %s12617_s23, %s12613_s13 }
  0xd9   :  { %p12620_p4 = por %p12619_p3, %p12618_p2 }
  0xdb   :  { %p12621_p5 = pnand %p12620_p4, %p12614_p1 }
  0xdd   :  { %12624 = shalt.err (!%p12621_p5)
}
  0xde   :  { %281 = dma.hbm_to_vmem [thread:$0]  %s13754_s27, 16, %s279_s15, [#allocation22]  }
  0xdf   :  { %s13617_s26 = smov [#allocation24]   ;;  %s13618_s0 = smov [#allocation27]  }
  0xe0   :  { %s300_s30 = sshll.u32 %s13617_s26, 4  ;;  %s322_s28 = sshll.u32 %s13618_s0, 4  ;;  %s301_s30 = int_to_ptr.vmem [resolvable:$true] %s300_s30  ;;  %s323_s28 = int_to_ptr.vmem [resolvable:$true] %s322_s28 }
  0xe1   :  { %s12625_s1 = scalar_lea.hbm %s13764_s6, 16 }
  0xe2   :  { %p12626_p6 = scmp.ne.s32.totalorder %s13764_s6, %s12625_s1  ;;  %p12629_p7 = scmp.lt.u32.totalorder %s12625_s1, %s13764_s6 }
  0xe4   :  { %p12631_p8 = pnand %p12629_p7, %p12626_p6 }
  0xe6   :  { %12634 = shalt.err (!%p12631_p8)
}
  0xe7   :  { %s12635_s29 = scalar_lea.vmem %s301_s30, 16  ;;  %s12639_s2 = scalar_lea.vmem %s301_s30, 32 }
  0xe8   :  { %p12636_p9 = scmp.ne.s32.totalorder %s301_s30, %s12635_s29  ;;  %p12640_p10 = scmp.lt.s32.totalorder %s301_s30, %s301_s30 }
  0xe9   :  { %p12641_p11 = scmp.lt.s32.totalorder %s12639_s2, %s12635_s29 }
  0xeb   :  { %p12642_p12 = por %p12641_p11, %p12640_p10 }
  0xed   :  { %p12643_p13 = pnand %p12642_p12, %p12636_p9 }
  0xef   :  { %12646 = shalt.err (!%p12643_p13)
}
  0xf0   :  { %303 = dma.hbm_to_vmem [thread:$0]  %s13764_s6, 16, %s301_s30, [#allocation25]  }
  0xf1   :  { %s12647_s27 = scalar_lea.hbm %s13774_s25, 16 }
  0xf2   :  { %p12648_p0 = scmp.ne.s32.totalorder %s13774_s25, %s12647_s27  ;;  %p12651_p1 = scmp.lt.u32.totalorder %s12647_s27, %s13774_s25 }
  0xf4   :  { %p12653_p2 = pnand %p12651_p1, %p12648_p0 }
  0xf6   :  { %12656 = shalt.err (!%p12653_p2)
}
  0xf7   :  { %s12657_s7 = scalar_lea.vmem %s323_s28, 16  ;;  %s12661_s10 = scalar_lea.vmem %s323_s28, 32 }
  0xf8   :  { %p12658_p3 = scmp.ne.s32.totalorder %s323_s28, %s12657_s7  ;;  %p12662_p4 = scmp.lt.s32.totalorder %s323_s28, %s323_s28 }
  0xf9   :  { %p12663_p5 = scmp.lt.s32.totalorder %s12661_s10, %s12657_s7 }
  0xfb   :  { %p12664_p6 = por %p12663_p5, %p12662_p4 }
  0xfd   :  { %p12665_p7 = pnand %p12664_p6, %p12658_p3 }
  0xff   :  { %12668 = shalt.err (!%p12665_p7)
}
 0x100   :  { %325 = dma.hbm_to_vmem [thread:$0]  %s13774_s25, 16, %s323_s28, [#allocation28]  }
 0x101   :  { %s13619_s8 = smov [#allocation30]   ;;  %s12669_s11 = scalar_lea.hbm %s13784_s5, 16 }
 0x102   :  { %s344_s6 = sshll.u32 %s13619_s8, 4  ;;  %p12670_p8 = scmp.ne.s32.totalorder %s13784_s5, %s12669_s11  ;;  %s345_s6 = int_to_ptr.vmem [resolvable:$true] %s344_s6 }
 0x103   :  { %p12673_p9 = scmp.lt.u32.totalorder %s12669_s11, %s13784_s5 }
 0x105   :  { %p12675_p10 = pnand %p12673_p9, %p12670_p8 }
 0x107   :  { %12678 = shalt.err (!%p12675_p10)
}
 0x108   :  { %s12679_s15 = scalar_lea.vmem %s345_s6, 16  ;;  %s12683_s16 = scalar_lea.vmem %s345_s6, 32 }
 0x109   :  { %p12680_p11 = scmp.ne.s32.totalorder %s345_s6, %s12679_s15  ;;  %p12684_p12 = scmp.lt.s32.totalorder %s345_s6, %s345_s6 }
 0x10a   :  { %p12685_p13 = scmp.lt.s32.totalorder %s12683_s16, %s12679_s15 }
 0x10c   :  { %p12686_p0 = por %p12685_p13, %p12684_p12 }
 0x10e   :  { %p12687_p1 = pnand %p12686_p0, %p12680_p11 }
 0x110   :  { %12690 = shalt.err (!%p12687_p1)
}
 0x111   :  { %347 = dma.hbm_to_vmem [thread:$0]  %s13784_s5, 16, %s345_s6, [#allocation31]  }
 0x112   :  { %s13620_s25 = smov [#allocation33]   ;;  %s13621_s22 = smov [#allocation36]  }
 0x113   :  { %s365_s18 = sshll.u32 %s13620_s25, 4  ;;  %s387_s19 = sshll.u32 %s13621_s22, 4  ;;  %s366_s18 = int_to_ptr.vmem [resolvable:$true] %s365_s18  ;;  %s388_s19 = int_to_ptr.vmem [resolvable:$true] %s387_s19 }
 0x114   :  { %s12691_s13 = scalar_lea.hbm %s13799_s17, 768 }
 0x115   :  { %p12692_p2 = scmp.ne.s32.totalorder %s13799_s17, %s12691_s13  ;;  %p12695_p3 = scmp.lt.u32.totalorder %s12691_s13, %s13799_s17 }
 0x117   :  { %p12697_p4 = pnand %p12695_p3, %p12692_p2 }
 0x119   :  { %12700 = shalt.err (!%p12697_p4)
}
 0x11a   :  { %s12701_s23 = scalar_lea.vmem %s366_s18, 768  ;;  %p12706_p6 = scmp.lt.s32.totalorder %s366_s18, %s366_s18 }
 0x11b   :  { %p12702_p5 = scmp.ne.s32.totalorder %s366_s18, %s12701_s23  ;;  %p12707_p7 = scmp.lt.s32.totalorder %s12701_s23, %s12701_s23 }
 0x11d   :  { %p12708_p8 = por %p12707_p7, %p12706_p6 }
 0x11f   :  { %p12709_p9 = pnand %p12708_p8, %p12702_p5 }
 0x121   :  { %12712 = shalt.err (!%p12709_p9)
}
 0x122   :  { %s13622_s26 = smov 64   ;;  %s13623_s5 = smov 4  }
 0x123   :  { %371 = dma.hbm_to_vmem [thread:$0]  %s13799_s17, 768, %s366_s18, [#allocation34], %s13622_s26, %s13622_s26, %s13623_s5  }
 0x124   :  { %s12713_s30 = scalar_lea.hbm %s13809_s20, 768 }
 0x125   :  { %p12714_p10 = scmp.ne.s32.totalorder %s13809_s20, %s12713_s30  ;;  %p12717_p11 = scmp.lt.u32.totalorder %s12713_s30, %s13809_s20 }
 0x127   :  { %p12719_p12 = pnand %p12717_p11, %p12714_p10 }
 0x129   :  { %12722 = shalt.err (!%p12719_p12)
}
 0x12a   :  { %s12723_s0 = scalar_lea.vmem %s388_s19, 768  ;;  %p12728_p0 = scmp.lt.s32.totalorder %s388_s19, %s388_s19 }
 0x12b   :  { %p12724_p13 = scmp.ne.s32.totalorder %s388_s19, %s12723_s0  ;;  %p12729_p1 = scmp.lt.s32.totalorder %s12723_s0, %s12723_s0 }
 0x12d   :  { %p12730_p2 = por %p12729_p1, %p12728_p0 }
 0x12f   :  { %p12731_p3 = pnand %p12730_p2, %p12724_p13 }
 0x131   :  { %12734 = shalt.err (!%p12731_p3)
}
 0x132   :  { %393 = dma.hbm_to_vmem [thread:$0]  %s13809_s20, 768, %s388_s19, [#allocation37], %s13622_s26, %s13622_s26, %s13623_s5  }
 0x133   :  { %s13624_s17 = smov [#allocation39]   ;;  %s13625_s1 = smov [#allocation42]  }
 0x134   :  { %s409_s28 = sshll.u32 %s13624_s17, 4  ;;  %s431_s29 = sshll.u32 %s13625_s1, 4  ;;  %s410_s28 = int_to_ptr.vmem [resolvable:$true] %s409_s28  ;;  %s432_s29 = int_to_ptr.vmem [resolvable:$true] %s431_s29 }
 0x135   :  { %s12735_s2 = scalar_lea.hbm %s13819_s24, 256 }
 0x136   :  { %p12736_p4 = scmp.ne.s32.totalorder %s13819_s24, %s12735_s2  ;;  %p12739_p5 = scmp.lt.u32.totalorder %s12735_s2, %s13819_s24 }
 0x138   :  { %p12741_p6 = pnand %p12739_p5, %p12736_p4 }
 0x13a   :  { %12744 = shalt.err (!%p12741_p6)
}
 0x13b   :  { %s12745_s27 = scalar_lea.vmem %s410_s28, 256  ;;  %p12750_p8 = scmp.lt.s32.totalorder %s410_s28, %s410_s28 }
 0x13c   :  { %p12746_p7 = scmp.ne.s32.totalorder %s410_s28, %s12745_s27  ;;  %p12751_p9 = scmp.lt.s32.totalorder %s12745_s27, %s12745_s27 }
 0x13e   :  { %p12752_p10 = por %p12751_p9, %p12750_p8 }
 0x140   :  { %p12753_p11 = pnand %p12752_p10, %p12746_p7 }
 0x142   :  { %12756 = shalt.err (!%p12753_p11)
}
 0x143   :  { %415 = dma.hbm_to_vmem [thread:$0]  %s13819_s24, 256, %s410_s28, [#allocation40], %s13622_s26, %s13622_s26, %s13623_s5  }
 0x144   :  { %s12757_s20 = scalar_lea.hbm %s13829_s14, 768 }
 0x145   :  { %p12758_p12 = scmp.ne.s32.totalorder %s13829_s14, %s12757_s20  ;;  %p12761_p13 = scmp.lt.u32.totalorder %s12757_s20, %s13829_s14 }
 0x147   :  { %p12763_p0 = pnand %p12761_p13, %p12758_p12 }
 0x149   :  { %12766 = shalt.err (!%p12763_p0)
}
 0x14a   :  { %s12767_s7 = scalar_lea.vmem %s432_s29, 768  ;;  %p12772_p2 = scmp.lt.s32.totalorder %s432_s29, %s432_s29 }
 0x14b   :  { %p12768_p1 = scmp.ne.s32.totalorder %s432_s29, %s12767_s7  ;;  %p12773_p3 = scmp.lt.s32.totalorder %s12767_s7, %s12767_s7 }
 0x14d   :  { %p12774_p4 = por %p12773_p3, %p12772_p2 }
 0x14f   :  { %p12775_p5 = pnand %p12774_p4, %p12768_p1 }
 0x151   :  { %12778 = shalt.err (!%p12775_p5)
}
 0x152   :  { %437 = dma.hbm_to_vmem [thread:$0]  %s13829_s14, 768, %s432_s29, [#allocation43], %s13622_s26, %s13622_s26, %s13623_s5  }
 0x153   :  { %s13626_s24 = smov [#allocation45]   ;;  %s13627_s8 = smov [#allocation48]  }
 0x154   :  { %s453_s10 = sshll.u32 %s13626_s24, 4  ;;  %s478_s6 = sshll.u32 %s13627_s8, 4  ;;  %s454_s10 = int_to_ptr.vmem [resolvable:$true] %s453_s10  ;;  %s479_s6 = int_to_ptr.vmem [resolvable:$true] %s478_s6 }
 0x155   :  { %s12779_s11 = scalar_lea.hbm %s13839_s3, 256 }
 0x156   :  { %p12780_p6 = scmp.ne.s32.totalorder %s13839_s3, %s12779_s11  ;;  %p12783_p7 = scmp.lt.u32.totalorder %s12779_s11, %s13839_s3 }
 0x158   :  { %p12785_p8 = pnand %p12783_p7, %p12780_p6 }
 0x15a   :  { %12788 = shalt.err (!%p12785_p8)
}
 0x15b   :  { %s12789_s15 = scalar_lea.vmem %s454_s10, 256  ;;  %p12794_p10 = scmp.lt.s32.totalorder %s454_s10, %s454_s10 }
 0x15c   :  { %p12790_p9 = scmp.ne.s32.totalorder %s454_s10, %s12789_s15  ;;  %p12795_p11 = scmp.lt.s32.totalorder %s12789_s15, %s12789_s15 }
 0x15e   :  { %p12796_p12 = por %p12795_p11, %p12794_p10 }
 0x160   :  { %p12797_p13 = pnand %p12796_p12, %p12790_p9 }
 0x162   :  { %12800 = shalt.err (!%p12797_p13)
}
 0x163   :  { %s15517_s14 = sld [smem:[#allocation121_spill]] }
 0x164   :  { %459 = dma.hbm_to_vmem [thread:$0]  %s13839_s3, 256, %s454_s10, [#allocation46], %s13622_s26, %s13622_s26, %s13623_s5  }
 0x169   :  { %s12801_s16 = scalar_lea.hbm %s15517_s14, 16 }
 0x16a   :  { %p12802_p0 = scmp.ne.s32.totalorder %s15517_s14, %s12801_s16  ;;  %p12805_p1 = scmp.lt.u32.totalorder %s12801_s16, %s15517_s14 }
 0x16c   :  { %p12807_p2 = pnand %p12805_p1, %p12802_p0 }
 0x16e   :  { %12810 = shalt.err (!%p12807_p2)
}
 0x16f   :  { %s12811_s25 = scalar_lea.vmem %s479_s6, 16  ;;  %s12815_s18 = scalar_lea.vmem %s479_s6, 32 }
 0x170   :  { %p12812_p3 = scmp.ne.s32.totalorder %s479_s6, %s12811_s25  ;;  %p12816_p4 = scmp.lt.s32.totalorder %s479_s6, %s479_s6 }
 0x171   :  { %p12817_p5 = scmp.lt.s32.totalorder %s12815_s18, %s12811_s25 }
 0x173   :  { %p12818_p6 = por %p12817_p5, %p12816_p4 }
 0x175   :  { %p12819_p7 = pnand %p12818_p6, %p12812_p3 }
 0x177   :  { %12822 = shalt.err (!%p12819_p7)
}
 0x178   :  { %s15518_s22 = sld [smem:[#allocation123_spill]]  ;;  %s13628_s3 = smov [#allocation51]  }
 0x179   :  { %481 = dma.hbm_to_vmem [thread:$0]  %s15517_s14, 16, %s479_s6, [#allocation49]  }
 0x17a   :  { %s500_s19 = sshll.u32 %s13628_s3, 4  ;;  %s13629_s13 = smov [#allocation54]   ;;  %s501_s19 = int_to_ptr.vmem [resolvable:$true] %s500_s19 }
 0x17b   :  { %s522_s23 = sshll.u32 %s13629_s13, 4  ;;  %s523_s23 = int_to_ptr.vmem [resolvable:$true] %s522_s23 }
 0x17e   :  { %s12823_s30 = scalar_lea.hbm %s15518_s22, 16 }
 0x17f   :  { %p12824_p8 = scmp.ne.s32.totalorder %s15518_s22, %s12823_s30  ;;  %p12827_p9 = scmp.lt.u32.totalorder %s12823_s30, %s15518_s22 }
 0x181   :  { %p12829_p10 = pnand %p12827_p9, %p12824_p8 }
 0x183   :  { %12832 = shalt.err (!%p12829_p10)
}
 0x184   :  { %s12833_s0 = scalar_lea.vmem %s501_s19, 16  ;;  %s12837_s17 = scalar_lea.vmem %s501_s19, 32 }
 0x185   :  { %p12834_p11 = scmp.ne.s32.totalorder %s501_s19, %s12833_s0  ;;  %p12838_p12 = scmp.lt.s32.totalorder %s501_s19, %s501_s19 }
 0x186   :  { %p12839_p13 = scmp.lt.s32.totalorder %s12837_s17, %s12833_s0 }
 0x188   :  { %p12840_p0 = por %p12839_p13, %p12838_p12 }
 0x18a   :  { %p12841_p1 = pnand %p12840_p0, %p12834_p11 }
 0x18c   :  { %12844 = shalt.err (!%p12841_p1)
}
 0x18d   :  { %s15519_s28 = sld [smem:[#allocation125_spill]] }
 0x18e   :  { %503 = dma.hbm_to_vmem [thread:$0]  %s15518_s22, 16, %s501_s19, [#allocation52]  }
 0x193   :  { %s12845_s1 = scalar_lea.hbm %s15519_s28, 16 }
 0x194   :  { %p12846_p2 = scmp.ne.s32.totalorder %s15519_s28, %s12845_s1  ;;  %p12849_p3 = scmp.lt.u32.totalorder %s12845_s1, %s15519_s28 }
 0x196   :  { %p12851_p4 = pnand %p12849_p3, %p12846_p2 }
 0x198   :  { %12854 = shalt.err (!%p12851_p4)
}
 0x199   :  { %s12855_s29 = scalar_lea.vmem %s523_s23, 16  ;;  %s12859_s2 = scalar_lea.vmem %s523_s23, 32 }
 0x19a   :  { %p12856_p5 = scmp.ne.s32.totalorder %s523_s23, %s12855_s29  ;;  %p12860_p6 = scmp.lt.s32.totalorder %s523_s23, %s523_s23 }
 0x19b   :  { %p12861_p7 = scmp.lt.s32.totalorder %s12859_s2, %s12855_s29 }
 0x19d   :  { %p12862_p8 = por %p12861_p7, %p12860_p6 }
 0x19f   :  { %p12863_p9 = pnand %p12862_p8, %p12856_p5 }
 0x1a1   :  { %12866 = shalt.err (!%p12863_p9)
}
 0x1a2   :  { %s15520_s27 = sld [smem:[#allocation127_spill]]  ;;  %s13630_s20 = smov [#allocation57]  }
 0x1a3   :  { %525 = dma.hbm_to_vmem [thread:$0]  %s15519_s28, 16, %s523_s23, [#allocation55]  }
 0x1a4   :  { %s544_s7 = sshll.u32 %s13630_s20, 4  ;;  %s13631_s24 = smov [#allocation60]   ;;  %s545_s7 = int_to_ptr.vmem [resolvable:$true] %s544_s7 }
 0x1a5   :  { %s566_s10 = sshll.u32 %s13631_s24, 4  ;;  %s567_s10 = int_to_ptr.vmem [resolvable:$true] %s566_s10 }
 0x1a8   :  { %s12867_s8 = scalar_lea.hbm %s15520_s27, 16 }
 0x1a9   :  { %p12868_p10 = scmp.ne.s32.totalorder %s15520_s27, %s12867_s8  ;;  %p12871_p11 = scmp.lt.u32.totalorder %s12867_s8, %s15520_s27 }
 0x1ab   :  { %p12873_p12 = pnand %p12871_p11, %p12868_p10 }
 0x1ad   :  { %12876 = shalt.err (!%p12873_p12)
}
 0x1ae   :  { %s12877_s6 = scalar_lea.vmem %s545_s7, 16  ;;  %s12881_s11 = scalar_lea.vmem %s545_s7, 32 }
 0x1af   :  { %p12878_p13 = scmp.ne.s32.totalorder %s545_s7, %s12877_s6  ;;  %p12882_p0 = scmp.lt.s32.totalorder %s545_s7, %s545_s7 }
 0x1b0   :  { %p12883_p1 = scmp.lt.s32.totalorder %s12881_s11, %s12877_s6 }
 0x1b2   :  { %p12884_p2 = por %p12883_p1, %p12882_p0 }
 0x1b4   :  { %p12885_p3 = pnand %p12884_p2, %p12878_p13 }
 0x1b6   :  { %12888 = shalt.err (!%p12885_p3)
}
 0x1b7   :  { %s15521_s15 = sld [smem:[#allocation129_spill]] }
 0x1b8   :  { %547 = dma.hbm_to_vmem [thread:$0]  %s15520_s27, 16, %s545_s7, [#allocation58]  }
 0x1bd   :  { %s12889_s14 = scalar_lea.hbm %s15521_s15, 16 }
 0x1be   :  { %p12890_p4 = scmp.ne.s32.totalorder %s15521_s15, %s12889_s14  ;;  %p12893_p5 = scmp.lt.u32.totalorder %s12889_s14, %s15521_s15 }
 0x1c0   :  { %p12895_p6 = pnand %p12893_p5, %p12890_p4 }
 0x1c2   :  { %12898 = shalt.err (!%p12895_p6)
}
 0x1c3   :  { %s12899_s16 = scalar_lea.vmem %s567_s10, 16  ;;  %s12903_s25 = scalar_lea.vmem %s567_s10, 32 }
 0x1c4   :  { %p12900_p7 = scmp.ne.s32.totalorder %s567_s10, %s12899_s16  ;;  %p12904_p8 = scmp.lt.s32.totalorder %s567_s10, %s567_s10 }
 0x1c5   :  { %p12905_p9 = scmp.lt.s32.totalorder %s12903_s25, %s12899_s16 }
 0x1c7   :  { %p12906_p10 = por %p12905_p9, %p12904_p8 }
 0x1c9   :  { %p12907_p11 = pnand %p12906_p10, %p12900_p7 }
 0x1cb   :  { %12910 = shalt.err (!%p12907_p11)
}
 0x1cc   :  { %s15522_s18 = sld [smem:[#allocation131_spill]]  ;;  %s13632_s22 = smov [#allocation63]  }
 0x1cd   :  { %569 = dma.hbm_to_vmem [thread:$0]  %s15521_s15, 16, %s567_s10, [#allocation61]  }
 0x1ce   :  { %s588_s3 = sshll.u32 %s13632_s22, 4  ;;  %s13633_s19 = smov [#allocation66]   ;;  %s589_s3 = int_to_ptr.vmem [resolvable:$true] %s588_s3 }
 0x1cf   :  { %s610_s13 = sshll.u32 %s13633_s19, 4  ;;  %s611_s13 = int_to_ptr.vmem [resolvable:$true] %s610_s13 }
 0x1d2   :  { %s12911_s23 = scalar_lea.hbm %s15522_s18, 16 }
 0x1d3   :  { %p12912_p12 = scmp.ne.s32.totalorder %s15522_s18, %s12911_s23  ;;  %p12915_p13 = scmp.lt.u32.totalorder %s12911_s23, %s15522_s18 }
 0x1d5   :  { %p12917_p0 = pnand %p12915_p13, %p12912_p12 }
 0x1d7   :  { %12920 = shalt.err (!%p12917_p0)
}
 0x1d8   :  { %s12921_s30 = scalar_lea.vmem %s589_s3, 16  ;;  %s12925_s0 = scalar_lea.vmem %s589_s3, 32 }
 0x1d9   :  { %p12922_p1 = scmp.ne.s32.totalorder %s589_s3, %s12921_s30  ;;  %p12926_p2 = scmp.lt.s32.totalorder %s589_s3, %s589_s3 }
 0x1da   :  { %p12927_p3 = scmp.lt.s32.totalorder %s12925_s0, %s12921_s30 }
 0x1dc   :  { %p12928_p4 = por %p12927_p3, %p12926_p2 }
 0x1de   :  { %p12929_p5 = pnand %p12928_p4, %p12922_p1 }
 0x1e0   :  { %12932 = shalt.err (!%p12929_p5)
}
 0x1e1   :  { %s15523_s17 = sld [smem:[#allocation133_spill]] }
 0x1e2   :  { %591 = dma.hbm_to_vmem [thread:$0]  %s15522_s18, 16, %s589_s3, [#allocation64]  }
 0x1e7   :  { %s12933_s28 = scalar_lea.hbm %s15523_s17, 16 }
 0x1e8   :  { %p12934_p6 = scmp.ne.s32.totalorder %s15523_s17, %s12933_s28  ;;  %p12937_p7 = scmp.lt.u32.totalorder %s12933_s28, %s15523_s17 }
 0x1ea   :  { %p12939_p8 = pnand %p12937_p7, %p12934_p6 }
 0x1ec   :  { %12942 = shalt.err (!%p12939_p8)
}
 0x1ed   :  { %s12943_s1 = scalar_lea.vmem %s611_s13, 16  ;;  %s12947_s29 = scalar_lea.vmem %s611_s13, 32 }
 0x1ee   :  { %p12944_p9 = scmp.ne.s32.totalorder %s611_s13, %s12943_s1  ;;  %p12948_p10 = scmp.lt.s32.totalorder %s611_s13, %s611_s13 }
 0x1ef   :  { %p12949_p11 = scmp.lt.s32.totalorder %s12947_s29, %s12943_s1 }
 0x1f1   :  { %p12950_p12 = por %p12949_p11, %p12948_p10 }
 0x1f3   :  { %p12951_p13 = pnand %p12950_p12, %p12944_p9 }
 0x1f5   :  { %12954 = shalt.err (!%p12951_p13)
}
 0x1f6   :  { %s15524_s2 = sld [smem:[#allocation100_spill]]  ;;  %s13634_s27 = smov [#allocation3]  }
 0x1f7   :  { %613 = dma.hbm_to_vmem [thread:$0]  %s15523_s17, 16, %s611_s13, [#allocation67]  }
 0x1f8   :  { %s151_s20 = sshll.u32 %s13634_s27, 4  ;;  %s152_s20 = int_to_ptr.vmem [resolvable:$true] %s151_s20 }
 0x1fc   :  { %s12955_s7 = scalar_lea.hbm %s15524_s2, 96 }
 0x1fd   :  { %p12956_p0 = scmp.ne.s32.totalorder %s15524_s2, %s12955_s7  ;;  %p12959_p1 = scmp.lt.u32.totalorder %s12955_s7, %s15524_s2 }
 0x1ff   :  { %p12961_p2 = pnand %p12959_p1, %p12956_p0 }
 0x201   :  { %12964 = shalt.err (!%p12961_p2)
}
 0x202   :  { %s12965_s24 = scalar_lea.vmem %s152_s20, 96  ;;  %p12970_p4 = scmp.lt.s32.totalorder %s152_s20, %s152_s20 }
 0x203   :  { %p12966_p3 = scmp.ne.s32.totalorder %s152_s20, %s12965_s24  ;;  %p12971_p5 = scmp.lt.s32.totalorder %s12965_s24, %s12965_s24 }
 0x205   :  { %p12972_p6 = por %p12971_p5, %p12970_p4 }
 0x207   :  { %p12973_p7 = pnand %p12972_p6, %p12966_p3 }
 0x209   :  { %12976 = shalt.err (!%p12973_p7)
}
 0x20a   :  { %s13635_s10 = smov 32   ;;  %s15525_s8 = sld [smem:[#allocation102_spill]] }
 0x20b   :  { %s13636_s6 = smov 2   ;;  %s13637_s11 = smov [#allocation8]  }
 0x20c   :  { %157 = dma.hbm_to_vmem [thread:$0]  %s15524_s2, 96, %s152_s20, [#allocation4], %s13635_s10, %s13635_s10, %s13636_s6  }
 0x20d   :  { %s176_s15 = sshll.u32 %s13637_s11, 4  ;;  %s13638_s14 = smov [#allocation11]   ;;  %s177_s15 = int_to_ptr.vmem [resolvable:$true] %s176_s15 }
 0x20e   :  { %s197_s16 = sshll.u32 %s13638_s14, 4  ;;  %s14059_s16 = int_to_ptr.vmem [resolvable:$true] %s197_s16 }
 0x210   :  { %s12977_s25 = scalar_lea.hbm %s15525_s8, 16 }
 0x211   :  { %p12978_p8 = scmp.ne.s32.totalorder %s15525_s8, %s12977_s25  ;;  %p12981_p9 = scmp.lt.u32.totalorder %s12977_s25, %s15525_s8 }
 0x213   :  { %p12983_p10 = pnand %p12981_p9, %p12978_p8 }
 0x215   :  { %12986 = shalt.err (!%p12983_p10)
}
 0x216   :  { %s12987_s18 = scalar_lea.vmem %s177_s15, 16  ;;  %s12991_s22 = scalar_lea.vmem %s177_s15, 32 }
 0x217   :  { %p12988_p11 = scmp.ne.s32.totalorder %s177_s15, %s12987_s18  ;;  %p12992_p12 = scmp.lt.s32.totalorder %s177_s15, %s177_s15 }
 0x218   :  { %p12993_p13 = scmp.lt.s32.totalorder %s12991_s22, %s12987_s18 }
 0x21a   :  { %p12994_p0 = por %p12993_p13, %p12992_p12 }
 0x21c   :  { %p12995_p1 = pnand %p12994_p0, %p12988_p11 }
 0x21e   :  { %12998 = shalt.err (!%p12995_p1)
}
 0x21f   :  { %s15526_s3 = sld [smem:[#allocation104_spill]] }
 0x220   :  { %179 = dma.hbm_to_vmem [thread:$0]  %s15525_s8, 16, %s177_s15, [#allocation7]  }
 0x225   :  { %s12999_s19 = scalar_lea.hbm %s15526_s3, 256 }
 0x226   :  { %p13000_p2 = scmp.ne.s32.totalorder %s15526_s3, %s12999_s19  ;;  %p13003_p3 = scmp.lt.u32.totalorder %s12999_s19, %s15526_s3 }
 0x228   :  { %p13005_p4 = pnand %p13003_p3, %p13000_p2 }
 0x22a   :  { %13008 = shalt.err (!%p13005_p4)
}
 0x22b   :  { %s13009_s13 = scalar_lea.vmem %s14059_s16, 256  ;;  %p13014_p6 = scmp.lt.s32.totalorder %s14059_s16, %s14059_s16 }
 0x22c   :  { %p13010_p5 = scmp.ne.s32.totalorder %s14059_s16, %s13009_s13  ;;  %p13015_p7 = scmp.lt.s32.totalorder %s13009_s13, %s13009_s13 }
 0x22e   :  { %p13016_p8 = por %p13015_p7, %p13014_p6 }
 0x230   :  { %p13017_p9 = pnand %p13016_p8, %p13010_p5 }
 0x232   :  { %13020 = shalt.err (!%p13017_p9)
}
 0x233   :  { %s15527_s23 = sld [smem:[#allocation105_spill]]  ;;  %s13639_s30 = smov [#allocation14]  }
 0x234   :  { %203 = dma.hbm_to_vmem [thread:$0]  %s15526_s3, 256, %s14059_s16, [#allocation10], %s13622_s26, %s13622_s26, %s13623_s5  }
 0x235   :  { %s219_s0 = sshll.u32 %s13639_s30, 4  ;;  %s13640_s17 = smov [#allocation17]   ;;  %s220_s0 = int_to_ptr.vmem [resolvable:$true] %s219_s0 }
 0x236   :  { %s241_s28 = sshll.u32 %s13640_s17, 4  ;;  %s14077_s28 = int_to_ptr.vmem [resolvable:$true] %s241_s28 }
 0x239   :  { %s13021_s1 = scalar_lea.hbm %s15527_s23, 768 }
 0x23a   :  { %p13022_p10 = scmp.ne.s32.totalorder %s15527_s23, %s13021_s1  ;;  %p13025_p11 = scmp.lt.u32.totalorder %s13021_s1, %s15527_s23 }
 0x23c   :  { %p13027_p12 = pnand %p13025_p11, %p13022_p10 }
 0x23e   :  { %13030 = shalt.err (!%p13027_p12)
}
 0x23f   :  { %s13031_s29 = scalar_lea.vmem %s220_s0, 768  ;;  %p13036_p0 = scmp.lt.s32.totalorder %s220_s0, %s220_s0 }
 0x240   :  { %p13032_p13 = scmp.ne.s32.totalorder %s220_s0, %s13031_s29  ;;  %p13037_p1 = scmp.lt.s32.totalorder %s13031_s29, %s13031_s29 }
 0x242   :  { %p13038_p2 = por %p13037_p1, %p13036_p0 }
 0x244   :  { %p13039_p3 = pnand %p13038_p2, %p13032_p13 }
 0x246   :  { %13042 = shalt.err (!%p13039_p3)
}
 0x247   :  { %s15528_s2 = sld [smem:[#allocation106_spill]] }
 0x248   :  { %225 = dma.hbm_to_vmem [thread:$0]  %s15527_s23, 768, %s220_s0, [#allocation13], %s13622_s26, %s13622_s26, %s13623_s5  }
 0x24d   :  { %s13043_s27 = scalar_lea.hbm %s15528_s2, 256 }
 0x24e   :  { %p13044_p4 = scmp.ne.s32.totalorder %s15528_s2, %s13043_s27  ;;  %p13047_p5 = scmp.lt.u32.totalorder %s13043_s27, %s15528_s2 }
 0x250   :  { %p13049_p6 = pnand %p13047_p5, %p13044_p4 }
 0x252   :  { %13052 = shalt.err (!%p13049_p6)
}
 0x253   :  { %s13053_s20 = scalar_lea.vmem %s14077_s28, 256  ;;  %p13058_p8 = scmp.lt.s32.totalorder %s14077_s28, %s14077_s28 }
 0x254   :  { %p13054_p7 = scmp.ne.s32.totalorder %s14077_s28, %s13053_s20  ;;  %p13059_p9 = scmp.lt.s32.totalorder %s13053_s20, %s13053_s20 }
 0x256   :  { %p13060_p10 = por %p13059_p9, %p13058_p8 }
 0x258   :  { %p13061_p11 = pnand %p13060_p10, %p13054_p7 }
 0x25a   :  { %13064 = shalt.err (!%p13061_p11)
}
 0x25b   :  { %s15529_s7 = sld [smem:[#allocation108_spill]]  ;;  %s13641_s24 = smov [#allocation20]  }
 0x25c   :  { %247 = dma.hbm_to_vmem [thread:$0]  %s15528_s2, 256, %s14077_s28, [#allocation16], %s13622_s26, %s13622_s26, %s13623_s5  }
 0x25d   :  { %s266_s10 = sshll.u32 %s13641_s24, 4  ;;  %s13642_s8 = smov [#allocation23]   ;;  %s267_s10 = int_to_ptr.vmem [resolvable:$true] %s266_s10 }
 0x25e   :  { %s287_s6 = sshll.u32 %s13642_s8, 4  ;;  %s14098_s6 = int_to_ptr.vmem [resolvable:$true] %s287_s6 }
 0x261   :  { %s13065_s11 = scalar_lea.hbm %s15529_s7, 16 }
 0x262   :  { %p13066_p12 = scmp.ne.s32.totalorder %s15529_s7, %s13065_s11  ;;  %p13069_p13 = scmp.lt.u32.totalorder %s13065_s11, %s15529_s7 }
 0x264   :  { %p13071_p0 = pnand %p13069_p13, %p13066_p12 }
 0x266   :  { %13074 = shalt.err (!%p13071_p0)
}
 0x267   :  { %s13075_s15 = scalar_lea.vmem %s267_s10, 16  ;;  %s13079_s14 = scalar_lea.vmem %s267_s10, 32 }
 0x268   :  { %p13076_p1 = scmp.ne.s32.totalorder %s267_s10, %s13075_s15  ;;  %p13080_p2 = scmp.lt.s32.totalorder %s267_s10, %s267_s10 }
 0x269   :  { %p13081_p3 = scmp.lt.s32.totalorder %s13079_s14, %s13075_s15 }
 0x26b   :  { %p13082_p4 = por %p13081_p3, %p13080_p2 }
 0x26d   :  { %p13083_p5 = pnand %p13082_p4, %p13076_p1 }
 0x26f   :  { %13086 = shalt.err (!%p13083_p5)
}
 0x270   :  { %s15530_s16 = sld [smem:[#allocation110_spill]] }
 0x271   :  { %269 = dma.hbm_to_vmem [thread:$0]  %s15529_s7, 16, %s267_s10, [#allocation19]  }
 0x276   :  { %s13087_s25 = scalar_lea.hbm %s15530_s16, 256 }
 0x277   :  { %p13088_p6 = scmp.ne.s32.totalorder %s15530_s16, %s13087_s25  ;;  %p13091_p7 = scmp.lt.u32.totalorder %s13087_s25, %s15530_s16 }
 0x279   :  { %p13093_p8 = pnand %p13091_p7, %p13088_p6 }
 0x27b   :  { %13096 = shalt.err (!%p13093_p8)
}
 0x27c   :  { %s13097_s18 = scalar_lea.vmem %s14098_s6, 256  ;;  %p13102_p10 = scmp.lt.s32.totalorder %s14098_s6, %s14098_s6 }
 0x27d   :  { %p13098_p9 = scmp.ne.s32.totalorder %s14098_s6, %s13097_s18  ;;  %p13103_p11 = scmp.lt.s32.totalorder %s13097_s18, %s13097_s18 }
 0x27f   :  { %p13104_p12 = por %p13103_p11, %p13102_p10 }
 0x281   :  { %p13105_p13 = pnand %p13104_p12, %p13098_p9 }
 0x283   :  { %13108 = shalt.err (!%p13105_p13)
}
 0x284   :  { %s15531_s22 = sld [smem:[#allocation111_spill]]  ;;  %s13643_s3 = smov [#allocation26]  }
 0x285   :  { %293 = dma.hbm_to_vmem [thread:$0]  %s15530_s16, 256, %s14098_s6, [#allocation22], %s13622_s26, %s13622_s26, %s13623_s5  }
 0x286   :  { %s309_s19 = sshll.u32 %s13643_s3, 4  ;;  %s13644_s13 = smov [#allocation29]   ;;  %s310_s19 = int_to_ptr.vmem [resolvable:$true] %s309_s19 }
 0x287   :  { %s331_s23 = sshll.u32 %s13644_s13, 4  ;;  %s14116_s23 = int_to_ptr.vmem [resolvable:$true] %s331_s23 }
 0x28a   :  { %s13109_s30 = scalar_lea.hbm %s15531_s22, 768 }
 0x28b   :  { %p13110_p0 = scmp.ne.s32.totalorder %s15531_s22, %s13109_s30  ;;  %p13113_p1 = scmp.lt.u32.totalorder %s13109_s30, %s15531_s22 }
 0x28d   :  { %p13115_p2 = pnand %p13113_p1, %p13110_p0 }
 0x28f   :  { %13118 = shalt.err (!%p13115_p2)
}
 0x290   :  { %s13119_s0 = scalar_lea.vmem %s310_s19, 768  ;;  %p13124_p4 = scmp.lt.s32.totalorder %s310_s19, %s310_s19 }
 0x291   :  { %p13120_p3 = scmp.ne.s32.totalorder %s310_s19, %s13119_s0  ;;  %p13125_p5 = scmp.lt.s32.totalorder %s13119_s0, %s13119_s0 }
 0x293   :  { %p13126_p6 = por %p13125_p5, %p13124_p4 }
 0x295   :  { %p13127_p7 = pnand %p13126_p6, %p13120_p3 }
 0x297   :  { %13130 = shalt.err (!%p13127_p7)
}
 0x298   :  { %s15532_s17 = sld [smem:[#allocation112_spill]] }
 0x299   :  { %315 = dma.hbm_to_vmem [thread:$0]  %s15531_s22, 768, %s310_s19, [#allocation25], %s13622_s26, %s13622_s26, %s13623_s5  }
 0x29e   :  { %s13131_s28 = scalar_lea.hbm %s15532_s17, 256 }
 0x29f   :  { %p13132_p8 = scmp.ne.s32.totalorder %s15532_s17, %s13131_s28  ;;  %p13135_p9 = scmp.lt.u32.totalorder %s13131_s28, %s15532_s17 }
 0x2a1   :  { %p13137_p10 = pnand %p13135_p9, %p13132_p8 }
 0x2a3   :  { %13140 = shalt.err (!%p13137_p10)
}
 0x2a4   :  { %s13141_s1 = scalar_lea.vmem %s14116_s23, 256  ;;  %p13146_p12 = scmp.lt.s32.totalorder %s14116_s23, %s14116_s23 }
 0x2a5   :  { %p13142_p11 = scmp.ne.s32.totalorder %s14116_s23, %s13141_s1  ;;  %p13147_p13 = scmp.lt.s32.totalorder %s13141_s1, %s13141_s1 }
 0x2a7   :  { %p13148_p0 = por %p13147_p13, %p13146_p12 }
 0x2a9   :  { %p13149_p1 = pnand %p13148_p0, %p13142_p11 }
 0x2ab   :  { %13152 = shalt.err (!%p13149_p1)
}
 0x2ac   :  { %s15533_s29 = sld [smem:[#allocation114_spill]]  ;;  %s13645_s2 = smov [#allocation32]  }
 0x2ad   :  { %337 = dma.hbm_to_vmem [thread:$0]  %s15532_s17, 256, %s14116_s23, [#allocation28], %s13622_s26, %s13622_s26, %s13623_s5  }
 0x2ae   :  { %s356_s27 = sshll.u32 %s13645_s2, 4  ;;  %s13646_s20 = smov [#allocation35]   ;;  %s357_s27 = int_to_ptr.vmem [resolvable:$true] %s356_s27 }
 0x2af   :  { %s378_s7 = sshll.u32 %s13646_s20, 4  ;;  %s379_s7 = int_to_ptr.vmem [resolvable:$true] %s378_s7 }
 0x2b2   :  { %s13153_s24 = scalar_lea.hbm %s15533_s29, 16 }
 0x2b3   :  { %p13154_p2 = scmp.ne.s32.totalorder %s15533_s29, %s13153_s24  ;;  %p13157_p3 = scmp.lt.u32.totalorder %s13153_s24, %s15533_s29 }
 0x2b5   :  { %p13159_p4 = pnand %p13157_p3, %p13154_p2 }
 0x2b7   :  { %13162 = shalt.err (!%p13159_p4)
}
 0x2b8   :  { %s13163_s10 = scalar_lea.vmem %s357_s27, 16  ;;  %s13167_s8 = scalar_lea.vmem %s357_s27, 32 }
 0x2b9   :  { %p13164_p5 = scmp.ne.s32.totalorder %s357_s27, %s13163_s10  ;;  %p13168_p6 = scmp.lt.s32.totalorder %s357_s27, %s357_s27 }
 0x2ba   :  { %p13169_p7 = scmp.lt.s32.totalorder %s13167_s8, %s13163_s10 }
 0x2bc   :  { %p13170_p8 = por %p13169_p7, %p13168_p6 }
 0x2be   :  { %p13171_p9 = pnand %p13170_p8, %p13164_p5 }
 0x2c0   :  { %13174 = shalt.err (!%p13171_p9)
}
 0x2c1   :  { %s15534_s6 = sld [smem:[#allocation115_spill]] }
 0x2c2   :  { %359 = dma.hbm_to_vmem [thread:$0]  %s15533_s29, 16, %s357_s27, [#allocation31]  }
 0x2c7   :  { %s13175_s11 = scalar_lea.hbm %s15534_s6, 16 }
 0x2c8   :  { %p13176_p10 = scmp.ne.s32.totalorder %s15534_s6, %s13175_s11  ;;  %p13179_p11 = scmp.lt.u32.totalorder %s13175_s11, %s15534_s6 }
 0x2ca   :  { %p13181_p12 = pnand %p13179_p11, %p13176_p10 }
 0x2cc   :  { %13184 = shalt.err (!%p13181_p12)
}
 0x2cd   :  { %s13185_s15 = scalar_lea.vmem %s379_s7, 16  ;;  %s13189_s14 = scalar_lea.vmem %s379_s7, 32 }
 0x2ce   :  { %p13186_p13 = scmp.ne.s32.totalorder %s379_s7, %s13185_s15  ;;  %p13190_p0 = scmp.lt.s32.totalorder %s379_s7, %s379_s7 }
 0x2cf   :  { %p13191_p1 = scmp.lt.s32.totalorder %s13189_s14, %s13185_s15 }
 0x2d1   :  { %p13192_p2 = por %p13191_p1, %p13190_p0 }
 0x2d3   :  { %p13193_p3 = pnand %p13192_p2, %p13186_p13 }
 0x2d5   :  { %13196 = shalt.err (!%p13193_p3)
}
 0x2d6   :  { %s15535_s16 = sld [smem:[#allocation116_spill]]  ;;  %s13647_s25 = smov [#allocation38]  }
 0x2d7   :  { %381 = dma.hbm_to_vmem [thread:$0]  %s15534_s6, 16, %s379_s7, [#allocation34]  }
 0x2d8   :  { %s400_s18 = sshll.u32 %s13647_s25, 4  ;;  %s13648_s22 = smov [#allocation41]   ;;  %s401_s18 = int_to_ptr.vmem [resolvable:$true] %s400_s18 }
 0x2d9   :  { %s422_s3 = sshll.u32 %s13648_s22, 4  ;;  %s423_s3 = int_to_ptr.vmem [resolvable:$true] %s422_s3 }
 0x2dc   :  { %s13197_s19 = scalar_lea.hbm %s15535_s16, 16 }
 0x2dd   :  { %p13198_p4 = scmp.ne.s32.totalorder %s15535_s16, %s13197_s19  ;;  %p13201_p5 = scmp.lt.u32.totalorder %s13197_s19, %s15535_s16 }
 0x2df   :  { %p13203_p6 = pnand %p13201_p5, %p13198_p4 }
 0x2e1   :  { %13206 = shalt.err (!%p13203_p6)
}
 0x2e2   :  { %s13207_s13 = scalar_lea.vmem %s401_s18, 16  ;;  %s13211_s23 = scalar_lea.vmem %s401_s18, 32 }
 0x2e3   :  { %p13208_p7 = scmp.ne.s32.totalorder %s401_s18, %s13207_s13  ;;  %p13212_p8 = scmp.lt.s32.totalorder %s401_s18, %s401_s18 }
 0x2e4   :  { %p13213_p9 = scmp.lt.s32.totalorder %s13211_s23, %s13207_s13 }
 0x2e6   :  { %p13214_p10 = por %p13213_p9, %p13212_p8 }
 0x2e8   :  { %p13215_p11 = pnand %p13214_p10, %p13208_p7 }
 0x2ea   :  { %13218 = shalt.err (!%p13215_p11)
}
 0x2eb   :  { %s15536_s30 = sld [smem:[#allocation117_spill]] }
 0x2ec   :  { %403 = dma.hbm_to_vmem [thread:$0]  %s15535_s16, 16, %s401_s18, [#allocation37]  }
 0x2f1   :  { %s13219_s0 = scalar_lea.hbm %s15536_s30, 16 }
 0x2f2   :  { %p13220_p12 = scmp.ne.s32.totalorder %s15536_s30, %s13219_s0  ;;  %p13223_p13 = scmp.lt.u32.totalorder %s13219_s0, %s15536_s30 }
 0x2f4   :  { %p13225_p0 = pnand %p13223_p13, %p13220_p12 }
 0x2f6   :  { %13228 = shalt.err (!%p13225_p0)
}
 0x2f7   :  { %s13229_s17 = scalar_lea.vmem %s423_s3, 16  ;;  %s13233_s28 = scalar_lea.vmem %s423_s3, 32 }
 0x2f8   :  { %p13230_p1 = scmp.ne.s32.totalorder %s423_s3, %s13229_s17  ;;  %p13234_p2 = scmp.lt.s32.totalorder %s423_s3, %s423_s3 }
 0x2f9   :  { %p13235_p3 = scmp.lt.s32.totalorder %s13233_s28, %s13229_s17 }
 0x2fb   :  { %p13236_p4 = por %p13235_p3, %p13234_p2 }
 0x2fd   :  { %p13237_p5 = pnand %p13236_p4, %p13230_p1 }
 0x2ff   :  { %13240 = shalt.err (!%p13237_p5)
}
 0x300   :  { %s15537_s1 = sld [smem:[#allocation118_spill]]  ;;  %s13649_s29 = smov [#allocation44]  }
 0x301   :  { %425 = dma.hbm_to_vmem [thread:$0]  %s15536_s30, 16, %s423_s3, [#allocation40]  }
 0x302   :  { %s444_s2 = sshll.u32 %s13649_s29, 4  ;;  %s13650_s27 = smov [#allocation47]   ;;  %s445_s2 = int_to_ptr.vmem [resolvable:$true] %s444_s2 }
 0x303   :  { %s466_s20 = sshll.u32 %s13650_s27, 4  ;;  %s467_s20 = int_to_ptr.vmem [resolvable:$true] %s466_s20 }
 0x306   :  { %s13241_s7 = scalar_lea.hbm %s15537_s1, 16 }
 0x307   :  { %p13242_p6 = scmp.ne.s32.totalorder %s15537_s1, %s13241_s7  ;;  %p13245_p7 = scmp.lt.u32.totalorder %s13241_s7, %s15537_s1 }
 0x309   :  { %p13247_p8 = pnand %p13245_p7, %p13242_p6 }
 0x30b   :  { %13250 = shalt.err (!%p13247_p8)
}
 0x30c   :  { %s13251_s24 = scalar_lea.vmem %s445_s2, 16  ;;  %s13255_s10 = scalar_lea.vmem %s445_s2, 32 }
 0x30d   :  { %p13252_p9 = scmp.ne.s32.totalorder %s445_s2, %s13251_s24  ;;  %p13256_p10 = scmp.lt.s32.totalorder %s445_s2, %s445_s2 }
 0x30e   :  { %p13257_p11 = scmp.lt.s32.totalorder %s13255_s10, %s13251_s24 }
 0x310   :  { %p13258_p12 = por %p13257_p11, %p13256_p10 }
 0x312   :  { %p13259_p13 = pnand %p13258_p12, %p13252_p9 }
 0x314   :  { %13262 = shalt.err (!%p13259_p13)
}
 0x315   :  { %s15538_s8 = sld [smem:[#allocation119_spill]] }
 0x316   :  { %447 = dma.hbm_to_vmem [thread:$0]  %s15537_s1, 16, %s445_s2, [#allocation43]  }
 0x31b   :  { %s13263_s6 = scalar_lea.hbm %s15538_s8, 16 }
 0x31c   :  { %p13264_p0 = scmp.ne.s32.totalorder %s15538_s8, %s13263_s6  ;;  %p13267_p1 = scmp.lt.u32.totalorder %s13263_s6, %s15538_s8 }
 0x31e   :  { %p13269_p2 = pnand %p13267_p1, %p13264_p0 }
 0x320   :  { %13272 = shalt.err (!%p13269_p2)
}
 0x321   :  { %s13273_s11 = scalar_lea.vmem %s467_s20, 16  ;;  %s13277_s15 = scalar_lea.vmem %s467_s20, 32 }
 0x322   :  { %p13274_p3 = scmp.ne.s32.totalorder %s467_s20, %s13273_s11  ;;  %p13278_p4 = scmp.lt.s32.totalorder %s467_s20, %s467_s20 }
 0x323   :  { %p13279_p5 = scmp.lt.s32.totalorder %s13277_s15, %s13273_s11 }
 0x325   :  { %p13280_p6 = por %p13279_p5, %p13278_p4 }
 0x327   :  { %p13281_p7 = pnand %p13280_p6, %p13274_p3 }
 0x329   :  { %13284 = shalt.err (!%p13281_p7)
}
 0x32a   :  { %s15539_s14 = sld [smem:[#allocation122_spill]]  ;;  %s13651_s16 = smov [#allocation50]  }
 0x32b   :  { %469 = dma.hbm_to_vmem [thread:$0]  %s15538_s8, 16, %s467_s20, [#allocation46]  }
 0x32c   :  { %s487_s25 = sshll.u32 %s13651_s16, 4  ;;  %s13652_s18 = smov [#allocation53]   ;;  %s488_s25 = int_to_ptr.vmem [resolvable:$true] %s487_s25 }
 0x32d   :  { %s509_s22 = sshll.u32 %s13652_s18, 4  ;;  %s14161_s22 = int_to_ptr.vmem [resolvable:$true] %s509_s22 }
 0x330   :  { %s13285_s3 = scalar_lea.hbm %s15539_s14, 768 }
 0x331   :  { %p13286_p8 = scmp.ne.s32.totalorder %s15539_s14, %s13285_s3  ;;  %p13289_p9 = scmp.lt.u32.totalorder %s13285_s3, %s15539_s14 }
 0x333   :  { %p13291_p10 = pnand %p13289_p9, %p13286_p8 }
 0x335   :  { %13294 = shalt.err (!%p13291_p10)
}
 0x336   :  { %s13295_s19 = scalar_lea.vmem %s488_s25, 768  ;;  %p13300_p12 = scmp.lt.s32.totalorder %s488_s25, %s488_s25 }
 0x337   :  { %p13296_p11 = scmp.ne.s32.totalorder %s488_s25, %s13295_s19  ;;  %p13301_p13 = scmp.lt.s32.totalorder %s13295_s19, %s13295_s19 }
 0x339   :  { %p13302_p0 = por %p13301_p13, %p13300_p12 }
 0x33b   :  { %p13303_p1 = pnand %p13302_p0, %p13296_p11 }
 0x33d   :  { %13306 = shalt.err (!%p13303_p1)
}
 0x33e   :  { %s15540_s13 = sld [smem:[#allocation124_spill]] }
 0x33f   :  { %493 = dma.hbm_to_vmem [thread:$0]  %s15539_s14, 768, %s488_s25, [#allocation49], %s13622_s26, %s13622_s26, %s13623_s5  }
 0x344   :  { %s13307_s23 = scalar_lea.hbm %s15540_s13, 256 }
 0x345   :  { %p13308_p2 = scmp.ne.s32.totalorder %s15540_s13, %s13307_s23  ;;  %p13311_p3 = scmp.lt.u32.totalorder %s13307_s23, %s15540_s13 }
 0x347   :  { %p13313_p4 = pnand %p13311_p3, %p13308_p2 }
 0x349   :  { %13316 = shalt.err (!%p13313_p4)
}
 0x34a   :  { %s13317_s30 = scalar_lea.vmem %s14161_s22, 256  ;;  %p13322_p6 = scmp.lt.s32.totalorder %s14161_s22, %s14161_s22 }
 0x34b   :  { %p13318_p5 = scmp.ne.s32.totalorder %s14161_s22, %s13317_s30  ;;  %p13323_p7 = scmp.lt.s32.totalorder %s13317_s30, %s13317_s30 }
 0x34d   :  { %p13324_p8 = por %p13323_p7, %p13322_p6 }
 0x34f   :  { %p13325_p9 = pnand %p13324_p8, %p13318_p5 }
 0x351   :  { %13328 = shalt.err (!%p13325_p9)
}
 0x352   :  { %s15541_s0 = sld [smem:[#allocation126_spill]]  ;;  %s13653_s17 = smov [#allocation56]  }
 0x353   :  { %515 = dma.hbm_to_vmem [thread:$0]  %s15540_s13, 256, %s14161_s22, [#allocation52], %s13622_s26, %s13622_s26, %s13623_s5  }
 0x354   :  { %s531_s28 = sshll.u32 %s13653_s17, 4  ;;  %s13654_s1 = smov [#allocation59]   ;;  %s532_s28 = int_to_ptr.vmem [resolvable:$true] %s531_s28 }
 0x355   :  { %s553_s29 = sshll.u32 %s13654_s1, 4  ;;  %s14182_s29 = int_to_ptr.vmem [resolvable:$true] %s553_s29 }
 0x358   :  { %s13329_s2 = scalar_lea.hbm %s15541_s0, 768 }
 0x359   :  { %p13330_p10 = scmp.ne.s32.totalorder %s15541_s0, %s13329_s2  ;;  %p13333_p11 = scmp.lt.u32.totalorder %s13329_s2, %s15541_s0 }
 0x35b   :  { %p13335_p12 = pnand %p13333_p11, %p13330_p10 }
 0x35d   :  { %13338 = shalt.err (!%p13335_p12)
}
 0x35e   :  { %s13339_s27 = scalar_lea.vmem %s532_s28, 768  ;;  %p13344_p0 = scmp.lt.s32.totalorder %s532_s28, %s532_s28 }
 0x35f   :  { %p13340_p13 = scmp.ne.s32.totalorder %s532_s28, %s13339_s27  ;;  %p13345_p1 = scmp.lt.s32.totalorder %s13339_s27, %s13339_s27 }
 0x361   :  { %p13346_p2 = por %p13345_p1, %p13344_p0 }
 0x363   :  { %p13347_p3 = pnand %p13346_p2, %p13340_p13 }
 0x365   :  { %13350 = shalt.err (!%p13347_p3)
}
 0x366   :  { %s15542_s20 = sld [smem:[#allocation128_spill]] }
 0x367   :  { %537 = dma.hbm_to_vmem [thread:$0]  %s15541_s0, 768, %s532_s28, [#allocation55], %s13622_s26, %s13622_s26, %s13623_s5  }
 0x36c   :  { %s13351_s7 = scalar_lea.hbm %s15542_s20, 256 }
 0x36d   :  { %p13352_p4 = scmp.ne.s32.totalorder %s15542_s20, %s13351_s7  ;;  %p13355_p5 = scmp.lt.u32.totalorder %s13351_s7, %s15542_s20 }
 0x36f   :  { %p13357_p6 = pnand %p13355_p5, %p13352_p4 }
 0x371   :  { %13360 = shalt.err (!%p13357_p6)
}
 0x372   :  { %s13361_s24 = scalar_lea.vmem %s14182_s29, 256  ;;  %p13366_p8 = scmp.lt.s32.totalorder %s14182_s29, %s14182_s29 }
 0x373   :  { %p13362_p7 = scmp.ne.s32.totalorder %s14182_s29, %s13361_s24  ;;  %p13367_p9 = scmp.lt.s32.totalorder %s13361_s24, %s13361_s24 }
 0x375   :  { %p13368_p10 = por %p13367_p9, %p13366_p8 }
 0x377   :  { %p13369_p11 = pnand %p13368_p10, %p13362_p7 }
 0x379   :  { %13372 = shalt.err (!%p13369_p11)
}
 0x37a   :  { %s15543_s10 = sld [smem:[#allocation130_spill]]  ;;  %s13655_s8 = smov [#allocation62]  }
 0x37b   :  { %559 = dma.hbm_to_vmem [thread:$0]  %s15542_s20, 256, %s14182_s29, [#allocation58], %s13622_s26, %s13622_s26, %s13623_s5  }
 0x37c   :  { %s575_s6 = sshll.u32 %s13655_s8, 4  ;;  %s13656_s11 = smov [#allocation65]   ;;  %s576_s6 = int_to_ptr.vmem [resolvable:$true] %s575_s6 }
 0x37d   :  { %s597_s15 = sshll.u32 %s13656_s11, 4  ;;  %s14203_s15 = int_to_ptr.vmem [resolvable:$true] %s597_s15 }
 0x380   :  { %s13373_s14 = scalar_lea.hbm %s15543_s10, 768 }
 0x381   :  { %p13374_p12 = scmp.ne.s32.totalorder %s15543_s10, %s13373_s14  ;;  %p13377_p13 = scmp.lt.u32.totalorder %s13373_s14, %s15543_s10 }
 0x383   :  { %p13379_p0 = pnand %p13377_p13, %p13374_p12 }
 0x385   :  { %13382 = shalt.err (!%p13379_p0)
}
 0x386   :  { %s13383_s16 = scalar_lea.vmem %s576_s6, 768  ;;  %p13388_p2 = scmp.lt.s32.totalorder %s576_s6, %s576_s6 }
 0x387   :  { %p13384_p1 = scmp.ne.s32.totalorder %s576_s6, %s13383_s16  ;;  %p13389_p3 = scmp.lt.s32.totalorder %s13383_s16, %s13383_s16 }
 0x389   :  { %p13390_p4 = por %p13389_p3, %p13388_p2 }
 0x38b   :  { %p13391_p5 = pnand %p13390_p4, %p13384_p1 }
 0x38d   :  { %13394 = shalt.err (!%p13391_p5)
}
 0x38e   :  { %s15544_s25 = sld [smem:[#allocation132_spill]] }
 0x38f   :  { %581 = dma.hbm_to_vmem [thread:$0]  %s15543_s10, 768, %s576_s6, [#allocation61], %s13622_s26, %s13622_s26, %s13623_s5  }
 0x394   :  { %s13395_s18 = scalar_lea.hbm %s15544_s25, 768 }
 0x395   :  { %p13396_p6 = scmp.ne.s32.totalorder %s15544_s25, %s13395_s18  ;;  %p13399_p7 = scmp.lt.u32.totalorder %s13395_s18, %s15544_s25 }
 0x397   :  { %p13401_p8 = pnand %p13399_p7, %p13396_p6 }
 0x399   :  { %13404 = shalt.err (!%p13401_p8)
}
 0x39a   :  { %s13405_s22 = scalar_lea.vmem %s14203_s15, 768  ;;  %p13410_p10 = scmp.lt.s32.totalorder %s14203_s15, %s14203_s15 }
 0x39b   :  { %p13406_p9 = scmp.ne.s32.totalorder %s14203_s15, %s13405_s22  ;;  %p13411_p11 = scmp.lt.s32.totalorder %s13405_s22, %s13405_s22 }
 0x39d   :  { %p13412_p12 = por %p13411_p11, %p13410_p10 }
 0x39f   :  { %p13413_p13 = pnand %p13412_p12, %p13406_p9 }
 0x3a1   :  { %13416 = shalt.err (!%p13413_p13)
}
 0x3a2   :  { %s15545_s3 = sld [smem:[#allocation135_spill]]  ;;  %s13657_s19 = smov [#allocation68]  }
 0x3a3   :  { %603 = dma.hbm_to_vmem [thread:$0]  %s15544_s25, 768, %s14203_s15, [#allocation64], %s13622_s26, %s13622_s26, %s13623_s5  }
 0x3a4   :  { %s622_s13 = sshll.u32 %s13657_s19, 4  ;;  %s13658_s23 = smov [#allocation69]   ;;  %s623_s13 = int_to_ptr.vmem [resolvable:$true] %s622_s13 }
 0x3a5   :  { %s636_s30 = sshll.u32 %s13658_s23, 4  ;;  %s637_s30 = int_to_ptr.vmem [resolvable:$true] %s636_s30 }
 0x3a8   :  { %s13417_s0 = scalar_lea.hbm %s15545_s3, 16 }
 0x3a9   :  { %p13418_p0 = scmp.ne.s32.totalorder %s15545_s3, %s13417_s0  ;;  %p13421_p1 = scmp.lt.u32.totalorder %s13417_s0, %s15545_s3 }
 0x3ab   :  { %p13423_p2 = pnand %p13421_p1, %p13418_p0 }
 0x3ad   :  { %13426 = shalt.err (!%p13423_p2)
}
 0x3ae   :  { %s13427_s17 = scalar_lea.vmem %s623_s13, 16  ;;  %s13431_s28 = scalar_lea.vmem %s623_s13, 32 }
 0x3af   :  { %p13428_p3 = scmp.ne.s32.totalorder %s623_s13, %s13427_s17  ;;  %p13432_p4 = scmp.lt.s32.totalorder %s623_s13, %s623_s13 }
 0x3b0   :  { %p13433_p5 = scmp.lt.s32.totalorder %s13431_s28, %s13427_s17 }
 0x3b2   :  { %p13434_p6 = por %p13433_p5, %p13432_p4 }
 0x3b4   :  { %p13435_p7 = pnand %p13434_p6, %p13428_p3 }
 0x3b6   :  { %13438 = shalt.err (!%p13435_p7)
}
 0x3b7   :  { %625 = dma.hbm_to_vmem [thread:$0]  %s15545_s3, 16, %s623_s13, [#allocation67]  }
 0x3b8   :  { %s13439_s26 = scalar_lea.hbm %s13939_s9, 16 }
 0x3b9   :  { %p13440_p8 = scmp.ne.s32.totalorder %s13939_s9, %s13439_s26  ;;  %p13443_p9 = scmp.lt.u32.totalorder %s13439_s26, %s13939_s9 }
 0x3bb   :  { %p13445_p10 = pnand %p13443_p9, %p13440_p8 }
 0x3bd   :  { %13448 = shalt.err (!%p13445_p10)
}
 0x3be   :  { %s13449_s5 = scalar_lea.vmem %s637_s30, 16  ;;  %s13453_s1 = scalar_lea.vmem %s637_s30, 32 }
 0x3bf   :  { %p13450_p11 = scmp.ne.s32.totalorder %s637_s30, %s13449_s5  ;;  %p13454_p12 = scmp.lt.s32.totalorder %s637_s30, %s637_s30 }
 0x3c0   :  { %p13455_p13 = scmp.lt.s32.totalorder %s13453_s1, %s13449_s5 }
 0x3c2   :  { %p13456_p0 = por %p13455_p13, %p13454_p12 }
 0x3c4   :  { %p13457_p1 = pnand %p13456_p0, %p13450_p11 }
 0x3c6   :  { %13460 = shalt.err (!%p13457_p1)
}
 0x3c7   :  { %639 = dma.hbm_to_vmem [thread:$0]  %s13939_s9, 16, %s637_s30, [#allocation70]  }
 0x3c8   :  { %13505 = dma.done.wait [#allocation4], 96  }
 0x3c9   :  { %13506 = vsyncadd [#allocation4], 4294967200 }
 0x3ca   :  { %13507 = dma.done.wait [#allocation7], 32  }
 0x3cb   :  { %13508 = vsyncadd [#allocation7], 4294967264 }
 0x3cc   :  { %13509 = dma.done.wait [#allocation10], 272  }
 0x3cd   :  { %13510 = vsyncadd [#allocation10], 4294967024 }
 0x3ce   :  { %13511 = dma.done.wait [#allocation13], 784  }
 0x3cf   :  { %13512 = vsyncadd [#allocation13], 4294966512 }
 0x3d0   :  { %13513 = dma.done.wait [#allocation16], 272  }
 0x3d1   :  { %13514 = vsyncadd [#allocation16], 4294967024 }
 0x3d2   :  { %13515 = dma.done.wait [#allocation19], 32  }
 0x3d3   :  { %13516 = vsyncadd [#allocation19], 4294967264 }
 0x3d4   :  { %13517 = dma.done.wait [#allocation22], 272  }
 0x3d5   :  { %13518 = vsyncadd [#allocation22], 4294967024 }
 0x3d6   :  { %13519 = dma.done.wait [#allocation25], 784  }
 0x3d7   :  { %13520 = vsyncadd [#allocation25], 4294966512 }
 0x3d8   :  { %13521 = dma.done.wait [#allocation28], 272  }
 0x3d9   :  { %13522 = vsyncadd [#allocation28], 4294967024 }
 0x3da   :  { %13523 = dma.done.wait [#allocation31], 32  }
 0x3db   :  { %13524 = vsyncadd [#allocation31], 4294967264 }
 0x3dc   :  { %13525 = dma.done.wait [#allocation34], 784  }
 0x3dd   :  { %13526 = vsyncadd [#allocation34], 4294966512 }
 0x3de   :  { %13527 = dma.done.wait [#allocation37], 784  }
 0x3df   :  { %13528 = vsyncadd [#allocation37], 4294966512 }
 0x3e0   :  { %13529 = dma.done.wait [#allocation40], 272  }
 0x3e1   :  { %13530 = vsyncadd [#allocation40], 4294967024 }
 0x3e2   :  { %13531 = dma.done.wait [#allocation43], 784  }
 0x3e3   :  { %13532 = vsyncadd [#allocation43], 4294966512 }
 0x3e4   :  { %13533 = dma.done.wait [#allocation46], 272  }
 0x3e5   :  { %13534 = vsyncadd [#allocation46], 4294967024 }
 0x3e6   :  { %13535 = dma.done.wait [#allocation49], 784  }
 0x3e7   :  { %13536 = vsyncadd [#allocation49], 4294966512 }
 0x3e8   :  { %13537 = dma.done.wait [#allocation52], 272  }
 0x3e9   :  { %13538 = vsyncadd [#allocation52], 4294967024 }
 0x3ea   :  { %13539 = dma.done.wait [#allocation55], 784  }
 0x3eb   :  { %13540 = vsyncadd [#allocation55], 4294966512 }
 0x3ec   :  { %13541 = dma.done.wait [#allocation58], 272  }
 0x3ed   :  { %13542 = vsyncadd [#allocation58], 4294967024 }
 0x3ee   :  { %13543 = dma.done.wait [#allocation61], 784  }
 0x3ef   :  { %13544 = vsyncadd [#allocation61], 4294966512 }
 0x3f0   :  { %13545 = dma.done.wait [#allocation64], 784  }
 0x3f1   :  { %13546 = vsyncadd [#allocation64], 4294966512 }
 0x3f2   :  { %13547 = dma.done.wait [#allocation67], 32  }
 0x3f3   :  { %13548 = vsyncadd [#allocation67], 4294967264 }
 0x3f4   :  { %13549 = dma.done.wait [#allocation70], 16  }
 0x3f5   :  { %13550 = vsyncadd [#allocation70], 4294967280  ;;  %vm807_vm0 = vcmask 1040384   ;;  %v13659_v0 = vmov 0.0   ;;  %s15546_s9 = sld [smem:[#allocation99_spill]]  ;;  %vm788_vm1 = vcmask 261120  }
 0x3f6   :  { %11033 = vmatprep.subr.bf16.mxu0 %v13659_v0  ;;  %11039 = vmatprep.subr.bf16.mxu1 %v13659_v0  ;;  %vm808_vm2 = vcmask 1041408   ;;  %v13660_v1 = vmov 65535   ;;  %vm13661_vm3 = vmmov 0   ;;  %789 = vst.msk [vmem:[#allocation2] sm:$0xff] %vm788_vm1, %v13659_v0  ;;  %790 = vst.msk [vmem:[#allocation2 + $0x8] sm:$0xff] %vm788_vm1, %v13659_v0  ;;  %vm792_vm4 = vcmask 23552  }
 0x3f7   :  { %v809_v2 = vsel %vm807_vm0, 4294967295, %v13660_v1  ;;  %11035 = vmatprep.mubr.msk.bf16.mxu0 %vm13661_vm3, %v13659_v0  ;;  %11041 = vmatprep.mubr.msk.bf16.mxu1 %vm13661_vm3, %v13659_v0  ;;  %791 = vst.msk [vmem:[#allocation2 + $0x10] sm:$0xff] %vm788_vm1, %v13659_v0  ;;  %v803_v4 = vld [vmem:[#allocation3 + $0x2] sm:$0x3]  ;;  %v798_v5 = vld [vmem:[#allocation3] sm:$0x3] }
 0x3f8   :  { %v14244_v3 = vsel %vm808_vm2, %v809_v2, 0  ;;  %v906_v10 = vld [vmem:[#allocation3 + $0x4] sm:$0x3]  ;;  %s15547_s29 = sld [smem:[#allocation101_spill]]  ;;  %v10066_v36 = vld [vmem:[#allocation6] ss:$0 sm:$0xff] }
 0x3f9   :  { %v812_v7 = vand.u32 %v14244_v3, %v803_v4  ;;  %v859_v8 = vand.u32 %v14244_v3, %v798_v5  ;;  %v911_v16 = vand.u32 %v906_v10, %v14244_v3  ;;  %v13662_v62 = vmov 0.0|0.0   ;;  %s15548_s2 = sld [smem:[#allocation103_spill]]  ;;  %s15551_s27 = sld [smem:[#allocation107_spill]] }
 0x3fa   :  { %vm1252_vm5 = vcmask 1046528   ;;  %vm13663_vm6 = vmmov 1   ;;  %vm1248_vm9 = vcmask 121856   ;;  %s15552_s20 = sld [smem:[#allocation109_spill]]  ;;  %vm2123_vm10 = vcmask 56320   ;;  %s15553_s7 = sld [smem:[#allocation113_spill]] }
 0x3fb   :  { %v786_v6 = vld [vmem:[%s15546_s9] sm:$0xff]  ;;  %v787_v9 = vld [vmem:[%s15546_s9 + $0x8] sm:$0xff]  ;;  %11034 = vmatpush3.bf16.msra.mxu0 %v812_v7  ;;  %11040 = vmatpush3.bf16.msra.mxu1 %v859_v8  ;;  %vm14337_vm7 = vmpackc.low %vm1252_vm5, %vm13663_vm6  ;;  %vm2203_vm11 = vcmask 257024   ;;  %s15554_s24 = sld [smem:[#allocation137_spill]]  ;;  %s15555_s10 = sld [smem:[#allocation136_spill]]  ;;  %vm3020_vm12 = vcmask 519168  }
 0x3fc   :  { %793 = vst.msk [vmem:[#allocation2 + $0x1] sm:$0xff] %vm792_vm4, %v786_v6  ;;  %794 = vst.msk [vmem:[#allocation2 + $0x9] sm:$0xff] %vm792_vm4, %v787_v9  ;;  %11045 = vmatprep.subr.bf16.mxu0 %v13659_v0  ;;  %11051 = vmatprep.subr.bf16.mxu1 %v13659_v0  ;;  %vm3044_vm15 = vcmask 523264   ;;  %s15556_s8 = sld [smem:[#allocation120_spill]]  ;;  %s15557_s6 = sld [smem:[#allocation134_spill]] }
 0x3fd   :  { %s13664_s11 = smov [#allocation71]   ;;  %s13665_s14 = smov [#allocation72]  }
 0x3fe   :  { %v12256_v21 = vld [vmem:[%s15547_s29 + $0x10] sm:$0xff]   ;;  %v12257_v22 = vld [vmem:[%s15547_s29] sm:$0xff]   ;;  %v12258_v23 = vld [vmem:[%s15547_s29 + $0x18] sm:$0xff]   ;;  %s9960_s15 = sshll.u32 %s13664_s11, 4  ;;  %s9970_s16 = sshll.u32 %s13665_s14, 4  ;;  %s9961_s15 = int_to_ptr.vmem [resolvable:$true] %s9960_s15  ;;  %s9971_s16 = int_to_ptr.vmem [resolvable:$true] %s9970_s16 }
 0x3ff   :  { %v12259_v24 = vld [vmem:[%s15547_s29 + $0x8] sm:$0xff]   ;;  %v12260_v46 = vld [vmem:[%s15547_s29 + $0x20] sm:$0xff]   ;;  %v12261_v49 = vld [vmem:[%s15547_s29 + $0x30] sm:$0xff]   ;;  %s13461_s25 = scalar_lea.vmem %s9961_s15, 16  ;;  %s13465_s18 = scalar_lea.vmem %s9961_s15, 32 }
 0x400   :  { %v12262_v58 = vld [vmem:[%s15547_s29 + $0x28] sm:$0xff]   ;;  %v12263_v59 = vld [vmem:[%s15547_s29 + $0x38] sm:$0xff]   ;;  %p13462_p2 = scmp.ne.s32.totalorder %s9961_s15, %s13461_s25  ;;  %p13466_p3 = scmp.lt.s32.totalorder %s9961_s15, %s9961_s15 }
 0x401   :  { %p13467_p4 = scmp.lt.s32.totalorder %s13465_s18, %s13461_s25 }
 0x403   :  { %v799_v11 = vld [vmem:[#allocation2 + $0x1] sm:$0xff]  ;;  %v800_v13 = vld [vmem:[#allocation2 + $0x9] sm:$0xff]  ;;  %p13468_p5 = por %p13467_p4, %p13466_p3 }
 0x404   :  { %v795_v12 = vld [vmem:[#allocation2] sm:$0xff]  ;;  %v903_v15 = vld [vmem:[#allocation2 + $0xa] sm:$0xff]  ;;  %v801_v17 = vpack.c.bf16 %v800_v13, %v799_v11  ;;  %v1240_v11 = vlaneseq }
 0x405   :  { %v902_v14 = vld [vmem:[#allocation2 + $0x2] sm:$0xff]  ;;  %969 = vst.msk [vmem:[#allocation2 + $0x10] sm:$0xff] %vm788_vm1, %v13659_v0  ;;  %p13469_p6 = pnand %p13468_p5, %p13462_p2 }
 0x406   :  { %v796_v18 = vld [vmem:[#allocation2 + $0x8] sm:$0xff]  ;;  %967 = vst.msk [vmem:[#allocation2] sm:$0xff] %vm788_vm1, %v13659_v0  ;;  %11036 = vmatmul.mubr.msk.bf16.vlgmr.msra.gmra.mrb[0].mxu0 %vm792_vm4, %v801_v17  ;;  %v904_v20 = vpack.c.bf16 %v903_v15, %v902_v14  ;;  %v14331_v13 = vshrl.u32 %v1240_v11, 7 }
 0x407   :  { %v797_v19 = vpack.c.bf16 %v796_v18, %v795_v12  ;;  %968 = vst.msk [vmem:[#allocation2 + $0x8] sm:$0xff] %vm788_vm1, %v13659_v0  ;;  %11046 = vmatpush3.bf16.msra.mxu0 %v911_v16  ;;  %11047 = vmatprep.mubr.msk.bf16.mxu0 %vm13661_vm3, %v13659_v0 }
 0x408   :  { %11059 = vmatprep.subr.bf16.mxu0 %v13659_v0 }
 0x409   :  { %11042 = vmatmul.mubr.msk.bf16.vlgmr.msra.gmra.mrb[0].mxu1 %vm792_vm4, %v797_v19 }
 0x40a   :  { %11055 = vmatprep.mubr.msk.bf16.mxu1 %vm13661_vm3, %v13659_v0  ;;  %11052 = vmatpush3.bf16.msra.mxu1 %v12256_v21 }
 0x40b   :  { %11053 = vmatprep.subr.bf16.mxu1 %v13659_v0 }
 0x40e   :  { %11048 = vmatmul.mubr.msk.bf16.vlgmr.msra.gmra.mrb[4].mxu0 %vm792_vm4, %v904_v20  ;;  %11054 = vmatpush3.bf16.msra.mxu1 %v12258_v23  ;;  %v10091_v23 = vld [vmem:[#allocation8] ss:$0 sm:$0xff] }
 0x40f   :  { %11063 = vmatprep.mubr.msk.bf16.mxu0 %vm13661_vm3, %v13659_v0  ;;  %11060 = vmatpush3.bf16.msra.mxu0 %v12257_v22 }
 0x410   :  { %11061 = vmatprep.subr.bf16.mxu0 %v13659_v0  ;;  %11067 = vmatprep.subr.bf16.mxu1 %v13659_v0 }
 0x413   :  { %11062 = vmatpush3.bf16.msra.mxu0 %v12259_v24 }
 0x414   :  { %11075 = vmatprep.subr.bf16.mxu0 %v13659_v0 }
 0x4d9   :  { %v848_v25 = vpop.f32.mrb[0].mxu0 }
 0x4da   :  { %v11037_v27 = vpop.f32.mrb[1].mxu0 }
 0x4db   :  { %v851_v30 = vpop.f32.mrb[2].mxu0 }
 0x4dc   :  { %v895_v26 = vpop.f32.mrb[0].mxu1  ;;  %v11038_v32 = vpop.f32.mrb[3].mxu0 }
 0x4dd   :  { %v896_v28 = vadd.f32 %v895_v26, %v848_v25  ;;  %v11043_v29 = vpop.f32.mrb[1].mxu1  ;;  %v14333_v25 = vand.u32 127, %v1240_v11  ;;  %v1244_v26 = vmul.u32 2, %v14331_v13  ;;  %v10113_v11 = vld [vmem:[#allocation12] ss:$0 sm:$0xff] }
 0x4de   :  { %v898_v31 = vpop.f32.mrb[2].mxu1 }
 0x4df   :  { %v899_v33 = vadd.f32 %v898_v31, %v851_v30  ;;  %v11044_v34 = vpop.f32.mrb[3].mxu1  ;;  %vm1245_vm8 = vcmp.eq.s32.totalorder %v14333_v25, %v1244_v26 }
 0x4e0   :  { %v14345_v32 = vsel %vm1245_vm8, 1.0, %v13659_v0  ;;  %v12265_v34 = vld [vmem:[%s15548_s2] sm:$0xff]  }
 0x4e1   :  { %v947_v35 = vpop.f32.mrb[4].mxu0 }
 0x4e2   :  { %v954_v37 = vadd.f32 %v947_v35, %v896_v28  ;;  %v11049_v38 = vpop.f32.mrb[5].mxu0  ;;  %v12266_v35 = vld [vmem:[%s15548_s2 + $0x18] sm:$0xff]  }
 0x4e3   :  { %v950_v39 = vpop.f32.mrb[6].mxu0 }
 0x4e4   :  { %v963_v40 = vadd.f32 %v10066_v36, %v954_v37  ;;  %v955_v41 = vadd.f32 %v950_v39, %v899_v33  ;;  %v11050_v42 = vpop.f32.mrb[7].mxu0  ;;  %v12264_v33 = vld [vmem:[%s15548_s2 + $0x10] sm:$0xff]  }
 0x4e6   :  { %v965_v43 = vmax.f32 %v963_v40, 0.0  ;;  %v964_v44 = vadd.f32 %v10066_v36, %v955_v41  ;;  %v12267_v36 = vld [vmem:[%s15548_s2 + $0x8] sm:$0xff]   ;;  %v12268_v40 = vld [vmem:[%s15548_s2 + $0x20] sm:$0xff]  }
 0x4e8   :  { %970 = vst.msk [vmem:[#allocation2 + $0x1] sm:$0xff] %vm788_vm1, %v965_v43  ;;  %v966_v45 = vmax.f32 %v964_v44, 0.0 }
 0x4ea   :  { %971 = vst.msk [vmem:[#allocation2 + $0x9] sm:$0xff] %vm788_vm1, %v966_v45 }
 0x4ef   :  { %v979_v47 = vld [vmem:[#allocation2 + $0x1] sm:$0xff] }
 0x4f0   :  { %v972_v48 = vld [vmem:[#allocation2] sm:$0xff] }
 0x4f1   :  { %v980_v50 = vld [vmem:[#allocation2 + $0x9] sm:$0x7f] }
 0x4f2   :  { %v1099_v51 = vld [vmem:[#allocation2 + $0x2] sm:$0xff]  ;;  %v1100_v52 = vld [vmem:[#allocation2 + $0xa] sm:$0x7f]  ;;  %v981_v54 = vpack.c.bf16 %v980_v50, %v979_v47 }
 0x4f3   :  { %v1166_v53 = vld [vmem:[#allocation2 + $0xb] sm:$0x7f]  ;;  %v1165_v56 = vld [vmem:[#allocation2 + $0x3] sm:$0xff]  ;;  %v1101_v60 = vpack.c.bf16 %v1100_v52, %v1099_v51 }
 0x4f4   :  { %v973_v55 = vld [vmem:[#allocation2 + $0x8] sm:$0x7f]  ;;  %1329 = vst.msk [vmem:[#allocation2 + $0x10] sm:$0xff] %vm788_vm1, %v13659_v0  ;;  %1327 = vst.msk [vmem:[#allocation2] sm:$0xff] %vm788_vm1, %v13659_v0  ;;  %11056 = vmatmul.mubr.msk.bf16.vlgmr.msra.gmra.mrb[4].mxu1 %vm788_vm1, %v981_v54  ;;  %v1167_v61 = vpack.c.bf16 %v1166_v53, %v1165_v56 }
 0x4f5   :  { %v974_v57 = vpack.c.bf16 %v973_v55, %v972_v48  ;;  %1328 = vst.msk [vmem:[#allocation2 + $0x8] sm:$0xff] %vm788_vm1, %v13659_v0  ;;  %1597 = vst.msk [vmem:[#allocation2 + $0x10] sm:$0xff] %vm788_vm1, %v13659_v0  ;;  %11068 = vmatpush3.bf16.msra.mxu1 %v12260_v46  ;;  %11071 = vmatprep.mubr.msk.bf16.mxu1 %vm13661_vm3, %v13659_v0  ;;  %v12269_v46 = vld [vmem:[%s15548_s2 + $0x28] sm:$0xff]   ;;  %v12270_v48 = vld [vmem:[#allocation11] sm:$0xff]  }
 0x4f6   :  { %1864 = vst.msk [vmem:[#allocation2 + $0x10] sm:$0xff] %vm788_vm1, %v13659_v0  ;;  %11069 = vmatprep.subr.bf16.mxu1 %v13659_v0 }
 0x4f7   :  { %11064 = vmatmul.mubr.msk.bf16.vlgmr.msra.gmra.mrb[8].mxu0 %vm788_vm1, %v974_v57  ;;  %2202 = vst.msk [vmem:[#allocation2 + $0x10] sm:$0xff] %vm788_vm1, %v13659_v0 }
 0x4f8   :  { %11076 = vmatpush3.bf16.msra.mxu0 %v12261_v49  ;;  %2471 = vst.msk [vmem:[#allocation2 + $0x10] sm:$0xff] %vm788_vm1, %v13659_v0  ;;  %11079 = vmatprep.mubr.msk.bf16.mxu0 %vm13661_vm3, %v13659_v0  ;;  %v12271_v49 = vld [vmem:[#allocation11 + $0x8] sm:$0xff]  }
 0x4f9   :  { %11077 = vmatprep.subr.bf16.mxu0 %v13659_v0  ;;  %2738 = vst.msk [vmem:[#allocation2 + $0x10] sm:$0xff] %vm788_vm1, %v13659_v0  ;;  %11070 = vmatpush3.bf16.msra.mxu1 %v12262_v58 }
 0x4fa   :  { %3142 = vst.msk [vmem:[#allocation2 + $0x10] sm:$0xff] %vm788_vm1, %v13659_v0  ;;  %12101 = vmatprep.subr.bf16.mxu1 %v13662_v62 }
 0x4fb   :  { %3342 = vst.msk [vmem:[#allocation2 + $0x10] sm:$0xff] %vm788_vm1, %v13659_v0 }
 0x4fc   :  { %11078 = vmatpush3.bf16.msra.mxu0 %v12263_v59  ;;  %3610 = vst.msk [vmem:[#allocation2 + $0x10] sm:$0xff] %vm788_vm1, %v13659_v0  ;;  %11072 = vmatmul.mubr.msk.bf16.vlgmr.msra.gmra.mrb[8].mxu1 %vm788_vm1, %v1101_v60  ;;  %v10112_v60 = vld [vmem:[#allocation9] ss:$0 sm:$0xff] }
 0x4fd   :  { %11090 = vmatprep.subr.bf16.mxu0 %v13659_v0  ;;  %3961 = vst.msk [vmem:[#allocation2 + $0x10] sm:$0xff] %vm788_vm1, %v13659_v0  ;;  %11087 = vmatprep.mubr.msk.f32.mxu1 %vm13661_vm3, %v13659_v0 }
 0x4fe   :  { %4160 = vst.msk [vmem:[#allocation2 + $0x10] sm:$0xff] %vm788_vm1, %v13659_v0 }
 0x4ff   :  { %11080 = vmatmul.mubr.msk.bf16.vlgmr.msra.gmra.mrb[12].mxu0 %vm788_vm1, %v1167_v61  ;;  %4428 = vst.msk [vmem:[#allocation2 + $0x10] sm:$0xff] %vm788_vm1, %v13659_v0 }
 0x500   :  { %11094 = vmatprep.mubr.msk.bf16.mxu0 %vm13661_vm3, %v13659_v0  ;;  %4782 = vst.msk [vmem:[#allocation2 + $0x10] sm:$0xff] %vm788_vm1, %v13659_v0  ;;  %11091 = vmatpush3.bf16.msra.mxu0 %v12264_v33 }
 0x501   :  { %11092 = vmatprep.subr.bf16.mxu0 %v13659_v0 }
 0x504   :  { %11093 = vmatpush3.bf16.msra.mxu0 %v12266_v35 }
 0x505   :  { %11106 = vmatprep.subr.bf16.mxu0 %v13659_v0 }
 0x5c7   :  { %v1036_v63 = vpop.f32.mrb[4].mxu1 }
 0x5c8   :  { %v11057_v2 = vpop.f32.mrb[5].mxu1 }
 0x5c9   :  { %v1039_v6 = vpop.f32.mrb[6].mxu1 }
 0x5ca   :  { %v1092_v1 = vpop.f32.mrb[8].mxu0  ;;  %v11058_v8 = vpop.f32.mrb[7].mxu1 }
 0x5cb   :  { %v1093_v4 = vadd.f32 %v1092_v1, %v1036_v63  ;;  %v11065_v5 = vpop.f32.mrb[9].mxu0  ;;  %v12273_v8 = vld [vmem:[#allocation14] sm:$0xff]  }
 0x5cc   :  { %v1095_v7 = vpop.f32.mrb[10].mxu0 }
 0x5cd   :  { %v1096_v9 = vadd.f32 %v1095_v7, %v1039_v6  ;;  %v11066_v10 = vpop.f32.mrb[11].mxu0  ;;  %v12272_v7 = vld [vmem:[#allocation14 + $0x10] sm:$0xff]  }
 0x5ce   :  { %v12275_v10 = vld [vmem:[#allocation14 + $0x8] sm:$0xff]  }
 0x5cf   :  { %v1156_v12 = vpop.f32.mrb[8].mxu1 }
 0x5d0   :  { %v1163_v14 = vadd.f32 %v1156_v12, %v1093_v4  ;;  %v11073_v16 = vpop.f32.mrb[9].mxu1 }
 0x5d1   :  { %v1159_v18 = vpop.f32.mrb[10].mxu1 }
 0x5d2   :  { %v1222_v15 = vpop.f32.mrb[12].mxu0  ;;  %v1164_v20 = vadd.f32 %v1159_v18, %v1096_v9  ;;  %v11074_v22 = vpop.f32.mrb[11].mxu1  ;;  %v12274_v9 = vld [vmem:[#allocation14 + $0x18] sm:$0xff]  }
 0x5d3   :  { %v11081_v17 = vpop.f32.mrb[13].mxu0  ;;  %v1229_v19 = vadd.f32 %v1222_v15, %v1163_v14 }
 0x5d4   :  { %v1225_v21 = vpop.f32.mrb[14].mxu0 }
 0x5d5   :  { %v11082_v24 = vpop.f32.mrb[15].mxu0  ;;  %v1230_v27 = vadd.f32 %v1225_v21, %v1164_v20  ;;  %v1238_v28 = vadd.f32 %v10091_v23, %v1229_v19  ;;  %v12276_v20 = vld [vmem:[#allocation14 + $0x20] sm:$0xff]  }
 0x5d7   :  { %v1239_v29 = vadd.f32 %v10091_v23, %v1230_v27  ;;  %v12277_v27 = vld [vmem:[#allocation14 + $0x28] sm:$0xff]  }
 0x5d9   :  { %v12102_v31 = vpack.c.bf16 %v1239_v29, %v1238_v28  ;;  %v12278_v29 = vld [vmem:[#allocation17] sm:$0xff]  }
 0x5db   :  { %12104 = vmatpush3.bf16.msk.msra.mxu1 %vm14337_vm7, %v12102_v31  ;;  %v12279_v31 = vld [vmem:[#allocation17 + $0x8] sm:$0xff]  }
 0x5dc   :  { %11098 = vmatprep.subr.bf16.mxu1 %v13659_v0 }
 0x5de   :  { %11088 = vmatmul.mubr.msk.f32.vlgmr.msra.gmra.mrb[12].mxu1 %vm1248_vm9, %v14345_v32 }
 0x5df   :  { %11102 = vmatprep.mubr.msk.bf16.mxu1 %vm13661_vm3, %v13659_v0  ;;  %11099 = vmatpush3.bf16.msra.mxu1 %v12265_v34 }
 0x5e0   :  { %11100 = vmatprep.subr.bf16.mxu1 %v13659_v0 }
 0x5e3   :  { %11101 = vmatpush3.bf16.msra.mxu1 %v12267_v36 }
 0x5e4   :  { %11114 = vmatprep.subr.bf16.mxu1 %v13659_v0 }
 0x6b1   :  { %v14360_v37 = vpop.f32.mrb[12].mxu1 }
 0x6b2   :  { %v1326_v38 = vmax.f32 %v14360_v37, 0.0  ;;  %v11089_v39 = vpop.f32.mrb[13].mxu1 }
 0x6b4   :  { %1330 = vst.msk [vmem:[#allocation2 + $0x3] sm:$0xff] %vm788_vm1, %v1326_v38 }
 0x6bb   :  { %v1337_v41 = vld [vmem:[#allocation2 + $0x3] sm:$0xff] }
 0x6bc   :  { %v1454_v42 = vld [vmem:[#allocation2 + $0x6] sm:$0xff]  ;;  %v1338_v44 = vpack.c.bf16 %v1337_v41, %v1337_v41 }
 0x6bd   :  { %v1331_v43 = vld [vmem:[#allocation2] sm:$0xff]  ;;  %1596 = vst.msk [vmem:[#allocation2 + $0x8] sm:$0xff] %vm788_vm1, %v13659_v0  ;;  %v1455_v47 = vpack.c.bf16 %v1454_v42, %v1454_v42 }
 0x6be   :  { %v1332_v45 = vpack.c.bf16 %v1331_v43, %v1331_v43  ;;  %1595 = vst.msk [vmem:[#allocation2] sm:$0xff] %vm788_vm1, %v13659_v0  ;;  %11095 = vmatmul.mubr.msk.bf16.vlgmr.msra.gmra.mrb[16].mxu0 %vm788_vm1, %v1338_v44  ;;  %v10126_v43 = vld [vmem:[#allocation15] ss:$0 sm:$0xff] }
 0x6bf   :  { %11107 = vmatpush3.bf16.msra.mxu0 %v12268_v40  ;;  %11110 = vmatprep.mubr.msk.bf16.mxu0 %vm13661_vm3, %v13659_v0 }
 0x6c0   :  { %11103 = vmatmul.mubr.msk.bf16.vlgmr.msra.gmra.mrb[16].mxu1 %vm788_vm1, %v1332_v45  ;;  %11108 = vmatprep.subr.bf16.mxu0 %v13659_v0 }
 0x6c1   :  { %11118 = vmatprep.mubr.msk.bf16.mxu1 %vm13661_vm3, %v13659_v0  ;;  %11115 = vmatpush3.bf16.msra.mxu1 %v12270_v48 }
 0x6c2   :  { %11116 = vmatprep.subr.bf16.mxu1 %v13659_v0 }
 0x6c3   :  { %11109 = vmatpush3.bf16.msra.mxu0 %v12269_v46 }
 0x6c4   :  { %11122 = vmatprep.subr.bf16.mxu0 %v13659_v0 }
 0x6c5   :  { %11117 = vmatpush3.bf16.msra.mxu1 %v12271_v49 }
 0x6c6   :  { %11111 = vmatmul.mubr.msk.bf16.vlgmr.msra.gmra.mrb[20].mxu0 %vm788_vm1, %v1455_v47  ;;  %11130 = vmatprep.subr.bf16.mxu1 %v13659_v0 }
 0x6c7   :  { %11126 = vmatprep.mubr.msk.bf16.mxu0 %vm13661_vm3, %v13659_v0  ;;  %11123 = vmatpush3.bf16.msra.mxu0 %v12272_v7  ;;  %v12285_v7 = vld [vmem:[%s15551_s27 + $0x30] sm:$0xff]  }
 0x6c8   :  { %11124 = vmatprep.subr.bf16.mxu0 %v13659_v0 }
 0x6cb   :  { %11125 = vmatpush3.bf16.msra.mxu0 %v12274_v9  ;;  %v12286_v9 = vld [vmem:[%s15551_s27 + $0x28] sm:$0xff]  }
 0x6cc   :  { %11138 = vmatprep.subr.bf16.mxu0 %v13659_v0 }
 0x791   :  { %v1393_v50 = vpop.f32.mrb[16].mxu0 }
 0x792   :  { %v11096_v53 = vpop.f32.mrb[17].mxu0 }
 0x793   :  { %v1448_v51 = vpop.f32.mrb[16].mxu1  ;;  %v1396_v55 = vpop.f32.mrb[18].mxu0  ;;  %v12282_v53 = vld [vmem:[%s15551_s27 + $0x18] sm:$0xff]  }
 0x794   :  { %v1449_v52 = vadd.f32 %v1448_v51, %v1393_v50  ;;  %v11104_v54 = vpop.f32.mrb[17].mxu1  ;;  %v11097_v57 = vpop.f32.mrb[19].mxu0  ;;  %v12280_v51 = vld [vmem:[%s15551_s27 + $0x10] sm:$0xff]   ;;  %v10127_v55 = vld [vmem:[#allocation18] ss:$0 sm:$0xff] }
 0x795   :  { %v1451_v56 = vpop.f32.mrb[18].mxu1  ;;  %v12283_v54 = vld [vmem:[%s15551_s27 + $0x8] sm:$0xff]  }
 0x796   :  { %v11105_v58 = vpop.f32.mrb[19].mxu1 }
 0x799   :  { %v1510_v59 = vpop.f32.mrb[20].mxu0 }
 0x79a   :  { %v1516_v61 = vadd.f32 %v1510_v59, %v1449_v52  ;;  %v11112_v63 = vpop.f32.mrb[21].mxu0  ;;  %v12281_v52 = vld [vmem:[%s15551_s27] sm:$0xff]  }
 0x79b   :  { %v1513_v1 = vpop.f32.mrb[22].mxu0  ;;  %v12284_v63 = vld [vmem:[%s15551_s27 + $0x20] sm:$0xff]  }
 0x79c   :  { %v1524_v2 = vadd.f32 %v10112_v60, %v1516_v61  ;;  %v11113_v4 = vpop.f32.mrb[23].mxu0 }
 0x79e   :  { %v1525_v5 = vmax.f32 %v1524_v2, 0.0 }
 0x7a0   :  { %v1526_v6 = vpack.c.bf16 %v1525_v5, %v1525_v5 }
 0x7a2   :  { %11119 = vmatmul.mubr.msk.bf16.vlgmr.msra.gmra.mrb[20].mxu1 %vm788_vm1, %v1526_v6 }
 0x7a3   :  { %11134 = vmatprep.mubr.msk.bf16.mxu1 %vm13661_vm3, %v13659_v0  ;;  %11131 = vmatpush3.bf16.msra.mxu1 %v12273_v8 }
 0x7a4   :  { %11132 = vmatprep.subr.bf16.mxu1 %v13659_v0 }
 0x7a7   :  { %11133 = vmatpush3.bf16.msra.mxu1 %v12275_v10  ;;  %v12287_v10 = vld [vmem:[%s15551_s27 + $0x38] sm:$0xff]  }
 0x7a8   :  { %11146 = vmatprep.subr.bf16.mxu1 %v13659_v0 }
 0x875   :  { %v1587_v12 = vpop.f32.mrb[20].mxu1 }
 0x876   :  { %v1588_v14 = vadd.f32 %v10113_v11, %v1587_v12  ;;  %v11120_v15 = vpop.f32.mrb[21].mxu1 }
 0x877   :  { %v1590_v16 = vpop.f32.mrb[22].mxu1 }
 0x878   :  { %v14391_v17 = vadd.f32 %v1588_v14, %v14360_v37  ;;  %v11121_v18 = vpop.f32.mrb[23].mxu1 }
 0x87a   :  { %v1594_v19 = vmax.f32 %v14391_v17, 0.0 }
 0x87c   :  { %1598 = vst.msk [vmem:[#allocation2 + $0x1] sm:$0xff] %vm788_vm1, %v1594_v19 }
 0x883   :  { %v1605_v21 = vld [vmem:[#allocation2 + $0x1] sm:$0xff] }
 0x884   :  { %v1722_v22 = vld [vmem:[#allocation2 + $0x2] sm:$0xff]  ;;  %v1606_v24 = vpack.c.bf16 %v1605_v21, %v1605_v21 }
 0x885   :  { %v1599_v23 = vld [vmem:[#allocation2] sm:$0xff]  ;;  %1863 = vst.msk [vmem:[#allocation2 + $0x8] sm:$0xff] %vm788_vm1, %v13659_v0  ;;  %v1723_v28 = vpack.c.bf16 %v1722_v22, %v1722_v22 }
 0x886   :  { %v1600_v26 = vpack.c.bf16 %v1599_v23, %v1599_v23  ;;  %1862 = vst.msk [vmem:[#allocation2] sm:$0xff] %vm788_vm1, %v13659_v0  ;;  %11127 = vmatmul.mubr.msk.bf16.vlgmr.msra.gmra.mrb[24].mxu0 %vm788_vm1, %v1606_v24 }
 0x887   :  { %11139 = vmatpush3.bf16.msra.mxu0 %v12276_v20  ;;  %11142 = vmatprep.mubr.msk.bf16.mxu0 %vm13661_vm3, %v13659_v0 }
 0x888   :  { %11135 = vmatmul.mubr.msk.bf16.vlgmr.msra.gmra.mrb[24].mxu1 %vm788_vm1, %v1600_v26  ;;  %11140 = vmatprep.subr.bf16.mxu0 %v13659_v0 }
 0x889   :  { %11150 = vmatprep.mubr.msk.bf16.mxu1 %vm13661_vm3, %v13659_v0  ;;  %11147 = vmatpush3.bf16.msra.mxu1 %v12278_v29 }
 0x88a   :  { %11148 = vmatprep.subr.bf16.mxu1 %v13659_v0 }
 0x88b   :  { %11141 = vmatpush3.bf16.msra.mxu0 %v12277_v27 }
 0x88c   :  { %11154 = vmatprep.subr.bf16.mxu0 %v13659_v0 }
 0x88d   :  { %11149 = vmatpush3.bf16.msra.mxu1 %v12279_v31 }
 0x88e   :  { %11143 = vmatmul.mubr.msk.bf16.vlgmr.msra.gmra.mrb[28].mxu0 %vm788_vm1, %v1723_v28  ;;  %11162 = vmatprep.subr.bf16.mxu1 %v13659_v0  ;;  %v10155_v28 = vld [vmem:[#allocation20] ss:$0 sm:$0xff] }
 0x88f   :  { %11158 = vmatprep.mubr.msk.bf16.mxu0 %vm13661_vm3, %v13659_v0  ;;  %11155 = vmatpush3.bf16.msra.mxu0 %v12280_v51  ;;  %v12293_v51 = vld [vmem:[%s15552_s20 + $0x28] sm:$0xff]  }
 0x890   :  { %11156 = vmatprep.subr.bf16.mxu0 %v13659_v0 }
 0x893   :  { %11157 = vmatpush3.bf16.msra.mxu0 %v12282_v53  ;;  %v12294_v53 = vld [vmem:[#allocation23] sm:$0xff]  }
 0x894   :  { %11170 = vmatprep.subr.bf16.mxu0 %v13659_v0 }
 0x959   :  { %v1661_v33 = vpop.f32.mrb[24].mxu0 }
 0x95a   :  { %v11128_v36 = vpop.f32.mrb[25].mxu0 }
 0x95b   :  { %v1716_v34 = vpop.f32.mrb[24].mxu1  ;;  %v1664_v38 = vpop.f32.mrb[26].mxu0 }
 0x95c   :  { %v1717_v35 = vadd.f32 %v1716_v34, %v1661_v33  ;;  %v11136_v37 = vpop.f32.mrb[25].mxu1  ;;  %v11129_v40 = vpop.f32.mrb[27].mxu0  ;;  %v12288_v38 = vld [vmem:[%s15552_s20 + $0x10] sm:$0xff]  }
 0x95d   :  { %v1719_v39 = vpop.f32.mrb[26].mxu1  ;;  %v12290_v40 = vld [vmem:[%s15552_s20 + $0x18] sm:$0xff]  }
 0x95e   :  { %v11137_v41 = vpop.f32.mrb[27].mxu1  ;;  %v12289_v39 = vld [vmem:[%s15552_s20] sm:$0xff]  }
 0x95f   :  { %v12291_v41 = vld [vmem:[%s15552_s20 + $0x8] sm:$0xff]  }
 0x961   :  { %v1778_v42 = vpop.f32.mrb[28].mxu0 }
 0x962   :  { %v1784_v44 = vadd.f32 %v1778_v42, %v1717_v35  ;;  %v11144_v45 = vpop.f32.mrb[29].mxu0 }
 0x963   :  { %v1781_v46 = vpop.f32.mrb[30].mxu0  ;;  %v12292_v45 = vld [vmem:[%s15552_s20 + $0x20] sm:$0xff]  }
 0x964   :  { %v1792_v47 = vadd.f32 %v10126_v43, %v1784_v44  ;;  %v11145_v48 = vpop.f32.mrb[31].mxu0 }
 0x966   :  { %v1793_v49 = vmax.f32 %v1792_v47, 0.0 }
 0x968   :  { %v1794_v50 = vpack.c.bf16 %v1793_v49, %v1793_v49 }
 0x96a   :  { %11151 = vmatmul.mubr.msk.bf16.vlgmr.msra.gmra.mrb[28].mxu1 %vm788_vm1, %v1794_v50 }
 0x96b   :  { %11166 = vmatprep.mubr.msk.bf16.mxu1 %vm13661_vm3, %v13659_v0  ;;  %11163 = vmatpush3.bf16.msra.mxu1 %v12281_v52 }
 0x96c   :  { %11164 = vmatprep.subr.bf16.mxu1 %v13659_v0 }
 0x96f   :  { %11165 = vmatpush3.bf16.msra.mxu1 %v12283_v54  ;;  %v12295_v54 = vld [vmem:[#allocation23 + $0x8] sm:$0xff]  }
 0x970   :  { %11178 = vmatprep.subr.bf16.mxu1 %v13659_v0 }
 0xa3d   :  { %v1855_v56 = vpop.f32.mrb[28].mxu1 }
 0xa3e   :  { %v1856_v57 = vadd.f32 %v10127_v55, %v1855_v56  ;;  %v11152_v58 = vpop.f32.mrb[29].mxu1 }
 0xa3f   :  { %v1858_v59 = vpop.f32.mrb[30].mxu1 }
 0xa40   :  { %v1861_v60 = vadd.f32 %v1856_v57, %v14391_v17  ;;  %v11153_v61 = vpop.f32.mrb[31].mxu1 }
 0xa42   :  { %1865 = vst.msk [vmem:[#allocation2 + $0x1] sm:$0xff] %vm788_vm1, %v1861_v60 }
 0xa49   :  { %v1989_v1 = vld [vmem:[#allocation2 + $0x2] sm:$0x7f] }
 0xa4a   :  { %v2052_v2 = vld [vmem:[#allocation2 + $0x3] sm:$0x7f]  ;;  %v1990_v11 = vpack.c.bf16 %v1989_v1, %v1989_v1 }
 0xa4b   :  { %v1872_v4 = vld [vmem:[#allocation2 + $0x1] sm:$0x7f]  ;;  %2201 = vst.msk [vmem:[#allocation2 + $0x8] sm:$0xff] %vm788_vm1, %v13659_v0  ;;  %v2053_v12 = vpack.c.bf16 %v2052_v2, %v2052_v2 }
 0xa4c   :  { %v1873_v5 = vpack.c.bf16 %v1872_v4, %v1872_v4  ;;  %v1866_v6 = vld [vmem:[#allocation2] sm:$0x7f]  ;;  %v10175_v4 = vld [vmem:[#allocation21] ss:$0 sm:$0xff] }
 0xa4d   :  { %v1867_v8 = vpack.c.bf16 %v1866_v6, %v1866_v6  ;;  %2200 = vst.msk [vmem:[#allocation2] sm:$0xff] %vm788_vm1, %v13659_v0 }
 0xa4e   :  { %11159 = vmatmul.mubr.msk.bf16.vlgmr.msra.gmra.mrb[32].mxu0 %vm788_vm1, %v1873_v5 }
 0xa4f   :  { %11167 = vmatmul.mubr.msk.bf16.vlgmr.msra.gmra.mrb[32].mxu1 %vm788_vm1, %v1867_v8  ;;  %11171 = vmatpush3.bf16.msra.mxu0 %v12284_v63 }
 0xa50   :  { %11179 = vmatpush3.bf16.msra.mxu1 %v12285_v7  ;;  %11172 = vmatprep.subr.bf16.mxu0 %v13659_v0 }
 0xa51   :  { %11180 = vmatprep.subr.bf16.mxu1 %v13659_v0  ;;  %11174 = vmatprep.mubr.msk.bf16.mxu0 %vm13661_vm3, %v13659_v0 }
 0xa52   :  { %11182 = vmatprep.mubr.msk.bf16.mxu1 %vm13661_vm3, %v13659_v0 }
 0xa53   :  { %11173 = vmatpush3.bf16.msra.mxu0 %v12286_v9 }
 0xa54   :  { %11181 = vmatpush3.bf16.msra.mxu1 %v12287_v10  ;;  %11186 = vmatprep.subr.mxu0 %v13659_v0 }
 0xa55   :  { %11191 = vmatprep.subr.bf16.mxu1 %v13659_v0 }
 0xa56   :  { %11175 = vmatmul.mubr.msk.bf16.vlgmr.msra.gmra.mrb[36].mxu0 %vm788_vm1, %v1990_v11 }
 0xa57   :  { %11183 = vmatmul.mubr.msk.bf16.vlgmr.msra.gmra.mrb[36].mxu1 %vm788_vm1, %v2053_v12  ;;  %11188 = vmatprep.mubr.msk.f32.mxu0 %vm13661_vm3, %v13659_v0  ;;  %v12296_v12 = vld [vmem:[#allocation26 + $0x10] sm:$0xff]  }
 0xa58   :  { %11195 = vmatprep.mubr.msk.bf16.mxu1 %vm13661_vm3, %v13659_v0  ;;  %11192 = vmatpush3.bf16.msra.mxu1 %v12288_v38 }
 0xa59   :  { %11193 = vmatprep.subr.bf16.mxu1 %v13659_v0 }
 0xa5c   :  { %11194 = vmatpush3.bf16.msra.mxu1 %v12290_v40 }
 0xa5d   :  { %11207 = vmatprep.subr.bf16.mxu1 %v13659_v0 }
 0xb21   :  { %v1928_v14 = vpop.f32.mrb[32].mxu0 }
 0xb22   :  { %v1983_v15 = vpop.f32.mrb[32].mxu1  ;;  %v11160_v16 = vpop.f32.mrb[33].mxu0 }
 0xb23   :  { %v1984_v17 = vadd.f32 %v1983_v15, %v1928_v14  ;;  %v11168_v18 = vpop.f32.mrb[33].mxu1  ;;  %v1931_v19 = vpop.f32.mrb[34].mxu0  ;;  %v12297_v14 = vld [vmem:[#allocation26] sm:$0xff]   ;;  %v12298_v15 = vld [vmem:[#allocation26 + $0x18] sm:$0xff]   ;;  %v12299_v16 = vld [vmem:[#allocation26 + $0x8] sm:$0xff]  }
 0xb24   :  { %v1986_v20 = vpop.f32.mrb[34].mxu1  ;;  %v11161_v21 = vpop.f32.mrb[35].mxu0 }
 0xb25   :  { %v11169_v22 = vpop.f32.mrb[35].mxu1 }
 0xb29   :  { %v2045_v23 = vpop.f32.mrb[36].mxu0 }
 0xb2a   :  { %v2051_v24 = vadd.f32 %v2045_v23, %v1984_v17  ;;  %v2108_v26 = vpop.f32.mrb[36].mxu1  ;;  %v11176_v27 = vpop.f32.mrb[37].mxu0  ;;  %v10176_v17 = vld [vmem:[#allocation24] ss:$0 sm:$0xff] }
 0xb2b   :  { %v11184_v29 = vpop.f32.mrb[37].mxu1  ;;  %v2048_v31 = vpop.f32.mrb[38].mxu0 }
 0xb2c   :  { %v2114_v33 = vadd.f32 %v2108_v26, %v2051_v24  ;;  %v2111_v34 = vpop.f32.mrb[38].mxu1  ;;  %v11177_v35 = vpop.f32.mrb[39].mxu0  ;;  %v12300_v26 = vld [vmem:[#allocation26 + $0x20] sm:$0xff]  }
 0xb2d   :  { %v11185_v36 = vpop.f32.mrb[39].mxu1  ;;  %v12301_v34 = vld [vmem:[#allocation26 + $0x28] sm:$0xff]  }
 0xb2e   :  { %v2122_v37 = vadd.f32 %v10155_v28, %v2114_v33  ;;  %v12302_v36 = vld [vmem:[#allocation29] sm:$0xff]  }
 0xb30   :  { %11187 = vmatpush3.msk.msra.mxu0 %vm1252_vm5, %v2122_v37  ;;  %v12303_v37 = vld [vmem:[#allocation29 + $0x8] sm:$0xff]  }
 0xb31   :  { %11189 = vmatmul.mubr.msk.f32.vlgmr.msra.gmra.mrb[40].mxu0 %vm2123_vm10, %v14345_v32  ;;  %11199 = vmatprep.subr.bf16.mxu0 %v13659_v0 }
 0xb32   :  { %11203 = vmatprep.mubr.msk.bf16.mxu0 %vm13661_vm3, %v13659_v0  ;;  %11200 = vmatpush3.bf16.msra.mxu0 %v12289_v39 }
 0xb33   :  { %11201 = vmatprep.subr.bf16.mxu0 %v13659_v0 }
 0xb36   :  { %11202 = vmatpush3.bf16.msra.mxu0 %v12291_v41 }
 0xb37   :  { %11215 = vmatprep.subr.bf16.mxu0 %v13659_v0 }
 0xc04   :  { %v14463_v42 = vpop.f32.mrb[40].mxu0 }
 0xc05   :  { %v2199_v43 = vmax.f32 %v14463_v42, 0.0  ;;  %v11190_v44 = vpop.f32.mrb[41].mxu0 }
 0xc07   :  { %2204 = vst.msk [vmem:[#allocation2 + $0x3] sm:$0xf] %vm2203_vm11, %v2199_v43 }
 0xc0e   :  { %v2328_v46 = vld [vmem:[#allocation2 + $0x6] sm:$0xf]  ;;  %v2205_v48 = vld [vmem:[#allocation2] sm:$0xf] }
 0xc0f   :  { %v2211_v47 = vld [vmem:[#allocation2 + $0x3] sm:$0xf]  ;;  %2470 = vst.msk [vmem:[#allocation2 + $0x8] sm:$0xff] %vm788_vm1, %v13659_v0  ;;  %v2206_v50 = vpack.c.bf16 %v2205_v48, %v2205_v48  ;;  %v2329_v52 = vpack.c.bf16 %v2328_v46, %v2328_v46  ;;  %v10189_v48 = vld [vmem:[#allocation27] ss:$0 sm:$0xff] }
 0xc10   :  { %v2212_v49 = vpack.c.bf16 %v2211_v47, %v2211_v47  ;;  %2469 = vst.msk [vmem:[#allocation2] sm:$0xff] %vm788_vm1, %v13659_v0  ;;  %2737 = vst.msk [vmem:[#allocation2 + $0x8] sm:$0xff] %vm788_vm1, %v13659_v0 }
 0xc11   :  { %3141 = vst.msk [vmem:[#allocation2 + $0x8] sm:$0xff] %vm788_vm1, %v13659_v0  ;;  %11204 = vmatmul.mubr.msk.bf16.vlgmr.msra.gmra.mrb[44].mxu0 %vm788_vm1, %v2206_v50 }
 0xc12   :  { %11196 = vmatmul.mubr.msk.bf16.vlgmr.msra.gmra.mrb[40].mxu1 %vm788_vm1, %v2212_v49  ;;  %3341 = vst.msk [vmem:[#allocation2 + $0x8] sm:$0xff] %vm788_vm1, %v13659_v0  ;;  %11219 = vmatprep.mubr.msk.bf16.mxu0 %vm13661_vm3, %v13659_v0 }
 0xc13   :  { %11208 = vmatpush3.bf16.msra.mxu1 %v12292_v45  ;;  %11211 = vmatprep.mubr.msk.bf16.mxu1 %vm13661_vm3, %v13659_v0 }
 0xc14   :  { %11209 = vmatprep.subr.bf16.mxu1 %v13659_v0  ;;  %11216 = vmatpush3.bf16.msra.mxu0 %v12294_v53 }
 0xc15   :  { %11217 = vmatprep.subr.bf16.mxu0 %v13659_v0 }
 0xc17   :  { %11210 = vmatpush3.bf16.msra.mxu1 %v12293_v51 }
 0xc18   :  { %11223 = vmatprep.subr.bf16.mxu1 %v13659_v0  ;;  %11218 = vmatpush3.bf16.msra.mxu0 %v12295_v54 }
 0xc19   :  { %11231 = vmatprep.subr.bf16.mxu0 %v13659_v0 }
 0xc1a   :  { %11212 = vmatmul.mubr.msk.bf16.vlgmr.msra.gmra.mrb[44].mxu1 %vm788_vm1, %v2329_v52 }
 0xc1b   :  { %11227 = vmatprep.mubr.msk.bf16.mxu1 %vm13661_vm3, %v13659_v0  ;;  %11224 = vmatpush3.bf16.msra.mxu1 %v12296_v12  ;;  %v12309_v12 = vld [vmem:[%s15553_s7 + $0x28] sm:$0xff]  }
 0xc1c   :  { %11225 = vmatprep.subr.bf16.mxu1 %v13659_v0 }
 0xc1f   :  { %11226 = vmatpush3.bf16.msra.mxu1 %v12298_v15  ;;  %v781_v15 = vld [vmem:[%s15554_s24] sm:$0xff] }
 0xc20   :  { %11239 = vmatprep.subr.bf16.mxu1 %v13659_v0 }
 0xce4   :  { %v2322_v56 = vpop.f32.mrb[44].mxu0 }
 0xce5   :  { %v2267_v55 = vpop.f32.mrb[40].mxu1  ;;  %v11205_v59 = vpop.f32.mrb[45].mxu0 }
 0xce6   :  { %v2323_v57 = vadd.f32 %v2322_v56, %v2267_v55  ;;  %v11197_v58 = vpop.f32.mrb[41].mxu1  ;;  %v2325_v61 = vpop.f32.mrb[46].mxu0  ;;  %v12304_v56 = vld [vmem:[%s15553_s7 + $0x10] sm:$0xff]   ;;  %v12307_v59 = vld [vmem:[%s15553_s7 + $0x8] sm:$0xff]  }
 0xce7   :  { %v2270_v60 = vpop.f32.mrb[42].mxu1  ;;  %v11206_v1 = vpop.f32.mrb[47].mxu0  ;;  %v12306_v58 = vld [vmem:[%s15553_s7 + $0x18] sm:$0xff]  }
 0xce8   :  { %v11198_v63 = vpop.f32.mrb[43].mxu1  ;;  %v10190_v60 = vld [vmem:[#allocation30] ss:$0 sm:$0xff] }
 0xced   :  { %v2384_v2 = vpop.f32.mrb[44].mxu1 }
 0xcee   :  { %v2390_v5 = vadd.f32 %v2384_v2, %v2323_v57  ;;  %v11213_v6 = vpop.f32.mrb[45].mxu1  ;;  %v12305_v57 = vld [vmem:[%s15553_s7] sm:$0xff]  }
 0xcef   :  { %v2387_v7 = vpop.f32.mrb[46].mxu1  ;;  %v12308_v6 = vld [vmem:[%s15553_s7 + $0x20] sm:$0xff]  }
 0xcf0   :  { %v2398_v8 = vadd.f32 %v10175_v4, %v2390_v5  ;;  %v11214_v9 = vpop.f32.mrb[47].mxu1 }
 0xcf2   :  { %v2399_v10 = vmax.f32 %v2398_v8, 0.0 }
 0xcf4   :  { %v2400_v11 = vpack.c.bf16 %v2399_v10, %v2399_v10 }
 0xcf6   :  { %11220 = vmatmul.mubr.msk.bf16.vlgmr.msra.gmra.mrb[48].mxu0 %vm788_vm1, %v2400_v11 }
 0xcf7   :  { %11235 = vmatprep.mubr.msk.bf16.mxu0 %vm13661_vm3, %v13659_v0  ;;  %11232 = vmatpush3.bf16.msra.mxu0 %v12297_v14 }
 0xcf8   :  { %11233 = vmatprep.subr.bf16.mxu0 %v13659_v0 }
 0xcfb   :  { %11234 = vmatpush3.bf16.msra.mxu0 %v12299_v16  ;;  %v782_v16 = vld [vmem:[%s15554_s24 + $0x8] sm:$0xff] }
 0xcfc   :  { %11247 = vmatprep.subr.bf16.mxu0 %v13659_v0 }
 0xdc9   :  { %v2461_v18 = vpop.f32.mrb[48].mxu0 }
 0xdca   :  { %v2462_v19 = vadd.f32 %v10176_v17, %v2461_v18  ;;  %v11221_v20 = vpop.f32.mrb[49].mxu0  ;;  %v14549_v17 = vpack.c.bf16 %v782_v16, %v781_v15  ;;  %v783_v18 = vld [vmem:[%s15554_s24 + $0x10] sm:$0xff] }
 0xdcb   :  { %v2464_v21 = vpop.f32.mrb[50].mxu0 }
 0xdcc   :  { %v14500_v22 = vadd.f32 %v2462_v19, %v14463_v42  ;;  %v11222_v23 = vpop.f32.mrb[51].mxu0  ;;  %v784_v19 = vld [vmem:[%s15554_s24 + $0x18] sm:$0xff] }
 0xdcd   :  { %v14555_v20 = vpack.c.bf16 %v784_v19, %v783_v18  ;;  %v12310_v18 = vld [vmem:[#allocation33 + $0x10] sm:$0xff]   ;;  %v12311_v19 = vld [vmem:[#allocation33 + $0x20] sm:$0xff]  }
 0xdce   :  { %v2468_v24 = vmax.f32 %v14500_v22, 0.0 }
 0xdd0   :  { %2472 = vst.msk [vmem:[#allocation2 + $0x1] sm:$0xf] %vm2203_vm11, %v2468_v24 }
 0xdd7   :  { %v2479_v27 = vld [vmem:[#allocation2 + $0x1] sm:$0xf] }
 0xdd8   :  { %v2596_v28 = vld [vmem:[#allocation2 + $0x2] sm:$0xf]  ;;  %v2480_v31 = vpack.c.bf16 %v2479_v27, %v2479_v27 }
 0xdd9   :  { %v2473_v29 = vld [vmem:[#allocation2] sm:$0xf]  ;;  %v2597_v35 = vpack.c.bf16 %v2596_v28, %v2596_v28 }
 0xdda   :  { %v2474_v33 = vpack.c.bf16 %v2473_v29, %v2473_v29  ;;  %2736 = vst.msk [vmem:[#allocation2] sm:$0xff] %vm788_vm1, %v13659_v0  ;;  %11228 = vmatmul.mubr.msk.bf16.vlgmr.msra.gmra.mrb[48].mxu1 %vm788_vm1, %v2480_v31 }
 0xddb   :  { %11240 = vmatpush3.bf16.msra.mxu1 %v12300_v26  ;;  %11243 = vmatprep.mubr.msk.bf16.mxu1 %vm13661_vm3, %v13659_v0 }
 0xddc   :  { %11236 = vmatmul.mubr.msk.bf16.vlgmr.msra.gmra.mrb[52].mxu0 %vm788_vm1, %v2474_v33  ;;  %11241 = vmatprep.subr.bf16.mxu1 %v13659_v0 }
 0xddd   :  { %11251 = vmatprep.mubr.msk.bf16.mxu0 %vm13661_vm3, %v13659_v0  ;;  %11248 = vmatpush3.bf16.msra.mxu0 %v12302_v36 }
 0xdde   :  { %11249 = vmatprep.subr.bf16.mxu0 %v13659_v0 }
 0xddf   :  { %11242 = vmatpush3.bf16.msra.mxu1 %v12301_v34  ;;  %v10211_v34 = vld [vmem:[#allocation32] ss:$0 sm:$0xff] }
 0xde0   :  { %11255 = vmatprep.subr.bf16.mxu1 %v13659_v0 }
 0xde1   :  { %11250 = vmatpush3.bf16.msra.mxu0 %v12303_v37 }
 0xde2   :  { %11244 = vmatmul.mubr.msk.bf16.vlgmr.msra.gmra.mrb[52].mxu1 %vm788_vm1, %v2597_v35  ;;  %11263 = vmatprep.subr.bf16.mxu0 %v13659_v0 }
 0xde3   :  { %11259 = vmatprep.mubr.msk.bf16.mxu1 %vm13661_vm3, %v13659_v0  ;;  %11256 = vmatpush3.bf16.msra.mxu1 %v12304_v56  ;;  %v774_v56 = vld [vmem:[%s15555_s10 + $0x8] sm:$0xff] }
 0xde4   :  { %11257 = vmatprep.subr.bf16.mxu1 %v13659_v0 }
 0xde7   :  { %11258 = vmatpush3.bf16.msra.mxu1 %v12306_v58 }
 0xde8   :  { %11271 = vmatprep.subr.bf16.mxu1 %v13659_v0 }
 0xead   :  { %v2535_v38 = vpop.f32.mrb[48].mxu1 }
 0xeae   :  { %v11229_v41 = vpop.f32.mrb[49].mxu1 }
 0xeaf   :  { %v2590_v39 = vpop.f32.mrb[52].mxu0  ;;  %v2538_v43 = vpop.f32.mrb[50].mxu1 }
 0xeb0   :  { %v2591_v40 = vadd.f32 %v2590_v39, %v2535_v38  ;;  %v11237_v42 = vpop.f32.mrb[53].mxu0  ;;  %v11230_v45 = vpop.f32.mrb[51].mxu1 }
 0xeb1   :  { %v2593_v44 = vpop.f32.mrb[54].mxu0 }
 0xeb2   :  { %v11238_v46 = vpop.f32.mrb[55].mxu0 }
 0xeb3   :  { %v10213_v46 = vld [vmem:[#allocation69] ss:$0 sm:$0xff] }
 0xeb5   :  { %v2652_v47 = vpop.f32.mrb[52].mxu1 }
 0xeb6   :  { %v2658_v49 = vadd.f32 %v2652_v47, %v2591_v40  ;;  %v11245_v50 = vpop.f32.mrb[53].mxu1 }
 0xeb7   :  { %v2655_v51 = vpop.f32.mrb[54].mxu1 }
 0xeb8   :  { %v2666_v52 = vadd.f32 %v10189_v48, %v2658_v49  ;;  %v11246_v53 = vpop.f32.mrb[55].mxu1 }
 0xeba   :  { %v2667_v54 = vmax.f32 %v2666_v52, 0.0 }
 0xebc   :  { %v2668_v55 = vpack.c.bf16 %v2667_v54, %v2667_v54 }
 0xebe   :  { %11252 = vmatmul.mubr.msk.bf16.vlgmr.msra.gmra.mrb[56].mxu0 %vm788_vm1, %v2668_v55  ;;  %v773_v55 = vld [vmem:[%s15555_s10] sm:$0xff] }
 0xebf   :  { %11267 = vmatprep.mubr.msk.bf16.mxu0 %vm13661_vm3, %v13659_v0  ;;  %11264 = vmatpush3.bf16.msra.mxu0 %v12305_v57  ;;  %v775_v57 = vld [vmem:[%s15555_s10 + $0x10] sm:$0xff]  ;;  %v14574_v58 = vpack.c.bf16 %v774_v56, %v773_v55 }
 0xec0   :  { %11265 = vmatprep.subr.bf16.mxu0 %v13659_v0 }
 0xec3   :  { %11266 = vmatpush3.bf16.msra.mxu0 %v12307_v59  ;;  %v776_v59 = vld [vmem:[%s15555_s10 + $0x18] sm:$0xff] }
 0xec4   :  { %12105 = vmatprep.subr.bf16.mxu0 %v13662_v62 }
 0xf91   :  { %v2729_v61 = vpop.f32.mrb[56].mxu0 }
 0xf92   :  { %v2730_v63 = vadd.f32 %v10190_v60, %v2729_v61  ;;  %v11253_v1 = vpop.f32.mrb[57].mxu0  ;;  %v14578_v60 = vpack.c.bf16 %v776_v59, %v775_v57 }
 0xf93   :  { %v2732_v2 = vpop.f32.mrb[58].mxu0 }
 0xf94   :  { %v2735_v4 = vadd.f32 %v2730_v63, %v14500_v22  ;;  %v11254_v5 = vpop.f32.mrb[59].mxu0 }
 0xf95   :  { %v778_v5 = vld [vmem:[%s15555_s10 + $0x28] sm:$0xff] }
 0xf96   :  { %2739 = vst.msk [vmem:[#allocation2 + $0x1] sm:$0xf] %vm2203_vm11, %v2735_v4  ;;  %v777_v4 = vld [vmem:[%s15555_s10 + $0x20] sm:$0xff] }
 0xf9d   :  { %v2746_v7 = vld [vmem:[#allocation2 + $0x1] sm:$0xf] }
 0xf9e   :  { %v2863_v8 = vld [vmem:[#allocation2 + $0x2] sm:$0xf]  ;;  %v2747_v10 = vpack.c.bf16 %v2746_v7, %v2746_v7 }
 0xf9f   :  { %v2740_v9 = vld [vmem:[#allocation2] sm:$0xf]  ;;  %v2864_v14 = vpack.c.bf16 %v2863_v8, %v2863_v8  ;;  %v780_v8 = vld [vmem:[%s15555_s10 + $0x38] sm:$0xff] }
 0xfa0   :  { %v2741_v11 = vpack.c.bf16 %v2740_v9, %v2740_v9  ;;  %3140 = vst.msk [vmem:[#allocation2] sm:$0xff] %vm788_vm1, %v13659_v0  ;;  %11260 = vmatmul.mubr.msk.bf16.vlgmr.msra.gmra.mrb[56].mxu1 %vm788_vm1, %v2747_v10  ;;  %v779_v7 = vld [vmem:[%s15555_s10 + $0x30] sm:$0xff] }
 0xfa1   :  { %11272 = vmatpush3.bf16.msra.mxu1 %v12308_v6  ;;  %11275 = vmatprep.mubr.msk.bf16.mxu1 %vm13661_vm3, %v13659_v0  ;;  %v14585_v6 = vpack.c.bf16 %v778_v5, %v777_v4  ;;  %v14591_v9 = vpack.c.bf16 %v780_v8, %v779_v7  ;;  %v12321_v7 = vld [vmem:[#allocation36 + $0x28] sm:$0xff]  }
 0xfa2   :  { %11268 = vmatmul.mubr.msk.bf16.vlgmr.msra.gmra.mrb[60].mxu0 %vm788_vm1, %v2741_v11  ;;  %11273 = vmatprep.subr.bf16.mxu1 %v13659_v0 }
 0xfa3   :  { %11287 = vmatprep.mubr.msk.f32.mxu0 %vm13661_vm3, %v13659_v0  ;;  %12107 = vmatpush3.bf16.msra.mxu0 %v14549_v17 }
 0xfa4   :  { %12108 = vmatprep.subr.bf16.mxu0 %v13662_v62 }
 0xfa5   :  { %11274 = vmatpush3.bf16.msra.mxu1 %v12309_v12 }
 0xfa6   :  { %12111 = vmatprep.subr.bf16.mxu1 %v13662_v62 }
 0xfa7   :  { %12110 = vmatpush3.bf16.msra.mxu0 %v14555_v20 }
 0xfa8   :  { %11276 = vmatmul.mubr.msk.bf16.vlgmr.msra.gmra.mrb[60].mxu1 %vm788_vm1, %v2864_v14  ;;  %11309 = vmatprep.subr.bf16.mxu0 %v13659_v0 }
 0xfa9   :  { %11306 = vmatprep.mubr.msk.f32.mxu1 %vm13661_vm3, %v13659_v0  ;;  %12113 = vmatpush3.bf16.msra.mxu1 %v14574_v58 }
 0xfaa   :  { %12114 = vmatprep.subr.bf16.mxu1 %v13662_v62 }
 0xfad   :  { %12116 = vmatpush3.bf16.msra.mxu1 %v14578_v60 }
 0xfae   :  { %12117 = vmatprep.subr.bf16.mxu1 %v13662_v62 }
 0xfb1   :  { %12119 = vmatpush3.bf16.msra.mxu1 %v14585_v6 }
 0xfb2   :  { %12120 = vmatprep.subr.bf16.mxu1 %v13662_v62 }
 0xfb5   :  { %12122 = vmatpush3.bf16.msra.mxu1 %v14591_v9 }
 0xfb6   :  { %11325 = vmatprep.subr.bf16.mxu1 %v13659_v0 }
0x1073   :  { %v2802_v21 = vpop.f32.mrb[56].mxu1 }
0x1074   :  { %v11261_v24 = vpop.f32.mrb[57].mxu1 }
0x1075   :  { %v2857_v22 = vpop.f32.mrb[60].mxu0  ;;  %v2805_v27 = vpop.f32.mrb[58].mxu1 }
0x1076   :  { %v2858_v23 = vadd.f32 %v2857_v22, %v2802_v21  ;;  %v11269_v26 = vpop.f32.mrb[61].mxu0  ;;  %v11262_v29 = vpop.f32.mrb[59].mxu1  ;;  %v12312_v21 = vld [vmem:[#allocation33 + $0x18] sm:$0xff]   ;;  %v12313_v22 = vld [vmem:[#allocation33 + $0x28] sm:$0xff]  }
0x1077   :  { %v2860_v28 = vpop.f32.mrb[62].mxu0  ;;  %v12314_v26 = vld [vmem:[#allocation33] sm:$0xff]  }
0x1078   :  { %v11270_v31 = vpop.f32.mrb[63].mxu0 }
0x107b   :  { %v2919_v33 = vpop.f32.mrb[60].mxu1 }
0x107c   :  { %v2925_v35 = vadd.f32 %v2919_v33, %v2858_v23  ;;  %v11277_v36 = vpop.f32.mrb[61].mxu1 }
0x107d   :  { %v2922_v37 = vpop.f32.mrb[62].mxu1  ;;  %v12316_v36 = vld [vmem:[#allocation36 + $0x10] sm:$0xff]  }
0x107e   :  { %v14559_v38 = vadd.f32 %v10211_v34, %v2925_v35  ;;  %v11278_v39 = vpop.f32.mrb[63].mxu1  ;;  %v12315_v34 = vld [vmem:[#allocation33 + $0x8] sm:$0xff]   ;;  %v12317_v37 = vld [vmem:[#allocation36] sm:$0xff]  }
0x107f   :  { %v12318_v39 = vld [vmem:[#allocation36 + $0x18] sm:$0xff]  }
0x1080   :  { %11288 = vmatmul.mubr.msk.f32.vlgmr.msra.gmra.mrb[42].mxu0 %vm788_vm1, %v14559_v38  ;;  %v2934_v40 = vmul.f32 %v14559_v38, %v14559_v38 }
0x1081   :  { %11313 = vmatprep.mubr.msk.bf16.mxu0 %vm13661_vm3, %v13659_v0  ;;  %11310 = vmatpush3.bf16.msra.mxu0 %v12310_v18 }
0x1082   :  { %v2935_v41 = vsel %vm2203_vm11, %v2934_v40, 0.0  ;;  %11311 = vmatprep.subr.bf16.mxu0 %v13659_v0  ;;  %v12319_v40 = vld [vmem:[#allocation36 + $0x8] sm:$0xff]  }
0x1083   :  { %2936 = vadd.xlane.f32.xlu0 %v2935_v41 }
0x1085   :  { %11312 = vmatpush3.bf16.msra.mxu0 %v12312_v21 }
0x1086   :  { %11317 = vmatprep.subr.bf16.mxu0 %v13659_v0 }
0x1110   :  { %v2937_v45 = vpop.xlane.xlu0 %2936 }
0x1153   :  { %v3007_v42 = vpop.f32.mrb[42].mxu0 }
0x1154   :  { %v3011_v43 = vmul.f32 2.0, %v3007_v42  ;;  %v11289_v44 = vpop.f32.mrb[43].mxu0 }
0x1156   :  { %v3012_v47 = vsub.f32 %v2937_v45, %v3011_v43 }
0x1158   :  { %v3019_v48 = vadd.f32 %v10213_v46, %v3012_v47 }
0x115a   :  { %v3021_v49 = vsel %vm3020_vm12, %v3019_v48, inf }
0x115b   :  { %3022 = vmin.xlane.f32.xlu0 %v3021_v49 }
0x11e8   :  { %v3023_v50 = vpop.xlane.xlu0 %3022 }
0x11e9   :  { %vm3024_vm13 = vcmp.le.f32.partialorder %v3019_v48, %v3023_v50 }
0x11ea   :  { %v3025_v51 = vsel %vm3024_vm13, %v14333_v25, 64  ;;  %vm3123_vm13 = vcmask 1043456  }
0x11eb   :  { %v3026_v52 = vsel %vm3020_vm12, %v3025_v51, 2147483647 }
0x11ec   :  { %v3028_v53 = vshra.s32 %v3026_v52, 16  ;;  %v3027_v61 = vand.u32 65535, %v3026_v52  ;;  %v10225_v52 = vld [vmem:[#allocation35] ss:$0 sm:$0xff] }
0x11ee   :  { %v3030_v54 = vcvt.s32.f32 %v3028_v53  ;;  %v3029_v1 = vcvt.s32.f32 %v3027_v61  ;;  %v12320_v61 = vld [vmem:[#allocation36 + $0x20] sm:$0xff]  }
0x11f0   :  { %3031 = vmin.xlane.f32.xlu1 %v3030_v54 }
0x127d   :  { %v3032_v63 = vpop.xlane.xlu1 %3031 }
0x127e   :  { %vm3033_vm14 = vcmp.eq.f32.partialorder %v3030_v54, %v3032_v63  ;;  %v3038_v10 = vcvt.f32.s32 %v3032_v63 }
0x127f   :  { %v3034_v2 = vsel %vm3033_vm14, %v3029_v1, inf  ;;  %vm3882_vm14 = vcmask 31744  }
0x1280   :  { %3035 = vmin.xlane.f32.xlu1 %v3034_v2  ;;  %v3039_v12 = vshll.u32 %v3038_v10, 16  ;;  %v12322_v10 = vld [vmem:[#allocation39] sm:$0xff]  }
0x130d   :  { %v3036_v11 = vpop.xlane.xlu1 %3035 }
0x130e   :  { %v3037_v14 = vcvt.f32.s32 %v3036_v11  ;;  %v12323_v11 = vld [vmem:[#allocation39 + $0x8] sm:$0xff]  }
0x1310   :  { %v3040_v15 = vadd.s32 %v3039_v12, %v3037_v14 }
0x1312   :  { %vm3041_vm0 = vcmp.eq.s32.totalorder %v14333_v25, %v3040_v15 }
0x1313   :  { %v14597_v16 = vsel %vm3041_vm0, 1.0, %v13659_v0  ;;  %vm4699_vm0 = vcmask 64512  }
0x1314   :  { %11307 = vmatmul.mubr.msk.f32.vlgmr.msra.gmra.mrb[14].mxu1 %vm3044_vm15, %v14597_v16 }
0x1315   :  { %11329 = vmatprep.mubr.msk.bf16.mxu1 %vm13661_vm3, %v13659_v0  ;;  %11326 = vmatpush3.bf16.msra.mxu1 %v12311_v19 }
0x1316   :  { %11327 = vmatprep.subr.bf16.mxu1 %v13659_v0 }
0x1319   :  { %11328 = vmatpush3.bf16.msra.mxu1 %v12313_v22 }
0x131a   :  { %11341 = vmatprep.subr.bf16.mxu1 %v13659_v0 }
0x13e7   :  { %v14607_v23 = vpop.f32.mrb[14].mxu1 }
0x13e8   :  { %3143 = vst.msk [vmem:[#allocation2 + $0x1] sm:$0xf] %vm2203_vm11, %v14607_v23  ;;  %v11308_v24 = vpop.f32.mrb[15].mxu1 }
0x13ef   :  { %v3150_v27 = vld [vmem:[#allocation2 + $0x1] sm:$0xf] }
0x13f0   :  { %v3267_v28 = vld [vmem:[#allocation2 + $0x2] sm:$0xf]  ;;  %v3151_v31 = vpack.c.bf16 %v3150_v27, %v3150_v27 }
0x13f1   :  { %v3144_v29 = vld [vmem:[#allocation2] sm:$0xf]  ;;  %v3268_v33 = vpack.c.bf16 %v3267_v28, %v3267_v28  ;;  %v10235_v28 = vld [vmem:[#allocation38] ss:$0 sm:$0xff] }
0x13f2   :  { %3340 = vst.msk [vmem:[#allocation2] sm:$0xff] %vm788_vm1, %v13659_v0  ;;  %11314 = vmatmul.mubr.msk.bf16.vlgmr.msra.gmra.mrb[64].mxu0 %vm788_vm1, %v3151_v31  ;;  %v3145_v35 = vpack.c.bf16 %v3144_v29, %v3144_v29 }
0x13f3   :  { %11330 = vmatmul.mubr.msk.bf16.vlgmr.msra.gmra.mrb[64].mxu1 %vm788_vm1, %v3268_v33  ;;  %11318 = vmatpush3.bf16.msra.mxu0 %v12314_v26 }
0x13f4   :  { %11321 = vmatprep.mubr.msk.bf16.mxu0 %vm13661_vm3, %v13659_v0  ;;  %11319 = vmatprep.subr.bf16.mxu0 %v13659_v0 }
0x13f5   :  { %11345 = vmatprep.mubr.msk.bf16.mxu1 %vm13661_vm3, %v13659_v0  ;;  %11342 = vmatpush3.bf16.msra.mxu1 %v12317_v37 }
0x13f6   :  { %11343 = vmatprep.subr.bf16.mxu1 %v13659_v0 }
0x13f7   :  { %11320 = vmatpush3.bf16.msra.mxu0 %v12315_v34 }
0x13f8   :  { %11333 = vmatprep.subr.bf16.mxu0 %v13659_v0 }
0x13f9   :  { %11344 = vmatpush3.bf16.msra.mxu1 %v12319_v40  ;;  %v12325_v40 = vld [vmem:[#allocation42] sm:$0xff]  }
0x13fa   :  { %11322 = vmatmul.mubr.msk.bf16.vlgmr.msra.gmra.mrb[68].mxu0 %vm788_vm1, %v3145_v35  ;;  %11357 = vmatprep.subr.bf16.mxu1 %v13659_v0 }
0x13fb   :  { %11337 = vmatprep.mubr.msk.bf16.mxu0 %vm13661_vm3, %v13659_v0  ;;  %11334 = vmatpush3.bf16.msra.mxu0 %v12316_v36 }
0x13fc   :  { %11335 = vmatprep.subr.bf16.mxu0 %v13659_v0 }
0x13ff   :  { %11336 = vmatpush3.bf16.msra.mxu0 %v12318_v39  ;;  %v12324_v39 = vld [vmem:[#allocation42 + $0x10] sm:$0xff]  }
0x1400   :  { %11349 = vmatprep.subr.bf16.mxu0 %v13659_v0 }
0x14c5   :  { %v3206_v41 = vpop.f32.mrb[64].mxu0 }
0x14c6   :  { %v3323_v42 = vpop.f32.mrb[64].mxu1  ;;  %v11315_v43 = vpop.f32.mrb[65].mxu0 }
0x14c7   :  { %v11331_v44 = vpop.f32.mrb[65].mxu1  ;;  %v3209_v45 = vpop.f32.mrb[66].mxu0  ;;  %v10236_v43 = vld [vmem:[#allocation41] ss:$0 sm:$0xff] }
0x14c8   :  { %v3326_v46 = vpop.f32.mrb[66].mxu1  ;;  %v11316_v47 = vpop.f32.mrb[67].mxu0 }
0x14c9   :  { %v11332_v48 = vpop.f32.mrb[67].mxu1 }
0x14cd   :  { %v3261_v49 = vpop.f32.mrb[68].mxu0 }
0x14ce   :  { %v3262_v50 = vadd.f32 %v3261_v49, %v3206_v41  ;;  %v11323_v51 = vpop.f32.mrb[69].mxu0  ;;  %v12326_v41 = vld [vmem:[#allocation42 + $0x18] sm:$0xff]  }
0x14cf   :  { %v3264_v53 = vpop.f32.mrb[70].mxu0  ;;  %v12328_v51 = vld [vmem:[#allocation42 + $0x20] sm:$0xff]  }
0x14d0   :  { %v3329_v54 = vadd.f32 %v3323_v42, %v3262_v50  ;;  %v11324_v55 = vpop.f32.mrb[71].mxu0  ;;  %v12327_v42 = vld [vmem:[#allocation42 + $0x8] sm:$0xff]  }
0x14d2   :  { %v14628_v56 = vadd.f32 %v10225_v52, %v3329_v54 }
0x14d4   :  { %v3338_v57 = vmax.f32 %v14628_v56, 0.0  ;;  %v12329_v56 = vld [vmem:[#allocation42 + $0x28] sm:$0xff]  }
0x14d6   :  { %v3339_v59 = vmax.f32 %v3338_v57, 0.0 }
0x14d8   :  { %3343 = vst.msk [vmem:[#allocation2 + $0x3] sm:$0xf] %vm2203_vm11, %v3339_v59 }
0x14df   :  { %v3350_v63 = vld [vmem:[#allocation2 + $0x3] sm:$0xf] }
0x14e0   :  { %v3467_v1 = vld [vmem:[#allocation2 + $0x6] sm:$0xf]  ;;  %v3344_v2 = vld [vmem:[#allocation2] sm:$0xf]  ;;  %v3351_v4 = vpack.c.bf16 %v3350_v63, %v3350_v63 }
0x14e1   :  { %3609 = vst.msk [vmem:[#allocation2 + $0x8] sm:$0xff] %vm788_vm1, %v13659_v0  ;;  %v3345_v5 = vpack.c.bf16 %v3344_v2, %v3344_v2  ;;  %3608 = vst.msk [vmem:[#allocation2] sm:$0xff] %vm788_vm1, %v13659_v0  ;;  %v3468_v8 = vpack.c.bf16 %v3467_v1, %v3467_v1  ;;  %v12331_v63 = vld [vmem:[#allocation45 + $0x8] sm:$0xff]  }
0x14e2   :  { %3960 = vst.msk [vmem:[#allocation2 + $0x8] sm:$0xff] %vm788_vm1, %v13659_v0  ;;  %11338 = vmatmul.mubr.msk.bf16.vlgmr.msra.gmra.mrb[72].mxu0 %vm788_vm1, %v3351_v4 }
0x14e3   :  { %11346 = vmatmul.mubr.msk.bf16.vlgmr.msra.gmra.mrb[68].mxu1 %vm788_vm1, %v3345_v5  ;;  %11350 = vmatpush3.bf16.msra.mxu0 %v12320_v61  ;;  %v12330_v61 = vld [vmem:[#allocation45] sm:$0xff]  }
0x14e4   :  { %11353 = vmatprep.mubr.msk.bf16.mxu0 %vm13661_vm3, %v13659_v0  ;;  %11351 = vmatprep.subr.bf16.mxu0 %v13659_v0 }
0x14e5   :  { %11361 = vmatprep.mubr.msk.bf16.mxu1 %vm13661_vm3, %v13659_v0  ;;  %11358 = vmatpush3.bf16.msra.mxu1 %v12322_v10 }
0x14e6   :  { %11359 = vmatprep.subr.bf16.mxu1 %v13659_v0 }
0x14e7   :  { %11352 = vmatpush3.bf16.msra.mxu0 %v12321_v7 }
0x14e8   :  { %11365 = vmatprep.subr.bf16.mxu0 %v13659_v0 }
0x14e9   :  { %11360 = vmatpush3.bf16.msra.mxu1 %v12323_v11 }
0x14ea   :  { %11354 = vmatmul.mubr.msk.bf16.vlgmr.msra.gmra.mrb[76].mxu0 %vm788_vm1, %v3468_v8  ;;  %11373 = vmatprep.subr.bf16.mxu1 %v13659_v0 }
0x14eb   :  { %11369 = vmatprep.mubr.msk.bf16.mxu0 %vm13661_vm3, %v13659_v0  ;;  %11366 = vmatpush3.bf16.msra.mxu0 %v12324_v39 }
0x14ec   :  { %11367 = vmatprep.subr.bf16.mxu0 %v13659_v0 }
0x14ef   :  { %11368 = vmatpush3.bf16.msra.mxu0 %v12326_v41  ;;  %v12332_v41 = vld [vmem:[%s15556_s8 + $0x10] sm:$0xff]  }
0x14f0   :  { %11381 = vmatprep.subr.bf16.mxu0 %v13659_v0 }
0x15b5   :  { %v3406_v12 = vpop.f32.mrb[72].mxu0 }
0x15b6   :  { %v3461_v14 = vpop.f32.mrb[68].mxu1  ;;  %v11339_v18 = vpop.f32.mrb[73].mxu0 }
0x15b7   :  { %v3462_v15 = vadd.f32 %v3461_v14, %v3406_v12  ;;  %v11347_v19 = vpop.f32.mrb[69].mxu1  ;;  %v3409_v21 = vpop.f32.mrb[74].mxu0 }
0x15b8   :  { %v3464_v22 = vpop.f32.mrb[70].mxu1  ;;  %v11340_v24 = vpop.f32.mrb[75].mxu0 }
0x15b9   :  { %v11348_v26 = vpop.f32.mrb[71].mxu1 }
0x15bd   :  { %v3523_v27 = vpop.f32.mrb[76].mxu0 }
0x15be   :  { %v3529_v29 = vadd.f32 %v3523_v27, %v3462_v15  ;;  %v11355_v31 = vpop.f32.mrb[77].mxu0  ;;  %v10249_v15 = vld [vmem:[#allocation44] ss:$0 sm:$0xff] }
0x15bf   :  { %v3526_v33 = vpop.f32.mrb[78].mxu0  ;;  %v10250_v31 = vld [vmem:[#allocation47] ss:$0 sm:$0xff] }
0x15c0   :  { %v3537_v34 = vadd.f32 %v10235_v28, %v3529_v29  ;;  %v11356_v35 = vpop.f32.mrb[79].mxu0  ;;  %v14682_v28 = vmul.u32 2, %v14333_v25 }
0x15c2   :  { %v3538_v36 = vmax.f32 %v3537_v34, 0.0  ;;  %v14685_v29 = vadd.s32 1, %v14682_v28  ;;  %vm3876_vm2 = vcmp.eq.s32.totalorder %v14331_v13, %v14682_v28 }
0x15c4   :  { %v3539_v37 = vpack.c.bf16 %v3538_v36, %v3538_v36  ;;  %vm3878_vm6 = vcmp.eq.s32.totalorder %v14331_v13, %v14685_v29 }
0x15c5   :  { %vm3879_vm8 = vmor %vm3876_vm2, %vm3878_vm6 }
0x15c6   :  { %11362 = vmatmul.mubr.msk.bf16.vlgmr.msra.gmra.mrb[72].mxu1 %vm788_vm1, %v3539_v37 }
0x15c7   :  { %11377 = vmatprep.mubr.msk.bf16.mxu1 %vm13661_vm3, %v13659_v0  ;;  %11374 = vmatpush3.bf16.msra.mxu1 %v12325_v40  ;;  %v14692_v40 = vsel %vm3879_vm8, 1.0, %v13659_v0 }
0x15c8   :  { %11375 = vmatprep.subr.bf16.mxu1 %v13659_v0 }
0x15cb   :  { %11376 = vmatpush3.bf16.msra.mxu1 %v12327_v42  ;;  %v12333_v42 = vld [vmem:[%s15556_s8] sm:$0xff]  }
0x15cc   :  { %11389 = vmatprep.subr.bf16.mxu1 %v13659_v0 }
0x1699   :  { %v3600_v44 = vpop.f32.mrb[72].mxu1 }
0x169a   :  { %v3601_v45 = vadd.f32 %v10236_v43, %v3600_v44  ;;  %v11363_v46 = vpop.f32.mrb[73].mxu1  ;;  %v12334_v43 = vld [vmem:[%s15556_s8 + $0x18] sm:$0xff]   ;;  %v12335_v44 = vld [vmem:[%s15556_s8 + $0x8] sm:$0xff]  }
0x169b   :  { %v3603_v47 = vpop.f32.mrb[74].mxu1 }
0x169c   :  { %v3606_v48 = vadd.f32 %v3601_v45, %v3338_v57  ;;  %v11364_v49 = vpop.f32.mrb[75].mxu1  ;;  %v12336_v47 = vld [vmem:[%s15556_s8 + $0x20] sm:$0xff]  }
0x169e   :  { %v3607_v50 = vmax.f32 %v3606_v48, 0.0 }
0x16a0   :  { %3611 = vst.msk [vmem:[#allocation2 + $0x1] sm:$0xf] %vm2203_vm11, %v3607_v50 }
0x16a7   :  { %v3618_v52 = vld [vmem:[#allocation2 + $0x1] sm:$0xf] }
0x16a8   :  { %v3735_v53 = vld [vmem:[#allocation2 + $0x2] sm:$0xf]  ;;  %v3619_v55 = vpack.c.bf16 %v3618_v52, %v3618_v52 }
0x16a9   :  { %v3612_v54 = vld [vmem:[#allocation2] sm:$0xf]  ;;  %v3736_v57 = vpack.c.bf16 %v3735_v53, %v3735_v53  ;;  %v12337_v53 = vld [vmem:[%s15556_s8 + $0x28] sm:$0xff]  }
0x16aa   :  { %v3613_v59 = vpack.c.bf16 %v3612_v54, %v3612_v54  ;;  %3959 = vst.msk [vmem:[#allocation2] sm:$0xff] %vm788_vm1, %v13659_v0  ;;  %11370 = vmatmul.mubr.msk.bf16.vlgmr.msra.gmra.mrb[80].mxu0 %vm788_vm1, %v3619_v55  ;;  %v12338_v55 = vld [vmem:[#allocation50 + $0x10] sm:$0xff]  }
0x16ab   :  { %11382 = vmatpush3.bf16.msra.mxu0 %v12328_v51  ;;  %11385 = vmatprep.mubr.msk.bf16.mxu0 %vm13661_vm3, %v13659_v0 }
0x16ac   :  { %11378 = vmatmul.mubr.msk.bf16.vlgmr.msra.gmra.mrb[76].mxu1 %vm788_vm1, %v3613_v59  ;;  %11383 = vmatprep.subr.bf16.mxu0 %v13659_v0  ;;  %v12339_v59 = vld [vmem:[#allocation50] sm:$0xff]  }
0x16ad   :  { %11393 = vmatprep.mubr.msk.bf16.mxu1 %vm13661_vm3, %v13659_v0  ;;  %11390 = vmatpush3.bf16.msra.mxu1 %v12330_v61 }
0x16ae   :  { %11391 = vmatprep.subr.bf16.mxu1 %v13659_v0 }
0x16af   :  { %11384 = vmatpush3.bf16.msra.mxu0 %v12329_v56  ;;  %v12340_v56 = vld [vmem:[#allocation50 + $0x18] sm:$0xff]  }
0x16b0   :  { %11397 = vmatprep.subr.mxu0 %v13659_v0 }
0x16b1   :  { %11392 = vmatpush3.bf16.msra.mxu1 %v12331_v63 }
0x16b2   :  { %11386 = vmatmul.mubr.msk.bf16.vlgmr.msra.gmra.mrb[84].mxu0 %vm788_vm1, %v3736_v57  ;;  %11402 = vmatprep.subr.bf16.mxu1 %v13659_v0  ;;  %v12341_v57 = vld [vmem:[#allocation50 + $0x8] sm:$0xff]  }
0x16b3   :  { %11399 = vmatprep.mubr.msk.f32.mxu0 %vm13661_vm3, %v13659_v0 }
0x177d   :  { %v3674_v1 = vpop.f32.mrb[80].mxu0 }
0x177e   :  { %v11371_v5 = vpop.f32.mrb[81].mxu0 }
0x177f   :  { %v3729_v2 = vpop.f32.mrb[76].mxu1  ;;  %v3677_v8 = vpop.f32.mrb[82].mxu0 }
0x1780   :  { %v3730_v4 = vadd.f32 %v3729_v2, %v3674_v1  ;;  %v11379_v7 = vpop.f32.mrb[77].mxu1  ;;  %v11372_v11 = vpop.f32.mrb[83].mxu0 }
0x1781   :  { %v3732_v10 = vpop.f32.mrb[78].mxu1 }
0x1782   :  { %v11380_v12 = vpop.f32.mrb[79].mxu1 }
0x1783   :  { %v10274_v12 = vld [vmem:[#allocation48] ss:$0 sm:$0xff] }
0x1785   :  { %v3791_v14 = vpop.f32.mrb[84].mxu0 }
0x1786   :  { %v3797_v18 = vadd.f32 %v3791_v14, %v3730_v4  ;;  %v11387_v19 = vpop.f32.mrb[85].mxu0 }
0x1787   :  { %v3794_v21 = vpop.f32.mrb[86].mxu0 }
0x1788   :  { %v3805_v22 = vadd.f32 %v10249_v15, %v3797_v18  ;;  %v11388_v24 = vpop.f32.mrb[87].mxu0 }
0x1789   :  { %v12342_v24 = vld [vmem:[#allocation50 + $0x20] sm:$0xff]  }
0x178a   :  { %v3806_v26 = vmax.f32 %v3805_v22, 0.0 }
0x178c   :  { %v3807_v27 = vpack.c.bf16 %v3806_v26, %v3806_v26 }
0x178e   :  { %11394 = vmatmul.mubr.msk.bf16.vlgmr.msra.gmra.mrb[80].mxu1 %vm788_vm1, %v3807_v27 }
0x178f   :  { %11406 = vmatprep.mubr.msk.bf16.mxu1 %vm13661_vm3, %v13659_v0  ;;  %11403 = vmatpush3.bf16.msra.mxu1 %v12332_v41 }
0x1790   :  { %11404 = vmatprep.subr.bf16.mxu1 %v13659_v0 }
0x1793   :  { %11405 = vmatpush3.bf16.msra.mxu1 %v12334_v43 }
0x1794   :  { %11418 = vmatprep.subr.bf16.mxu1 %v13659_v0 }
0x1861   :  { %v3868_v33 = vpop.f32.mrb[80].mxu1 }
0x1862   :  { %v3869_v34 = vadd.f32 %v10250_v31, %v3868_v33  ;;  %v11395_v35 = vpop.f32.mrb[81].mxu1 }
0x1863   :  { %v3871_v36 = vpop.f32.mrb[82].mxu1  ;;  %v12343_v35 = vld [vmem:[#allocation50 + $0x28] sm:$0xff]  }
0x1864   :  { %v3874_v37 = vadd.f32 %v3869_v34, %v3606_v48  ;;  %v11396_v39 = vpop.f32.mrb[83].mxu1 }
0x1865   :  { %v12345_v39 = vld [vmem:[#allocation53 + $0x8] sm:$0xff]  }
0x1866   :  { %11398 = vmatpush3.msk.msra.mxu0 %vm3123_vm13, %v3874_v37  ;;  %v12344_v37 = vld [vmem:[#allocation53] sm:$0xff]  }
0x1867   :  { %11400 = vmatmul.mubr.msk.f32.vlgmr.msra.gmra.mrb[88].mxu0 %vm3882_vm14, %v14692_v40  ;;  %11410 = vmatprep.subr.bf16.mxu0 %v13659_v0 }
0x1868   :  { %11414 = vmatprep.mubr.msk.bf16.mxu0 %vm13661_vm3, %v13659_v0  ;;  %11411 = vmatpush3.bf16.msra.mxu0 %v12333_v42 }
0x1869   :  { %11412 = vmatprep.subr.bf16.mxu0 %v13659_v0 }
0x186c   :  { %11413 = vmatpush3.bf16.msra.mxu0 %v12335_v44 }
0x186d   :  { %11426 = vmatprep.subr.bf16.mxu0 %v13659_v0 }
0x193a   :  { %v3955_v45 = vpop.f32.mrb[88].mxu0 }
0x193b   :  { %3962 = vst.msk [vmem:[#allocation2 + $0x1] sm:$0xff] %vm788_vm1, %v3955_v45  ;;  %v11401_v46 = vpop.f32.mrb[89].mxu0 }
0x1942   :  { %v3969_v48 = vld [vmem:[#allocation2 + $0x1] sm:$0xff] }
0x1943   :  { %v4086_v49 = vld [vmem:[#allocation2 + $0x2] sm:$0xff]  ;;  %v3970_v51 = vpack.c.bf16 %v3969_v48, %v3969_v48 }
0x1944   :  { %v3963_v50 = vld [vmem:[#allocation2] sm:$0xff]  ;;  %4159 = vst.msk [vmem:[#allocation2 + $0x8] sm:$0xff] %vm788_vm1, %v13659_v0  ;;  %v4087_v54 = vpack.c.bf16 %v4086_v49, %v4086_v49 }
0x1945   :  { %v3964_v52 = vpack.c.bf16 %v3963_v50, %v3963_v50  ;;  %4158 = vst.msk [vmem:[#allocation2] sm:$0xff] %vm788_vm1, %v13659_v0  ;;  %11407 = vmatmul.mubr.msk.bf16.vlgmr.msra.gmra.mrb[84].mxu1 %vm788_vm1, %v3970_v51  ;;  %v10284_v51 = vld [vmem:[#allocation51] ss:$0 sm:$0xff] }
0x1946   :  { %11419 = vmatpush3.bf16.msra.mxu1 %v12336_v47  ;;  %11422 = vmatprep.mubr.msk.bf16.mxu1 %vm13661_vm3, %v13659_v0 }
0x1947   :  { %11415 = vmatmul.mubr.msk.bf16.vlgmr.msra.gmra.mrb[92].mxu0 %vm788_vm1, %v3964_v52  ;;  %11420 = vmatprep.subr.bf16.mxu1 %v13659_v0 }
0x1948   :  { %11430 = vmatprep.mubr.msk.bf16.mxu0 %vm13661_vm3, %v13659_v0  ;;  %11427 = vmatpush3.bf16.msra.mxu0 %v12338_v55 }
0x1949   :  { %11428 = vmatprep.subr.bf16.mxu0 %v13659_v0 }
0x194a   :  { %11421 = vmatpush3.bf16.msra.mxu1 %v12337_v53 }
0x194b   :  { %11434 = vmatprep.subr.bf16.mxu1 %v13659_v0 }
0x194c   :  { %11429 = vmatpush3.bf16.msra.mxu0 %v12340_v56 }
0x194d   :  { %11423 = vmatmul.mubr.msk.bf16.vlgmr.msra.gmra.mrb[88].mxu1 %vm788_vm1, %v4087_v54  ;;  %11442 = vmatprep.subr.bf16.mxu0 %v13659_v0 }
0x194e   :  { %11438 = vmatprep.mubr.msk.bf16.mxu1 %vm13661_vm3, %v13659_v0  ;;  %11435 = vmatpush3.bf16.msra.mxu1 %v12339_v59 }
0x194f   :  { %11436 = vmatprep.subr.bf16.mxu1 %v13659_v0 }
0x1952   :  { %11437 = vmatpush3.bf16.msra.mxu1 %v12341_v57 }
0x1953   :  { %11450 = vmatprep.subr.bf16.mxu1 %v13659_v0 }
0x1a18   :  { %v4025_v61 = vpop.f32.mrb[84].mxu1 }
0x1a19   :  { %v11408_v2 = vpop.f32.mrb[85].mxu1 }
0x1a1a   :  { %v4080_v63 = vpop.f32.mrb[92].mxu0  ;;  %v4028_v5 = vpop.f32.mrb[86].mxu1  ;;  %v12349_v2 = vld [vmem:[#allocation56 + $0x8] sm:$0xff]  }
0x1a1b   :  { %v4081_v1 = vadd.f32 %v4080_v63, %v4025_v61  ;;  %v11416_v4 = vpop.f32.mrb[93].mxu0  ;;  %v11409_v8 = vpop.f32.mrb[87].mxu1  ;;  %v12346_v61 = vld [vmem:[#allocation56 + $0x10] sm:$0xff]   ;;  %v12347_v63 = vld [vmem:[#allocation56] sm:$0xff]  }
0x1a1c   :  { %v4083_v7 = vpop.f32.mrb[94].mxu0  ;;  %v10285_v4 = vld [vmem:[#allocation54] ss:$0 sm:$0xff] }
0x1a1d   :  { %v11417_v10 = vpop.f32.mrb[95].mxu0 }
0x1a20   :  { %v4142_v11 = vpop.f32.mrb[88].mxu1 }
0x1a21   :  { %v4148_v14 = vadd.f32 %v4142_v11, %v4081_v1  ;;  %v11424_v15 = vpop.f32.mrb[89].mxu1  ;;  %v12348_v1 = vld [vmem:[#allocation56 + $0x18] sm:$0xff]  }
0x1a22   :  { %v4145_v18 = vpop.f32.mrb[90].mxu1  ;;  %v12350_v15 = vld [vmem:[#allocation56 + $0x20] sm:$0xff]  }
0x1a23   :  { %v14730_v19 = vadd.f32 %v10274_v12, %v4148_v14  ;;  %v11425_v21 = vpop.f32.mrb[91].mxu1 }
0x1a25   :  { %v4157_v22 = vmax.f32 %v14730_v19, 0.0 }
0x1a27   :  { %4161 = vst.msk [vmem:[#allocation2 + $0x3] sm:$0xff] %vm788_vm1, %v4157_v22 }
0x1a2e   :  { %v4168_v26 = vld [vmem:[#allocation2 + $0x3] sm:$0xff] }
0x1a2f   :  { %v4285_v27 = vld [vmem:[#allocation2 + $0x6] sm:$0xff]  ;;  %v4169_v33 = vpack.c.bf16 %v4168_v26, %v4168_v26 }
0x1a30   :  { %v4162_v31 = vld [vmem:[#allocation2] sm:$0xff]  ;;  %4427 = vst.msk [vmem:[#allocation2 + $0x8] sm:$0xff] %vm788_vm1, %v13659_v0  ;;  %v4286_v36 = vpack.c.bf16 %v4285_v27, %v4285_v27 }
0x1a31   :  { %v4163_v34 = vpack.c.bf16 %v4162_v31, %v4162_v31  ;;  %4426 = vst.msk [vmem:[#allocation2] sm:$0xff] %vm788_vm1, %v13659_v0  ;;  %11431 = vmatmul.mubr.msk.bf16.vlgmr.msra.gmra.mrb[96].mxu0 %vm788_vm1, %v4169_v33  ;;  %v12352_v31 = vld [vmem:[#allocation59] sm:$0xff]   ;;  %v12353_v33 = vld [vmem:[#allocation59 + $0x8] sm:$0xff]  }
0x1a32   :  { %11443 = vmatpush3.bf16.msra.mxu0 %v12342_v24  ;;  %11446 = vmatprep.mubr.msk.bf16.mxu0 %vm13661_vm3, %v13659_v0 }
0x1a33   :  { %11439 = vmatmul.mubr.msk.bf16.vlgmr.msra.gmra.mrb[92].mxu1 %vm788_vm1, %v4163_v34  ;;  %11444 = vmatprep.subr.bf16.mxu0 %v13659_v0 }
0x1a34   :  { %11454 = vmatprep.mubr.msk.bf16.mxu1 %vm13661_vm3, %v13659_v0  ;;  %11451 = vmatpush3.bf16.msra.mxu1 %v12344_v37 }
0x1a35   :  { %11452 = vmatprep.subr.bf16.mxu1 %v13659_v0 }
0x1a36   :  { %11445 = vmatpush3.bf16.msra.mxu0 %v12343_v35 }
0x1a37   :  { %11458 = vmatprep.subr.bf16.mxu0 %v13659_v0 }
0x1a38   :  { %11453 = vmatpush3.bf16.msra.mxu1 %v12345_v39 }
0x1a39   :  { %11447 = vmatmul.mubr.msk.bf16.vlgmr.msra.gmra.mrb[100].mxu0 %vm788_vm1, %v4286_v36  ;;  %11466 = vmatprep.subr.bf16.mxu1 %v13659_v0 }
0x1a3a   :  { %11462 = vmatprep.mubr.msk.bf16.mxu0 %vm13661_vm3, %v13659_v0  ;;  %11459 = vmatpush3.bf16.msra.mxu0 %v12346_v61 }
0x1a3b   :  { %11460 = vmatprep.subr.bf16.mxu0 %v13659_v0 }
0x1a3e   :  { %11461 = vmatpush3.bf16.msra.mxu0 %v12348_v1 }
0x1a3f   :  { %11474 = vmatprep.subr.bf16.mxu0 %v13659_v0 }
0x1b04   :  { %v4224_v41 = vpop.f32.mrb[96].mxu0 }
0x1b05   :  { %v11432_v44 = vpop.f32.mrb[97].mxu0 }
0x1b06   :  { %v4279_v42 = vpop.f32.mrb[92].mxu1  ;;  %v4227_v46 = vpop.f32.mrb[98].mxu0 }
0x1b07   :  { %v4280_v43 = vadd.f32 %v4279_v42, %v4224_v41  ;;  %v11440_v45 = vpop.f32.mrb[93].mxu1  ;;  %v11433_v48 = vpop.f32.mrb[99].mxu0  ;;  %v10298_v46 = vld [vmem:[#allocation57] ss:$0 sm:$0xff] }
0x1b08   :  { %v4282_v47 = vpop.f32.mrb[94].mxu1 }
0x1b09   :  { %v11441_v49 = vpop.f32.mrb[95].mxu1 }
0x1b0c   :  { %v4341_v50 = vpop.f32.mrb[100].mxu0 }
0x1b0d   :  { %v4347_v52 = vadd.f32 %v4341_v50, %v4280_v43  ;;  %v11448_v53 = vpop.f32.mrb[101].mxu0 }
0x1b0e   :  { %v4344_v54 = vpop.f32.mrb[102].mxu0 }
0x1b0f   :  { %v4355_v55 = vadd.f32 %v10284_v51, %v4347_v52  ;;  %v11449_v59 = vpop.f32.mrb[103].mxu0  ;;  %v4693_v54 = vadd.s32 8, %v14331_v13  ;;  %v12354_v13 = vld [vmem:[#allocation62 + $0x10] sm:$0xff]  }
0x1b11   :  { %v4356_v56 = vmax.f32 %v4355_v55, 0.0  ;;  %v10299_v55 = vld [vmem:[#allocation60] ss:$0 sm:$0xff]  ;;  %vm4694_vm2 = vcmp.eq.s32.totalorder %v4693_v54, %v14682_v28  ;;  %vm4695_vm6 = vcmp.eq.s32.totalorder %v4693_v54, %v14685_v29  ;;  %v12355_v28 = vld [vmem:[#allocation62] sm:$0xff]  }
0x1b12   :  { %vm4696_vm8 = vmor %vm4694_vm2, %vm4695_vm6  ;;  %v12356_v29 = vld [vmem:[#allocation62 + $0x18] sm:$0xff]  }
0x1b13   :  { %v4357_v57 = vpack.c.bf16 %v4356_v56, %v4356_v56 }
0x1b15   :  { %11455 = vmatmul.mubr.msk.bf16.vlgmr.msra.gmra.mrb[96].mxu1 %vm788_vm1, %v4357_v57 }
0x1b16   :  { %11470 = vmatprep.mubr.msk.bf16.mxu1 %vm13661_vm3, %v13659_v0  ;;  %11467 = vmatpush3.bf16.msra.mxu1 %v12347_v63 }
0x1b17   :  { %11468 = vmatprep.subr.bf16.mxu1 %v13659_v0 }
0x1b1a   :  { %11469 = vmatpush3.bf16.msra.mxu1 %v12349_v2  ;;  %v14783_v2 = vsel %vm4696_vm8, 1.0, %v13659_v0 }
0x1b1b   :  { %11482 = vmatprep.subr.bf16.mxu1 %v13659_v0 }
0x1be8   :  { %v4418_v5 = vpop.f32.mrb[96].mxu1 }
0x1be9   :  { %v4419_v7 = vadd.f32 %v10285_v4, %v4418_v5  ;;  %v11456_v8 = vpop.f32.mrb[97].mxu1  ;;  %v12357_v4 = vld [vmem:[#allocation62 + $0x8] sm:$0xff]  }
0x1bea   :  { %v4421_v10 = vpop.f32.mrb[98].mxu1 }
0x1beb   :  { %v4424_v11 = vadd.f32 %v4419_v7, %v14730_v19  ;;  %v11457_v12 = vpop.f32.mrb[99].mxu1  ;;  %v12351_v19 = vld [vmem:[#allocation56 + $0x28] sm:$0xff]  }
0x1bed   :  { %v4425_v14 = vmax.f32 %v4424_v11, 0.0 }
0x1bef   :  { %4429 = vst.msk [vmem:[#allocation2 + $0x1] sm:$0xff] %vm788_vm1, %v4425_v14 }
0x1bf6   :  { %v4436_v18 = vld [vmem:[#allocation2 + $0x1] sm:$0xff] }
0x1bf7   :  { %v4553_v21 = vld [vmem:[#allocation2 + $0x2] sm:$0xff]  ;;  %v4437_v24 = vpack.c.bf16 %v4436_v18, %v4436_v18 }
0x1bf8   :  { %v4430_v22 = vld [vmem:[#allocation2] sm:$0xff]  ;;  %4781 = vst.msk [vmem:[#allocation2 + $0x8] sm:$0xff] %vm788_vm1, %v13659_v0  ;;  %v4554_v27 = vpack.c.bf16 %v4553_v21, %v4553_v21 }
0x1bf9   :  { %v4431_v26 = vpack.c.bf16 %v4430_v22, %v4430_v22  ;;  %4780 = vst.msk [vmem:[#allocation2] sm:$0xff] %vm788_vm1, %v13659_v0  ;;  %11463 = vmatmul.mubr.msk.bf16.vlgmr.msra.gmra.mrb[104].mxu0 %vm788_vm1, %v4437_v24  ;;  %v12359_v24 = vld [vmem:[#allocation62 + $0x28] sm:$0xff]  }
0x1bfa   :  { %11475 = vmatpush3.bf16.msra.mxu0 %v12350_v15  ;;  %11478 = vmatprep.mubr.msk.bf16.mxu0 %vm13661_vm3, %v13659_v0 }
0x1bfb   :  { %11471 = vmatmul.mubr.msk.bf16.vlgmr.msra.gmra.mrb[100].mxu1 %vm788_vm1, %v4431_v26  ;;  %11476 = vmatprep.subr.bf16.mxu0 %v13659_v0 }
0x1bfc   :  { %11486 = vmatprep.mubr.msk.bf16.mxu1 %vm13661_vm3, %v13659_v0  ;;  %11483 = vmatpush3.bf16.msra.mxu1 %v12352_v31  ;;  %v12362_v31 = vld [vmem:[#allocation65 + $0x18] sm:$0xff]  }
0x1bfd   :  { %11484 = vmatprep.subr.bf16.mxu1 %v13659_v0 }
0x1bfe   :  { %11477 = vmatpush3.bf16.msra.mxu0 %v12351_v19  ;;  %v12360_v19 = vld [vmem:[#allocation65 + $0x10] sm:$0xff]  }
0x1c00   :  { %11485 = vmatpush3.bf16.msra.mxu1 %v12353_v33  ;;  %v12363_v33 = vld [vmem:[#allocation65 + $0x8] sm:$0xff]  }
0x1c01   :  { %11479 = vmatmul.mubr.msk.bf16.vlgmr.msra.gmra.mrb[108].mxu0 %vm788_vm1, %v4554_v27  ;;  %11495 = vmatprep.subr.bf16.mxu1 %v13659_v0  ;;  %v12361_v27 = vld [vmem:[#allocation65] sm:$0xff]  }
0x1c02   :  { %11492 = vmatprep.mubr.msk.f32.mxu0 %vm4699_vm0, %v14692_v40 }
0x1ccc   :  { %v4492_v34 = vpop.f32.mrb[104].mxu0 }
0x1ccd   :  { %v11464_v37 = vpop.f32.mrb[105].mxu0 }
0x1cce   :  { %v4547_v35 = vpop.f32.mrb[100].mxu1  ;;  %v4495_v41 = vpop.f32.mrb[106].mxu0 }
0x1ccf   :  { %v4548_v36 = vadd.f32 %v4547_v35, %v4492_v34  ;;  %v11472_v39 = vpop.f32.mrb[101].mxu1  ;;  %v11465_v43 = vpop.f32.mrb[107].mxu0 }
0x1cd0   :  { %v4550_v42 = vpop.f32.mrb[102].mxu1 }
0x1cd1   :  { %v11473_v44 = vpop.f32.mrb[103].mxu1 }
0x1cd4   :  { %v4609_v45 = vpop.f32.mrb[108].mxu0 }
0x1cd5   :  { %v4615_v47 = vadd.f32 %v4609_v45, %v4548_v36  ;;  %v11480_v48 = vpop.f32.mrb[109].mxu0 }
0x1cd6   :  { %v4612_v49 = vpop.f32.mrb[110].mxu0 }
0x1cd7   :  { %v4623_v50 = vadd.f32 %v10298_v46, %v4615_v47  ;;  %v11481_v51 = vpop.f32.mrb[111].mxu0  ;;  %v10315_v47 = vld [vmem:[#allocation63] ss:$0 sm:$0xff] }
0x1cd9   :  { %v4624_v52 = vmax.f32 %v4623_v50, 0.0 }
0x1cdb   :  { %v4625_v53 = vpack.c.bf16 %v4624_v52, %v4624_v52 }
0x1cdd   :  { %11487 = vmatmul.mubr.msk.bf16.vlgmr.msra.gmra.mrb[104].mxu1 %vm788_vm1, %v4625_v53 }
0x1cde   :  { %11499 = vmatprep.mubr.msk.bf16.mxu1 %vm13661_vm3, %v13659_v0  ;;  %11496 = vmatpush3.bf16.msra.mxu1 %v12354_v13 }
0x1cdf   :  { %11497 = vmatprep.subr.bf16.mxu1 %v13659_v0 }
0x1ce2   :  { %11498 = vmatpush3.bf16.msra.mxu1 %v12356_v29  ;;  %v12365_v29 = vld [vmem:[#allocation65 + $0x28] sm:$0xff]  }
0x1ce3   :  { %11511 = vmatprep.subr.bf16.mxu1 %v13659_v0 }
0x1db0   :  { %v4686_v59 = vpop.f32.mrb[104].mxu1 }
0x1db1   :  { %v4687_v56 = vadd.f32 %v10299_v55, %v4686_v59  ;;  %v11488_v57 = vpop.f32.mrb[105].mxu1 }
0x1db2   :  { %v4689_v61 = vpop.f32.mrb[106].mxu1 }
0x1db3   :  { %v4692_v63 = vadd.f32 %v4687_v56, %v4424_v11  ;;  %v11489_v1 = vpop.f32.mrb[107].mxu1  ;;  %v12358_v11 = vld [vmem:[#allocation62 + $0x20] sm:$0xff]   ;;  %v12364_v56 = vld [vmem:[#allocation65 + $0x20] sm:$0xff]  }
0x1db5   :  { %11490 = vmatprep.subr.mxu0 %v4692_v63 }
0x1db6   :  { %11491 = vmatpush3.msra.mxu0 %v4692_v63 }
0x1db7   :  { %11493 = vmatmul.mubr.msk.f32.vlgmr.msra.gmra.mrb[90].mxu0 %vm4699_vm0, %v14783_v2  ;;  %11503 = vmatprep.subr.bf16.mxu0 %v13659_v0 }
0x1db8   :  { %11507 = vmatprep.mubr.msk.bf16.mxu0 %vm13661_vm3, %v13659_v0  ;;  %11504 = vmatpush3.bf16.msra.mxu0 %v12355_v28 }
0x1db9   :  { %11505 = vmatprep.subr.bf16.mxu0 %v13659_v0 }
0x1dbc   :  { %11506 = vmatpush3.bf16.msra.mxu0 %v12357_v4 }
0x1dbd   :  { %11519 = vmatprep.subr.bf16.mxu0 %v13659_v0 }
0x1e8a   :  { %v11494_v5 = vpop.f32.mrb[90].mxu0 }
0x1e8b   :  { %4784 = vst.msk [vmem:[#allocation2 + $0x9] sm:$0xff] %vm788_vm1, %v11494_v5  ;;  %v4771_v7 = vpop.f32.mrb[91].mxu0  ;;  %v12366_v5 = vld [vmem:[%s15557_s6 + $0x10] sm:$0xff]  }
0x1e8c   :  { %4783 = vst.msk [vmem:[#allocation2 + $0x1] sm:$0xff] %vm788_vm1, %v4771_v7  ;;  %v12367_v7 = vld [vmem:[%s15557_s6] sm:$0xff]  }
0x1e92   :  { %v4793_v8 = vld [vmem:[#allocation2 + $0x9] sm:$0xff] }
0x1e93   :  { %v4913_v10 = vld [vmem:[#allocation2 + $0xa] sm:$0xff]  ;;  %v4792_v12 = vld [vmem:[#allocation2 + $0x1] sm:$0xff] }
0x1e94   :  { %v4912_v14 = vld [vmem:[#allocation2 + $0x2] sm:$0xff]  ;;  %4989 = vst.msk [vmem:[#allocation2 + $0x10] sm:$0xff] %vm788_vm1, %v13659_v0  ;;  %v4794_v18 = vpack.c.bf16 %v4793_v8, %v4792_v12 }
0x1e95   :  { %v4785_v15 = vld [vmem:[#allocation2] sm:$0xff]  ;;  %v4786_v21 = vld [vmem:[#allocation2 + $0x8] sm:$0xff]  ;;  %v4914_v26 = vpack.c.bf16 %v4913_v10, %v4912_v14  ;;  %v12369_v10 = vld [vmem:[%s15557_s6 + $0x8] sm:$0xff]  }
0x1e96   :  { %4987 = vst.msk [vmem:[#allocation2] sm:$0xff] %vm788_vm1, %v13659_v0  ;;  %v4787_v22 = vpack.c.bf16 %v4786_v21, %v4785_v15  ;;  %4988 = vst.msk [vmem:[#allocation2 + $0x8] sm:$0xff] %vm788_vm1, %v13659_v0  ;;  %11500 = vmatmul.mubr.msk.bf16.vlgmr.msra.gmra.mrb[108].mxu1 %vm788_vm1, %v4794_v18  ;;  %v12368_v8 = vld [vmem:[%s15557_s6 + $0x18] sm:$0xff]  }
0x1e97   :  { %11512 = vmatpush3.bf16.msra.mxu1 %v12358_v11  ;;  %11515 = vmatprep.mubr.msk.bf16.mxu1 %vm13661_vm3, %v13659_v0 }
0x1e98   :  { %11508 = vmatmul.mubr.msk.bf16.vlgmr.msra.gmra.mrb[112].mxu0 %vm788_vm1, %v4787_v22  ;;  %11513 = vmatprep.subr.bf16.mxu1 %v13659_v0 }
0x1e99   :  { %11523 = vmatprep.mubr.msk.bf16.mxu0 %vm13661_vm3, %v13659_v0  ;;  %11520 = vmatpush3.bf16.msra.mxu0 %v12360_v19 }
0x1e9a   :  { %11521 = vmatprep.subr.bf16.mxu0 %v13659_v0 }
0x1e9b   :  { %11514 = vmatpush3.bf16.msra.mxu1 %v12359_v24 }
0x1e9c   :  { %11527 = vmatprep.subr.bf16.mxu1 %v13659_v0 }
0x1e9d   :  { %11522 = vmatpush3.bf16.msra.mxu0 %v12362_v31  ;;  %v10325_v31 = vld [vmem:[#allocation66] ss:$0 sm:$0xff] }
0x1e9e   :  { %11516 = vmatmul.mubr.msk.bf16.vlgmr.msra.gmra.mrb[112].mxu1 %vm788_vm1, %v4914_v26  ;;  %11535 = vmatprep.subr.bf16.mxu0 %v13659_v0 }
0x1e9f   :  { %11531 = vmatprep.mubr.msk.bf16.mxu1 %vm13661_vm3, %v13659_v0  ;;  %11528 = vmatpush3.bf16.msra.mxu1 %v12361_v27 }
0x1ea0   :  { %11529 = vmatprep.subr.bf16.mxu1 %v13659_v0 }
0x1ea3   :  { %11530 = vmatpush3.bf16.msra.mxu1 %v12363_v33 }
0x1ea4   :  { %11543 = vmatprep.subr.bf16.mxu1 %v13659_v0 }
0x1f69   :  { %v4849_v34 = vpop.f32.mrb[108].mxu1 }
0x1f6a   :  { %v11501_v36 = vpop.f32.mrb[109].mxu1 }
0x1f6b   :  { %v4905_v35 = vpop.f32.mrb[112].mxu0  ;;  %v4852_v41 = vpop.f32.mrb[110].mxu1 }
0x1f6c   :  { %v4906_v37 = vadd.f32 %v4905_v35, %v4849_v34  ;;  %v11509_v39 = vpop.f32.mrb[113].mxu0  ;;  %v11502_v43 = vpop.f32.mrb[111].mxu1 }
0x1f6d   :  { %v4908_v42 = vpop.f32.mrb[114].mxu0 }
0x1f6e   :  { %v4909_v44 = vadd.f32 %v4908_v42, %v4852_v41  ;;  %v11510_v45 = vpop.f32.mrb[115].mxu0 }
0x1f6f   :  { %v10344_v45 = vld [vmem:[%s15546_s9 + $0x10] sm:$0xff] }
0x1f71   :  { %v4969_v46 = vpop.f32.mrb[112].mxu1 }
0x1f72   :  { %v4976_v48 = vadd.f32 %v4969_v46, %v4906_v37  ;;  %v11517_v49 = vpop.f32.mrb[113].mxu1  ;;  %v10345_v46 = vld [vmem:[%s15546_s9 + $0x18] sm:$0xff] }
0x1f73   :  { %v4972_v50 = vpop.f32.mrb[114].mxu1  ;;  %v12370_v49 = vld [vmem:[%s15557_s6 + $0x20] sm:$0xff]  }
0x1f74   :  { %v4985_v51 = vadd.f32 %v10315_v47, %v4976_v48  ;;  %v4977_v52 = vadd.f32 %v4972_v50, %v4909_v44  ;;  %v11518_v53 = vpop.f32.mrb[115].mxu1  ;;  %v5420_v44 = vld [vmem:[#allocation3 + $0x2] sm:$0x3] }
0x1f76   :  { %4990 = vst.msk [vmem:[#allocation2 + $0x1] sm:$0xff] %vm788_vm1, %v4985_v51  ;;  %v4986_v54 = vadd.f32 %v10315_v47, %v4977_v52 }
0x1f78   :  { %4991 = vst.msk [vmem:[#allocation2 + $0x9] sm:$0xff] %vm788_vm1, %v4986_v54 }
0x1f7d   :  { %v4999_v55 = vld [vmem:[#allocation2 + $0x1] sm:$0xff] }
0x1f7e   :  { %v4992_v59 = vld [vmem:[#allocation2] sm:$0xff] }
0x1f7f   :  { %v5000_v57 = vld [vmem:[#allocation2 + $0x9] sm:$0xff] }
0x1f80   :  { %v5119_v61 = vld [vmem:[#allocation2 + $0x2] sm:$0xff]  ;;  %v5120_v63 = vld [vmem:[#allocation2 + $0xa] sm:$0xff]  ;;  %v5001_v1 = vpack.c.bf16 %v5000_v57, %v4999_v55  ;;  %v5425_v55 = vand.u32 %v5420_v44, %v14244_v3  ;;  %v5416_v57 = vld [vmem:[#allocation3] sm:$0x3] }
0x1f81   :  { %5198 = vst.msk [vmem:[#allocation2 + $0x10] sm:$0xff] %vm788_vm1, %v13659_v0  ;;  %v4993_v13 = vld [vmem:[#allocation2 + $0x8] sm:$0xff]  ;;  %5196 = vst.msk [vmem:[#allocation2] sm:$0xff] %vm788_vm1, %v13659_v0  ;;  %v5121_v4 = vpack.c.bf16 %v5120_v63, %v5119_v61  ;;  %v5518_v61 = vld [vmem:[#allocation3 + $0x4] sm:$0x3]  ;;  %v5472_v63 = vand.u32 %v5416_v57, %v14244_v3 }
0x1f82   :  { %v4994_v28 = vpack.c.bf16 %v4993_v13, %v4992_v59  ;;  %5197 = vst.msk [vmem:[#allocation2 + $0x8] sm:$0xff] %vm788_vm1, %v13659_v0  ;;  %11524 = vmatmul.mubr.msk.bf16.vlgmr.msra.gmra.mrb[116].mxu0 %vm788_vm1, %v5001_v1 }
0x1f83   :  { %11536 = vmatpush3.bf16.msra.mxu0 %v12364_v56  ;;  %11539 = vmatprep.mubr.msk.bf16.mxu0 %vm13661_vm3, %v13659_v0  ;;  %v12371_v56 = vld [vmem:[%s15557_s6 + $0x28] sm:$0xff]  }
0x1f84   :  { %11532 = vmatmul.mubr.msk.bf16.vlgmr.msra.gmra.mrb[116].mxu1 %vm788_vm1, %v4994_v28  ;;  %11537 = vmatprep.subr.bf16.mxu0 %v13659_v0 }
0x1f85   :  { %11547 = vmatprep.mubr.msk.bf16.mxu1 %vm13661_vm3, %v13659_v0  ;;  %11544 = vmatpush3.bf16.msra.mxu1 %v12366_v5 }
0x1f86   :  { %11545 = vmatprep.subr.bf16.mxu1 %v13659_v0 }
0x1f87   :  { %11538 = vmatpush3.bf16.msra.mxu0 %v12365_v29 }
0x1f88   :  { %11551 = vmatprep.subr.bf16.mxu0 %v13659_v0 }
0x1f89   :  { %11546 = vmatpush3.bf16.msra.mxu1 %v12368_v8 }
0x1f8a   :  { %11540 = vmatmul.mubr.msk.bf16.vlgmr.msra.gmra.mrb[120].mxu0 %vm788_vm1, %v5121_v4  ;;  %11559 = vmatprep.subr.bf16.mxu1 %v13659_v0  ;;  %v5523_v4 = vand.u32 %v5518_v61, %v14244_v3 }
0x1f8b   :  { %11555 = vmatprep.mubr.msk.bf16.mxu0 %vm13661_vm3, %v13659_v0  ;;  %11552 = vmatpush3.bf16.msra.mxu0 %v12367_v7 }
0x1f8c   :  { %11553 = vmatprep.subr.bf16.mxu0 %v13659_v0 }
0x1f8f   :  { %11554 = vmatpush3.bf16.msra.mxu0 %v12369_v10 }
0x1f90   :  { %11567 = vmatprep.subr.bf16.mxu0 %v13659_v0 }
0x2055   :  { %v5056_v11 = vpop.f32.mrb[116].mxu0 }
0x2056   :  { %v11525_v14 = vpop.f32.mrb[117].mxu0 }
0x2057   :  { %v5112_v12 = vpop.f32.mrb[116].mxu1  ;;  %v5059_v21 = vpop.f32.mrb[118].mxu0  ;;  %v12373_v14 = vld [vmem:[%s15547_s29] sm:$0xff]  }
0x2058   :  { %v5113_v15 = vadd.f32 %v5112_v12, %v5056_v11  ;;  %v11533_v18 = vpop.f32.mrb[117].mxu1  ;;  %v11526_v24 = vpop.f32.mrb[119].mxu0  ;;  %v12372_v12 = vld [vmem:[%s15547_s29 + $0x10] sm:$0xff]  }
0x2059   :  { %v5115_v22 = vpop.f32.mrb[118].mxu1  ;;  %v12375_v18 = vld [vmem:[%s15547_s29 + $0x8] sm:$0xff]  }
0x205a   :  { %v5116_v26 = vadd.f32 %v5115_v22, %v5059_v21  ;;  %v11534_v19 = vpop.f32.mrb[119].mxu1 }
0x205d   :  { %v5176_v27 = vpop.f32.mrb[120].mxu0 }
0x205e   :  { %v5183_v33 = vadd.f32 %v5176_v27, %v5113_v15  ;;  %v11541_v34 = vpop.f32.mrb[121].mxu0  ;;  %v12374_v15 = vld [vmem:[%s15547_s29 + $0x18] sm:$0xff]  }
0x205f   :  { %v5179_v35 = vpop.f32.mrb[122].mxu0 }
0x2060   :  { %v5192_v36 = vadd.f32 %v10325_v31, %v5183_v33  ;;  %v5184_v37 = vadd.f32 %v5179_v35, %v5116_v26  ;;  %v11542_v39 = vpop.f32.mrb[123].mxu0 }
0x2062   :  { %v5194_v41 = vmax.f32 %v5192_v36, 0.0  ;;  %v5193_v42 = vadd.f32 %v10325_v31, %v5184_v37  ;;  %v10343_v37 = vld [vmem:[#allocation68] ss:$0 sm:$0xff] }
0x2064   :  { %5199 = vst.msk [vmem:[#allocation2 + $0x1] sm:$0xff] %vm788_vm1, %v5194_v41  ;;  %v5195_v43 = vmax.f32 %v5193_v42, 0.0 }
0x2066   :  { %5200 = vst.msk [vmem:[#allocation2 + $0x9] sm:$0xff] %vm788_vm1, %v5195_v43 }
0x206b   :  { %v5208_v47 = vld [vmem:[#allocation2 + $0x1] sm:$0xff] }
0x206c   :  { %v5201_v48 = vld [vmem:[#allocation2] sm:$0xff] }
0x206d   :  { %v5209_v50 = vld [vmem:[#allocation2 + $0x9] sm:$0xff] }
0x206e   :  { %v5328_v51 = vld [vmem:[#allocation2 + $0x2] sm:$0xff]  ;;  %v5329_v52 = vld [vmem:[#allocation2 + $0xa] sm:$0xff]  ;;  %v5210_v53 = vpack.c.bf16 %v5209_v50, %v5208_v47 }
0x206f   :  { %5410 = vst.msk [vmem:[#allocation2 + $0x10] sm:$0xff] %vm788_vm1, %v13659_v0  ;;  %v5202_v54 = vld [vmem:[#allocation2 + $0x8] sm:$0xff]  ;;  %5408 = vst.msk [vmem:[#allocation2] sm:$0xff] %vm788_vm1, %v13659_v0  ;;  %v5330_v1 = vpack.c.bf16 %v5329_v52, %v5328_v51 }
0x2070   :  { %v5203_v59 = vpack.c.bf16 %v5202_v54, %v5201_v48  ;;  %5409 = vst.msk [vmem:[#allocation2 + $0x8] sm:$0xff] %vm788_vm1, %v13659_v0  ;;  %11548 = vmatmul.mubr.msk.bf16.vlgmr.msra.gmra.mrb[120].mxu1 %vm788_vm1, %v5210_v53 }
0x2071   :  { %5411 = vst.msk [vmem:[#allocation2 + $0x1] sm:$0xff] %vm792_vm4, %v10344_v45  ;;  %5412 = vst.msk [vmem:[#allocation2 + $0x9] sm:$0xff] %vm792_vm4, %v10345_v46  ;;  %11560 = vmatpush3.bf16.msra.mxu1 %v12370_v49  ;;  %11563 = vmatprep.mubr.msk.bf16.mxu1 %vm13661_vm3, %v13659_v0 }
0x2072   :  { %11556 = vmatmul.mubr.msk.bf16.vlgmr.msra.gmra.mrb[124].mxu0 %vm788_vm1, %v5203_v59  ;;  %11561 = vmatprep.subr.bf16.mxu1 %v13659_v0 }
0x2073   :  { %11568 = vmatpush3.bf16.msra.mxu0 %v5425_v55  ;;  %11569 = vmatprep.mubr.msk.bf16.mxu0 %vm13661_vm3, %v13659_v0  ;;  %v10349_v55 = vld [vmem:[#allocation6] ss:$0 sm:$0xff] }
0x2074   :  { %11579 = vmatprep.subr.bf16.mxu0 %v13659_v0 }
0x2075   :  { %11562 = vmatpush3.bf16.msra.mxu1 %v12371_v56 }
0x2076   :  { %11573 = vmatprep.subr.bf16.mxu1 %v13659_v0 }
0x2078   :  { %v5417_v13 = vld [vmem:[#allocation2 + $0x1] sm:$0xff]  ;;  %v5418_v28 = vld [vmem:[#allocation2 + $0x9] sm:$0xff]  ;;  %11564 = vmatmul.mubr.msk.bf16.vlgmr.msra.gmra.mrb[124].mxu1 %vm788_vm1, %v5330_v1 }
0x2079   :  { %v5515_v29 = vld [vmem:[#allocation2 + $0x2] sm:$0xff]  ;;  %v5419_v5 = vpack.c.bf16 %v5418_v28, %v5417_v13  ;;  %v5516_v7 = vld [vmem:[#allocation2 + $0xa] sm:$0xff]  ;;  %11574 = vmatpush3.bf16.msra.mxu1 %v5472_v63  ;;  %11575 = vmatprep.mubr.msk.bf16.mxu1 %vm13661_vm3, %v13659_v0 }
0x207a   :  { %v5413_v8 = vld [vmem:[#allocation2] sm:$0xff]  ;;  %v5414_v10 = vld [vmem:[#allocation2 + $0x8] sm:$0xff]  ;;  %5581 = vst.msk [vmem:[#allocation2 + $0x10] sm:$0xff] %vm788_vm1, %v13659_v0  ;;  %11585 = vmatprep.subr.bf16.mxu1 %v13659_v0  ;;  %v5517_v11 = vpack.c.bf16 %v5516_v7, %v5515_v29 }
0x207b   :  { %5579 = vst.msk [vmem:[#allocation2] sm:$0xff] %vm788_vm1, %v13659_v0  ;;  %5580 = vst.msk [vmem:[#allocation2 + $0x8] sm:$0xff] %vm788_vm1, %v13659_v0  ;;  %11570 = vmatmul.mubr.msk.bf16.vlgmr.msra.gmra.mrb[128].mxu0 %vm792_vm4, %v5419_v5  ;;  %v5415_v3 = vpack.c.bf16 %v5414_v10, %v5413_v8  ;;  %v12376_v8 = vld [vmem:[%s15547_s29 + $0x20] sm:$0xff]  }
0x207c   :  { %11580 = vmatpush3.bf16.msra.mxu0 %v5523_v4  ;;  %11581 = vmatprep.mubr.msk.bf16.mxu0 %vm13661_vm3, %v13659_v0 }
0x207d   :  { %11593 = vmatprep.subr.bf16.mxu0 %v13659_v0 }
0x2080   :  { %11576 = vmatmul.mubr.msk.bf16.vlgmr.msra.gmra.mrb[128].mxu1 %vm792_vm4, %v5415_v3 }
0x2081   :  { %11589 = vmatprep.mubr.msk.bf16.mxu1 %vm13661_vm3, %v13659_v0  ;;  %11586 = vmatpush3.bf16.msra.mxu1 %v12372_v12 }
0x2082   :  { %11587 = vmatprep.subr.bf16.mxu1 %v13659_v0 }
0x2083   :  { %11582 = vmatmul.mubr.msk.bf16.vlgmr.msra.gmra.mrb[132].mxu0 %vm792_vm4, %v5517_v11  ;;  %v12377_v11 = vld [vmem:[%s15547_s29 + $0x30] sm:$0xff]  }
0x2084   :  { %11597 = vmatprep.mubr.msk.bf16.mxu0 %vm13661_vm3, %v13659_v0  ;;  %11594 = vmatpush3.bf16.msra.mxu0 %v12373_v14 }
0x2085   :  { %11595 = vmatprep.subr.bf16.mxu0 %v13659_v0  ;;  %11588 = vmatpush3.bf16.msra.mxu1 %v12374_v15 }
0x2086   :  { %11601 = vmatprep.subr.bf16.mxu1 %v13659_v0 }
0x2088   :  { %11596 = vmatpush3.bf16.msra.mxu0 %v12375_v18 }
0x2089   :  { %11609 = vmatprep.subr.bf16.mxu0 %v13659_v0 }
0x2143   :  { %v5265_v21 = vpop.f32.mrb[120].mxu1 }
0x2144   :  { %v11549_v24 = vpop.f32.mrb[121].mxu1 }
0x2145   :  { %v5321_v22 = vpop.f32.mrb[124].mxu0  ;;  %v5268_v27 = vpop.f32.mrb[122].mxu1 }
0x2146   :  { %v5322_v26 = vadd.f32 %v5321_v22, %v5265_v21  ;;  %v11557_v19 = vpop.f32.mrb[125].mxu0  ;;  %v11550_v33 = vpop.f32.mrb[123].mxu1 }
0x2147   :  { %v5324_v31 = vpop.f32.mrb[126].mxu0  ;;  %v12378_v19 = vld [vmem:[%s15547_s29 + $0x28] sm:$0xff]  }
0x2148   :  { %v5325_v34 = vadd.f32 %v5324_v31, %v5268_v27  ;;  %v11558_v35 = vpop.f32.mrb[127].mxu0  ;;  %v12379_v27 = vld [vmem:[%s15547_s29 + $0x38] sm:$0xff]  }
0x214b   :  { %v5385_v36 = vpop.f32.mrb[124].mxu1 }
0x214c   :  { %v5392_v39 = vadd.f32 %v5385_v36, %v5322_v26  ;;  %v11565_v41 = vpop.f32.mrb[125].mxu1 }
0x214d   :  { %v5388_v43 = vpop.f32.mrb[126].mxu1 }
0x214e   :  { %v5461_v42 = vpop.f32.mrb[128].mxu0  ;;  %v5401_v44 = vadd.f32 %v10343_v37, %v5392_v39  ;;  %v5393_v45 = vadd.f32 %v5388_v43, %v5325_v34  ;;  %v11566_v47 = vpop.f32.mrb[127].mxu1 }
0x214f   :  { %v11571_v46 = vpop.f32.mrb[129].mxu0 }
0x2150   :  { %v5464_v48 = vpop.f32.mrb[130].mxu0  ;;  %5403 = vst.msk [vmem:[%s13944_s12] sm:$0xff] %vm792_vm4, %v5401_v44  ;;  %v5402_v49 = vadd.f32 %v10343_v37, %v5393_v45 }
0x2151   :  { %v11572_v50 = vpop.f32.mrb[131].mxu0 }
0x2152   :  { %5404 = vst.msk [vmem:[%s13944_s12 + $0x8] sm:$0xff] %vm792_vm4, %v5402_v49 }
0x2153   :  { %v5508_v51 = vpop.f32.mrb[128].mxu1 }
0x2154   :  { %v5509_v52 = vadd.f32 %v5508_v51, %v5461_v42  ;;  %v11577_v53 = vpop.f32.mrb[129].mxu1 }
0x2155   :  { %v5511_v59 = vpop.f32.mrb[130].mxu1 }
0x2156   :  { %v5559_v54 = vpop.f32.mrb[132].mxu0  ;;  %v5512_v57 = vadd.f32 %v5511_v59, %v5464_v48  ;;  %v11578_v63 = vpop.f32.mrb[131].mxu1  ;;  %v10374_v59 = vld [vmem:[#allocation8] ss:$0 sm:$0xff] }
0x2157   :  { %v5566_v56 = vadd.f32 %v5559_v54, %v5509_v52  ;;  %v11583_v61 = vpop.f32.mrb[133].mxu0 }
0x2158   :  { %v5562_v1 = vpop.f32.mrb[134].mxu0 }
0x2159   :  { %v5575_v13 = vadd.f32 %v10349_v55, %v5566_v56  ;;  %v5567_v28 = vadd.f32 %v5562_v1, %v5512_v57  ;;  %v11584_v29 = vpop.f32.mrb[135].mxu0 }
0x215a   :  { %v12382_v29 = vld [vmem:[%s15548_s2 + $0x18] sm:$0xff]  }
0x215b   :  { %v5577_v4 = vmax.f32 %v5575_v13, 0.0  ;;  %v5576_v5 = vadd.f32 %v10349_v55, %v5567_v28  ;;  %v12380_v13 = vld [vmem:[%s15548_s2 + $0x10] sm:$0xff]   ;;  %v12381_v28 = vld [vmem:[%s15548_s2] sm:$0xff]  }
0x215d   :  { %5582 = vst.msk [vmem:[#allocation2 + $0x1] sm:$0xff] %vm788_vm1, %v5577_v4  ;;  %v5578_v7 = vmax.f32 %v5576_v5, 0.0  ;;  %v12383_v4 = vld [vmem:[%s15548_s2 + $0x8] sm:$0xff]  }
0x215f   :  { %5583 = vst.msk [vmem:[#allocation2 + $0x9] sm:$0xff] %vm788_vm1, %v5578_v7 }
0x2164   :  { %v5591_v10 = vld [vmem:[#allocation2 + $0x1] sm:$0xff] }
0x2165   :  { %v5584_v3 = vld [vmem:[#allocation2] sm:$0xff] }
0x2166   :  { %v5592_v12 = vld [vmem:[#allocation2 + $0x9] sm:$0x7f] }
0x2167   :  { %v5710_v14 = vld [vmem:[#allocation2 + $0x2] sm:$0xff]  ;;  %v5711_v15 = vld [vmem:[#allocation2 + $0xa] sm:$0x7f]  ;;  %v5593_v18 = vpack.c.bf16 %v5592_v12, %v5591_v10 }
0x2168   :  { %v5776_v21 = vld [vmem:[#allocation2 + $0xb] sm:$0x7f]  ;;  %v5775_v24 = vld [vmem:[#allocation2 + $0x3] sm:$0xff]  ;;  %v5712_v31 = vpack.c.bf16 %v5711_v15, %v5710_v14  ;;  %v12385_v15 = vld [vmem:[%s15548_s2 + $0x28] sm:$0xff]  }
0x2169   :  { %v5585_v22 = vld [vmem:[#allocation2 + $0x8] sm:$0x7f]  ;;  %5925 = vst.msk [vmem:[#allocation2 + $0x10] sm:$0xff] %vm788_vm1, %v13659_v0  ;;  %5923 = vst.msk [vmem:[#allocation2] sm:$0xff] %vm788_vm1, %v13659_v0  ;;  %11590 = vmatmul.mubr.msk.bf16.vlgmr.msra.gmra.mrb[132].mxu1 %vm788_vm1, %v5593_v18  ;;  %v5777_v33 = vpack.c.bf16 %v5776_v21, %v5775_v24 }
0x216a   :  { %v5586_v26 = vpack.c.bf16 %v5585_v22, %v5584_v3  ;;  %5924 = vst.msk [vmem:[#allocation2 + $0x8] sm:$0xff] %vm788_vm1, %v13659_v0  ;;  %6191 = vst.msk [vmem:[#allocation2 + $0x10] sm:$0xff] %vm788_vm1, %v13659_v0  ;;  %11602 = vmatpush3.bf16.msra.mxu1 %v12376_v8  ;;  %11605 = vmatprep.mubr.msk.bf16.mxu1 %vm13661_vm3, %v13659_v0  ;;  %v12384_v8 = vld [vmem:[%s15548_s2 + $0x20] sm:$0xff]   ;;  %v12386_v21 = vld [vmem:[#allocation11] sm:$0xff]  }
0x216b   :  { %6456 = vst.msk [vmem:[#allocation2 + $0x10] sm:$0xff] %vm788_vm1, %v13659_v0  ;;  %11603 = vmatprep.subr.bf16.mxu1 %v13659_v0  ;;  %v12387_v22 = vld [vmem:[#allocation11 + $0x8] sm:$0xff]  }
0x216c   :  { %11598 = vmatmul.mubr.msk.bf16.vlgmr.msra.gmra.mrb[136].mxu0 %vm788_vm1, %v5586_v26  ;;  %6788 = vst.msk [vmem:[#allocation2 + $0x10] sm:$0xff] %vm788_vm1, %v13659_v0 }
0x216d   :  { %11610 = vmatpush3.bf16.msra.mxu0 %v12377_v11  ;;  %7054 = vst.msk [vmem:[#allocation2 + $0x10] sm:$0xff] %vm788_vm1, %v13659_v0  ;;  %11613 = vmatprep.mubr.msk.bf16.mxu0 %vm13661_vm3, %v13659_v0 }
0x216e   :  { %11611 = vmatprep.subr.bf16.mxu0 %v13659_v0  ;;  %7319 = vst.msk [vmem:[#allocation2 + $0x10] sm:$0xff] %vm788_vm1, %v13659_v0  ;;  %11604 = vmatpush3.bf16.msra.mxu1 %v12378_v19 }
0x216f   :  { %7712 = vst.msk [vmem:[#allocation2 + $0x10] sm:$0xff] %vm788_vm1, %v13659_v0  ;;  %12123 = vmatprep.subr.bf16.mxu1 %v13662_v62 }
0x2170   :  { %7910 = vst.msk [vmem:[#allocation2 + $0x10] sm:$0xff] %vm788_vm1, %v13659_v0 }
0x2171   :  { %11612 = vmatpush3.bf16.msra.mxu0 %v12379_v27  ;;  %8176 = vst.msk [vmem:[#allocation2 + $0x10] sm:$0xff] %vm788_vm1, %v13659_v0  ;;  %11606 = vmatmul.mubr.msk.bf16.vlgmr.msra.gmra.mrb[136].mxu1 %vm788_vm1, %v5712_v31 }
0x2172   :  { %11624 = vmatprep.subr.bf16.mxu0 %v13659_v0  ;;  %8514 = vst.msk [vmem:[#allocation2 + $0x10] sm:$0xff] %vm788_vm1, %v13659_v0  ;;  %11621 = vmatprep.mubr.msk.f32.mxu1 %vm13661_vm3, %v13659_v0 }
0x2173   :  { %8711 = vst.msk [vmem:[#allocation2 + $0x10] sm:$0xff] %vm788_vm1, %v13659_v0 }
0x2174   :  { %11614 = vmatmul.mubr.msk.bf16.vlgmr.msra.gmra.mrb[140].mxu0 %vm788_vm1, %v5777_v33  ;;  %8977 = vst.msk [vmem:[#allocation2 + $0x10] sm:$0xff] %vm788_vm1, %v13659_v0 }
0x2175   :  { %11628 = vmatprep.mubr.msk.bf16.mxu0 %vm13661_vm3, %v13659_v0  ;;  %9317 = vst.msk [vmem:[#allocation2 + $0x10] sm:$0xff] %vm788_vm1, %v13659_v0  ;;  %11625 = vmatpush3.bf16.msra.mxu0 %v12380_v13 }
0x2176   :  { %11626 = vmatprep.subr.bf16.mxu0 %v13659_v0 }
0x2179   :  { %11627 = vmatpush3.bf16.msra.mxu0 %v12382_v29 }
0x217a   :  { %11640 = vmatprep.subr.bf16.mxu0 %v13659_v0 }
0x223c   :  { %v5647_v34 = vpop.f32.mrb[132].mxu1 }
0x223d   :  { %v11591_v36 = vpop.f32.mrb[133].mxu1 }
0x223e   :  { %v5650_v41 = vpop.f32.mrb[134].mxu1 }
0x223f   :  { %v5703_v35 = vpop.f32.mrb[136].mxu0  ;;  %v11592_v43 = vpop.f32.mrb[135].mxu1 }
0x2240   :  { %v5704_v37 = vadd.f32 %v5703_v35, %v5647_v34  ;;  %v11599_v39 = vpop.f32.mrb[137].mxu0 }
0x2241   :  { %v5706_v42 = vpop.f32.mrb[138].mxu0  ;;  %v10394_v39 = vld [vmem:[#allocation9] ss:$0 sm:$0xff] }
0x2242   :  { %v5707_v44 = vadd.f32 %v5706_v42, %v5650_v41  ;;  %v11600_v45 = vpop.f32.mrb[139].mxu0 }
0x2244   :  { %v5766_v46 = vpop.f32.mrb[136].mxu1 }
0x2245   :  { %v5773_v47 = vadd.f32 %v5766_v46, %v5704_v37  ;;  %v11607_v49 = vpop.f32.mrb[137].mxu1 }
0x2246   :  { %v5769_v51 = vpop.f32.mrb[138].mxu1  ;;  %v12389_v49 = vld [vmem:[#allocation14] sm:$0xff]  }
0x2247   :  { %v5831_v48 = vpop.f32.mrb[140].mxu0  ;;  %v5774_v53 = vadd.f32 %v5769_v51, %v5707_v44  ;;  %v11608_v55 = vpop.f32.mrb[139].mxu1  ;;  %v12391_v51 = vld [vmem:[#allocation14 + $0x8] sm:$0xff]  }
0x2248   :  { %v11615_v50 = vpop.f32.mrb[141].mxu0  ;;  %v5838_v52 = vadd.f32 %v5831_v48, %v5773_v47  ;;  %v12388_v48 = vld [vmem:[#allocation14 + $0x10] sm:$0xff]  }
0x2249   :  { %v5834_v54 = vpop.f32.mrb[142].mxu0  ;;  %v12390_v50 = vld [vmem:[#allocation14 + $0x18] sm:$0xff]  }
0x224a   :  { %v11616_v56 = vpop.f32.mrb[143].mxu0  ;;  %v5839_v57 = vadd.f32 %v5834_v54, %v5774_v53  ;;  %v5847_v61 = vadd.f32 %v10374_v59, %v5838_v52  ;;  %v10395_v52 = vld [vmem:[#allocation12] ss:$0 sm:$0xff] }
0x224c   :  { %v5848_v63 = vadd.f32 %v10374_v59, %v5839_v57 }
0x224e   :  { %v12124_v1 = vpack.c.bf16 %v5848_v63, %v5847_v61  ;;  %v12392_v63 = vld [vmem:[#allocation14 + $0x20] sm:$0xff]  }
0x2250   :  { %12126 = vmatpush3.bf16.msk.msra.mxu1 %vm14337_vm7, %v12124_v1 }
0x2251   :  { %11632 = vmatprep.subr.bf16.mxu1 %v13659_v0 }
0x2253   :  { %11622 = vmatmul.mubr.msk.f32.vlgmr.msra.gmra.mrb[140].mxu1 %vm1248_vm9, %v14345_v32 }
0x2254   :  { %11636 = vmatprep.mubr.msk.bf16.mxu1 %vm13661_vm3, %v13659_v0  ;;  %11633 = vmatpush3.bf16.msra.mxu1 %v12381_v28 }
0x2255   :  { %11634 = vmatprep.subr.bf16.mxu1 %v13659_v0 }
0x2258   :  { %11635 = vmatpush3.bf16.msra.mxu1 %v12383_v4 }
0x2259   :  { %11648 = vmatprep.subr.bf16.mxu1 %v13659_v0 }
0x2326   :  { %v14969_v30 = vpop.f32.mrb[140].mxu1 }
0x2327   :  { %v5922_v5 = vmax.f32 %v14969_v30, 0.0  ;;  %v11623_v7 = vpop.f32.mrb[141].mxu1 }
0x2328   :  { %v12394_v7 = vld [vmem:[#allocation17] sm:$0xff]  }
0x2329   :  { %5926 = vst.msk [vmem:[#allocation2 + $0x3] sm:$0xff] %vm788_vm1, %v5922_v5 }
0x2330   :  { %v5933_v10 = vld [vmem:[#allocation2 + $0x3] sm:$0xff] }
0x2331   :  { %v6049_v3 = vld [vmem:[#allocation2 + $0x6] sm:$0xff]  ;;  %v5934_v12 = vpack.c.bf16 %v5933_v10, %v5933_v10 }
0x2332   :  { %v5927_v11 = vld [vmem:[#allocation2] sm:$0xff]  ;;  %6190 = vst.msk [vmem:[#allocation2 + $0x8] sm:$0xff] %vm788_vm1, %v13659_v0  ;;  %v6050_v18 = vpack.c.bf16 %v6049_v3, %v6049_v3 }
0x2333   :  { %v5928_v14 = vpack.c.bf16 %v5927_v11, %v5927_v11  ;;  %6189 = vst.msk [vmem:[#allocation2] sm:$0xff] %vm788_vm1, %v13659_v0  ;;  %11629 = vmatmul.mubr.msk.bf16.vlgmr.msra.gmra.mrb[144].mxu0 %vm788_vm1, %v5934_v12 }
0x2334   :  { %11641 = vmatpush3.bf16.msra.mxu0 %v12384_v8  ;;  %11644 = vmatprep.mubr.msk.bf16.mxu0 %vm13661_vm3, %v13659_v0  ;;  %v12395_v8 = vld [vmem:[#allocation17 + $0x8] sm:$0xff]  }
0x2335   :  { %11637 = vmatmul.mubr.msk.bf16.vlgmr.msra.gmra.mrb[144].mxu1 %vm788_vm1, %v5928_v14  ;;  %11642 = vmatprep.subr.bf16.mxu0 %v13659_v0 }
0x2336   :  { %11652 = vmatprep.mubr.msk.bf16.mxu1 %vm13661_vm3, %v13659_v0  ;;  %11649 = vmatpush3.bf16.msra.mxu1 %v12386_v21 }
0x2337   :  { %11650 = vmatprep.subr.bf16.mxu1 %v13659_v0 }
0x2338   :  { %11643 = vmatpush3.bf16.msra.mxu0 %v12385_v15 }
0x2339   :  { %11656 = vmatprep.subr.bf16.mxu0 %v13659_v0 }
0x233a   :  { %11651 = vmatpush3.bf16.msra.mxu1 %v12387_v22 }
0x233b   :  { %11645 = vmatmul.mubr.msk.bf16.vlgmr.msra.gmra.mrb[148].mxu0 %vm788_vm1, %v6050_v18  ;;  %11664 = vmatprep.subr.bf16.mxu1 %v13659_v0 }
0x233c   :  { %11660 = vmatprep.mubr.msk.bf16.mxu0 %vm13661_vm3, %v13659_v0  ;;  %11657 = vmatpush3.bf16.msra.mxu0 %v12388_v48 }
0x233d   :  { %11658 = vmatprep.subr.bf16.mxu0 %v13659_v0 }
0x2340   :  { %11659 = vmatpush3.bf16.msra.mxu0 %v12390_v50  ;;  %v12400_v50 = vld [vmem:[%s15551_s27 + $0x20] sm:$0xff]  }
0x2341   :  { %11672 = vmatprep.subr.bf16.mxu0 %v13659_v0 }
0x2406   :  { %v5988_v24 = vpop.f32.mrb[144].mxu0 }
0x2407   :  { %v11630_v27 = vpop.f32.mrb[145].mxu0 }
0x2408   :  { %v6043_v26 = vpop.f32.mrb[144].mxu1  ;;  %v5991_v33 = vpop.f32.mrb[146].mxu0 }
0x2409   :  { %v6044_v19 = vadd.f32 %v6043_v26, %v5988_v24  ;;  %v11638_v31 = vpop.f32.mrb[145].mxu1  ;;  %v11631_v35 = vpop.f32.mrb[147].mxu0  ;;  %v10408_v26 = vld [vmem:[#allocation15] ss:$0 sm:$0xff] }
0x240a   :  { %v6046_v34 = vpop.f32.mrb[146].mxu1 }
0x240b   :  { %v11639_v36 = vpop.f32.mrb[147].mxu1 }
0x240e   :  { %v6104_v37 = vpop.f32.mrb[148].mxu0 }
0x240f   :  { %v6110_v41 = vadd.f32 %v6104_v37, %v6044_v19  ;;  %v11646_v42 = vpop.f32.mrb[149].mxu0  ;;  %v12396_v37 = vld [vmem:[%s15551_s27 + $0x10] sm:$0xff]  }
0x2410   :  { %v6107_v43 = vpop.f32.mrb[150].mxu0  ;;  %v12399_v42 = vld [vmem:[%s15551_s27 + $0x8] sm:$0xff]  }
0x2411   :  { %v6118_v44 = vadd.f32 %v10394_v39, %v6110_v41  ;;  %v11647_v45 = vpop.f32.mrb[151].mxu0  ;;  %v12397_v39 = vld [vmem:[%s15551_s27] sm:$0xff]   ;;  %v12398_v41 = vld [vmem:[%s15551_s27 + $0x18] sm:$0xff]   ;;  %v10409_v43 = vld [vmem:[#allocation18] ss:$0 sm:$0xff] }
0x2413   :  { %v6119_v46 = vmax.f32 %v6118_v44, 0.0 }
0x2415   :  { %v6120_v47 = vpack.c.bf16 %v6119_v46, %v6119_v46 }
0x2417   :  { %11653 = vmatmul.mubr.msk.bf16.vlgmr.msra.gmra.mrb[148].mxu1 %vm788_vm1, %v6120_v47 }
0x2418   :  { %11668 = vmatprep.mubr.msk.bf16.mxu1 %vm13661_vm3, %v13659_v0  ;;  %11665 = vmatpush3.bf16.msra.mxu1 %v12389_v49 }
0x2419   :  { %11666 = vmatprep.subr.bf16.mxu1 %v13659_v0 }
0x241c   :  { %11667 = vmatpush3.bf16.msra.mxu1 %v12391_v51 }
0x241d   :  { %11680 = vmatprep.subr.bf16.mxu1 %v13659_v0 }
0x24ea   :  { %v6181_v53 = vpop.f32.mrb[148].mxu1 }
0x24eb   :  { %v6182_v54 = vadd.f32 %v10395_v52, %v6181_v53  ;;  %v11654_v55 = vpop.f32.mrb[149].mxu1 }
0x24ec   :  { %v6184_v59 = vpop.f32.mrb[150].mxu1 }
0x24ed   :  { %v15000_v56 = vadd.f32 %v6182_v54, %v14969_v30  ;;  %v11655_v57 = vpop.f32.mrb[151].mxu1  ;;  %v12393_v30 = vld [vmem:[#allocation14 + $0x28] sm:$0xff]  }
0x24ee   :  { %v12401_v59 = vld [vmem:[%s15551_s27 + $0x30] sm:$0xff]  }
0x24ef   :  { %v6188_v61 = vmax.f32 %v15000_v56, 0.0 }
0x24f1   :  { %6192 = vst.msk [vmem:[#allocation2 + $0x1] sm:$0xff] %vm788_vm1, %v6188_v61  ;;  %v12403_v61 = vld [vmem:[%s15551_s27 + $0x38] sm:$0xff]  }
0x24f8   :  { %v6199_v1 = vld [vmem:[#allocation2 + $0x1] sm:$0xff] }
0x24f9   :  { %v6315_v13 = vld [vmem:[#allocation2 + $0x2] sm:$0xff]  ;;  %v6200_v29 = vpack.c.bf16 %v6199_v1, %v6199_v1 }
0x24fa   :  { %v6193_v28 = vld [vmem:[#allocation2] sm:$0xff]  ;;  %6455 = vst.msk [vmem:[#allocation2 + $0x8] sm:$0xff] %vm788_vm1, %v13659_v0  ;;  %v6316_v5 = vpack.c.bf16 %v6315_v13, %v6315_v13 }
0x24fb   :  { %v6194_v4 = vpack.c.bf16 %v6193_v28, %v6193_v28  ;;  %6454 = vst.msk [vmem:[#allocation2] sm:$0xff] %vm788_vm1, %v13659_v0  ;;  %11661 = vmatmul.mubr.msk.bf16.vlgmr.msra.gmra.mrb[152].mxu0 %vm788_vm1, %v6200_v29 }
0x24fc   :  { %11673 = vmatpush3.bf16.msra.mxu0 %v12392_v63  ;;  %11676 = vmatprep.mubr.msk.bf16.mxu0 %vm13661_vm3, %v13659_v0 }
0x24fd   :  { %11669 = vmatmul.mubr.msk.bf16.vlgmr.msra.gmra.mrb[152].mxu1 %vm788_vm1, %v6194_v4  ;;  %11674 = vmatprep.subr.bf16.mxu0 %v13659_v0 }
0x24fe   :  { %11684 = vmatprep.mubr.msk.bf16.mxu1 %vm13661_vm3, %v13659_v0  ;;  %11681 = vmatpush3.bf16.msra.mxu1 %v12394_v7 }
0x24ff   :  { %11682 = vmatprep.subr.bf16.mxu1 %v13659_v0 }
0x2500   :  { %11675 = vmatpush3.bf16.msra.mxu0 %v12393_v30 }
0x2501   :  { %11688 = vmatprep.subr.bf16.mxu0 %v13659_v0 }
0x2502   :  { %11683 = vmatpush3.bf16.msra.mxu1 %v12395_v8 }
0x2503   :  { %11677 = vmatmul.mubr.msk.bf16.vlgmr.msra.gmra.mrb[156].mxu0 %vm788_vm1, %v6316_v5  ;;  %11696 = vmatprep.subr.bf16.mxu1 %v13659_v0 }
0x2504   :  { %11692 = vmatprep.mubr.msk.bf16.mxu0 %vm13661_vm3, %v13659_v0  ;;  %11689 = vmatpush3.bf16.msra.mxu0 %v12396_v37 }
0x2505   :  { %11690 = vmatprep.subr.bf16.mxu0 %v13659_v0 }
0x2508   :  { %11691 = vmatpush3.bf16.msra.mxu0 %v12398_v41 }
0x2509   :  { %11704 = vmatprep.subr.bf16.mxu0 %v13659_v0 }
0x25ce   :  { %v6254_v10 = vpop.f32.mrb[152].mxu0 }
0x25cf   :  { %v11662_v12 = vpop.f32.mrb[153].mxu0 }
0x25d0   :  { %v6309_v3 = vpop.f32.mrb[152].mxu1  ;;  %v6257_v15 = vpop.f32.mrb[154].mxu0 }
0x25d1   :  { %v6310_v11 = vadd.f32 %v6309_v3, %v6254_v10  ;;  %v11670_v14 = vpop.f32.mrb[153].mxu1  ;;  %v11663_v21 = vpop.f32.mrb[155].mxu0  ;;  %v10437_v15 = vld [vmem:[#allocation20] ss:$0 sm:$0xff] }
0x25d2   :  { %v6312_v18 = vpop.f32.mrb[154].mxu1 }
0x25d3   :  { %v11671_v22 = vpop.f32.mrb[155].mxu1 }
0x25d6   :  { %v6370_v24 = vpop.f32.mrb[156].mxu0 }
0x25d7   :  { %v6376_v19 = vadd.f32 %v6370_v24, %v6310_v11  ;;  %v11678_v27 = vpop.f32.mrb[157].mxu0 }
0x25d8   :  { %v6373_v31 = vpop.f32.mrb[158].mxu0 }
0x25d9   :  { %v6384_v33 = vadd.f32 %v10408_v26, %v6376_v19  ;;  %v11679_v34 = vpop.f32.mrb[159].mxu0  ;;  %v12404_v31 = vld [vmem:[%s15552_s20 + $0x10] sm:$0xff]  }
0x25da   :  { %v12406_v34 = vld [vmem:[%s15552_s20 + $0x18] sm:$0xff]  }
0x25db   :  { %v6385_v35 = vmax.f32 %v6384_v33, 0.0  ;;  %v12405_v33 = vld [vmem:[%s15552_s20] sm:$0xff]  }
0x25dd   :  { %v6386_v36 = vpack.c.bf16 %v6385_v35, %v6385_v35  ;;  %v12407_v35 = vld [vmem:[%s15552_s20 + $0x8] sm:$0xff]  }
0x25df   :  { %11685 = vmatmul.mubr.msk.bf16.vlgmr.msra.gmra.mrb[156].mxu1 %vm788_vm1, %v6386_v36 }
0x25e0   :  { %11700 = vmatprep.mubr.msk.bf16.mxu1 %vm13661_vm3, %v13659_v0  ;;  %11697 = vmatpush3.bf16.msra.mxu1 %v12397_v39  ;;  %v12408_v39 = vld [vmem:[%s15552_s20 + $0x20] sm:$0xff]  }
0x25e1   :  { %11698 = vmatprep.subr.bf16.mxu1 %v13659_v0 }
0x25e4   :  { %11699 = vmatpush3.bf16.msra.mxu1 %v12399_v42 }
0x25e5   :  { %11712 = vmatprep.subr.bf16.mxu1 %v13659_v0 }
0x26b2   :  { %v6447_v44 = vpop.f32.mrb[156].mxu1 }
0x26b3   :  { %v6448_v45 = vadd.f32 %v10409_v43, %v6447_v44  ;;  %v11686_v46 = vpop.f32.mrb[157].mxu1 }
0x26b4   :  { %v6450_v47 = vpop.f32.mrb[158].mxu1  ;;  %v12409_v46 = vld [vmem:[%s15552_s20 + $0x28] sm:$0xff]  }
0x26b5   :  { %v6453_v48 = vadd.f32 %v6448_v45, %v15000_v56  ;;  %v11687_v49 = vpop.f32.mrb[159].mxu1  ;;  %v12402_v56 = vld [vmem:[%s15551_s27 + $0x28] sm:$0xff]  }
0x26b6   :  { %v12411_v49 = vld [vmem:[#allocation23 + $0x8] sm:$0xff]  }
0x26b7   :  { %6457 = vst.msk [vmem:[#allocation2 + $0x1] sm:$0xff] %vm788_vm1, %v6453_v48  ;;  %v12410_v48 = vld [vmem:[#allocation23] sm:$0xff]  }
0x26be   :  { %v6464_v51 = vld [vmem:[#allocation2 + $0x1] sm:$0x7f] }
0x26bf   :  { %v6580_v52 = vld [vmem:[#allocation2 + $0x2] sm:$0x7f]  ;;  %v6465_v54 = vpack.c.bf16 %v6464_v51, %v6464_v51 }
0x26c0   :  { %v6642_v53 = vld [vmem:[#allocation2 + $0x3] sm:$0x7f]  ;;  %v6581_v63 = vpack.c.bf16 %v6580_v52, %v6580_v52 }
0x26c1   :  { %6787 = vst.msk [vmem:[#allocation2 + $0x8] sm:$0xff] %vm788_vm1, %v13659_v0  ;;  %v6458_v55 = vld [vmem:[#allocation2] sm:$0x7f]  ;;  %11693 = vmatmul.mubr.msk.bf16.vlgmr.msra.gmra.mrb[160].mxu0 %vm788_vm1, %v6465_v54  ;;  %v6643_v1 = vpack.c.bf16 %v6642_v53, %v6642_v53 }
0x26c2   :  { %v6459_v57 = vpack.c.bf16 %v6458_v55, %v6458_v55  ;;  %6786 = vst.msk [vmem:[#allocation2] sm:$0xff] %vm788_vm1, %v13659_v0  ;;  %11705 = vmatpush3.bf16.msra.mxu0 %v12400_v50  ;;  %11708 = vmatprep.mubr.msk.bf16.mxu0 %vm13661_vm3, %v13659_v0 }
0x26c3   :  { %11706 = vmatprep.subr.bf16.mxu0 %v13659_v0 }
0x26c4   :  { %11701 = vmatmul.mubr.msk.bf16.vlgmr.msra.gmra.mrb[160].mxu1 %vm788_vm1, %v6459_v57 }
0x26c5   :  { %11713 = vmatpush3.bf16.msra.mxu1 %v12401_v59  ;;  %11716 = vmatprep.mubr.msk.bf16.mxu1 %vm13661_vm3, %v13659_v0 }
0x26c6   :  { %11714 = vmatprep.subr.bf16.mxu1 %v13659_v0  ;;  %11707 = vmatpush3.bf16.msra.mxu0 %v12402_v56 }
0x26c7   :  { %11720 = vmatprep.subr.mxu0 %v13659_v0 }
0x26c9   :  { %11715 = vmatpush3.bf16.msra.mxu1 %v12403_v61  ;;  %11709 = vmatmul.mubr.msk.bf16.vlgmr.msra.gmra.mrb[164].mxu0 %vm788_vm1, %v6581_v63  ;;  %v10457_v63 = vld [vmem:[#allocation21] ss:$0 sm:$0xff] }
0x26ca   :  { %11725 = vmatprep.subr.bf16.mxu1 %v13659_v0  ;;  %11722 = vmatprep.mubr.msk.f32.mxu0 %vm13661_vm3, %v13659_v0 }
0x26cc   :  { %11717 = vmatmul.mubr.msk.bf16.vlgmr.msra.gmra.mrb[164].mxu1 %vm788_vm1, %v6643_v1 }
0x26cd   :  { %11729 = vmatprep.mubr.msk.bf16.mxu1 %vm13661_vm3, %v13659_v0  ;;  %11726 = vmatpush3.bf16.msra.mxu1 %v12404_v31 }
0x26ce   :  { %11727 = vmatprep.subr.bf16.mxu1 %v13659_v0 }
0x26d1   :  { %11728 = vmatpush3.bf16.msra.mxu1 %v12406_v34 }
0x26d2   :  { %11741 = vmatprep.subr.bf16.mxu1 %v13659_v0 }
0x2794   :  { %v6519_v13 = vpop.f32.mrb[160].mxu0 }
0x2795   :  { %v11694_v29 = vpop.f32.mrb[161].mxu0 }
0x2796   :  { %v6522_v5 = vpop.f32.mrb[162].mxu0 }
0x2797   :  { %v6574_v28 = vpop.f32.mrb[160].mxu1  ;;  %v11695_v8 = vpop.f32.mrb[163].mxu0 }
0x2798   :  { %v6575_v4 = vadd.f32 %v6574_v28, %v6519_v13  ;;  %v11702_v30 = vpop.f32.mrb[161].mxu1  ;;  %v12413_v8 = vld [vmem:[#allocation26] sm:$0xff]  }
0x2799   :  { %v6577_v7 = vpop.f32.mrb[162].mxu1 }
0x279a   :  { %v11703_v10 = vpop.f32.mrb[163].mxu1  ;;  %v12412_v7 = vld [vmem:[#allocation26 + $0x10] sm:$0xff]  }
0x279b   :  { %v12414_v10 = vld [vmem:[#allocation26 + $0x18] sm:$0xff]  }
0x279c   :  { %v6635_v3 = vpop.f32.mrb[164].mxu0 }
0x279d   :  { %v6641_v11 = vadd.f32 %v6635_v3, %v6575_v4  ;;  %v11710_v14 = vpop.f32.mrb[165].mxu0  ;;  %v12415_v3 = vld [vmem:[#allocation26 + $0x8] sm:$0xff]  }
0x279e   :  { %v6638_v21 = vpop.f32.mrb[166].mxu0 }
0x279f   :  { %v6697_v12 = vpop.f32.mrb[164].mxu1  ;;  %v11711_v26 = vpop.f32.mrb[167].mxu0 }
0x27a0   :  { %v11718_v18 = vpop.f32.mrb[165].mxu1  ;;  %v6703_v22 = vadd.f32 %v6697_v12, %v6641_v11  ;;  %v10458_v11 = vld [vmem:[#allocation24] ss:$0 sm:$0xff]  ;;  %v12416_v26 = vld [vmem:[#allocation26 + $0x20] sm:$0xff]  }
0x27a1   :  { %v6700_v24 = vpop.f32.mrb[166].mxu1 }
0x27a2   :  { %v11719_v19 = vpop.f32.mrb[167].mxu1  ;;  %v6711_v27 = vadd.f32 %v10437_v15, %v6703_v22 }
0x27a4   :  { %11721 = vmatpush3.msk.msra.mxu0 %vm1252_vm5, %v6711_v27 }
0x27a5   :  { %11723 = vmatmul.mubr.msk.f32.vlgmr.msra.gmra.mrb[168].mxu0 %vm2123_vm10, %v14345_v32  ;;  %11733 = vmatprep.subr.bf16.mxu0 %v13659_v0  ;;  %vm9937_vm10 = vcmask 0  }
0x27a6   :  { %11737 = vmatprep.mubr.msk.bf16.mxu0 %vm13661_vm3, %v13659_v0  ;;  %11734 = vmatpush3.bf16.msra.mxu0 %v12405_v33 }
0x27a7   :  { %11735 = vmatprep.subr.bf16.mxu0 %v13659_v0 }
0x27aa   :  { %11736 = vmatpush3.bf16.msra.mxu0 %v12407_v35  ;;  %v12417_v35 = vld [vmem:[#allocation26 + $0x28] sm:$0xff]  }
0x27ab   :  { %11749 = vmatprep.subr.bf16.mxu0 %v13659_v0 }
0x2878   :  { %v15072_v32 = vpop.f32.mrb[168].mxu0 }
0x2879   :  { %v6785_v36 = vmax.f32 %v15072_v32, 0.0  ;;  %v11724_v37 = vpop.f32.mrb[169].mxu0 }
0x287a   :  { %v12419_v37 = vld [vmem:[#allocation29 + $0x8] sm:$0xff]  }
0x287b   :  { %6789 = vst.msk [vmem:[#allocation2 + $0x3] sm:$0xf] %vm2203_vm11, %v6785_v36  ;;  %v12418_v36 = vld [vmem:[#allocation29] sm:$0xff]  }
0x2882   :  { %v6796_v41 = vld [vmem:[#allocation2 + $0x3] sm:$0xf] }
0x2883   :  { %v6912_v42 = vld [vmem:[#allocation2 + $0x6] sm:$0xf]  ;;  %v6790_v43 = vld [vmem:[#allocation2] sm:$0xf]  ;;  %v6797_v44 = vpack.c.bf16 %v6796_v41, %v6796_v41 }
0x2884   :  { %7053 = vst.msk [vmem:[#allocation2 + $0x8] sm:$0xff] %vm788_vm1, %v13659_v0  ;;  %v6791_v45 = vpack.c.bf16 %v6790_v43, %v6790_v43  ;;  %7052 = vst.msk [vmem:[#allocation2] sm:$0xff] %vm788_vm1, %v13659_v0  ;;  %v6913_v47 = vpack.c.bf16 %v6912_v42, %v6912_v42 }
0x2885   :  { %7318 = vst.msk [vmem:[#allocation2 + $0x8] sm:$0xff] %vm788_vm1, %v13659_v0  ;;  %11730 = vmatmul.mubr.msk.bf16.vlgmr.msra.gmra.mrb[168].mxu1 %vm788_vm1, %v6797_v44 }
0x2886   :  { %11738 = vmatmul.mubr.msk.bf16.vlgmr.msra.gmra.mrb[172].mxu0 %vm788_vm1, %v6791_v45  ;;  %7711 = vst.msk [vmem:[#allocation2 + $0x8] sm:$0xff] %vm788_vm1, %v13659_v0  ;;  %11742 = vmatpush3.bf16.msra.mxu1 %v12408_v39 }
0x2887   :  { %7909 = vst.msk [vmem:[#allocation2 + $0x8] sm:$0xff] %vm788_vm1, %v13659_v0  ;;  %11745 = vmatprep.mubr.msk.bf16.mxu1 %vm13661_vm3, %v13659_v0  ;;  %11743 = vmatprep.subr.bf16.mxu1 %v13659_v0 }
0x2888   :  { %11753 = vmatprep.mubr.msk.bf16.mxu0 %vm13661_vm3, %v13659_v0  ;;  %11750 = vmatpush3.bf16.msra.mxu0 %v12410_v48 }
0x2889   :  { %11751 = vmatprep.subr.bf16.mxu0 %v13659_v0 }
0x288a   :  { %11744 = vmatpush3.bf16.msra.mxu1 %v12409_v46 }
0x288b   :  { %11757 = vmatprep.subr.bf16.mxu1 %v13659_v0 }
0x288c   :  { %11752 = vmatpush3.bf16.msra.mxu0 %v12411_v49 }
0x288d   :  { %11746 = vmatmul.mubr.msk.bf16.vlgmr.msra.gmra.mrb[172].mxu1 %vm788_vm1, %v6913_v47  ;;  %11765 = vmatprep.subr.bf16.mxu0 %v13659_v0 }
0x288e   :  { %11761 = vmatprep.mubr.msk.bf16.mxu1 %vm13661_vm3, %v13659_v0  ;;  %11758 = vmatpush3.bf16.msra.mxu1 %v12412_v7 }
0x288f   :  { %11759 = vmatprep.subr.bf16.mxu1 %v13659_v0 }
0x2892   :  { %11760 = vmatpush3.bf16.msra.mxu1 %v12414_v10 }
0x2893   :  { %11773 = vmatprep.subr.bf16.mxu1 %v13659_v0 }
0x2958   :  { %v6851_v50 = vpop.f32.mrb[168].mxu1 }
0x2959   :  { %v6906_v51 = vpop.f32.mrb[172].mxu0  ;;  %v11731_v53 = vpop.f32.mrb[169].mxu1 }
0x295a   :  { %v6907_v52 = vadd.f32 %v6906_v51, %v6851_v50  ;;  %v11739_v54 = vpop.f32.mrb[173].mxu0  ;;  %v6854_v55 = vpop.f32.mrb[170].mxu1  ;;  %v10471_v50 = vld [vmem:[#allocation27] ss:$0 sm:$0xff] }
0x295b   :  { %v6909_v59 = vpop.f32.mrb[174].mxu0  ;;  %v11732_v57 = vpop.f32.mrb[171].mxu1 }
0x295c   :  { %v11740_v56 = vpop.f32.mrb[175].mxu0 }
0x295d   :  { %v12420_v56 = vld [vmem:[%s15553_s7 + $0x10] sm:$0xff]  }
0x2960   :  { %v6967_v61 = vpop.f32.mrb[172].mxu1 }
0x2961   :  { %v6973_v1 = vadd.f32 %v6967_v61, %v6907_v52  ;;  %v11747_v13 = vpop.f32.mrb[173].mxu1  ;;  %v12421_v61 = vld [vmem:[%s15553_s7] sm:$0xff]  }
0x2962   :  { %v6970_v28 = vpop.f32.mrb[174].mxu1  ;;  %v10472_v13 = vld [vmem:[#allocation30] ss:$0 sm:$0xff] }
0x2963   :  { %v6981_v29 = vadd.f32 %v10457_v63, %v6973_v1  ;;  %v11748_v4 = vpop.f32.mrb[175].mxu1  ;;  %v12422_v63 = vld [vmem:[%s15553_s7 + $0x18] sm:$0xff]   ;;  %v12423_v1 = vld [vmem:[%s15553_s7 + $0x8] sm:$0xff]  }
0x2965   :  { %v6982_v30 = vmax.f32 %v6981_v29, 0.0 }
0x2967   :  { %v6983_v5 = vpack.c.bf16 %v6982_v30, %v6982_v30 }
0x2969   :  { %11754 = vmatmul.mubr.msk.bf16.vlgmr.msra.gmra.mrb[176].mxu0 %vm788_vm1, %v6983_v5 }
0x296a   :  { %11769 = vmatprep.mubr.msk.bf16.mxu0 %vm13661_vm3, %v13659_v0  ;;  %11766 = vmatpush3.bf16.msra.mxu0 %v12413_v8  ;;  %v12424_v8 = vld [vmem:[%s15553_s7 + $0x20] sm:$0xff]  }
0x296b   :  { %11767 = vmatprep.subr.bf16.mxu0 %v13659_v0 }
0x296e   :  { %11768 = vmatpush3.bf16.msra.mxu0 %v12415_v3 }
0x296f   :  { %11781 = vmatprep.subr.bf16.mxu0 %v13659_v0 }
0x2a3c   :  { %v7044_v12 = vpop.f32.mrb[176].mxu0 }
0x2a3d   :  { %v7045_v14 = vadd.f32 %v10458_v11, %v7044_v12  ;;  %v11755_v15 = vpop.f32.mrb[177].mxu0 }
0x2a3e   :  { %v7047_v18 = vpop.f32.mrb[178].mxu0  ;;  %v12425_v15 = vld [vmem:[%s15553_s7 + $0x28] sm:$0xff]  }
0x2a3f   :  { %v15109_v21 = vadd.f32 %v7045_v14, %v15072_v32  ;;  %v11756_v22 = vpop.f32.mrb[179].mxu0 }
0x2a41   :  { %v7051_v24 = vmax.f32 %v15109_v21, 0.0 }
0x2a43   :  { %7055 = vst.msk [vmem:[#allocation2 + $0x1] sm:$0xf] %vm2203_vm11, %v7051_v24 }
0x2a4a   :  { %v7062_v19 = vld [vmem:[#allocation2 + $0x1] sm:$0xf] }
0x2a4b   :  { %v7178_v27 = vld [vmem:[#allocation2 + $0x2] sm:$0xf]  ;;  %v7063_v33 = vpack.c.bf16 %v7062_v19, %v7062_v19 }
0x2a4c   :  { %v7056_v31 = vld [vmem:[#allocation2] sm:$0xf]  ;;  %v7179_v32 = vpack.c.bf16 %v7178_v27, %v7178_v27 }
0x2a4d   :  { %v7057_v34 = vpack.c.bf16 %v7056_v31, %v7056_v31  ;;  %7317 = vst.msk [vmem:[#allocation2] sm:$0xff] %vm788_vm1, %v13659_v0  ;;  %11762 = vmatmul.mubr.msk.bf16.vlgmr.msra.gmra.mrb[176].mxu1 %vm788_vm1, %v7063_v33  ;;  %v10493_v31 = vld [vmem:[#allocation32] ss:$0 sm:$0xff] }
0x2a4e   :  { %11774 = vmatpush3.bf16.msra.mxu1 %v12416_v26  ;;  %11777 = vmatprep.mubr.msk.bf16.mxu1 %vm13661_vm3, %v13659_v0 }
0x2a4f   :  { %11770 = vmatmul.mubr.msk.bf16.vlgmr.msra.gmra.mrb[180].mxu0 %vm788_vm1, %v7057_v34  ;;  %11775 = vmatprep.subr.bf16.mxu1 %v13659_v0 }
0x2a50   :  { %11785 = vmatprep.mubr.msk.bf16.mxu0 %vm13661_vm3, %v13659_v0  ;;  %11782 = vmatpush3.bf16.msra.mxu0 %v12418_v36 }
0x2a51   :  { %11783 = vmatprep.subr.bf16.mxu0 %v13659_v0 }
0x2a52   :  { %11776 = vmatpush3.bf16.msra.mxu1 %v12417_v35 }
0x2a53   :  { %11789 = vmatprep.subr.bf16.mxu1 %v13659_v0 }
0x2a54   :  { %11784 = vmatpush3.bf16.msra.mxu0 %v12419_v37 }
0x2a55   :  { %11778 = vmatmul.mubr.msk.bf16.vlgmr.msra.gmra.mrb[180].mxu1 %vm788_vm1, %v7179_v32  ;;  %11797 = vmatprep.subr.bf16.mxu0 %v13659_v0 }
0x2a56   :  { %11793 = vmatprep.mubr.msk.bf16.mxu1 %vm13661_vm3, %v13659_v0  ;;  %11790 = vmatpush3.bf16.msra.mxu1 %v12420_v56  ;;  %v3132_v56 = vsel %vm3020_vm12, %v14597_v16, 0.0 }
0x2a57   :  { %11791 = vmatprep.subr.bf16.mxu1 %v13659_v0 }
0x2a5a   :  { %11792 = vmatpush3.bf16.msra.mxu1 %v12422_v63 }
0x2a5b   :  { %11805 = vmatprep.subr.bf16.mxu1 %v13659_v0 }
0x2b20   :  { %v7117_v39 = vpop.f32.mrb[176].mxu1 }
0x2b21   :  { %v11763_v43 = vpop.f32.mrb[177].mxu1 }
0x2b22   :  { %v7172_v41 = vpop.f32.mrb[180].mxu0  ;;  %v7120_v45 = vpop.f32.mrb[178].mxu1  ;;  %v12492_v43 = vld [vmem:[#allocation69] ss:$0 sm:$0xff] }
0x2b23   :  { %v7173_v42 = vadd.f32 %v7172_v41, %v7117_v39  ;;  %v11771_v44 = vpop.f32.mrb[181].mxu0  ;;  %v11764_v47 = vpop.f32.mrb[179].mxu1 }
0x2b24   :  { %v7175_v46 = vpop.f32.mrb[182].mxu0 }
0x2b25   :  { %v11772_v48 = vpop.f32.mrb[183].mxu0 }
0x2b26   :  { %v3118_v48 = vsub.f32 %v14559_v38, %v14607_v23  ;;  %v3133_v38 = vrot.slane %v3132_v56, 4 }
0x2b28   :  { %v7233_v49 = vpop.f32.mrb[180].mxu1 }
0x2b29   :  { %v7239_v51 = vadd.f32 %v7233_v49, %v7173_v42  ;;  %v11779_v52 = vpop.f32.mrb[181].mxu1 }
0x2b2a   :  { %v7236_v53 = vpop.f32.mrb[182].mxu1  ;;  %v3119_v52 = vmul.f32 %v3118_v48, %v3118_v48  ;;  %v12434_v48 = vld [vmem:[#allocation36 + $0x18] sm:$0xff]  }
0x2b2b   :  { %v7247_v54 = vadd.f32 %v10471_v50, %v7239_v51  ;;  %v11780_v55 = vpop.f32.mrb[183].mxu1 }
0x2b2c   :  { %v3120_v53 = vsel %vm2203_vm11, %v3119_v52, 0.0 }
0x2b2d   :  { %v7248_v59 = vmax.f32 %v7247_v54, 0.0 }
0x2b2f   :  { %v7249_v57 = vpack.c.bf16 %v7248_v59, %v7248_v59 }
0x2b31   :  { %11786 = vmatmul.mubr.msk.bf16.vlgmr.msra.gmra.mrb[184].mxu0 %vm788_vm1, %v7249_v57 }
0x2b32   :  { %11801 = vmatprep.mubr.msk.bf16.mxu0 %vm13661_vm3, %v13659_v0  ;;  %11798 = vmatpush3.bf16.msra.mxu0 %v12421_v61 }
0x2b33   :  { %11799 = vmatprep.subr.bf16.mxu0 %v13659_v0 }
0x2b36   :  { %11800 = vmatpush3.bf16.msra.mxu0 %v12423_v1 }
0x2b37   :  { %12127 = vmatprep.subr.bf16.mxu0 %v13662_v62 }
0x2c04   :  { %v7310_v28 = vpop.f32.mrb[184].mxu0 }
0x2c05   :  { %v7311_v29 = vadd.f32 %v10472_v13, %v7310_v28  ;;  %v11787_v4 = vpop.f32.mrb[185].mxu0  ;;  %v3134_v13 = vadd.f32 %v3133_v38, %v3132_v56 }
0x2c06   :  { %v7313_v30 = vpop.f32.mrb[186].mxu0 }
0x2c07   :  { %v7316_v5 = vadd.f32 %v7311_v29, %v15109_v21  ;;  %v11788_v7 = vpop.f32.mrb[187].mxu0  ;;  %v3135_v29 = vrot.slane %v3134_v13, 2 }
0x2c09   :  { %7320 = vst.msk [vmem:[#allocation2 + $0x1] sm:$0xf] %vm2203_vm11, %v7316_v5  ;;  %v3136_v7 = vadd.f32 %v3135_v29, %v3134_v13 }
0x2c10   :  { %v7327_v10 = vld [vmem:[#allocation2 + $0x1] sm:$0xf] }
0x2c11   :  { %v7443_v3 = vld [vmem:[#allocation2 + $0x2] sm:$0xf]  ;;  %v7328_v12 = vpack.c.bf16 %v7327_v10, %v7327_v10  ;;  %v3137_v10 = vrot.slane %v3136_v7, 1 }
0x2c12   :  { %v7321_v11 = vld [vmem:[#allocation2] sm:$0xf]  ;;  %v7444_v18 = vpack.c.bf16 %v7443_v3, %v7443_v3 }
0x2c13   :  { %v7322_v14 = vpack.c.bf16 %v7321_v11, %v7321_v11  ;;  %7710 = vst.msk [vmem:[#allocation2] sm:$0xff] %vm788_vm1, %v13659_v0  ;;  %11794 = vmatmul.mubr.msk.bf16.vlgmr.msra.gmra.mrb[184].mxu1 %vm788_vm1, %v7328_v12  ;;  %v3138_v12 = vadd.f32 %v3137_v10, %v3136_v7 }
0x2c14   :  { %11806 = vmatpush3.bf16.msra.mxu1 %v12424_v8  ;;  %11809 = vmatprep.mubr.msk.bf16.mxu1 %vm13661_vm3, %v13659_v0 }
0x2c15   :  { %11802 = vmatmul.mubr.msk.bf16.vlgmr.msra.gmra.mrb[188].mxu0 %vm788_vm1, %v7322_v14  ;;  %11807 = vmatprep.subr.bf16.mxu1 %v13659_v0 }
0x2c16   :  { %12129 = vmatpush3.bf16.msra.mxu0 %v14549_v17  ;;  %11821 = vmatprep.mubr.msk.f32.mxu0 %vm13661_vm3, %v13659_v0 }
0x2c17   :  { %12130 = vmatprep.subr.bf16.mxu0 %v13662_v62 }
0x2c18   :  { %11808 = vmatpush3.bf16.msra.mxu1 %v12425_v15 }
0x2c19   :  { %12133 = vmatprep.subr.bf16.mxu1 %v13662_v62 }
0x2c1a   :  { %12132 = vmatpush3.bf16.msra.mxu0 %v14555_v20 }
0x2c1b   :  { %11843 = vmatprep.subr.bf16.mxu0 %v13659_v0  ;;  %11810 = vmatmul.mubr.msk.bf16.vlgmr.msra.gmra.mrb[188].mxu1 %vm788_vm1, %v7444_v18 }
0x2c1c   :  { %12135 = vmatpush3.bf16.msra.mxu1 %v14574_v58  ;;  %11840 = vmatprep.mubr.msk.f32.mxu1 %vm13661_vm3, %v13659_v0 }
0x2c1d   :  { %12136 = vmatprep.subr.bf16.mxu1 %v13662_v62 }
0x2c20   :  { %12138 = vmatpush3.bf16.msra.mxu1 %v14578_v60 }
0x2c21   :  { %12139 = vmatprep.subr.bf16.mxu1 %v13662_v62 }
0x2c24   :  { %12141 = vmatpush3.bf16.msra.mxu1 %v14585_v6 }
0x2c25   :  { %12142 = vmatprep.subr.bf16.mxu1 %v13662_v62 }
0x2c28   :  { %12144 = vmatpush3.bf16.msra.mxu1 %v14591_v9 }
0x2c29   :  { %11859 = vmatprep.subr.bf16.mxu1 %v13659_v0 }
0x2ce6   :  { %v7382_v17 = vpop.f32.mrb[184].mxu1 }
0x2ce7   :  { %v11795_v21 = vpop.f32.mrb[185].mxu1 }
0x2ce8   :  { %v7437_v20 = vpop.f32.mrb[188].mxu0  ;;  %v7385_v24 = vpop.f32.mrb[186].mxu1 }
0x2ce9   :  { %v7438_v58 = vadd.f32 %v7437_v20, %v7382_v17  ;;  %v11803_v22 = vpop.f32.mrb[189].mxu0  ;;  %v11796_v19 = vpop.f32.mrb[187].mxu1  ;;  %v12427_v24 = vld [vmem:[#allocation33 + $0x20] sm:$0xff]  }
0x2cea   :  { %v7440_v26 = vpop.f32.mrb[190].mxu0  ;;  %v12426_v22 = vld [vmem:[#allocation33 + $0x10] sm:$0xff]   ;;  %v12429_v19 = vld [vmem:[#allocation33 + $0x28] sm:$0xff]  }
0x2ceb   :  { %v11804_v27 = vpop.f32.mrb[191].mxu0  ;;  %v12428_v26 = vld [vmem:[#allocation33 + $0x18] sm:$0xff]  }
0x2cee   :  { %v7498_v60 = vpop.f32.mrb[188].mxu1 }
0x2cef   :  { %v7504_v33 = vadd.f32 %v7498_v60, %v7438_v58  ;;  %v11811_v34 = vpop.f32.mrb[189].mxu1 }
0x2cf0   :  { %v7501_v6 = vpop.f32.mrb[190].mxu1 }
0x2cf1   :  { %v15168_v35 = vadd.f32 %v10493_v31, %v7504_v33  ;;  %v11812_v62 = vpop.f32.mrb[191].mxu1 }
0x2cf3   :  { %11822 = vmatmul.mubr.msk.f32.vlgmr.msra.gmra.mrb[170].mxu0 %vm788_vm1, %v15168_v35  ;;  %v7513_v9 = vmul.f32 %v15168_v35, %v15168_v35 }
0x2cf4   :  { %11847 = vmatprep.mubr.msk.bf16.mxu0 %vm13661_vm3, %v13659_v0  ;;  %11844 = vmatpush3.bf16.msra.mxu0 %v12426_v22  ;;  %v12436_v22 = vld [vmem:[#allocation36 + $0x20] sm:$0xff]  }
0x2cf5   :  { %v7514_v32 = vsel %vm2203_vm11, %v7513_v9, 0.0  ;;  %11845 = vmatprep.subr.bf16.mxu0 %v13659_v0 }
0x2cf6   :  { %7515 = vadd.xlane.f32.xlu0 %v7514_v32 }
0x2cf8   :  { %11846 = vmatpush3.bf16.msra.mxu0 %v12428_v26 }
0x2cf9   :  { %11851 = vmatprep.subr.bf16.mxu0 %v13659_v0 }
0x2d83   :  { %v7516_v41 = vpop.xlane.xlu0 %7515 }
0x2dc6   :  { %v7586_v36 = vpop.f32.mrb[170].mxu0 }
0x2dc7   :  { %v7590_v37 = vmul.f32 2.0, %v7586_v36  ;;  %v11823_v39 = vpop.f32.mrb[171].mxu0 }
0x2dc9   :  { %v7591_v42 = vsub.f32 %v7516_v41, %v7590_v37  ;;  %v12430_v37 = vld [vmem:[#allocation33] sm:$0xff]  }
0x2dcb   :  { %v7592_v44 = vadd.f32 %v12492_v43, %v7591_v42 }
0x2dcd   :  { %v7593_v45 = vsel %vm3020_vm12, %v7592_v44, inf }
0x2dce   :  { %7594 = vmin.xlane.f32.xlu1 %v7593_v45 }
0x2e5b   :  { %v7595_v46 = vpop.xlane.xlu1 %7594 }
0x2e5c   :  { %vm7596_vm5 = vcmp.le.f32.partialorder %v7592_v44, %v7595_v46  ;;  %v12432_v46 = vld [vmem:[#allocation36 + $0x10] sm:$0xff]  }
0x2e5d   :  { %v7597_v47 = vsel %vm7596_vm5, %v14333_v25, 64 }
0x2e5e   :  { %v7598_v49 = vsel %vm3020_vm12, %v7597_v47, 2147483647  ;;  %v12433_v47 = vld [vmem:[#allocation36] sm:$0xff]  }
0x2e5f   :  { %v7600_v50 = vshra.s32 %v7598_v49, 16  ;;  %v7599_v54 = vand.u32 65535, %v7598_v49  ;;  %v12435_v49 = vld [vmem:[#allocation36 + $0x8] sm:$0xff]  }
0x2e61   :  { %v7602_v51 = vcvt.s32.f32 %v7600_v50  ;;  %v7601_v59 = vcvt.s32.f32 %v7599_v54 }
0x2e63   :  { %7603 = vmin.xlane.f32.xlu0 %v7602_v51 }
0x2e67   :  { %3121 = vadd.xlane.f32.xlu0 %v3120_v53 }
0x2ef0   :  { %v7604_v55 = vpop.xlane.xlu0 %7603 }
0x2ef1   :  { %vm7605_vm7 = vcmp.eq.f32.partialorder %v7602_v51, %v7604_v55  ;;  %v7610_v61 = vcvt.f32.s32 %v7604_v55 }
0x2ef2   :  { %v7606_v57 = vsel %vm7605_vm7, %v7601_v59, inf }
0x2ef3   :  { %7607 = vmin.xlane.f32.xlu1 %v7606_v57  ;;  %v7611_v63 = vshll.u32 %v7610_v61, 16 }
0x2ef4   :  { %v3122_v27 = vpop.xlane.xlu0 %3121 }
0x2ef5   :  { %v3124_v50 = vsel %vm3123_vm13, %v3122_v27, 0.0 }
0x2ef6   :  { %v3125_v51 = vrot.slane %v3124_v50, 4 }
0x2ef8   :  { %v3126_v52 = vadd.f32 %v3125_v51, %v3124_v50 }
0x2efa   :  { %v3127_v53 = vrot.slane %v3126_v52, 2 }
0x2efc   :  { %v3128_v57 = vadd.f32 %v3127_v53, %v3126_v52  ;;  %v12440_v52 = vld [vmem:[#allocation42 + $0x10] sm:$0xff]   ;;  %v12441_v53 = vld [vmem:[#allocation42] sm:$0xff]  }
0x2efe   :  { %v3129_v38 = vrot.slane %v3128_v57, 1 }
0x2f80   :  { %v7608_v23 = vpop.xlane.xlu1 %7607 }
0x2f81   :  { %v7609_v1 = vcvt.f32.s32 %v7608_v23 }
0x2f83   :  { %v7612_v28 = vadd.s32 %v7611_v63, %v7609_v1  ;;  %v3130_v1 = vadd.f32 %v3129_v38, %v3128_v57 }
0x2f85   :  { %vm7613_vm9 = vcmp.eq.s32.totalorder %v14333_v25, %v7612_v28 }
0x2f86   :  { %v10495_v4 = vsel %vm7613_vm9, 1.0, %v13659_v0 }
0x2f87   :  { %v7702_v30 = vsel %vm3020_vm12, %v10495_v4, 0.0  ;;  %11841 = vmatmul.mubr.msk.f32.vlgmr.msra.gmra.mrb[142].mxu1 %vm3044_vm15, %v10495_v4 }
0x2f88   :  { %v7703_v5 = vrot.slane %v7702_v30, 4  ;;  %11863 = vmatprep.mubr.msk.bf16.mxu1 %vm13661_vm3, %v13659_v0  ;;  %11860 = vmatpush3.bf16.msra.mxu1 %v12427_v24 }
0x2f89   :  { %11861 = vmatprep.subr.bf16.mxu1 %v13659_v0 }
0x2f8a   :  { %v7704_v16 = vadd.f32 %v7703_v5, %v7702_v30 }
0x2f8c   :  { %v7705_v8 = vrot.slane %v7704_v16, 2  ;;  %11862 = vmatpush3.bf16.msra.mxu1 %v12429_v19 }
0x2f8d   :  { %11875 = vmatprep.subr.bf16.mxu1 %v13659_v0 }
0x2f8e   :  { %v7706_v3 = vadd.f32 %v7705_v8, %v7704_v16 }
0x2f90   :  { %v7707_v11 = vrot.slane %v7706_v3, 1 }
0x2f92   :  { %v7708_v14 = vadd.f32 %v7707_v11, %v7706_v3 }
0x2f94   :  { %v7709_v25 = vadd.f32 %v7708_v14, %v3138_v12 }
0x2f96   :  { %v9940_v15 = vmul.f32 0.125, %v7709_v25  ;;  %v10506_v25 = vld [vmem:[#allocation35] ss:$0 sm:$0xff] }
0x2f98   :  { %v9941_v18 = vadd.f32 1e-07, %v9940_v15 }
0x2f9a   :  { %12488 = vlog2.f32 %v9941_v18 }
0x2fa4   :  { %v12489_v17 = vpop.eup %12488 }
0x2fa5   :  { %v9943_v20 = vmul.f32 0.6931472, %v12489_v17 }
0x2fa7   :  { %v9944_v58 = vmul.f32 %v9943_v20, %v9940_v15 }
0x2fa9   :  { %v9945_v21 = vsel %vm3044_vm15, %v9944_v58, 0.0 }
0x2faa   :  { %9946 = vadd.xlane.f32.xlu0 %v9945_v21 }
0x3037   :  { %v9947_v60 = vpop.xlane.xlu0 %9946 }
0x3038   :  { %v9948_v31 = vsub.f32 0.0, %v9947_v60 }
0x303a   :  { %v9949_v33 = vmul.f32 1.442695, %v9948_v31  ;;  %v12437_v31 = vld [vmem:[#allocation36 + $0x28] sm:$0xff]  }
0x303c   :  { %12490 = vpow2.f32 %v9949_v33 }
0x3046   :  { %v12491_v34 = vpop.eup %12490 }
0x3047   :  { %9951 = vst.msk [vmem:[#allocation72] sm:$0x1] %vm9937_vm10, %v12491_v34  ;;  %v12438_v34 = vld [vmem:[#allocation39] sm:$0xff]  }
0x305a   :  { %v7685_v6 = vpop.f32.mrb[142].mxu1 }
0x305b   :  { %v7689_v62 = vsub.f32 %v15168_v35, %v7685_v6  ;;  %7713 = vst.msk [vmem:[#allocation2 + $0x1] sm:$0xf] %vm2203_vm11, %v7685_v6  ;;  %v11842_v9 = vpop.f32.mrb[143].mxu1  ;;  %v12431_v35 = vld [vmem:[#allocation33 + $0x8] sm:$0xff]  }
0x305c   :  { %v12439_v6 = vld [vmem:[#allocation39 + $0x8] sm:$0xff]  }
0x305d   :  { %v7690_v32 = vmul.f32 %v7689_v62, %v7689_v62 }
0x305f   :  { %v7691_v36 = vsel %vm2203_vm11, %v7690_v32, 0.0 }
0x3060   :  { %7692 = vadd.xlane.f32.xlu1 %v7691_v36 }
0x3062   :  { %v7720_v39 = vld [vmem:[#allocation2 + $0x1] sm:$0xf] }
0x3063   :  { %v7836_v41 = vld [vmem:[#allocation2 + $0x2] sm:$0xf]  ;;  %v7721_v43 = vpack.c.bf16 %v7720_v39, %v7720_v39 }
0x3064   :  { %v7714_v42 = vld [vmem:[#allocation2] sm:$0xf]  ;;  %v7837_v44 = vpack.c.bf16 %v7836_v41, %v7836_v41 }
0x3065   :  { %7908 = vst.msk [vmem:[#allocation2] sm:$0xff] %vm788_vm1, %v13659_v0  ;;  %11848 = vmatmul.mubr.msk.bf16.vlgmr.msra.gmra.mrb[192].mxu0 %vm788_vm1, %v7721_v43  ;;  %v7715_v45 = vpack.c.bf16 %v7714_v42, %v7714_v42 }
0x3066   :  { %11864 = vmatmul.mubr.msk.bf16.vlgmr.msra.gmra.mrb[192].mxu1 %vm788_vm1, %v7837_v44  ;;  %11852 = vmatpush3.bf16.msra.mxu0 %v12430_v37 }
0x3067   :  { %11855 = vmatprep.mubr.msk.bf16.mxu0 %vm13661_vm3, %v13659_v0  ;;  %11853 = vmatprep.subr.bf16.mxu0 %v13659_v0 }
0x3068   :  { %11879 = vmatprep.mubr.msk.bf16.mxu1 %vm13661_vm3, %v13659_v0  ;;  %11876 = vmatpush3.bf16.msra.mxu1 %v12433_v47 }
0x3069   :  { %11877 = vmatprep.subr.bf16.mxu1 %v13659_v0 }
0x306a   :  { %11854 = vmatpush3.bf16.msra.mxu0 %v12431_v35  ;;  %v10516_v35 = vld [vmem:[#allocation38] ss:$0 sm:$0xff] }
0x306b   :  { %11867 = vmatprep.subr.bf16.mxu0 %v13659_v0 }
0x306c   :  { %11878 = vmatpush3.bf16.msra.mxu1 %v12435_v49 }
0x306d   :  { %11856 = vmatmul.mubr.msk.bf16.vlgmr.msra.gmra.mrb[196].mxu0 %vm788_vm1, %v7715_v45  ;;  %11891 = vmatprep.subr.bf16.mxu1 %v13659_v0 }
0x306e   :  { %11871 = vmatprep.mubr.msk.bf16.mxu0 %vm13661_vm3, %v13659_v0  ;;  %11868 = vmatpush3.bf16.msra.mxu0 %v12432_v46 }
0x306f   :  { %11869 = vmatprep.subr.bf16.mxu0 %v13659_v0 }
0x3072   :  { %11870 = vmatpush3.bf16.msra.mxu0 %v12434_v48 }
0x3073   :  { %11883 = vmatprep.subr.bf16.mxu0 %v13659_v0 }
0x30ed   :  { %v7693_v54 = vpop.xlane.xlu1 %7692 }
0x30ee   :  { %v7694_v55 = vsel %vm3123_vm13, %v7693_v54, 0.0  ;;  %v12442_v54 = vld [vmem:[#allocation42 + $0x18] sm:$0xff]  }
0x30ef   :  { %v7695_v59 = vrot.slane %v7694_v55, 4 }
0x30f1   :  { %v7696_v56 = vadd.f32 %v7695_v59, %v7694_v55  ;;  %v12443_v55 = vld [vmem:[#allocation42 + $0x8] sm:$0xff]   ;;  %v10517_v59 = vld [vmem:[#allocation41] ss:$0 sm:$0xff] }
0x30f3   :  { %v7697_v61 = vrot.slane %v7696_v56, 2 }
0x30f5   :  { %v7698_v23 = vadd.f32 %v7697_v61, %v7696_v56 }
0x30f7   :  { %v7699_v63 = vrot.slane %v7698_v23, 1 }
0x30f9   :  { %v7700_v13 = vadd.f32 %v7699_v63, %v7698_v23 }
0x30fb   :  { %v7701_v28 = vadd.f32 %v7700_v13, %v3130_v1  ;;  %v12444_v13 = vld [vmem:[#allocation42 + $0x20] sm:$0xff]  }
0x30fd   :  { %v9936_v29 = vmul.f32 0.00390625, %v7701_v28 }
0x30ff   :  { %9938 = vst.msk [vmem:[#allocation71] sm:$0x1] %vm9937_vm10, %v9936_v29 }
0x3138   :  { %v7775_v4 = vpop.f32.mrb[192].mxu0 }
0x3139   :  { %v7891_v30 = vpop.f32.mrb[192].mxu1  ;;  %v11849_v5 = vpop.f32.mrb[193].mxu0 }
0x313a   :  { %v11865_v16 = vpop.f32.mrb[193].mxu1  ;;  %v7778_v7 = vpop.f32.mrb[194].mxu0 }
0x313b   :  { %v7894_v8 = vpop.f32.mrb[194].mxu1  ;;  %v11850_v10 = vpop.f32.mrb[195].mxu0  ;;  %v12445_v16 = vld [vmem:[#allocation42 + $0x28] sm:$0xff]  }
0x313c   :  { %v11866_v3 = vpop.f32.mrb[195].mxu1  ;;  %v12446_v8 = vld [vmem:[#allocation45] sm:$0xff]   ;;  %v12447_v10 = vld [vmem:[#allocation45 + $0x8] sm:$0xff]  }
0x3140   :  { %v7830_v11 = vpop.f32.mrb[196].mxu0 }
0x3141   :  { %v7831_v12 = vadd.f32 %v7830_v11, %v7775_v4  ;;  %v11857_v14 = vpop.f32.mrb[197].mxu0 }
0x3142   :  { %v7833_v15 = vpop.f32.mrb[198].mxu0 }
0x3143   :  { %v7897_v18 = vadd.f32 %v7891_v30, %v7831_v12  ;;  %v11858_v17 = vpop.f32.mrb[199].mxu0 }
0x3145   :  { %v15220_v20 = vadd.f32 %v10506_v25, %v7897_v18 }
0x3147   :  { %v7906_v58 = vmax.f32 %v15220_v20, 0.0 }
0x3149   :  { %v7907_v21 = vmax.f32 %v7906_v58, 0.0 }
0x314b   :  { %7911 = vst.msk [vmem:[#allocation2 + $0x3] sm:$0xf] %vm2203_vm11, %v7907_v21  ;;  %v10530_v21 = vld [vmem:[#allocation44] ss:$0 sm:$0xff] }
0x3152   :  { %v7918_v24 = vld [vmem:[#allocation2 + $0x3] sm:$0xf] }
0x3153   :  { %v8034_v26 = vld [vmem:[#allocation2 + $0x6] sm:$0xf]  ;;  %v7912_v19 = vld [vmem:[#allocation2] sm:$0xf]  ;;  %v7919_v27 = vpack.c.bf16 %v7918_v24, %v7918_v24 }
0x3154   :  { %8175 = vst.msk [vmem:[#allocation2 + $0x8] sm:$0xff] %vm788_vm1, %v13659_v0  ;;  %v7913_v60 = vpack.c.bf16 %v7912_v19, %v7912_v19  ;;  %8174 = vst.msk [vmem:[#allocation2] sm:$0xff] %vm788_vm1, %v13659_v0  ;;  %v8035_v33 = vpack.c.bf16 %v8034_v26, %v8034_v26 }
0x3155   :  { %8513 = vst.msk [vmem:[#allocation2 + $0x8] sm:$0xff] %vm788_vm1, %v13659_v0  ;;  %11872 = vmatmul.mubr.msk.bf16.vlgmr.msra.gmra.mrb[200].mxu0 %vm788_vm1, %v7919_v27 }
0x3156   :  { %11880 = vmatmul.mubr.msk.bf16.vlgmr.msra.gmra.mrb[196].mxu1 %vm788_vm1, %v7913_v60  ;;  %11884 = vmatpush3.bf16.msra.mxu0 %v12436_v22 }
0x3157   :  { %11887 = vmatprep.mubr.msk.bf16.mxu0 %vm13661_vm3, %v13659_v0  ;;  %11885 = vmatprep.subr.bf16.mxu0 %v13659_v0 }
0x3158   :  { %11895 = vmatprep.mubr.msk.bf16.mxu1 %vm13661_vm3, %v13659_v0  ;;  %11892 = vmatpush3.bf16.msra.mxu1 %v12438_v34 }
0x3159   :  { %11893 = vmatprep.subr.bf16.mxu1 %v13659_v0 }
0x315a   :  { %11886 = vmatpush3.bf16.msra.mxu0 %v12437_v31 }
0x315b   :  { %11899 = vmatprep.subr.bf16.mxu0 %v13659_v0 }
0x315c   :  { %11894 = vmatpush3.bf16.msra.mxu1 %v12439_v6 }
0x315d   :  { %11888 = vmatmul.mubr.msk.bf16.vlgmr.msra.gmra.mrb[204].mxu0 %vm788_vm1, %v8035_v33  ;;  %11907 = vmatprep.subr.bf16.mxu1 %v13659_v0  ;;  %v10531_v33 = vld [vmem:[#allocation47] ss:$0 sm:$0xff] }
0x315e   :  { %11903 = vmatprep.mubr.msk.bf16.mxu0 %vm13661_vm3, %v13659_v0  ;;  %11900 = vmatpush3.bf16.msra.mxu0 %v12440_v52  ;;  %v12454_v52 = vld [vmem:[#allocation50 + $0x10] sm:$0xff]  }
0x315f   :  { %11901 = vmatprep.subr.bf16.mxu0 %v13659_v0 }
0x3162   :  { %11902 = vmatpush3.bf16.msra.mxu0 %v12442_v54  ;;  %v12456_v54 = vld [vmem:[#allocation50 + $0x18] sm:$0xff]  }
0x3163   :  { %11915 = vmatprep.subr.bf16.mxu0 %v13659_v0 }
0x3228   :  { %v7973_v62 = vpop.f32.mrb[200].mxu0 }
0x3229   :  { %v8028_v9 = vpop.f32.mrb[196].mxu1  ;;  %v11873_v36 = vpop.f32.mrb[201].mxu0 }
0x322a   :  { %v8029_v32 = vadd.f32 %v8028_v9, %v7973_v62  ;;  %v11881_v37 = vpop.f32.mrb[197].mxu1  ;;  %v7976_v39 = vpop.f32.mrb[202].mxu0 }
0x322b   :  { %v8031_v41 = vpop.f32.mrb[198].mxu1  ;;  %v11874_v42 = vpop.f32.mrb[203].mxu0  ;;  %v12448_v37 = vld [vmem:[%s15556_s8 + $0x10] sm:$0xff]   ;;  %v12449_v39 = vld [vmem:[%s15556_s8] sm:$0xff]  }
0x322c   :  { %v11882_v43 = vpop.f32.mrb[199].mxu1  ;;  %v12450_v41 = vld [vmem:[%s15556_s8 + $0x18] sm:$0xff]   ;;  %v12451_v42 = vld [vmem:[%s15556_s8 + $0x8] sm:$0xff]  }
0x3230   :  { %v8089_v44 = vpop.f32.mrb[204].mxu0 }
0x3231   :  { %v8095_v45 = vadd.f32 %v8089_v44, %v8029_v32  ;;  %v11889_v46 = vpop.f32.mrb[205].mxu0 }
0x3232   :  { %v8092_v47 = vpop.f32.mrb[206].mxu0 }
0x3233   :  { %v8103_v48 = vadd.f32 %v10516_v35, %v8095_v45  ;;  %v11890_v49 = vpop.f32.mrb[207].mxu0  ;;  %v12452_v35 = vld [vmem:[%s15556_s8 + $0x20] sm:$0xff]  }
0x3235   :  { %v8104_v50 = vmax.f32 %v8103_v48, 0.0 }
0x3237   :  { %v8105_v51 = vpack.c.bf16 %v8104_v50, %v8104_v50  ;;  %v12453_v50 = vld [vmem:[%s15556_s8 + $0x28] sm:$0xff]  }
0x3239   :  { %11896 = vmatmul.mubr.msk.bf16.vlgmr.msra.gmra.mrb[200].mxu1 %vm788_vm1, %v8105_v51 }
0x323a   :  { %11911 = vmatprep.mubr.msk.bf16.mxu1 %vm13661_vm3, %v13659_v0  ;;  %11908 = vmatpush3.bf16.msra.mxu1 %v12441_v53  ;;  %v12455_v53 = vld [vmem:[#allocation50] sm:$0xff]  }
0x323b   :  { %11909 = vmatprep.subr.bf16.mxu1 %v13659_v0 }
0x323e   :  { %11910 = vmatpush3.bf16.msra.mxu1 %v12443_v55  ;;  %v12457_v55 = vld [vmem:[#allocation50 + $0x8] sm:$0xff]  }
0x323f   :  { %11923 = vmatprep.subr.bf16.mxu1 %v13659_v0 }
0x330c   :  { %v8166_v57 = vpop.f32.mrb[200].mxu1 }
0x330d   :  { %v8167_v56 = vadd.f32 %v10517_v59, %v8166_v57  ;;  %v11897_v61 = vpop.f32.mrb[201].mxu1 }
0x330e   :  { %v8169_v38 = vpop.f32.mrb[202].mxu1 }
0x330f   :  { %v8172_v23 = vadd.f32 %v8167_v56, %v7906_v58  ;;  %v11898_v63 = vpop.f32.mrb[203].mxu1 }
0x3311   :  { %v8173_v1 = vmax.f32 %v8172_v23, 0.0 }
0x3313   :  { %8177 = vst.msk [vmem:[#allocation2 + $0x1] sm:$0xf] %vm2203_vm11, %v8173_v1 }
0x331a   :  { %v8184_v28 = vld [vmem:[#allocation2 + $0x1] sm:$0xf] }
0x331b   :  { %v8178_v29 = vld [vmem:[#allocation2] sm:$0xf]  ;;  %v8185_v30 = vpack.c.bf16 %v8184_v28, %v8184_v28 }
0x331c   :  { %v8300_v4 = vld [vmem:[#allocation2 + $0x2] sm:$0xf]  ;;  %v8179_v5 = vpack.c.bf16 %v8178_v29, %v8178_v29  ;;  %v10554_v29 = vld [vmem:[#allocation48] ss:$0 sm:$0xff] }
0x331d   :  { %8512 = vst.msk [vmem:[#allocation2] sm:$0xff] %vm788_vm1, %v13659_v0  ;;  %11904 = vmatmul.mubr.msk.bf16.vlgmr.msra.gmra.mrb[208].mxu0 %vm788_vm1, %v8185_v30  ;;  %v8301_v7 = vpack.c.bf16 %v8300_v4, %v8300_v4 }
0x331e   :  { %11912 = vmatmul.mubr.msk.bf16.vlgmr.msra.gmra.mrb[204].mxu1 %vm788_vm1, %v8179_v5  ;;  %11916 = vmatpush3.bf16.msra.mxu0 %v12444_v13 }
0x331f   :  { %11919 = vmatprep.mubr.msk.bf16.mxu0 %vm13661_vm3, %v13659_v0  ;;  %11917 = vmatprep.subr.bf16.mxu0 %v13659_v0 }
0x3320   :  { %11927 = vmatprep.mubr.msk.bf16.mxu1 %vm13661_vm3, %v13659_v0  ;;  %11924 = vmatpush3.bf16.msra.mxu1 %v12446_v8 }
0x3321   :  { %11925 = vmatprep.subr.bf16.mxu1 %v13659_v0 }
0x3322   :  { %11918 = vmatpush3.bf16.msra.mxu0 %v12445_v16 }
0x3323   :  { %11931 = vmatprep.subr.mxu0 %v13659_v0 }
0x3324   :  { %11926 = vmatpush3.bf16.msra.mxu1 %v12447_v10  ;;  %v12458_v10 = vld [vmem:[#allocation50 + $0x20] sm:$0xff]  }
0x3325   :  { %11920 = vmatmul.mubr.msk.bf16.vlgmr.msra.gmra.mrb[212].mxu0 %vm788_vm1, %v8301_v7  ;;  %11936 = vmatprep.subr.bf16.mxu1 %v13659_v0 }
0x3326   :  { %11933 = vmatprep.mubr.msk.f32.mxu0 %vm13661_vm3, %v13659_v0 }
0x33f0   :  { %v8239_v3 = vpop.f32.mrb[208].mxu0 }
0x33f1   :  { %v8294_v11 = vpop.f32.mrb[204].mxu1  ;;  %v11905_v14 = vpop.f32.mrb[209].mxu0 }
0x33f2   :  { %v8295_v12 = vadd.f32 %v8294_v11, %v8239_v3  ;;  %v11913_v25 = vpop.f32.mrb[205].mxu1  ;;  %v8242_v15 = vpop.f32.mrb[210].mxu0 }
0x33f3   :  { %v8297_v18 = vpop.f32.mrb[206].mxu1  ;;  %v11906_v17 = vpop.f32.mrb[211].mxu0  ;;  %v12459_v15 = vld [vmem:[#allocation50 + $0x28] sm:$0xff]  }
0x33f4   :  { %v11914_v20 = vpop.f32.mrb[207].mxu1  ;;  %v12460_v17 = vld [vmem:[#allocation53] sm:$0xff]  }
0x33f5   :  { %v12461_v20 = vld [vmem:[#allocation53 + $0x8] sm:$0xff]  }
0x33f8   :  { %v8355_v58 = vpop.f32.mrb[212].mxu0 }
0x33f9   :  { %v8361_v22 = vadd.f32 %v8355_v58, %v8295_v12  ;;  %v11921_v24 = vpop.f32.mrb[213].mxu0 }
0x33fa   :  { %v8358_v26 = vpop.f32.mrb[214].mxu0 }
0x33fb   :  { %v8369_v19 = vadd.f32 %v10530_v21, %v8361_v22  ;;  %v11922_v27 = vpop.f32.mrb[215].mxu0 }
0x33fd   :  { %v8370_v60 = vmax.f32 %v8369_v19, 0.0 }
0x33ff   :  { %v8371_v31 = vpack.c.bf16 %v8370_v60, %v8370_v60 }
0x3401   :  { %11928 = vmatmul.mubr.msk.bf16.vlgmr.msra.gmra.mrb[208].mxu1 %vm788_vm1, %v8371_v31 }
0x3402   :  { %11940 = vmatprep.mubr.msk.bf16.mxu1 %vm13661_vm3, %v13659_v0  ;;  %11937 = vmatpush3.bf16.msra.mxu1 %v12448_v37 }
0x3403   :  { %11938 = vmatprep.subr.bf16.mxu1 %v13659_v0 }
0x3406   :  { %11939 = vmatpush3.bf16.msra.mxu1 %v12450_v41  ;;  %v12462_v41 = vld [vmem:[#allocation56 + $0x10] sm:$0xff]  }
0x3407   :  { %11952 = vmatprep.subr.bf16.mxu1 %v13659_v0 }
0x34d4   :  { %v8432_v34 = vpop.f32.mrb[208].mxu1 }
0x34d5   :  { %v8433_v6 = vadd.f32 %v10531_v33, %v8432_v34  ;;  %v11929_v62 = vpop.f32.mrb[209].mxu1  ;;  %v10564_v34 = vld [vmem:[#allocation51] ss:$0 sm:$0xff] }
0x34d6   :  { %v8435_v9 = vpop.f32.mrb[210].mxu1 }
0x34d7   :  { %v8438_v32 = vadd.f32 %v8433_v6, %v8172_v23  ;;  %v11930_v36 = vpop.f32.mrb[211].mxu1 }
0x34d9   :  { %11932 = vmatpush3.msk.msra.mxu0 %vm3123_vm13, %v8438_v32 }
0x34da   :  { %11934 = vmatmul.mubr.msk.f32.vlgmr.msra.gmra.mrb[216].mxu0 %vm3882_vm14, %v14692_v40  ;;  %11944 = vmatprep.subr.bf16.mxu0 %v13659_v0 }
0x34db   :  { %11948 = vmatprep.mubr.msk.bf16.mxu0 %vm13661_vm3, %v13659_v0  ;;  %11945 = vmatpush3.bf16.msra.mxu0 %v12449_v39 }
0x34dc   :  { %11946 = vmatprep.subr.bf16.mxu0 %v13659_v0 }
0x34df   :  { %11947 = vmatpush3.bf16.msra.mxu0 %v12451_v42  ;;  %v12463_v42 = vld [vmem:[#allocation56] sm:$0xff]  }
0x34e0   :  { %11960 = vmatprep.subr.bf16.mxu0 %v13659_v0 }
0x35ad   :  { %v8508_v43 = vpop.f32.mrb[216].mxu0 }
0x35ae   :  { %8515 = vst.msk [vmem:[#allocation2 + $0x1] sm:$0xff] %vm788_vm1, %v8508_v43  ;;  %v11935_v44 = vpop.f32.mrb[217].mxu0  ;;  %v12464_v43 = vld [vmem:[#allocation56 + $0x18] sm:$0xff]  }
0x35af   :  { %v12465_v44 = vld [vmem:[#allocation56 + $0x8] sm:$0xff]  }
0x35b5   :  { %v8522_v45 = vld [vmem:[#allocation2 + $0x1] sm:$0xff] }
0x35b6   :  { %v8516_v46 = vld [vmem:[#allocation2] sm:$0xff]  ;;  %v8523_v48 = vpack.c.bf16 %v8522_v45, %v8522_v45 }
0x35b7   :  { %v8638_v47 = vld [vmem:[#allocation2 + $0x2] sm:$0xff]  ;;  %v8517_v49 = vpack.c.bf16 %v8516_v46, %v8516_v46 }
0x35b8   :  { %8709 = vst.msk [vmem:[#allocation2] sm:$0xff] %vm788_vm1, %v13659_v0  ;;  %8710 = vst.msk [vmem:[#allocation2 + $0x8] sm:$0xff] %vm788_vm1, %v13659_v0  ;;  %11941 = vmatmul.mubr.msk.bf16.vlgmr.msra.gmra.mrb[212].mxu1 %vm788_vm1, %v8523_v48  ;;  %v8639_v51 = vpack.c.bf16 %v8638_v47, %v8638_v47 }
0x35b9   :  { %11949 = vmatmul.mubr.msk.bf16.vlgmr.msra.gmra.mrb[220].mxu0 %vm788_vm1, %v8517_v49  ;;  %11953 = vmatpush3.bf16.msra.mxu1 %v12452_v35  ;;  %v10565_v35 = vld [vmem:[#allocation54] ss:$0 sm:$0xff] }
0x35ba   :  { %11956 = vmatprep.mubr.msk.bf16.mxu1 %vm13661_vm3, %v13659_v0  ;;  %11954 = vmatprep.subr.bf16.mxu1 %v13659_v0 }
0x35bb   :  { %11964 = vmatprep.mubr.msk.bf16.mxu0 %vm13661_vm3, %v13659_v0  ;;  %11961 = vmatpush3.bf16.msra.mxu0 %v12454_v52  ;;  %v12466_v52 = vld [vmem:[#allocation56 + $0x20] sm:$0xff]  }
0x35bc   :  { %11962 = vmatprep.subr.bf16.mxu0 %v13659_v0 }
0x35bd   :  { %11955 = vmatpush3.bf16.msra.mxu1 %v12453_v50 }
0x35be   :  { %11968 = vmatprep.subr.bf16.mxu1 %v13659_v0 }
0x35bf   :  { %11963 = vmatpush3.bf16.msra.mxu0 %v12456_v54 }
0x35c0   :  { %11957 = vmatmul.mubr.msk.bf16.vlgmr.msra.gmra.mrb[216].mxu1 %vm788_vm1, %v8639_v51  ;;  %11976 = vmatprep.subr.bf16.mxu0 %v13659_v0 }
0x35c1   :  { %11972 = vmatprep.mubr.msk.bf16.mxu1 %vm13661_vm3, %v13659_v0  ;;  %11969 = vmatpush3.bf16.msra.mxu1 %v12455_v53 }
0x35c2   :  { %11970 = vmatprep.subr.bf16.mxu1 %v13659_v0 }
0x35c5   :  { %11971 = vmatpush3.bf16.msra.mxu1 %v12457_v55 }
0x35c6   :  { %11984 = vmatprep.subr.bf16.mxu1 %v13659_v0 }
0x368b   :  { %v8577_v59 = vpop.f32.mrb[212].mxu1 }
0x368c   :  { %v8632_v57 = vpop.f32.mrb[220].mxu0  ;;  %v11942_v61 = vpop.f32.mrb[213].mxu1 }
0x368d   :  { %v8633_v56 = vadd.f32 %v8632_v57, %v8577_v59  ;;  %v11950_v38 = vpop.f32.mrb[221].mxu0  ;;  %v8580_v23 = vpop.f32.mrb[214].mxu1 }
0x368e   :  { %v8635_v63 = vpop.f32.mrb[222].mxu0  ;;  %v11943_v1 = vpop.f32.mrb[215].mxu1  ;;  %v12468_v38 = vld [vmem:[#allocation59] sm:$0xff]   ;;  %v12469_v23 = vld [vmem:[#allocation59 + $0x8] sm:$0xff]  }
0x368f   :  { %v11951_v13 = vpop.f32.mrb[223].mxu0 }
0x3693   :  { %v8693_v28 = vpop.f32.mrb[216].mxu1 }
0x3694   :  { %v8699_v4 = vadd.f32 %v8693_v28, %v8633_v56  ;;  %v11958_v30 = vpop.f32.mrb[217].mxu1  ;;  %v12467_v56 = vld [vmem:[#allocation56 + $0x28] sm:$0xff]  }
0x3695   :  { %v8696_v5 = vpop.f32.mrb[218].mxu1 }
0x3696   :  { %v15309_v16 = vadd.f32 %v10554_v29, %v8699_v4  ;;  %v11959_v7 = vpop.f32.mrb[219].mxu1 }
0x3698   :  { %v8708_v8 = vmax.f32 %v15309_v16, 0.0 }
0x369a   :  { %8712 = vst.msk [vmem:[#allocation2 + $0x3] sm:$0xff] %vm788_vm1, %v8708_v8  ;;  %v10578_v8 = vld [vmem:[#allocation57] ss:$0 sm:$0xff] }
0x36a1   :  { %v8719_v3 = vld [vmem:[#allocation2 + $0x3] sm:$0xff] }
0x36a2   :  { %v8713_v11 = vld [vmem:[#allocation2] sm:$0xff]  ;;  %v8720_v14 = vpack.c.bf16 %v8719_v3, %v8719_v3 }
0x36a3   :  { %v8835_v12 = vld [vmem:[#allocation2 + $0x6] sm:$0xff]  ;;  %v8714_v25 = vpack.c.bf16 %v8713_v11, %v8713_v11 }
0x36a4   :  { %8975 = vst.msk [vmem:[#allocation2] sm:$0xff] %vm788_vm1, %v13659_v0  ;;  %8976 = vst.msk [vmem:[#allocation2 + $0x8] sm:$0xff] %vm788_vm1, %v13659_v0  ;;  %11965 = vmatmul.mubr.msk.bf16.vlgmr.msra.gmra.mrb[224].mxu0 %vm788_vm1, %v8720_v14  ;;  %v8836_v18 = vpack.c.bf16 %v8835_v12, %v8835_v12 }
0x36a5   :  { %11973 = vmatmul.mubr.msk.bf16.vlgmr.msra.gmra.mrb[220].mxu1 %vm788_vm1, %v8714_v25  ;;  %11977 = vmatpush3.bf16.msra.mxu0 %v12458_v10 }
0x36a6   :  { %11980 = vmatprep.mubr.msk.bf16.mxu0 %vm13661_vm3, %v13659_v0  ;;  %11978 = vmatprep.subr.bf16.mxu0 %v13659_v0 }
0x36a7   :  { %11988 = vmatprep.mubr.msk.bf16.mxu1 %vm13661_vm3, %v13659_v0  ;;  %11985 = vmatpush3.bf16.msra.mxu1 %v12460_v17 }
0x36a8   :  { %11986 = vmatprep.subr.bf16.mxu1 %v13659_v0 }
0x36a9   :  { %11979 = vmatpush3.bf16.msra.mxu0 %v12459_v15  ;;  %v10579_v15 = vld [vmem:[#allocation60] ss:$0 sm:$0xff] }
0x36aa   :  { %11992 = vmatprep.subr.bf16.mxu0 %v13659_v0 }
0x36ab   :  { %11987 = vmatpush3.bf16.msra.mxu1 %v12461_v20 }
0x36ac   :  { %11981 = vmatmul.mubr.msk.bf16.vlgmr.msra.gmra.mrb[228].mxu0 %vm788_vm1, %v8836_v18  ;;  %12000 = vmatprep.subr.bf16.mxu1 %v13659_v0 }
0x36ad   :  { %11996 = vmatprep.mubr.msk.bf16.mxu0 %vm13661_vm3, %v13659_v0  ;;  %11993 = vmatpush3.bf16.msra.mxu0 %v12462_v41 }
0x36ae   :  { %11994 = vmatprep.subr.bf16.mxu0 %v13659_v0 }
0x36b1   :  { %11995 = vmatpush3.bf16.msra.mxu0 %v12464_v43  ;;  %v12477_v43 = vld [vmem:[#allocation65] sm:$0xff]  }
0x36b2   :  { %12008 = vmatprep.subr.bf16.mxu0 %v13659_v0 }
0x3777   :  { %v8774_v58 = vpop.f32.mrb[224].mxu0 }
0x3778   :  { %v8829_v21 = vpop.f32.mrb[220].mxu1  ;;  %v11966_v24 = vpop.f32.mrb[225].mxu0 }
0x3779   :  { %v8830_v22 = vadd.f32 %v8829_v21, %v8774_v58  ;;  %v11974_v26 = vpop.f32.mrb[221].mxu1  ;;  %v8777_v19 = vpop.f32.mrb[226].mxu0  ;;  %v12470_v24 = vld [vmem:[#allocation62 + $0x10] sm:$0xff]  }
0x377a   :  { %v8832_v27 = vpop.f32.mrb[222].mxu1  ;;  %v11967_v60 = vpop.f32.mrb[227].mxu0  ;;  %v12471_v26 = vld [vmem:[#allocation62] sm:$0xff]   ;;  %v12472_v19 = vld [vmem:[#allocation62 + $0x18] sm:$0xff]  }
0x377b   :  { %v11975_v31 = vpop.f32.mrb[223].mxu1  ;;  %v12473_v27 = vld [vmem:[#allocation62 + $0x8] sm:$0xff]  }
0x377f   :  { %v8890_v33 = vpop.f32.mrb[228].mxu0 }
0x3780   :  { %v8896_v6 = vadd.f32 %v8890_v33, %v8830_v22  ;;  %v11982_v62 = vpop.f32.mrb[229].mxu0  ;;  %v12474_v33 = vld [vmem:[#allocation62 + $0x20] sm:$0xff]  }
0x3781   :  { %v8893_v9 = vpop.f32.mrb[230].mxu0 }
0x3782   :  { %v8904_v32 = vadd.f32 %v10564_v34, %v8896_v6  ;;  %v11983_v36 = vpop.f32.mrb[231].mxu0 }
0x3784   :  { %v8905_v37 = vmax.f32 %v8904_v32, 0.0 }
0x3786   :  { %v8906_v39 = vpack.c.bf16 %v8905_v37, %v8905_v37 }
0x3788   :  { %11989 = vmatmul.mubr.msk.bf16.vlgmr.msra.gmra.mrb[224].mxu1 %vm788_vm1, %v8906_v39  ;;  %v12475_v39 = vld [vmem:[#allocation62 + $0x28] sm:$0xff]  }
0x3789   :  { %12004 = vmatprep.mubr.msk.bf16.mxu1 %vm13661_vm3, %v13659_v0  ;;  %12001 = vmatpush3.bf16.msra.mxu1 %v12463_v42  ;;  %v12476_v42 = vld [vmem:[#allocation65 + $0x10] sm:$0xff]  }
0x378a   :  { %12002 = vmatprep.subr.bf16.mxu1 %v13659_v0 }
0x378d   :  { %12003 = vmatpush3.bf16.msra.mxu1 %v12465_v44  ;;  %v12478_v44 = vld [vmem:[#allocation65 + $0x18] sm:$0xff]  }
0x378e   :  { %12016 = vmatprep.subr.bf16.mxu1 %v13659_v0 }
0x385b   :  { %v8967_v45 = vpop.f32.mrb[224].mxu1 }
0x385c   :  { %v8968_v46 = vadd.f32 %v10565_v35, %v8967_v45  ;;  %v11990_v47 = vpop.f32.mrb[225].mxu1  ;;  %v12479_v35 = vld [vmem:[#allocation65 + $0x8] sm:$0xff]  }
0x385d   :  { %v8970_v48 = vpop.f32.mrb[226].mxu1 }
0x385e   :  { %v8973_v49 = vadd.f32 %v8968_v46, %v15309_v16  ;;  %v11991_v50 = vpop.f32.mrb[227].mxu1 }
0x3860   :  { %v8974_v51 = vmax.f32 %v8973_v49, 0.0 }
0x3862   :  { %8978 = vst.msk [vmem:[#allocation2 + $0x1] sm:$0xff] %vm788_vm1, %v8974_v51 }
0x3869   :  { %v8985_v53 = vld [vmem:[#allocation2 + $0x1] sm:$0xff] }
0x386a   :  { %v8979_v54 = vld [vmem:[#allocation2] sm:$0xff]  ;;  %v8986_v59 = vpack.c.bf16 %v8985_v53, %v8985_v53 }
0x386b   :  { %v9101_v55 = vld [vmem:[#allocation2 + $0x2] sm:$0xff]  ;;  %v8980_v57 = vpack.c.bf16 %v8979_v54, %v8979_v54 }
0x386c   :  { %9315 = vst.msk [vmem:[#allocation2] sm:$0xff] %vm788_vm1, %v13659_v0  ;;  %9316 = vst.msk [vmem:[#allocation2 + $0x8] sm:$0xff] %vm788_vm1, %v13659_v0  ;;  %11997 = vmatmul.mubr.msk.bf16.vlgmr.msra.gmra.mrb[232].mxu0 %vm788_vm1, %v8986_v59  ;;  %v9102_v61 = vpack.c.bf16 %v9101_v55, %v9101_v55  ;;  %v10594_v59 = vld [vmem:[#allocation63] ss:$0 sm:$0xff] }
0x386d   :  { %12005 = vmatmul.mubr.msk.bf16.vlgmr.msra.gmra.mrb[228].mxu1 %vm788_vm1, %v8980_v57  ;;  %12009 = vmatpush3.bf16.msra.mxu0 %v12466_v52 }
0x386e   :  { %12012 = vmatprep.mubr.msk.bf16.mxu0 %vm13661_vm3, %v13659_v0  ;;  %12010 = vmatprep.subr.bf16.mxu0 %v13659_v0 }
0x386f   :  { %12020 = vmatprep.mubr.msk.bf16.mxu1 %vm13661_vm3, %v13659_v0  ;;  %12017 = vmatpush3.bf16.msra.mxu1 %v12468_v38 }
0x3870   :  { %12018 = vmatprep.subr.bf16.mxu1 %v13659_v0 }
0x3871   :  { %12011 = vmatpush3.bf16.msra.mxu0 %v12467_v56 }
0x3873   :  { %12019 = vmatpush3.bf16.msra.mxu1 %v12469_v23 }
0x3874   :  { %12013 = vmatmul.mubr.msk.bf16.vlgmr.msra.gmra.mrb[236].mxu0 %vm788_vm1, %v9102_v61  ;;  %12029 = vmatprep.subr.bf16.mxu1 %v13659_v0 }
0x3875   :  { %12026 = vmatprep.mubr.msk.f32.mxu0 %vm4699_vm0, %v14692_v40 }
0x393f   :  { %v9040_v63 = vpop.f32.mrb[232].mxu0 }
0x3940   :  { %v9095_v1 = vpop.f32.mrb[228].mxu1  ;;  %v11998_v28 = vpop.f32.mrb[233].mxu0 }
0x3941   :  { %v9096_v13 = vadd.f32 %v9095_v1, %v9040_v63  ;;  %v12006_v29 = vpop.f32.mrb[229].mxu1  ;;  %v9043_v4 = vpop.f32.mrb[234].mxu0 }
0x3942   :  { %v9098_v30 = vpop.f32.mrb[230].mxu1  ;;  %v11999_v5 = vpop.f32.mrb[235].mxu0  ;;  %v12480_v29 = vld [vmem:[#allocation65 + $0x20] sm:$0xff]  }
0x3943   :  { %v12007_v16 = vpop.f32.mrb[231].mxu1 }
0x3947   :  { %v9156_v7 = vpop.f32.mrb[236].mxu0 }
0x3948   :  { %v9162_v40 = vadd.f32 %v9156_v7, %v9096_v13  ;;  %v12014_v10 = vpop.f32.mrb[237].mxu0 }
0x3949   :  { %v9159_v3 = vpop.f32.mrb[238].mxu0 }
0x394a   :  { %v9170_v11 = vadd.f32 %v10578_v8, %v9162_v40  ;;  %v12015_v12 = vpop.f32.mrb[239].mxu0  ;;  %v12481_v40 = vld [vmem:[#allocation65 + $0x28] sm:$0xff]   ;;  %v12482_v3 = vld [vmem:[%s15557_s6 + $0x10] sm:$0xff]  }
0x394b   :  { %v12484_v12 = vld [vmem:[%s15557_s6 + $0x18] sm:$0xff]  }
0x394c   :  { %v9171_v14 = vmax.f32 %v9170_v11, 0.0  ;;  %v12483_v11 = vld [vmem:[%s15557_s6] sm:$0xff]  }
0x394e   :  { %v9172_v25 = vpack.c.bf16 %v9171_v14, %v9171_v14  ;;  %v12485_v14 = vld [vmem:[%s15557_s6 + $0x8] sm:$0xff]  }
0x3950   :  { %12021 = vmatmul.mubr.msk.bf16.vlgmr.msra.gmra.mrb[232].mxu1 %vm788_vm1, %v9172_v25 }
0x3951   :  { %12033 = vmatprep.mubr.msk.bf16.mxu1 %vm13661_vm3, %v13659_v0  ;;  %12030 = vmatpush3.bf16.msra.mxu1 %v12470_v24 }
0x3952   :  { %12031 = vmatprep.subr.bf16.mxu1 %v13659_v0 }
0x3955   :  { %12032 = vmatpush3.bf16.msra.mxu1 %v12472_v19 }
0x3956   :  { %12045 = vmatprep.subr.bf16.mxu1 %v13659_v0 }
0x3a23   :  { %v9233_v18 = vpop.f32.mrb[232].mxu1 }
0x3a24   :  { %v9234_v17 = vadd.f32 %v10579_v15, %v9233_v18  ;;  %v12022_v20 = vpop.f32.mrb[233].mxu1 }
0x3a25   :  { %v9236_v58 = vpop.f32.mrb[234].mxu1 }
0x3a26   :  { %v9239_v21 = vadd.f32 %v9234_v17, %v8973_v49  ;;  %v12023_v22 = vpop.f32.mrb[235].mxu1 }
0x3a28   :  { %12024 = vmatprep.subr.mxu0 %v9239_v21 }
0x3a29   :  { %12025 = vmatpush3.msra.mxu0 %v9239_v21 }
0x3a2a   :  { %12027 = vmatmul.mubr.msk.f32.vlgmr.msra.gmra.mrb[218].mxu0 %vm4699_vm0, %v14783_v2  ;;  %12037 = vmatprep.subr.bf16.mxu0 %v13659_v0 }
0x3a2b   :  { %12041 = vmatprep.mubr.msk.bf16.mxu0 %vm13661_vm3, %v13659_v0  ;;  %12038 = vmatpush3.bf16.msra.mxu0 %v12471_v26 }
0x3a2c   :  { %12039 = vmatprep.subr.bf16.mxu0 %v13659_v0 }
0x3a2f   :  { %12040 = vmatpush3.bf16.msra.mxu0 %v12473_v27  ;;  %v10604_v27 = vld [vmem:[#allocation66] ss:$0 sm:$0xff] }
0x3a30   :  { %12053 = vmatprep.subr.bf16.mxu0 %v13659_v0 }
0x3afd   :  { %v12028_v2 = vpop.f32.mrb[218].mxu0 }
0x3afe   :  { %9319 = vst.msk [vmem:[#allocation2 + $0x9] sm:$0xff] %vm788_vm1, %v12028_v2  ;;  %v9306_v60 = vpop.f32.mrb[219].mxu0 }
0x3aff   :  { %9318 = vst.msk [vmem:[#allocation2 + $0x1] sm:$0xff] %vm788_vm1, %v9306_v60 }
0x3b05   :  { %v9328_v31 = vld [vmem:[#allocation2 + $0x9] sm:$0xff] }
0x3b06   :  { %v9447_v34 = vld [vmem:[#allocation2 + $0xa] sm:$0xff]  ;;  %v9327_v6 = vld [vmem:[#allocation2 + $0x1] sm:$0xff] }
0x3b07   :  { %v9320_v62 = vld [vmem:[#allocation2] sm:$0xff]  ;;  %v9321_v9 = vld [vmem:[#allocation2 + $0x8] sm:$0xff]  ;;  %9522 = vst.msk [vmem:[#allocation2 + $0x10] sm:$0xff] %vm788_vm1, %v13659_v0  ;;  %v9329_v32 = vpack.c.bf16 %v9328_v31, %v9327_v6 }
0x3b08   :  { %v9322_v36 = vpack.c.bf16 %v9321_v9, %v9320_v62  ;;  %v9446_v37 = vld [vmem:[#allocation2 + $0x2] sm:$0xff] }
0x3b09   :  { %9520 = vst.msk [vmem:[#allocation2] sm:$0xff] %vm788_vm1, %v13659_v0  ;;  %9521 = vst.msk [vmem:[#allocation2 + $0x8] sm:$0xff] %vm788_vm1, %v13659_v0  ;;  %12034 = vmatmul.mubr.msk.bf16.vlgmr.msra.gmra.mrb[236].mxu1 %vm788_vm1, %v9329_v32  ;;  %v9448_v41 = vpack.c.bf16 %v9447_v34, %v9446_v37  ;;  %v12486_v37 = vld [vmem:[%s15557_s6 + $0x20] sm:$0xff]  }
0x3b0a   :  { %12042 = vmatmul.mubr.msk.bf16.vlgmr.msra.gmra.mrb[240].mxu0 %vm788_vm1, %v9322_v36  ;;  %12046 = vmatpush3.bf16.msra.mxu1 %v12474_v33 }
0x3b0b   :  { %12049 = vmatprep.mubr.msk.bf16.mxu1 %vm13661_vm3, %v13659_v0  ;;  %12047 = vmatprep.subr.bf16.mxu1 %v13659_v0 }
0x3b0c   :  { %12057 = vmatprep.mubr.msk.bf16.mxu0 %vm13661_vm3, %v13659_v0  ;;  %12054 = vmatpush3.bf16.msra.mxu0 %v12476_v42 }
0x3b0d   :  { %12055 = vmatprep.subr.bf16.mxu0 %v13659_v0 }
0x3b0e   :  { %12048 = vmatpush3.bf16.msra.mxu1 %v12475_v39 }
0x3b0f   :  { %12061 = vmatprep.subr.bf16.mxu1 %v13659_v0 }
0x3b10   :  { %12056 = vmatpush3.bf16.msra.mxu0 %v12478_v44 }
0x3b11   :  { %12050 = vmatmul.mubr.msk.bf16.vlgmr.msra.gmra.mrb[240].mxu1 %vm788_vm1, %v9448_v41  ;;  %12069 = vmatprep.subr.bf16.mxu0 %v13659_v0 }
0x3b12   :  { %12065 = vmatprep.mubr.msk.bf16.mxu1 %vm13661_vm3, %v13659_v0  ;;  %12062 = vmatpush3.bf16.msra.mxu1 %v12477_v43 }
0x3b13   :  { %12063 = vmatprep.subr.bf16.mxu1 %v13659_v0 }
0x3b16   :  { %12064 = vmatpush3.bf16.msra.mxu1 %v12479_v35  ;;  %v12487_v35 = vld [vmem:[%s15557_s6 + $0x28] sm:$0xff]  }
0x3b17   :  { %12077 = vmatprep.subr.bf16.mxu1 %v13659_v0 }
0x3bdc   :  { %v9383_v45 = vpop.f32.mrb[236].mxu1 }
0x3bdd   :  { %v9439_v46 = vpop.f32.mrb[240].mxu0  ;;  %v12035_v48 = vpop.f32.mrb[237].mxu1 }
0x3bde   :  { %v9440_v47 = vadd.f32 %v9439_v46, %v9383_v45  ;;  %v12043_v49 = vpop.f32.mrb[241].mxu0  ;;  %v9386_v50 = vpop.f32.mrb[238].mxu1 }
0x3bdf   :  { %v9442_v51 = vpop.f32.mrb[242].mxu0  ;;  %v12036_v53 = vpop.f32.mrb[239].mxu1 }
0x3be0   :  { %v9443_v52 = vadd.f32 %v9442_v51, %v9386_v50  ;;  %v12044_v54 = vpop.f32.mrb[243].mxu0 }
0x3be4   :  { %v9502_v55 = vpop.f32.mrb[240].mxu1 }
0x3be5   :  { %v9509_v57 = vadd.f32 %v9502_v55, %v9440_v47  ;;  %v12051_v56 = vpop.f32.mrb[241].mxu1 }
0x3be6   :  { %v9505_v61 = vpop.f32.mrb[242].mxu1 }
0x3be7   :  { %v9518_v38 = vadd.f32 %v10594_v59, %v9509_v57  ;;  %v9510_v23 = vadd.f32 %v9505_v61, %v9443_v52  ;;  %v12052_v63 = vpop.f32.mrb[243].mxu1 }
0x3be9   :  { %9523 = vst.msk [vmem:[#allocation2 + $0x1] sm:$0xff] %vm788_vm1, %v9518_v38  ;;  %v9519_v1 = vadd.f32 %v10594_v59, %v9510_v23 }
0x3beb   :  { %9524 = vst.msk [vmem:[#allocation2 + $0x9] sm:$0xff] %vm788_vm1, %v9519_v1 }
0x3bf0   :  { %v9532_v13 = vld [vmem:[#allocation2 + $0x1] sm:$0xff] }
0x3bf1   :  { %v9525_v28 = vld [vmem:[#allocation2] sm:$0xff] }
0x3bf2   :  { %v9533_v4 = vld [vmem:[#allocation2 + $0x9] sm:$0xff] }
0x3bf3   :  { %v9526_v30 = vld [vmem:[#allocation2 + $0x8] sm:$0xff]  ;;  %v9534_v16 = vpack.c.bf16 %v9533_v4, %v9532_v13 }
0x3bf4   :  { %v9651_v5 = vld [vmem:[#allocation2 + $0x2] sm:$0xff]  ;;  %v9527_v7 = vpack.c.bf16 %v9526_v30, %v9525_v28  ;;  %v9652_v8 = vld [vmem:[#allocation2 + $0xa] sm:$0xff] }
0x3bf5   :  { %9727 = vst.msk [vmem:[#allocation2] sm:$0xff] %vm788_vm1, %v13659_v0  ;;  %9729 = vst.msk [vmem:[#allocation2 + $0x10] sm:$0xff] %vm788_vm1, %v13659_v0  ;;  %12058 = vmatmul.mubr.msk.bf16.vlgmr.msra.gmra.mrb[244].mxu0 %vm788_vm1, %v9534_v16  ;;  %v9653_v10 = vpack.c.bf16 %v9652_v8, %v9651_v5 }
0x3bf6   :  { %9728 = vst.msk [vmem:[#allocation2 + $0x8] sm:$0xff] %vm788_vm1, %v13659_v0  ;;  %12066 = vmatmul.mubr.msk.bf16.vlgmr.msra.gmra.mrb[244].mxu1 %vm788_vm1, %v9527_v7  ;;  %12070 = vmatpush3.bf16.msra.mxu0 %v12480_v29 }
0x3bf7   :  { %12073 = vmatprep.mubr.msk.bf16.mxu0 %vm13661_vm3, %v13659_v0  ;;  %12071 = vmatprep.subr.bf16.mxu0 %v13659_v0 }
0x3bf8   :  { %12081 = vmatprep.mubr.msk.bf16.mxu1 %vm13661_vm3, %v13659_v0  ;;  %12078 = vmatpush3.bf16.msra.mxu1 %v12482_v3 }
0x3bf9   :  { %12079 = vmatprep.subr.bf16.mxu1 %v13659_v0 }
0x3bfa   :  { %12072 = vmatpush3.bf16.msra.mxu0 %v12481_v40 }
0x3bfb   :  { %12085 = vmatprep.subr.bf16.mxu0 %v13659_v0 }
0x3bfc   :  { %12080 = vmatpush3.bf16.msra.mxu1 %v12484_v12 }
0x3bfd   :  { %12074 = vmatmul.mubr.msk.bf16.vlgmr.msra.gmra.mrb[248].mxu0 %vm788_vm1, %v9653_v10  ;;  %12093 = vmatprep.subr.bf16.mxu1 %v13659_v0 }
0x3bfe   :  { %12089 = vmatprep.mubr.msk.bf16.mxu0 %vm13661_vm3, %v13659_v0  ;;  %12086 = vmatpush3.bf16.msra.mxu0 %v12483_v11 }
0x3bff   :  { %12087 = vmatprep.subr.bf16.mxu0 %v13659_v0 }
0x3c02   :  { %12088 = vmatpush3.bf16.msra.mxu0 %v12485_v14 }
0x3cc8   :  { %v9588_v25 = vpop.f32.mrb[244].mxu0 }
0x3cc9   :  { %v9644_v15 = vpop.f32.mrb[244].mxu1  ;;  %v12059_v17 = vpop.f32.mrb[245].mxu0 }
0x3cca   :  { %v9645_v18 = vadd.f32 %v9644_v15, %v9588_v25  ;;  %v12067_v20 = vpop.f32.mrb[245].mxu1  ;;  %v9591_v58 = vpop.f32.mrb[246].mxu0 }
0x3ccb   :  { %v9647_v21 = vpop.f32.mrb[246].mxu1  ;;  %v12060_v24 = vpop.f32.mrb[247].mxu0 }
0x3ccc   :  { %v9648_v22 = vadd.f32 %v9647_v21, %v9591_v58  ;;  %v12068_v26 = vpop.f32.mrb[247].mxu1 }
0x3cd0   :  { %v9707_v19 = vpop.f32.mrb[248].mxu0 }
0x3cd1   :  { %v9714_v2 = vadd.f32 %v9707_v19, %v9645_v18  ;;  %v12075_v60 = vpop.f32.mrb[249].mxu0 }
0x3cd2   :  { %v9710_v31 = vpop.f32.mrb[250].mxu0 }
0x3cd3   :  { %v9723_v33 = vadd.f32 %v10604_v27, %v9714_v2  ;;  %v9715_v34 = vadd.f32 %v9710_v31, %v9648_v22  ;;  %v12076_v6 = vpop.f32.mrb[251].mxu0 }
0x3cd5   :  { %v9725_v62 = vmax.f32 %v9723_v33, 0.0  ;;  %v9724_v9 = vadd.f32 %v10604_v27, %v9715_v34 }
0x3cd7   :  { %9730 = vst.msk [vmem:[#allocation2 + $0x1] sm:$0xff] %vm788_vm1, %v9725_v62  ;;  %v9726_v32 = vmax.f32 %v9724_v9, 0.0 }
0x3cd9   :  { %9731 = vst.msk [vmem:[#allocation2 + $0x9] sm:$0xff] %vm788_vm1, %v9726_v32 }
0x3cde   :  { %v9739_v36 = vld [vmem:[#allocation2 + $0x1] sm:$0xff] }
0x3cdf   :  { %v9732_v41 = vld [vmem:[#allocation2] sm:$0xff] }
0x3ce0   :  { %v9740_v39 = vld [vmem:[#allocation2 + $0x9] sm:$0xff] }
0x3ce1   :  { %v9733_v42 = vld [vmem:[#allocation2 + $0x8] sm:$0xff]  ;;  %v9741_v43 = vpack.c.bf16 %v9740_v39, %v9739_v36 }
0x3ce2   :  { %v9734_v44 = vpack.c.bf16 %v9733_v42, %v9732_v41  ;;  %v9858_v45 = vld [vmem:[#allocation2 + $0x2] sm:$0xff]  ;;  %v9859_v46 = vld [vmem:[#allocation2 + $0xa] sm:$0xff] }
0x3ce3   :  { %12082 = vmatmul.mubr.msk.bf16.vlgmr.msra.gmra.mrb[248].mxu1 %vm788_vm1, %v9741_v43  ;;  %v9860_v47 = vpack.c.bf16 %v9859_v46, %v9858_v45 }
0x3ce4   :  { %12090 = vmatmul.mubr.msk.bf16.vlgmr.msra.gmra.mrb[252].mxu0 %vm788_vm1, %v9734_v44  ;;  %12094 = vmatpush3.bf16.msra.mxu1 %v12486_v37 }
0x3ce5   :  { %12097 = vmatprep.mubr.msk.bf16.mxu1 %vm13661_vm3, %v13659_v0  ;;  %12095 = vmatprep.subr.bf16.mxu1 %v13659_v0 }
0x3ce8   :  { %12096 = vmatpush3.bf16.msra.mxu1 %v12487_v35 }
0x3ceb   :  { %12098 = vmatmul.mubr.msk.bf16.vlgmr.msra.gmra.mrb[252].mxu1 %vm788_vm1, %v9860_v47 }
0x3cec   :  { %13472 = shalt.err (!%p13469_p6)
}
0x3ced   :  { %s13473_s22 = scalar_lea.hbm %s13949_s21, 16 }
0x3cee   :  { %p13474_p7 = scmp.ne.s32.totalorder %s13949_s21, %s13473_s22  ;;  %p13477_p8 = scmp.lt.u32.totalorder %s13473_s22, %s13949_s21 }
0x3cf0   :  { %p13479_p9 = pnand %p13477_p8, %p13474_p7 }
0x3cf2   :  { %13482 = shalt.err (!%p13479_p9)
}
0x3cf3   :  { %9963 = dma.vmem_to_hbm [thread:$0]  %s9961_s15, 16, %s13949_s21, [#allocation5]  }
0x3cf4   :  { %s13483_s3 = scalar_lea.vmem %s9971_s16, 16  ;;  %s13487_s19 = scalar_lea.vmem %s9971_s16, 32 }
0x3cf5   :  { %p13484_p10 = scmp.ne.s32.totalorder %s9971_s16, %s13483_s3  ;;  %p13488_p11 = scmp.lt.s32.totalorder %s9971_s16, %s9971_s16 }
0x3cf6   :  { %p13489_p12 = scmp.lt.s32.totalorder %s13487_s19, %s13483_s3 }
0x3cf8   :  { %p13490_p13 = por %p13489_p12, %p13488_p11 }
0x3cfa   :  { %p13491_p0 = pnand %p13490_p13, %p13484_p10 }
0x3cfc   :  { %13494 = shalt.err (!%p13491_p0)
}
0x3cfd   :  { %s13495_s13 = scalar_lea.hbm %s13954_s4, 16 }
0x3cfe   :  { %p13496_p1 = scmp.ne.s32.totalorder %s13954_s4, %s13495_s13  ;;  %p13499_p2 = scmp.lt.u32.totalorder %s13495_s13, %s13954_s4 }
0x3d00   :  { %p13501_p3 = pnand %p13499_p2, %p13496_p1 }
0x3d02   :  { %13504 = shalt.err (!%p13501_p3)
}
0x3d03   :  { %9973 = dma.vmem_to_hbm [thread:$0]  %s9971_s16, 16, %s13954_s4, [#allocation73]   ;;  %v10622_v56 = vld [vmem:[#allocation68] ss:$0 sm:$0xff] }
0x3db6   :  { %v9795_v0 = vpop.f32.mrb[248].mxu1 }
0x3db7   :  { %v9851_v48 = vpop.f32.mrb[252].mxu0  ;;  %v12083_v50 = vpop.f32.mrb[249].mxu1 }
0x3db8   :  { %v9852_v49 = vadd.f32 %v9851_v48, %v9795_v0  ;;  %v12091_v51 = vpop.f32.mrb[253].mxu0  ;;  %v9798_v52 = vpop.f32.mrb[250].mxu1 }
0x3db9   :  { %v9854_v53 = vpop.f32.mrb[254].mxu0  ;;  %v12084_v55 = vpop.f32.mrb[251].mxu1 }
0x3dba   :  { %v9855_v54 = vadd.f32 %v9854_v53, %v9798_v52  ;;  %v12092_v59 = vpop.f32.mrb[255].mxu0 }
0x3dbe   :  { %v9914_v57 = vpop.f32.mrb[252].mxu1 }
0x3dbf   :  { %v9921_v61 = vadd.f32 %v9914_v57, %v9852_v49  ;;  %v12099_v38 = vpop.f32.mrb[253].mxu1 }
0x3dc0   :  { %v9917_v23 = vpop.f32.mrb[254].mxu1 }
0x3dc1   :  { %v9930_v63 = vadd.f32 %v10622_v56, %v9921_v61  ;;  %v9922_v1 = vadd.f32 %v9917_v23, %v9855_v54  ;;  %v12100_v13 = vpop.f32.mrb[255].mxu1 }
0x3dc3   :  { %10623 = vst.msk [vmem:[%s13944_s12 + $0x10] sm:$0xff] %vm792_vm4, %v9930_v63  ;;  %v9931_v28 = vadd.f32 %v10622_v56, %v9922_v1 }
0x3dc5   :  { %10624 = vst.msk [vmem:[%s13944_s12 + $0x18] sm:$0xff] %vm792_vm4, %v9931_v28 }
0x3dc6   :  { %13551 = dma.done.wait [#allocation5], 16  }
0x3dc7   :  { %13552 = vsyncadd [#allocation5], 4294967280 }
0x3dc8   :  { %13553 = dma.done.wait [#allocation73], 16  }
0x3dc9   :  { %13554 = vsyncadd [#allocation73], 4294967280 }
0x3dca   :  { %9982 = vsyncpa [#allocation4], 1 }
0x3dcb   :  { %9983 = vsyncpa [#allocation7], 1 }
0x3dcc   :  { %9984 = vsyncpa [#allocation10], 1 }
0x3dcd   :  { %9985 = vsyncpa [#allocation13], 1 }
0x3dce   :  { %9986 = vsyncpa [#allocation16], 1 }
0x3dcf   :  { %9987 = vsyncpa [#allocation19], 1 }
0x3dd0   :  { %9988 = vsyncpa [#allocation22], 1 }
0x3dd1   :  { %9989 = vsyncpa [#allocation25], 1 }
0x3dd2   :  { %9990 = vsyncpa [#allocation28], 1 }
0x3dd3   :  { %9991 = vsyncpa [#allocation31], 1 }
0x3dd4   :  { %9992 = vsyncpa [#allocation34], 1 }
0x3dd5   :  { %9993 = vsyncpa [#allocation37], 1 }
0x3dd6   :  { %9994 = vsyncpa [#allocation40], 1 }
0x3dd7   :  { %9995 = vsyncpa [#allocation43], 1 }
0x3dd8   :  { %9996 = vsyncpa [#allocation46], 1 }
0x3dd9   :  { %9997 = vsyncpa [#allocation49], 1 }
0x3dda   :  { %9998 = vsyncpa [#allocation52], 1 }
0x3ddb   :  { %9999 = vsyncpa [#allocation55], 1 }
0x3ddc   :  { %10000 = vsyncpa [#allocation58], 1 }
0x3ddd   :  { %10001 = vsyncpa [#allocation61], 1 }
0x3dde   :  { %10002 = vsyncpa [#allocation64], 1 }
0x3ddf   :  { %10003 = vsyncpa [#allocation67], 1 }
0x3de0   :  { %10004 = vsyncpa [#allocation70], 1 }
0x3de1   :  { %10005 = vsyncpa [#allocation5], 1 }
0x3de2   :  { %10006 = vsyncpa [#allocation73], 1 }

</bundles_post_ra>
